<compile_context>
chip_gen: v5e
topology: v5e:2x2
jax: 0.10.0
libtpu: 0.0.40
codegen_flags: <defaults>
</compile_context>

<pallas_src>
import functools

import jax
import jax.numpy as jnp
from jax import lax
from jax.experimental import pallas as pl
from jax.experimental.pallas import tpu as pltpu


# (dy, dx) input shifts used by the 4-phase decomposition of a
# ConvTranspose2d(k=3, s=2, p=1, output_padding=1).
_DECONV_TAPS = ((0, 0), (0, 1), (1, 0), (1, 1))


def _pick_rows(out_h, out_w, target_m=256):
    """Output-row strip size.

    Keeps the per-step matmul M = rows*out_w around <=256 so the f32 result
    (M x lane-padded n_out) stays well inside the 64-vreg file, while adding
    grid steps for pipelining / megacore sharding.
    """
    if out_h <= 8 or out_h % 8 != 0:
        return out_h
    cands = [d for d in range(8, out_h // 2 + 1, 8)
             if out_h % d == 0 and d * out_w <= target_m]
    return max(cands) if cands else 8


# --------------------------------------------------------------------------
# Pallas kernel: one output row-strip of a stride-1 "VALID" conv expressed as
# (a few) big-K matmuls on an im2col slab built in VMEM.
#   x_ref: (1, Hp, Wp, Cin)        full padded image (resident across strips)
#   w_ref: (G, Kg, n_out)  bf16    flattened weights, one slab per tap group
#   b_ref: (1, n_out)      f32     bias
#   o_ref: (1, rows, out_w, n_out) output strip
# --------------------------------------------------------------------------
def _im2col_matmul_kernel(x_ref, w_ref, b_ref, o_ref, *, rows, out_w, tap_groups):
    cin = x_ref.shape[-1]
    n_out = w_ref.shape[-1]
    m = rows * out_w

    r0 = pl.program_id(1) * rows
    if rows % 8 == 0:
        r0 = pl.multiple_of(r0, 8)

    acc = None
    for gi, group in enumerate(tap_groups):
        # im2col slab for this tap group: channels of the shifted windows are
        # concatenated along the lane dim -> one K = len(group)*Cin matmul
        # instead of len(group) tiny K=Cin matmuls.
        views = [
            x_ref[0, pl.ds(r0 + dy, rows), dx:dx + out_w, :]   # (rows, out_w, cin)
            for dy, dx in group
        ]
        slab = jnp.concatenate(views, axis=-1)                 # (rows, out_w, Kg)
        slab = slab.reshape(m, len(group) * cin)               # free: out_w % 8 == 0
        part = jnp.dot(slab.astype(jnp.bfloat16), w_ref[gi],
                       preferred_element_type=jnp.float32)     # native bf16 MXU pass
        acc = part if acc is None else acc + part

    acc = acc + b_ref[...]                                     # (1, n_out) broadcast
    o_ref[0, :, :, :] = acc.reshape(rows, out_w, n_out).astype(o_ref.dtype)


def _conv_strips_pallas(x_pad, w_groups, bias, *, tap_groups, out_h, out_w, n_out):
    """Run the strip kernel over grid = (batch, row-strips)."""
    N, Hp, Wp, Cin = x_pad.shape
    G, Kg, _ = w_groups.shape
    rows = _pick_rows(out_h, out_w)
    S = out_h // rows

    kernel = functools.partial(
        _im2col_matmul_kernel, rows=rows, out_w=out_w, tap_groups=tap_groups)

    return pl.pallas_call(
        kernel,
        out_shape=jax.ShapeDtypeStruct((N, out_h, out_w, n_out), jnp.float32),
        grid=(N, S),
        in_specs=[
            # Compact padded input: one image per batch step, resident in VMEM
            # while the inner (fastest) strip axis runs.
            pl.BlockSpec((1, Hp, Wp, Cin), lambda n, s: (n, 0, 0, 0)),
            pl.BlockSpec((G, Kg, n_out), lambda n, s: (0, 0, 0)),
            pl.BlockSpec((1, n_out), lambda n, s: (0, 0)),
        ],
        out_specs=pl.BlockSpec((1, rows, out_w, n_out), lambda n, s: (n, s, 0, 0)),
        compiler_params=pltpu.CompilerParams(
            dimension_semantics=("parallel", "parallel"),
            vmem_limit_bytes=32 * 1024 * 1024,   # explicit; well under v7x's 64 MiB
        ),
    )(x_pad.astype(jnp.float32), w_groups, bias)


# --------------------------------------------------------------------------
# Layer wrappers
# --------------------------------------------------------------------------
def _deconv_phase_weight(w_t):
    """Fold ConvTranspose2d(k=3,s=2,p=1,op=1) weights (Cin, Cout, 3, 3) into the
    (4*Cin, 4*Cout) matrix of the 4-phase (sub-pixel) decomposition.

    Row blocks follow the input-shift (view) order _DECONV_TAPS; column blocks
    follow the output-parity order p = 2*ry + rx.  For view (dy, dx) and parity
    (ry, rx) the contributing tap is (ky, kx) = (ry + 1 - 2*dy, rx + 1 - 2*dx),
    zero if out of the 3x3 range.
    """
    cin, cout = w_t.shape[0], w_t.shape[1]
    zero = jnp.zeros((cin, cout), w_t.dtype)
    view_blocks = []
    for dy, dx in _DECONV_TAPS:
        phase_blocks = []
        for ry in (0, 1):
            for rx in (0, 1):
                ky, kx = ry + 1 - 2 * dy, rx + 1 - 2 * dx
                ok = (0 <= ky < 3) and (0 <= kx < 3)
                phase_blocks.append(w_t[:, :, ky, kx] if ok else zero)
            # (Cin, 4*Cout) for this view
        view_blocks.append(jnp.concatenate(phase_blocks, axis=1))
    return jnp.concatenate(view_blocks, axis=0)                 # (4*Cin, 4*Cout)


def deconv_s2_pallas(x_nhwc, w_t, b):
    """ConvTranspose2d(k=3, s=2, p=1, output_padding=1) on NHWC input."""
    N, H, W, _ = x_nhwc.shape
    Cout = w_t.shape[1]
    # Compact input + 1-row/col zero halo (covers output_padding / edge taps).
    xp = jnp.pad(x_nhwc, ((0, 0), (0, 1), (0, 1), (0, 0)))
    wc = _deconv_phase_weight(w_t).astype(jnp.bfloat16)[None]   # (1, 4*Cin, 4*Cout)
    bc = jnp.tile(b.astype(jnp.float32), 4).reshape(1, 4 * Cout)

    yp = _conv_strips_pallas(xp, wc, bc, tap_groups=(_DECONV_TAPS,),
                             out_h=H, out_w=W, n_out=4 * Cout)
    # Interleave the 4 packed parity phases back to (N, 2H, 2W, Cout).
    y = yp.reshape(N, H, W, 2, 2, Cout)
    y = jnp.transpose(y, (0, 1, 3, 2, 4, 5)).reshape(N, 2 * H, 2 * W, Cout)
    return y


def conv5x5_pallas(x_nhwc, w, b):
    """Conv2d(k=5, s=1, p=2); PyTorch weight layout (Cout, Cin, 5, 5)."""
    N, H, W, Cin = x_nhwc.shape
    Cout = w.shape[0]
    xp = jnp.pad(x_nhwc, ((0, 0), (2, 2), (2, 2), (0, 0)))
    # Per-ky tap groups -> 5 matmuls of K = 5*Cin each (fused kx taps).
    tap_groups = tuple(tuple((ky, kx) for kx in range(5)) for ky in range(5))
    wm = jnp.transpose(w, (2, 3, 1, 0)).reshape(5, 5 * Cin, Cout).astype(jnp.bfloat16)
    bm = b.astype(jnp.float32).reshape(1, Cout)
    return _conv_strips_pallas(xp, wm, bm, tap_groups=tap_groups,
                               out_h=H, out_w=W, n_out=Cout)


def reconstructor_forward(x_nchw, params):
    """Full Reconstructor forward. Input/output are NCHW (PyTorch convention)."""
    x = jnp.transpose(x_nchw, (0, 2, 3, 1)).astype(jnp.float32)   # NCHW -> NHWC
    x = deconv_s2_pallas(x, params["w0"], params["b0"])           # (N, 2H, 2W, 2F)
    x = deconv_s2_pallas(x, params["w1"], params["b1"])           # (N, 4H, 4W, F)
    x = conv5x5_pallas(x, params["w2"], params["b2"])             # (N, 4H, 4W, Cch)
    return jnp.transpose(x, (0, 3, 1, 2))                         # NHWC -> NCHW


# --------------------------------------------------------------------------
# Pure-JAX references (lax.conv) for correctness checking.
#   bf16_operands=True applies the same bf16 operand rounding the kernels use,
#   isolating the Pallas decomposition math from the intended bf16 MXU rounding.
# --------------------------------------------------------------------------
def _reference_forward(x_nchw, params, *, bf16_operands):
    if bf16_operands:
        cast = lambda a: a.astype(jnp.bfloat16).astype(jnp.float32)
    else:
        cast = lambda a: a

    def conv_valid(xp, w_hwio, b):
        y = lax.conv_general_dilated(
            cast(xp), cast(w_hwio), (1, 1), "VALID",
            dimension_numbers=("NHWC", "HWIO", "NHWC"),
            precision=lax.Precision.HIGHEST)
        return y + b.reshape(1, 1, 1, -1)

    def deconv(x, w_t, b):
        N, H, W, C = x.shape
        w_hwio = jnp.transpose(w_t[:, :, ::-1, ::-1], (2, 3, 0, 1))
        up = jnp.zeros((N, 2 * H - 1, 2 * W - 1, C), x.dtype)
        up = up.at[:, ::2, ::2, :].set(x)
        return conv_valid(jnp.pad(up, ((0, 0), (1, 2), (1, 2), (0, 0))), w_hwio, b)

    x = jnp.transpose(x_nchw, (0, 2, 3, 1))
    x = deconv(x, params["w0"], params["b0"])
    x = deconv(x, params["w1"], params["b1"])
    x = conv_valid(jnp.pad(x, ((0, 0), (2, 2), (2, 2), (0, 0))),
                   jnp.transpose(params["w2"], (2, 3, 1, 0)), params["b2"])
    return jnp.transpose(x, (0, 3, 1, 2))


# --------------------------------------------------------------------------
# Main: small deterministic config.
#   future_frames=1, past_frames=1 -> related_f=3
#   n_features=4, n_channels=3 -> in_channels = 5*4*3 = 60
# --------------------------------------------------------------------------
if __name__ == "__main__":
    n_feats = 4
    related_f = 3            # future_frames(1) + 1 + past_frames(1)
    n_channels = 3
    c_in = 5 * n_feats * related_f   # 60
    N, H, W = 2, 8, 8

    key = jax.random.PRNGKey(0)
    k = jax.random.split(key, 7)

    params = {
        # ConvTranspose2d weight layout: (Cin, Cout, kH, kW)
        "w0": 0.05 * jax.random.normal(k[0], (c_in, 2 * n_feats, 3, 3), jnp.float32),
        "b0": 0.05 * jax.random.normal(k[1], (2 * n_feats,), jnp.float32),
        "w1": 0.05 * jax.random.normal(k[2], (2 * n_feats, n_feats, 3, 3), jnp.float32),
        "b1": 0.05 * jax.random.normal(k[3], (n_feats,), jnp.float32),
        # Conv2d weight layout: (Cout, Cin, kH, kW)
        "w2": 0.05 * jax.random.normal(k[4], (n_channels, n_feats, 5, 5), jnp.float32),
        "b2": 0.05 * jax.random.normal(k[5], (n_channels,), jnp.float32),
    }
    x = jax.random.normal(k[6], (N, c_in, H, W), jnp.float32)

    out = jax.block_until_ready(jax.jit(reconstructor_forward)(x, params))
    assert out.shape == (N, n_channels, 4 * H, 4 * W), out.shape

    # (1) Same-rounding reference: checks the phase/im2col decomposition math.
    ref_bf16 = jax.block_until_ready(
        jax.jit(functools.partial(_reference_forward, bf16_operands=True))(x, params))
    # (2) Full-precision reference: overall numerical sanity of the bf16 path.
    ref_f32 = jax.block_until_ready(
        jax.jit(functools.partial(_reference_forward, bf16_operands=False))(x, params))

    err_math = float(jnp.max(jnp.abs(out - ref_bf16)))
    err_full = float(jnp.max(jnp.abs(out - ref_f32)))
    if err_math > 1e-3:
        raise AssertionError(
            f"Pallas kernel mismatch vs bf16-matched reference, max abs err {err_math}")
    if err_full > 1e-2:
        raise AssertionError(
            f"Pallas kernel too far from f32 reference, max abs err {err_full}")

    print("KERNEL_OK")
</pallas_src>

<mosaic_0001>
module attributes {stable_mosaic.version = 11 : i64} {
  func.func @_im2col_matmul_kernel(%arg0: i32, %arg1: i32, %arg2: memref<1x9x9x60xf32, #tpu.memory_space<vmem>>, %arg3: memref<1x240x32xbf16, #tpu.memory_space<vmem>>, %arg4: memref<1x32xf32, #tpu.memory_space<vmem>>, %arg5: memref<1x8x8x32xf32, #tpu.memory_space<vmem>>) attributes {dimension_semantics = [#tpu.dimension_semantics<parallel>, #tpu.dimension_semantics<parallel>], iteration_bounds = array<i64: 2, 1>, scalar_prefetch = 0 : i64, scratch_operands = 0 : i64, tpu.core_type = #tpu.core_type<tc>, window_params = [{transform_indices = @transform_0, window_bounds = array<i64: 1, 9, 9, 60>}, {pipeline_mode = #tpu.pipeline_mode<synchronous>, transform_indices = @transform_1, window_bounds = array<i64: 1, 240, 32>}, {pipeline_mode = #tpu.pipeline_mode<synchronous>, transform_indices = @transform_2, window_bounds = array<i64: 1, 32>}, {transform_indices = @transform_3, window_bounds = array<i64: 1, 8, 8, 32>}]} {
    %c8_i32 = arith.constant 8 : i32
    %0 = arith.muli %arg1, %c8_i32 : i32
    %1 = tpu.assume_multiple %0, 8 : i32
    %c0_i32 = arith.constant 0 : i32
    %2 = arith.addi %1, %c0_i32 : i32
    %c0 = arith.constant 0 : index
    %3 = arith.index_cast %2 : i32 to index
    %c0_0 = arith.constant 0 : index
    %c0_1 = arith.constant 0 : index
    %4 = vector.load %arg2[%c0, %3, %c0_0, %c0_1] : memref<1x9x9x60xf32, #tpu.memory_space<vmem>>, vector<1x8x8x60xf32>
    %5 = vector.shape_cast %4 : vector<1x8x8x60xf32> to vector<8x8x60xf32>
    %c0_i32_2 = arith.constant 0 : i32
    %6 = arith.addi %1, %c0_i32_2 : i32
    %c0_3 = arith.constant 0 : index
    %7 = arith.index_cast %6 : i32 to index
    %c1 = arith.constant 1 : index
    %c0_4 = arith.constant 0 : index
    %8 = vector.load %arg2[%c0_3, %7, %c1, %c0_4] : memref<1x9x9x60xf32, #tpu.memory_space<vmem>>, vector<1x8x8x60xf32>
    %9 = vector.shape_cast %8 : vector<1x8x8x60xf32> to vector<8x8x60xf32>
    %c1_i32 = arith.constant 1 : i32
    %10 = arith.addi %1, %c1_i32 : i32
    %c0_5 = arith.constant 0 : index
    %11 = arith.index_cast %10 : i32 to index
    %c0_6 = arith.constant 0 : index
    %c0_7 = arith.constant 0 : index
    %12 = vector.load %arg2[%c0_5, %11, %c0_6, %c0_7] : memref<1x9x9x60xf32, #tpu.memory_space<vmem>>, vector<1x8x8x60xf32>
    %13 = vector.shape_cast %12 : vector<1x8x8x60xf32> to vector<8x8x60xf32>
    %c1_i32_8 = arith.constant 1 : i32
    %14 = arith.addi %1, %c1_i32_8 : i32
    %c0_9 = arith.constant 0 : index
    %15 = arith.index_cast %14 : i32 to index
    %c1_10 = arith.constant 1 : index
    %c0_11 = arith.constant 0 : index
    %16 = vector.load %arg2[%c0_9, %15, %c1_10, %c0_11] : memref<1x9x9x60xf32, #tpu.memory_space<vmem>>, vector<1x8x8x60xf32>
    %17 = vector.shape_cast %16 : vector<1x8x8x60xf32> to vector<8x8x60xf32>
    %18 = tpu.concatenate %5, %9, %13, %17 in 2 : vector<8x8x60xf32>, vector<8x8x60xf32>, vector<8x8x60xf32>, vector<8x8x60xf32> -> vector<8x8x240xf32>
    %19 = vector.shape_cast %18 : vector<8x8x240xf32> to vector<64x240xf32>
    %20 = arith.truncf %19 : vector<64x240xf32> to vector<64x240xbf16>
    %c0_12 = arith.constant 0 : index
    %c0_13 = arith.constant 0 : index
    %c0_14 = arith.constant 0 : index
    %21 = vector.load %arg3[%c0_12, %c0_13, %c0_14] : memref<1x240x32xbf16, #tpu.memory_space<vmem>>, vector<1x240x32xbf16>
    %22 = vector.shape_cast %21 : vector<1x240x32xbf16> to vector<240x32xbf16>
    %cst = arith.constant dense<0.000000e+00> : vector<64x32xf32>
    %23 = tpu.matmul %20, %22, %cst {dimension_numbers = #tpu.dot_dimension_numbers<[1], [0], [0], [1], [0, 0, 1, 1], [], []>} : vector<64x240xbf16>, vector<240x32xbf16>, vector<64x32xf32> -> vector<64x32xf32>
    %c0_15 = arith.constant 0 : index
    %c0_16 = arith.constant 0 : index
    %24 = vector.load %arg4[%c0_15, %c0_16] : memref<1x32xf32, #tpu.memory_space<vmem>>, vector<1x32xf32>
    %25 = vector.broadcast %24 : vector<1x32xf32> to vector<64x32xf32>
    %26 = arith.addf %23, %25 : vector<64x32xf32>
    %27 = vector.shape_cast %26 : vector<64x32xf32> to vector<8x8x32xf32>
    %c0_17 = arith.constant 0 : index
    %c0_18 = arith.constant 0 : index
    %c0_19 = arith.constant 0 : index
    %c0_20 = arith.constant 0 : index
    %28 = vector.load %arg5[%c0_17, %c0_18, %c0_19, %c0_20] : memref<1x8x8x32xf32, #tpu.memory_space<vmem>>, vector<1x8x8x32xf32>
    %29 = vector.shape_cast %28 : vector<1x8x8x32xf32> to vector<8x8x32xf32>
    %30 = vector.shape_cast %27 : vector<8x8x32xf32> to vector<1x8x8x32xf32>
    tpu.vector_store %arg5[%c0_17, %c0_18, %c0_19, %c0_20], %30 {strides = array<i32>} : memref<1x8x8x32xf32, #tpu.memory_space<vmem>>, vector<1x8x8x32xf32>,
    return
  }
  func.func @transform_0(%arg0: i32, %arg1: i32) -> (i32, i32, i32, i32) {
    %c0_i32 = arith.constant 0 : i32
    %c0_i32_0 = arith.constant 0 : i32
    %c0_i32_1 = arith.constant 0 : i32
    %c0_i32_2 = arith.constant 0 : i32
    return %arg0, %c0_i32, %c0_i32_0, %c0_i32_1 : i32, i32, i32, i32
  }
  func.func @transform_1(%arg0: i32, %arg1: i32) -> (i32, i32, i32) {
    %c0_i32 = arith.constant 0 : i32
    %c0_i32_0 = arith.constant 0 : i32
    %c0_i32_1 = arith.constant 0 : i32
    %c0_i32_2 = arith.constant 0 : i32
    return %c0_i32, %c0_i32_0, %c0_i32_1 : i32, i32, i32
  }
  func.func @transform_2(%arg0: i32, %arg1: i32) -> (i32, i32) {
    %c0_i32 = arith.constant 0 : i32
    %c0_i32_0 = arith.constant 0 : i32
    %c0_i32_1 = arith.constant 0 : i32
    return %c0_i32, %c0_i32_0 : i32, i32
  }
  func.func @transform_3(%arg0: i32, %arg1: i32) -> (i32, i32, i32, i32) {
    %c0_i32 = arith.constant 0 : i32
    %c0_i32_0 = arith.constant 0 : i32
    %c0_i32_1 = arith.constant 0 : i32
    return %arg0, %arg1, %c0_i32, %c0_i32_0 : i32, i32, i32, i32
  }
}

module attributes {stable_mosaic.version = 11 : i64} {
  func.func @_im2col_matmul_kernel(%arg0: i32, %arg1: i32, %arg2: memref<1x17x17x8xf32, #tpu.memory_space<vmem>>, %arg3: memref<1x32x16xbf16, #tpu.memory_space<vmem>>, %arg4: memref<1x16xf32, #tpu.memory_space<vmem>>, %arg5: memref<1x8x16x16xf32, #tpu.memory_space<vmem>>) attributes {dimension_semantics = [#tpu.dimension_semantics<parallel>, #tpu.dimension_semantics<parallel>], iteration_bounds = array<i64: 2, 2>, scalar_prefetch = 0 : i64, scratch_operands = 0 : i64, tpu.core_type = #tpu.core_type<tc>, window_params = [{transform_indices = @transform_0, window_bounds = array<i64: 1, 17, 17, 8>}, {pipeline_mode = #tpu.pipeline_mode<synchronous>, transform_indices = @transform_1, window_bounds = array<i64: 1, 32, 16>}, {pipeline_mode = #tpu.pipeline_mode<synchronous>, transform_indices = @transform_2, window_bounds = array<i64: 1, 16>}, {transform_indices = @transform_3, window_bounds = array<i64: 1, 8, 16, 16>}]} {
    %c8_i32 = arith.constant 8 : i32
    %0 = arith.muli %arg1, %c8_i32 : i32
    %1 = tpu.assume_multiple %0, 8 : i32
    %c0_i32 = arith.constant 0 : i32
    %2 = arith.addi %1, %c0_i32 : i32
    %c0 = arith.constant 0 : index
    %3 = arith.index_cast %2 : i32 to index
    %c0_0 = arith.constant 0 : index
    %c0_1 = arith.constant 0 : index
    %4 = vector.load %arg2[%c0, %3, %c0_0, %c0_1] : memref<1x17x17x8xf32, #tpu.memory_space<vmem>>, vector<1x8x16x8xf32>
    %5 = vector.shape_cast %4 : vector<1x8x16x8xf32> to vector<8x16x8xf32>
    %c0_i32_2 = arith.constant 0 : i32
    %6 = arith.addi %1, %c0_i32_2 : i32
    %c0_3 = arith.constant 0 : index
    %7 = arith.index_cast %6 : i32 to index
    %c1 = arith.constant 1 : index
    %c0_4 = arith.constant 0 : index
    %8 = vector.load %arg2[%c0_3, %7, %c1, %c0_4] : memref<1x17x17x8xf32, #tpu.memory_space<vmem>>, vector<1x8x16x8xf32>
    %9 = vector.shape_cast %8 : vector<1x8x16x8xf32> to vector<8x16x8xf32>
    %c1_i32 = arith.constant 1 : i32
    %10 = arith.addi %1, %c1_i32 : i32
    %c0_5 = arith.constant 0 : index
    %11 = arith.index_cast %10 : i32 to index
    %c0_6 = arith.constant 0 : index
    %c0_7 = arith.constant 0 : index
    %12 = vector.load %arg2[%c0_5, %11, %c0_6, %c0_7] : memref<1x17x17x8xf32, #tpu.memory_space<vmem>>, vector<1x8x16x8xf32>
    %13 = vector.shape_cast %12 : vector<1x8x16x8xf32> to vector<8x16x8xf32>
    %c1_i32_8 = arith.constant 1 : i32
    %14 = arith.addi %1, %c1_i32_8 : i32
    %c0_9 = arith.constant 0 : index
    %15 = arith.index_cast %14 : i32 to index
    %c1_10 = arith.constant 1 : index
    %c0_11 = arith.constant 0 : index
    %16 = vector.load %arg2[%c0_9, %15, %c1_10, %c0_11] : memref<1x17x17x8xf32, #tpu.memory_space<vmem>>, vector<1x8x16x8xf32>
    %17 = vector.shape_cast %16 : vector<1x8x16x8xf32> to vector<8x16x8xf32>
    %18 = tpu.concatenate %5, %9, %13, %17 in 2 : vector<8x16x8xf32>, vector<8x16x8xf32>, vector<8x16x8xf32>, vector<8x16x8xf32> -> vector<8x16x32xf32>
    %19 = vector.shape_cast %18 : vector<8x16x32xf32> to vector<128x32xf32>
    %20 = arith.truncf %19 : vector<128x32xf32> to vector<128x32xbf16>
    %c0_12 = arith.constant 0 : index
    %c0_13 = arith.constant 0 : index
    %c0_14 = arith.constant 0 : index
    %21 = vector.load %arg3[%c0_12, %c0_13, %c0_14] : memref<1x32x16xbf16, #tpu.memory_space<vmem>>, vector<1x32x16xbf16>
    %22 = vector.shape_cast %21 : vector<1x32x16xbf16> to vector<32x16xbf16>
    %cst = arith.constant dense<0.000000e+00> : vector<128x16xf32>
    %23 = tpu.matmul %20, %22, %cst {dimension_numbers = #tpu.dot_dimension_numbers<[1], [0], [0], [1], [0, 0, 1, 1], [], []>} : vector<128x32xbf16>, vector<32x16xbf16>, vector<128x16xf32> -> vector<128x16xf32>
    %c0_15 = arith.constant 0 : index
    %c0_16 = arith.constant 0 : index
    %24 = vector.load %arg4[%c0_15, %c0_16] : memref<1x16xf32, #tpu.memory_space<vmem>>, vector<1x16xf32>
    %25 = vector.broadcast %24 : vector<1x16xf32> to vector<128x16xf32>
    %26 = arith.addf %23, %25 : vector<128x16xf32>
    %27 = vector.shape_cast %26 : vector<128x16xf32> to vector<8x16x16xf32>
    %c0_17 = arith.constant 0 : index
    %c0_18 = arith.constant 0 : index
    %c0_19 = arith.constant 0 : index
    %c0_20 = arith.constant 0 : index
    %28 = vector.load %arg5[%c0_17, %c0_18, %c0_19, %c0_20] : memref<1x8x16x16xf32, #tpu.memory_space<vmem>>, vector<1x8x16x16xf32>
    %29 = vector.shape_cast %28 : vector<1x8x16x16xf32> to vector<8x16x16xf32>
    %30 = vector.shape_cast %27 : vector<8x16x16xf32> to vector<1x8x16x16xf32>
    tpu.vector_store %arg5[%c0_17, %c0_18, %c0_19, %c0_20], %30 {strides = array<i32>} : memref<1x8x16x16xf32, #tpu.memory_space<vmem>>, vector<1x8x16x16xf32>,
    return
  }
  func.func @transform_0(%arg0: i32, %arg1: i32) -> (i32, i32, i32, i32) {
    %c0_i32 = arith.constant 0 : i32
    %c0_i32_0 = arith.constant 0 : i32
    %c0_i32_1 = arith.constant 0 : i32
    %c0_i32_2 = arith.constant 0 : i32
    return %arg0, %c0_i32, %c0_i32_0, %c0_i32_1 : i32, i32, i32, i32
  }
  func.func @transform_1(%arg0: i32, %arg1: i32) -> (i32, i32, i32) {
    %c0_i32 = arith.constant 0 : i32
    %c0_i32_0 = arith.constant 0 : i32
    %c0_i32_1 = arith.constant 0 : i32
    %c0_i32_2 = arith.constant 0 : i32
    return %c0_i32, %c0_i32_0, %c0_i32_1 : i32, i32, i32
  }
  func.func @transform_2(%arg0: i32, %arg1: i32) -> (i32, i32) {
    %c0_i32 = arith.constant 0 : i32
    %c0_i32_0 = arith.constant 0 : i32
    %c0_i32_1 = arith.constant 0 : i32
    return %c0_i32, %c0_i32_0 : i32, i32
  }
  func.func @transform_3(%arg0: i32, %arg1: i32) -> (i32, i32, i32, i32) {
    %c0_i32 = arith.constant 0 : i32
    %c0_i32_0 = arith.constant 0 : i32
    %c0_i32_1 = arith.constant 0 : i32
    return %arg0, %arg1, %c0_i32, %c0_i32_0 : i32, i32, i32, i32
  }
}

module attributes {stable_mosaic.version = 11 : i64} {
  func.func @_im2col_matmul_kernel(%arg0: i32, %arg1: i32, %arg2: memref<1x36x36x4xf32, #tpu.memory_space<vmem>>, %arg3: memref<5x20x3xbf16, #tpu.memory_space<vmem>>, %arg4: memref<1x3xf32, #tpu.memory_space<vmem>>, %arg5: memref<1x8x32x3xf32, #tpu.memory_space<vmem>>) attributes {dimension_semantics = [#tpu.dimension_semantics<parallel>, #tpu.dimension_semantics<parallel>], iteration_bounds = array<i64: 2, 4>, scalar_prefetch = 0 : i64, scratch_operands = 0 : i64, tpu.core_type = #tpu.core_type<tc>, window_params = [{transform_indices = @transform_0, window_bounds = array<i64: 1, 36, 36, 4>}, {pipeline_mode = #tpu.pipeline_mode<synchronous>, transform_indices = @transform_1, window_bounds = array<i64: 5, 20, 3>}, {pipeline_mode = #tpu.pipeline_mode<synchronous>, transform_indices = @transform_2, window_bounds = array<i64: 1, 3>}, {transform_indices = @transform_3, window_bounds = array<i64: 1, 8, 32, 3>}]} {
    %c8_i32 = arith.constant 8 : i32
    %0 = arith.muli %arg1, %c8_i32 : i32
    %1 = tpu.assume_multiple %0, 8 : i32
    %c0_i32 = arith.constant 0 : i32
    %2 = arith.addi %1, %c0_i32 : i32
    %c0 = arith.constant 0 : index
    %3 = arith.index_cast %2 : i32 to index
    %c0_0 = arith.constant 0 : index
    %c0_1 = arith.constant 0 : index
    %4 = vector.load %arg2[%c0, %3, %c0_0, %c0_1] : memref<1x36x36x4xf32, #tpu.memory_space<vmem>>, vector<1x8x32x4xf32>
    %5 = vector.shape_cast %4 : vector<1x8x32x4xf32> to vector<8x32x4xf32>
    %c0_i32_2 = arith.constant 0 : i32
    %6 = arith.addi %1, %c0_i32_2 : i32
    %c0_3 = arith.constant 0 : index
    %7 = arith.index_cast %6 : i32 to index
    %c1 = arith.constant 1 : index
    %c0_4 = arith.constant 0 : index
    %8 = vector.load %arg2[%c0_3, %7, %c1, %c0_4] : memref<1x36x36x4xf32, #tpu.memory_space<vmem>>, vector<1x8x32x4xf32>
    %9 = vector.shape_cast %8 : vector<1x8x32x4xf32> to vector<8x32x4xf32>
    %c0_i32_5 = arith.constant 0 : i32
    %10 = arith.addi %1, %c0_i32_5 : i32
    %c0_6 = arith.constant 0 : index
    %11 = arith.index_cast %10 : i32 to index
    %c2 = arith.constant 2 : index
    %c0_7 = arith.constant 0 : index
    %12 = vector.load %arg2[%c0_6, %11, %c2, %c0_7] : memref<1x36x36x4xf32, #tpu.memory_space<vmem>>, vector<1x8x32x4xf32>
    %13 = vector.shape_cast %12 : vector<1x8x32x4xf32> to vector<8x32x4xf32>
    %c0_i32_8 = arith.constant 0 : i32
    %14 = arith.addi %1, %c0_i32_8 : i32
    %c0_9 = arith.constant 0 : index
    %15 = arith.index_cast %14 : i32 to index
    %c3 = arith.constant 3 : index
    %c0_10 = arith.constant 0 : index
    %16 = vector.load %arg2[%c0_9, %15, %c3, %c0_10] : memref<1x36x36x4xf32, #tpu.memory_space<vmem>>, vector<1x8x32x4xf32>
    %17 = vector.shape_cast %16 : vector<1x8x32x4xf32> to vector<8x32x4xf32>
    %c0_i32_11 = arith.constant 0 : i32
    %18 = arith.addi %1, %c0_i32_11 : i32
    %c0_12 = arith.constant 0 : index
    %19 = arith.index_cast %18 : i32 to index
    %c4 = arith.constant 4 : index
    %c0_13 = arith.constant 0 : index
    %20 = vector.load %arg2[%c0_12, %19, %c4, %c0_13] : memref<1x36x36x4xf32, #tpu.memory_space<vmem>>, vector<1x8x32x4xf32>
    %21 = vector.shape_cast %20 : vector<1x8x32x4xf32> to vector<8x32x4xf32>
    %22 = tpu.concatenate %5, %9, %13, %17, %21 in 2 : vector<8x32x4xf32>, vector<8x32x4xf32>, vector<8x32x4xf32>, vector<8x32x4xf32>, vector<8x32x4xf32> -> vector<8x32x20xf32>
    %23 = vector.shape_cast %22 : vector<8x32x20xf32> to vector<256x20xf32>
    %24 = arith.truncf %23 : vector<256x20xf32> to vector<256x20xbf16>
    %c0_14 = arith.constant 0 : index
    %c0_15 = arith.constant 0 : index
    %c0_16 = arith.constant 0 : index
    %25 = vector.load %arg3[%c0_14, %c0_15, %c0_16] : memref<5x20x3xbf16, #tpu.memory_space<vmem>>, vector<1x20x3xbf16>
    %26 = vector.shape_cast %25 : vector<1x20x3xbf16> to vector<20x3xbf16>
    %cst = arith.constant dense<0.000000e+00> : vector<256x3xf32>
    %27 = tpu.matmul %24, %26, %cst {dimension_numbers = #tpu.dot_dimension_numbers<[1], [0], [0], [1], [0, 0, 1, 1], [], []>} : vector<256x20xbf16>, vector<20x3xbf16>, vector<256x3xf32> -> vector<256x3xf32>
    %c1_i32 = arith.constant 1 : i32
    %28 = arith.addi %1, %c1_i32 : i32
    %c0_17 = arith.constant 0 : index
    %29 = arith.index_cast %28 : i32 to index
    %c0_18 = arith.constant 0 : index
    %c0_19 = arith.constant 0 : index
    %30 = vector.load %arg2[%c0_17, %29, %c0_18, %c0_19] : memref<1x36x36x4xf32, #tpu.memory_space<vmem>>, vector<1x8x32x4xf32>
    %31 = vector.shape_cast %30 : vector<1x8x32x4xf32> to vector<8x32x4xf32>
    %c1_i32_20 = arith.constant 1 : i32
    %32 = arith.addi %1, %c1_i32_20 : i32
    %c0_21 = arith.constant 0 : index
    %33 = arith.index_cast %32 : i32 to index
    %c1_22 = arith.constant 1 : index
    %c0_23 = arith.constant 0 : index
    %34 = vector.load %arg2[%c0_21, %33, %c1_22, %c0_23] : memref<1x36x36x4xf32, #tpu.memory_space<vmem>>, vector<1x8x32x4xf32>
    %35 = vector.shape_cast %34 : vector<1x8x32x4xf32> to vector<8x32x4xf32>
    %c1_i32_24 = arith.constant 1 : i32
    %36 = arith.addi %1, %c1_i32_24 : i32
    %c0_25 = arith.constant 0 : index
    %37 = arith.index_cast %36 : i32 to index
    %c2_26 = arith.constant 2 : index
    %c0_27 = arith.constant 0 : index
    %38 = vector.load %arg2[%c0_25, %37, %c2_26, %c0_27] : memref<1x36x36x4xf32, #tpu.memory_space<vmem>>, vector<1x8x32x4xf32>
    %39 = vector.shape_cast %38 : vector<1x8x32x4xf32> to vector<8x32x4xf32>
    %c1_i32_28 = arith.constant 1 : i32
    %40 = arith.addi %1, %c1_i32_28 : i32
    %c0_29 = arith.constant 0 : index
    %41 = arith.index_cast %40 : i32 to index
    %c3_30 = arith.constant 3 : index
    %c0_31 = arith.constant 0 : index
    %42 = vector.load %arg2[%c0_29, %41, %c3_30, %c0_31] : memref<1x36x36x4xf32, #tpu.memory_space<vmem>>, vector<1x8x32x4xf32>
    %43 = vector.shape_cast %42 : vector<1x8x32x4xf32> to vector<8x32x4xf32>
    %c1_i32_32 = arith.constant 1 : i32
    %44 = arith.addi %1, %c1_i32_32 : i32
    %c0_33 = arith.constant 0 : index
    %45 = arith.index_cast %44 : i32 to index
    %c4_34 = arith.constant 4 : index
    %c0_35 = arith.constant 0 : index
    %46 = vector.load %arg2[%c0_33, %45, %c4_34, %c0_35] : memref<1x36x36x4xf32, #tpu.memory_space<vmem>>, vector<1x8x32x4xf32>
    %47 = vector.shape_cast %46 : vector<1x8x32x4xf32> to vector<8x32x4xf32>
    %48 = tpu.concatenate %31, %35, %39, %43, %47 in 2 : vector<8x32x4xf32>, vector<8x32x4xf32>, vector<8x32x4xf32>, vector<8x32x4xf32>, vector<8x32x4xf32> -> vector<8x32x20xf32>
    %49 = vector.shape_cast %48 : vector<8x32x20xf32> to vector<256x20xf32>
    %50 = arith.truncf %49 : vector<256x20xf32> to vector<256x20xbf16>
    %c1_36 = arith.constant 1 : index
    %c0_37 = arith.constant 0 : index
    %c0_38 = arith.constant 0 : index
    %51 = vector.load %arg3[%c1_36, %c0_37, %c0_38] : memref<5x20x3xbf16, #tpu.memory_space<vmem>>, vector<1x20x3xbf16>
    %52 = vector.shape_cast %51 : vector<1x20x3xbf16> to vector<20x3xbf16>
    %cst_39 = arith.constant dense<0.000000e+00> : vector<256x3xf32>
    %53 = tpu.matmul %50, %52, %cst_39 {dimension_numbers = #tpu.dot_dimension_numbers<[1], [0], [0], [1], [0, 0, 1, 1], [], []>} : vector<256x20xbf16>, vector<20x3xbf16>, vector<256x3xf32> -> vector<256x3xf32>
    %54 = arith.addf %27, %53 : vector<256x3xf32>
    %c2_i32 = arith.constant 2 : i32
    %55 = arith.addi %1, %c2_i32 : i32
    %c0_40 = arith.constant 0 : index
    %56 = arith.index_cast %55 : i32 to index
    %c0_41 = arith.constant 0 : index
    %c0_42 = arith.constant 0 : index
    %57 = vector.load %arg2[%c0_40, %56, %c0_41, %c0_42] : memref<1x36x36x4xf32, #tpu.memory_space<vmem>>, vector<1x8x32x4xf32>
    %58 = vector.shape_cast %57 : vector<1x8x32x4xf32> to vector<8x32x4xf32>
    %c2_i32_43 = arith.constant 2 : i32
    %59 = arith.addi %1, %c2_i32_43 : i32
    %c0_44 = arith.constant 0 : index
    %60 = arith.index_cast %59 : i32 to index
    %c1_45 = arith.constant 1 : index
    %c0_46 = arith.constant 0 : index
    %61 = vector.load %arg2[%c0_44, %60, %c1_45, %c0_46] : memref<1x36x36x4xf32, #tpu.memory_space<vmem>>, vector<1x8x32x4xf32>
    %62 = vector.shape_cast %61 : vector<1x8x32x4xf32> to vector<8x32x4xf32>
    %c2_i32_47 = arith.constant 2 : i32
    %63 = arith.addi %1, %c2_i32_47 : i32
    %c0_48 = arith.constant 0 : index
    %64 = arith.index_cast %63 : i32 to index
    %c2_49 = arith.constant 2 : index
    %c0_50 = arith.constant 0 : index
    %65 = vector.load %arg2[%c0_48, %64, %c2_49, %c0_50] : memref<1x36x36x4xf32, #tpu.memory_space<vmem>>, vector<1x8x32x4xf32>
    %66 = vector.shape_cast %65 : vector<1x8x32x4xf32> to vector<8x32x4xf32>
    %c2_i32_51 = arith.constant 2 : i32
    %67 = arith.addi %1, %c2_i32_51 : i32
    %c0_52 = arith.constant 0 : index
    %68 = arith.index_cast %67 : i32 to index
    %c3_53 = arith.constant 3 : index
    %c0_54 = arith.constant 0 : index
    %69 = vector.load %arg2[%c0_52, %68, %c3_53, %c0_54] : memref<1x36x36x4xf32, #tpu.memory_space<vmem>>, vector<1x8x32x4xf32>
    %70 = vector.shape_cast %69 : vector<1x8x32x4xf32> to vector<8x32x4xf32>
    %c2_i32_55 = arith.constant 2 : i32
    %71 = arith.addi %1, %c2_i32_55 : i32
    %c0_56 = arith.constant 0 : index
    %72 = arith.index_cast %71 : i32 to index
    %c4_57 = arith.constant 4 : index
    %c0_58 = arith.constant 0 : index
    %73 = vector.load %arg2[%c0_56, %72, %c4_57, %c0_58] : memref<1x36x36x4xf32, #tpu.memory_space<vmem>>, vector<1x8x32x4xf32>
    %74 = vector.shape_cast %73 : vector<1x8x32x4xf32> to vector<8x32x4xf32>
    %75 = tpu.concatenate %58, %62, %66, %70, %74 in 2 : vector<8x32x4xf32>, vector<8x32x4xf32>, vector<8x32x4xf32>, vector<8x32x4xf32>, vector<8x32x4xf32> -> vector<8x32x20xf32>
    %76 = vector.shape_cast %75 : vector<8x32x20xf32> to vector<256x20xf32>
    %77 = arith.truncf %76 : vector<256x20xf32> to vector<256x20xbf16>
    %c2_59 = arith.constant 2 : index
    %c0_60 = arith.constant 0 : index
    %c0_61 = arith.constant 0 : index
    %78 = vector.load %arg3[%c2_59, %c0_60, %c0_61] : memref<5x20x3xbf16, #tpu.memory_space<vmem>>, vector<1x20x3xbf16>
    %79 = vector.shape_cast %78 : vector<1x20x3xbf16> to vector<20x3xbf16>
    %cst_62 = arith.constant dense<0.000000e+00> : vector<256x3xf32>
    %80 = tpu.matmul %77, %79, %cst_62 {dimension_numbers = #tpu.dot_dimension_numbers<[1], [0], [0], [1], [0, 0, 1, 1], [], []>} : vector<256x20xbf16>, vector<20x3xbf16>, vector<256x3xf32> -> vector<256x3xf32>
    %81 = arith.addf %54, %80 : vector<256x3xf32>
    %c3_i32 = arith.constant 3 : i32
    %82 = arith.addi %1, %c3_i32 : i32
    %c0_63 = arith.constant 0 : index
    %83 = arith.index_cast %82 : i32 to index
    %c0_64 = arith.constant 0 : index
    %c0_65 = arith.constant 0 : index
    %84 = vector.load %arg2[%c0_63, %83, %c0_64, %c0_65] : memref<1x36x36x4xf32, #tpu.memory_space<vmem>>, vector<1x8x32x4xf32>
    %85 = vector.shape_cast %84 : vector<1x8x32x4xf32> to vector<8x32x4xf32>
    %c3_i32_66 = arith.constant 3 : i32
    %86 = arith.addi %1, %c3_i32_66 : i32
    %c0_67 = arith.constant 0 : index
    %87 = arith.index_cast %86 : i32 to index
    %c1_68 = arith.constant 1 : index
    %c0_69 = arith.constant 0 : index
    %88 = vector.load %arg2[%c0_67, %87, %c1_68, %c0_69] : memref<1x36x36x4xf32, #tpu.memory_space<vmem>>, vector<1x8x32x4xf32>
    %89 = vector.shape_cast %88 : vector<1x8x32x4xf32> to vector<8x32x4xf32>
    %c3_i32_70 = arith.constant 3 : i32
    %90 = arith.addi %1, %c3_i32_70 : i32
    %c0_71 = arith.constant 0 : index
    %91 = arith.index_cast %90 : i32 to index
    %c2_72 = arith.constant 2 : index
    %c0_73 = arith.constant 0 : index
    %92 = vector.load %arg2[%c0_71, %91, %c2_72, %c0_73] : memref<1x36x36x4xf32, #tpu.memory_space<vmem>>, vector<1x8x32x4xf32>
    %93 = vector.shape_cast %92 : vector<1x8x32x4xf32> to vector<8x32x4xf32>
    %c3_i32_74 = arith.constant 3 : i32
    %94 = arith.addi %1, %c3_i32_74 : i32
    %c0_75 = arith.constant 0 : index
    %95 = arith.index_cast %94 : i32 to index
    %c3_76 = arith.constant 3 : index
    %c0_77 = arith.constant 0 : index
    %96 = vector.load %arg2[%c0_75, %95, %c3_76, %c0_77] : memref<1x36x36x4xf32, #tpu.memory_space<vmem>>, vector<1x8x32x4xf32>
    %97 = vector.shape_cast %96 : vector<1x8x32x4xf32> to vector<8x32x4xf32>
    %c3_i32_78 = arith.constant 3 : i32
    %98 = arith.addi %1, %c3_i32_78 : i32
    %c0_79 = arith.constant 0 : index
    %99 = arith.index_cast %98 : i32 to index
    %c4_80 = arith.constant 4 : index
    %c0_81 = arith.constant 0 : index
    %100 = vector.load %arg2[%c0_79, %99, %c4_80, %c0_81] : memref<1x36x36x4xf32, #tpu.memory_space<vmem>>, vector<1x8x32x4xf32>
    %101 = vector.shape_cast %100 : vector<1x8x32x4xf32> to vector<8x32x4xf32>
    %102 = tpu.concatenate %85, %89, %93, %97, %101 in 2 : vector<8x32x4xf32>, vector<8x32x4xf32>, vector<8x32x4xf32>, vector<8x32x4xf32>, vector<8x32x4xf32> -> vector<8x32x20xf32>
    %103 = vector.shape_cast %102 : vector<8x32x20xf32> to vector<256x20xf32>
    %104 = arith.truncf %103 : vector<256x20xf32> to vector<256x20xbf16>
    %c3_82 = arith.constant 3 : index
    %c0_83 = arith.constant 0 : index
    %c0_84 = arith.constant 0 : index
    %105 = vector.load %arg3[%c3_82, %c0_83, %c0_84] : memref<5x20x3xbf16, #tpu.memory_space<vmem>>, vector<1x20x3xbf16>
    %106 = vector.shape_cast %105 : vector<1x20x3xbf16> to vector<20x3xbf16>
    %cst_85 = arith.constant dense<0.000000e+00> : vector<256x3xf32>
    %107 = tpu.matmul %104, %106, %cst_85 {dimension_numbers = #tpu.dot_dimension_numbers<[1], [0], [0], [1], [0, 0, 1, 1], [], []>} : vector<256x20xbf16>, vector<20x3xbf16>, vector<256x3xf32> -> vector<256x3xf32>
    %108 = arith.addf %81, %107 : vector<256x3xf32>
    %c4_i32 = arith.constant 4 : i32
    %109 = arith.addi %1, %c4_i32 : i32
    %c0_86 = arith.constant 0 : index
    %110 = arith.index_cast %109 : i32 to index
    %c0_87 = arith.constant 0 : index
    %c0_88 = arith.constant 0 : index
    %111 = vector.load %arg2[%c0_86, %110, %c0_87, %c0_88] : memref<1x36x36x4xf32, #tpu.memory_space<vmem>>, vector<1x8x32x4xf32>
    %112 = vector.shape_cast %111 : vector<1x8x32x4xf32> to vector<8x32x4xf32>
    %c4_i32_89 = arith.constant 4 : i32
    %113 = arith.addi %1, %c4_i32_89 : i32
    %c0_90 = arith.constant 0 : index
    %114 = arith.index_cast %113 : i32 to index
    %c1_91 = arith.constant 1 : index
    %c0_92 = arith.constant 0 : index
    %115 = vector.load %arg2[%c0_90, %114, %c1_91, %c0_92] : memref<1x36x36x4xf32, #tpu.memory_space<vmem>>, vector<1x8x32x4xf32>
    %116 = vector.shape_cast %115 : vector<1x8x32x4xf32> to vector<8x32x4xf32>
    %c4_i32_93 = arith.constant 4 : i32
    %117 = arith.addi %1, %c4_i32_93 : i32
    %c0_94 = arith.constant 0 : index
    %118 = arith.index_cast %117 : i32 to index
    %c2_95 = arith.constant 2 : index
    %c0_96 = arith.constant 0 : index
    %119 = vector.load %arg2[%c0_94, %118, %c2_95, %c0_96] : memref<1x36x36x4xf32, #tpu.memory_space<vmem>>, vector<1x8x32x4xf32>
    %120 = vector.shape_cast %119 : vector<1x8x32x4xf32> to vector<8x32x4xf32>
    %c4_i32_97 = arith.constant 4 : i32
    %121 = arith.addi %1, %c4_i32_97 : i32
    %c0_98 = arith.constant 0 : index
    %122 = arith.index_cast %121 : i32 to index
    %c3_99 = arith.constant 3 : index
    %c0_100 = arith.constant 0 : index
    %123 = vector.load %arg2[%c0_98, %122, %c3_99, %c0_100] : memref<1x36x36x4xf32, #tpu.memory_space<vmem>>, vector<1x8x32x4xf32>
    %124 = vector.shape_cast %123 : vector<1x8x32x4xf32> to vector<8x32x4xf32>
    %c4_i32_101 = arith.constant 4 : i32
    %125 = arith.addi %1, %c4_i32_101 : i32
    %c0_102 = arith.constant 0 : index
    %126 = arith.index_cast %125 : i32 to index
    %c4_103 = arith.constant 4 : index
    %c0_104 = arith.constant 0 : index
    %127 = vector.load %arg2[%c0_102, %126, %c4_103, %c0_104] : memref<1x36x36x4xf32, #tpu.memory_space<vmem>>, vector<1x8x32x4xf32>
    %128 = vector.shape_cast %127 : vector<1x8x32x4xf32> to vector<8x32x4xf32>
    %129 = tpu.concatenate %112, %116, %120, %124, %128 in 2 : vector<8x32x4xf32>, vector<8x32x4xf32>, vector<8x32x4xf32>, vector<8x32x4xf32>, vector<8x32x4xf32> -> vector<8x32x20xf32>
    %130 = vector.shape_cast %129 : vector<8x32x20xf32> to vector<256x20xf32>
    %131 = arith.truncf %130 : vector<256x20xf32> to vector<256x20xbf16>
    %c4_105 = arith.constant 4 : index
    %c0_106 = arith.constant 0 : index
    %c0_107 = arith.constant 0 : index
    %132 = vector.load %arg3[%c4_105, %c0_106, %c0_107] : memref<5x20x3xbf16, #tpu.memory_space<vmem>>, vector<1x20x3xbf16>
    %133 = vector.shape_cast %132 : vector<1x20x3xbf16> to vector<20x3xbf16>
    %cst_108 = arith.constant dense<0.000000e+00> : vector<256x3xf32>
    %134 = tpu.matmul %131, %133, %cst_108 {dimension_numbers = #tpu.dot_dimension_numbers<[1], [0], [0], [1], [0, 0, 1, 1], [], []>} : vector<256x20xbf16>, vector<20x3xbf16>, vector<256x3xf32> -> vector<256x3xf32>
    %135 = arith.addf %108, %134 : vector<256x3xf32>
    %c0_109 = arith.constant 0 : index
    %c0_110 = arith.constant 0 : index
    %136 = vector.load %arg4[%c0_109, %c0_110] : memref<1x3xf32, #tpu.memory_space<vmem>>, vector<1x3xf32>
    %137 = vector.broadcast %136 : vector<1x3xf32> to vector<256x3xf32>
    %138 = arith.addf %135, %137 : vector<256x3xf32>
    %139 = vector.shape_cast %138 : vector<256x3xf32> to vector<8x32x3xf32>
    %c0_111 = arith.constant 0 : index
    %c0_112 = arith.constant 0 : index
    %c0_113 = arith.constant 0 : index
    %c0_114 = arith.constant 0 : index
    %140 = vector.load %arg5[%c0_111, %c0_112, %c0_113, %c0_114] : memref<1x8x32x3xf32, #tpu.memory_space<vmem>>, vector<1x8x32x3xf32>
    %141 = vector.shape_cast %140 : vector<1x8x32x3xf32> to vector<8x32x3xf32>
    %142 = vector.shape_cast %139 : vector<8x32x3xf32> to vector<1x8x32x3xf32>
    tpu.vector_store %arg5[%c0_111, %c0_112, %c0_113, %c0_114], %142 {strides = array<i32>} : memref<1x8x32x3xf32, #tpu.memory_space<vmem>>, vector<1x8x32x3xf32>,
    return
  }
  func.func @transform_0(%arg0: i32, %arg1: i32) -> (i32, i32, i32, i32) {
    %c0_i32 = arith.constant 0 : i32
    %c0_i32_0 = arith.constant 0 : i32
    %c0_i32_1 = arith.constant 0 : i32
    %c0_i32_2 = arith.constant 0 : i32
    return %arg0, %c0_i32, %c0_i32_0, %c0_i32_1 : i32, i32, i32, i32
  }
  func.func @transform_1(%arg0: i32, %arg1: i32) -> (i32, i32, i32) {
    %c0_i32 = arith.constant 0 : i32
    %c0_i32_0 = arith.constant 0 : i32
    %c0_i32_1 = arith.constant 0 : i32
    %c0_i32_2 = arith.constant 0 : i32
    return %c0_i32, %c0_i32_0, %c0_i32_1 : i32, i32, i32
  }
  func.func @transform_2(%arg0: i32, %arg1: i32) -> (i32, i32) {
    %c0_i32 = arith.constant 0 : i32
    %c0_i32_0 = arith.constant 0 : i32
    %c0_i32_1 = arith.constant 0 : i32
    return %c0_i32, %c0_i32_0 : i32, i32
  }
  func.func @transform_3(%arg0: i32, %arg1: i32) -> (i32, i32, i32, i32) {
    %c0_i32 = arith.constant 0 : i32
    %c0_i32_0 = arith.constant 0 : i32
    %c0_i32_1 = arith.constant 0 : i32
    return %arg0, %arg1, %c0_i32, %c0_i32_0 : i32, i32, i32, i32
  }
}

</mosaic_0001>

<bundles_post_ra>
// kernel: tile.19
= control target key start
LH: loop header
LB: loop body
LE: loop exit
PB: predicated region body
PF: predicated region fallthrough
CT: control target
= control target key end

     0   :  { %s37_s8 = smov 4   ;;  %s38_s9 = smov 8   ;;  %vm7_vm0 = vcmask 31744   ;;  %vm13_vm1 = vcmask 130144   ;;  %vm19_vm2 = vcmask 97344   ;;  %vm25_vm3 = vcmask 64544   ;;  %s55_s0 = inlined_call_operand.vmem [shape: f32[4,4], index: 0, kind: input, shape index: {}]   ;;  %s56_s1 = inlined_call_operand.vmem [shape: f32[1,16], index: 1, kind: output, shape index: {}]  }
   0x1   :  { %v4_v0 = vld [vmem:[%s55_s0] sm:$0xf]  ;;  %s36_s0 = smov 12  }
   0x2   :  { %5 = vst [vmem:[#allocation1] sm:$0xf] %v4_v0 }
   0x9   :  { %v10_v1 = vld [vmem:[#allocation1 + $0x3] sm:$0x1]   ;;  %v22_v2 = vld [vmem:[#allocation1 + $0x1] sm:$0x1]   ;;  %v16_v3 = vld [vmem:[#allocation1 + $0x2] sm:$0x1]  }
   0xa   :  { %11 = vrot.lane.b32.xlu0 %v10_v1, %s36_s0  ;;  %23 = vrot.lane.b32.xlu1 %v22_v2, %s37_s8  ;;  %v6_v4 = vld [vmem:[#allocation1] sm:$0x1]  }
   0xb   :  { %8 = vst.msk [vmem:[#allocation0] sm:$0x1] %vm7_vm0, %v6_v4  }
  0x12   :  { %17 = vrot.lane.b32.xlu0 %v16_v3, %s38_s9 }
  0x7c   :  { %v12_v5 = vpop.permute.xlu0 %11   ;;  %v24_v6 = vpop.permute.xlu1 %23  }
  0x7d   :  { %14 = vst.msk [vmem:[#allocation0] sm:$0x1] %vm13_vm1, %v12_v5  }
  0x84   :  { %v18_v7 = vpop.permute.xlu0 %17  }
  0x85   :  { %20 = vst.msk [vmem:[#allocation0] sm:$0x1] %vm19_vm2, %v18_v7  }
  0x86   :  { %26 = vst.msk [vmem:[#allocation0] sm:$0x1] %vm25_vm3, %v24_v6  }
  0x8d   :  { %v29_v8 = vld [vmem:[#allocation0] sm:$0x1] }
  0x8e   :  { %32 = vst [vmem:[%s56_s1] sm:$0x1] %v29_v8 }

// kernel: tile.14
= control target key start
LH: loop header
LB: loop body
LE: loop exit
PB: predicated region body
PF: predicated region fallthrough
CT: control target
= control target key end

     0   :  { %s37_s8 = smov 8   ;;  %s38_s9 = smov 16   ;;  %vm7_vm0 = vcmask 64512   ;;  %vm13_vm1 = vcmask 261312   ;;  %vm19_vm2 = vcmask 195712   ;;  %vm25_vm3 = vcmask 130112   ;;  %s55_s0 = inlined_call_operand.vmem [shape: f32[4,8], index: 0, kind: input, shape index: {}]   ;;  %s56_s1 = inlined_call_operand.vmem [shape: f32[1,32], index: 1, kind: output, shape index: {}]  }
   0x1   :  { %v4_v0 = vld [vmem:[%s55_s0] sm:$0xf]  ;;  %s36_s0 = smov 24  }
   0x2   :  { %5 = vst [vmem:[#allocation1] sm:$0xf] %v4_v0 }
   0x9   :  { %v10_v1 = vld [vmem:[#allocation1 + $0x3] sm:$0x1]   ;;  %v22_v2 = vld [vmem:[#allocation1 + $0x1] sm:$0x1]   ;;  %v16_v3 = vld [vmem:[#allocation1 + $0x2] sm:$0x1]  }
   0xa   :  { %11 = vrot.lane.b32.xlu0 %v10_v1, %s36_s0  ;;  %23 = vrot.lane.b32.xlu1 %v22_v2, %s37_s8  ;;  %v6_v4 = vld [vmem:[#allocation1] sm:$0x1]  }
   0xb   :  { %8 = vst.msk [vmem:[#allocation0] sm:$0x1] %vm7_vm0, %v6_v4  }
  0x12   :  { %17 = vrot.lane.b32.xlu0 %v16_v3, %s38_s9 }
  0x7c   :  { %v12_v5 = vpop.permute.xlu0 %11   ;;  %v24_v6 = vpop.permute.xlu1 %23  }
  0x7d   :  { %14 = vst.msk [vmem:[#allocation0] sm:$0x1] %vm13_vm1, %v12_v5  }
  0x84   :  { %v18_v7 = vpop.permute.xlu0 %17  }
  0x85   :  { %20 = vst.msk [vmem:[#allocation0] sm:$0x1] %vm19_vm2, %v18_v7  }
  0x86   :  { %26 = vst.msk [vmem:[#allocation0] sm:$0x1] %vm25_vm3, %v24_v6  }
  0x8d   :  { %v29_v8 = vld [vmem:[#allocation0] sm:$0x1] }
  0x8e   :  { %32 = vst [vmem:[%s56_s1] sm:$0x1] %v29_v8 }

// kernel: tile.13
= control target key start
LH: loop header
LB: loop body
LE: loop exit
PB: predicated region body
PF: predicated region fallthrough
CT: control target
= control target key end

     0   :  { %2 = vsyncpa [#allocation1], 0  ;;  %s48_s8 = smov [#allocation0]   ;;  %s65_s0 = inlined_call_operand.hbm [shape: f32[8], index: 0, kind: input, shape index: {}]   ;;  %s66_s1 = inlined_call_operand.vmem [shape: f32[4,8], index: 1, kind: output, shape index: {}]  }
   0x1   :  { %s8_s0 = sshll.u32 %s65_s0, 4  ;;  %s10_s9 = sshll.u32 %s48_s8, 4  ;;  %s9_s0 = int_to_ptr.hbm [resolvable:$true] %s8_s0  ;;  %s11_s9 = int_to_ptr.vmem [resolvable:$true] %s10_s9 }
   0x2   :  { %13 = dma.hbm_to_vmem [thread:$0]  %s9_s0, 16, %s11_s9, [#allocation1]  }
   0x3   :  { %46 = dma.done.wait [#allocation1], 16  }
   0x4   :  { %47 = vsyncadd [#allocation1], 4294967280  ;;  %v18_v0 = vld [vmem:[#allocation0] ss:$0 sm:$0xff] }
   0x5   :  { %19 = vst [vmem:[%s66_s1] sm:$0xf] %v18_v0 }
   0x6   :  { %20 = vsyncpa [#allocation1], 1 }

// kernel: tile.18
= control target key start
LH: loop header
LB: loop body
LE: loop exit
PB: predicated region body
PF: predicated region fallthrough
CT: control target
= control target key end

     0   :  { %2 = vsyncpa [#allocation1], 0  ;;  %s48_s8 = smov [#allocation0]   ;;  %s65_s0 = inlined_call_operand.hbm [shape: f32[4], index: 0, kind: input, shape index: {}]   ;;  %s66_s1 = inlined_call_operand.vmem [shape: f32[4,4], index: 1, kind: output, shape index: {}]  }
   0x1   :  { %s8_s0 = sshll.u32 %s65_s0, 4  ;;  %s10_s9 = sshll.u32 %s48_s8, 4  ;;  %s9_s0 = int_to_ptr.hbm [resolvable:$true] %s8_s0  ;;  %s11_s9 = int_to_ptr.vmem [resolvable:$true] %s10_s9 }
   0x2   :  { %13 = dma.hbm_to_vmem [thread:$0]  %s9_s0, 16, %s11_s9, [#allocation1]  }
   0x3   :  { %46 = dma.done.wait [#allocation1], 16  }
   0x4   :  { %47 = vsyncadd [#allocation1], 4294967280  ;;  %v18_v0 = vld [vmem:[#allocation0] ss:$0 sm:$0xff] }
   0x5   :  { %19 = vst [vmem:[%s66_s1] sm:$0xf] %v18_v0 }
   0x6   :  { %20 = vsyncpa [#allocation1], 1 }

// kernel: reconstructor_forward.3
= control target key start
LH: loop header
LB: loop body
LE: loop exit
PB: predicated region body
PF: predicated region fallthrough
CT: control target
= control target key end

     0   :  { %s912_s12 = smov 0   ;;  %s914_s13 = smov 0   ;;  %s1119_s0 = inlined_call_operand.vmem [shape: f32[2,9,9,60], index: 0, kind: input, shape index: {}]   ;;  %s1120_s1 = inlined_call_operand.vmem [shape: bf16[1,240,32], index: 1, kind: input, shape index: {}]   ;;  %s1121_s2 = inlined_call_operand.vmem [shape: f32[1,32], index: 2, kind: input, shape index: {}]   ;;  %s1122_s3 = inlined_call_operand.vmem [shape: f32[2,8,8,32], index: 3, kind: output, shape index: {}]  }
   0x1   :  { %s916_s14 = smov 0  }
   0x2 LB: > { %s25_s15 = sadd.s32 1, %s883_s13  ;;  %p659_p0 = scmp.ge.s32.totalorder %s887_s14, 1  ;;  %s887_s14 = sphi %s916_s14, %s13_s14   ;;  %s883_s13 = sphi %s914_s13, %s1124_s13   ;;  %s879_s12 = sphi %s912_s12, %s1123_s12  }
   0x3   : > { %p27_p1 = scmp.ge.s32.totalorder %s25_s15, 2  ;;  %p151_p2 = scmp.lt.s32.totalorder %s887_s14, 3 }
   0x5   : > { %s1126_s15 = smov (%p27_p1, %s25_s15), 0  ;;  %p152_p3 = pnand %p659_p0, %p151_p2 }
   0x6   : > { %p179_p4 = scmp.lt.s32.totalorder (!%p152_p3), %s879_s12, 1  ;;  %s889_s28 = smov (!%p152_p3), 120  }
   0x7   : > { %155 = sbr.rel (%p152_p3) target bundleno = 322 (0x142), region = 32  ;;  %s890_s29 = smov (!%p152_p3), 60  }
   0x8   : > { %s891_s7 = smov (!%p152_p3), 52  }
   0xc   : > { %s1128_s12 = smov (!%p179_p4, %s879_s12), 1  ;;  %v753_v0 = vld [vmem:[%s1120_s1 + $0x38] sm:$0xff]  ;;  %v760_v1 = vld [vmem:[%s1120_s1 + $0x70] sm:$0xff]  ;;  %v759_v8 = vld [vmem:[%s1120_s1 + $0x68] sm:$0xff]  ;;  %vm329_vm0 = vcmask 490496   ;;  %vm338_vm1 = vcmask 982016  }
   0xd   : > { %s776_s16 = smul.u32 144, %s1128_s12  ;;  %v752_v2 = vld [vmem:[%s1120_s1 + $0x30] sm:$0xff]  ;;  %761 = vmatpush.bf16.msra.mxu2 %v753_v0  ;;  %769 = vmatpush.bf16.msra.mxu3 %v760_v1  ;;  %v751_v13 = vld [vmem:[%s1120_s1 + $0x28] sm:$0xff]  ;;  %v758_v16 = vld [vmem:[%s1120_s1 + $0x60] sm:$0xff]  ;;  %vm347_vm2 = vcmask 424960   ;;  %vm488_vm3 = vcmask 916480  }
   0xe   : > { %501 = vmatpush.bf16.msra.mxu0 %v753_v0  ;;  %531 = vmatpush.bf16.msra.mxu1 %v760_v1  ;;  %v750_v21 = vld [vmem:[%s1120_s1 + $0x20] sm:$0xff]  ;;  %v749_v36 = vld [vmem:[%s1120_s1 + $0x18] sm:$0xff]  ;;  %v748_v38 = vld [vmem:[%s1120_s1 + $0x10] sm:$0xff]  ;;  %s745_s5 = sshll.u32 %s1128_s12, 6  ;;  %vm559_vm4 = vcmask 261120  }
   0xf   : > { %s942_s23 = scalar_lea.vmem %s1119_s0, %s776_s16  ;;  %v757_v37 = vld [vmem:[%s1120_s1 + $0x58] sm:$0xff]  ;;  %v756_v39 = vld [vmem:[%s1120_s1 + $0x50] sm:$0xff]  ;;  %v747_v40 = vld [vmem:[%s1120_s1 + $0x8] sm:$0xff]  ;;  %s1092_s8 = scalar_lea.vmem %s1122_s3, %s745_s5 }
  0x10   : > { %v948_v3 = vld [vmem:[%s942_s23 + $0x30] sm:$0xff]  ;;  %v951_v4 = vld [vmem:[%s942_s23 + $0x40] sm:$0xff]  ;;  %v755_v41 = vld [vmem:[%s1120_s1 + $0x48] sm:$0xff] }
  0x11   : > { %v210_v5 = vld [vmem:[%s942_s23 + $0x41] sm:$0xff]  ;;  %v804_v6 = vpack.i.bf16 %v951_v4, %v948_v3  ;;  %v211_v7 = vld [vmem:[%s942_s23 + $0x51] sm:$0xff]  ;;  %762 = vmatpush.bf16.msra.mxu2 %v752_v2  ;;  %770 = vmatpush.bf16.msra.mxu3 %v759_v8 }
  0x12   : > { %v814_v9 = vpack.i.bf16 %v211_v7, %v210_v5  ;;  %v212_v10 = vld [vmem:[%s942_s23 + $0x61] sm:$0xff]  ;;  %v673_v11 = vld [vmem:[%s942_s23 + $0x31] sm:$0xff]  ;;  %502 = vmatpush.bf16.msra.mxu0 %v752_v2  ;;  %532 = vmatpush.bf16.msra.mxu1 %v759_v8 }
  0x13   : > { %805 = vrot.lane.b32.xlu0 %v804_v6, %s889_s28  ;;  %v824_v12 = vpack.i.bf16 %v212_v10, %v211_v7  ;;  %v968_v14 = vld [vmem:[%s942_s23 + $0x50] sm:$0xff]  ;;  %v971_v15 = vld [vmem:[%s942_s23 + $0x60] sm:$0xff]  ;;  %v809_v17 = vpack.i.bf16 %v210_v5, %v673_v11 }
  0x14   : > { %815 = vrot.lane.b32.xlu1 %v814_v9, %s890_s29  ;;  %v206_v18 = vld [vmem:[%s942_s23 + $0x1] sm:$0xff]  ;;  %v207_v19 = vld [vmem:[%s942_s23 + $0x11] sm:$0xff]  ;;  %v819_v20 = vpack.i.bf16 %v971_v15, %v968_v14 }
  0x15   : > { %825 = vrot.lane.b32.xlu2 %v824_v12, %s891_s7  ;;  %763 = vmatpush.bf16.msra.mxu2 %v751_v13  ;;  %v829_v22 = vpack.i.bf16 %v207_v19, %v206_v18  ;;  %v987_v23 = vld [vmem:[%s942_s23 + $0x10] sm:$0xff]  ;;  %v990_v24 = vld [vmem:[%s942_s23 + $0x20] sm:$0xff] }
  0x16   : > { %771 = vmatpush.bf16.msra.mxu3 %v758_v16  ;;  %503 = vmatpush.bf16.msra.mxu0 %v751_v13  ;;  %v213_v25 = vld [vmem:[%s942_s23 + $0x71] sm:$0xff]  ;;  %v834_v26 = vpack.i.bf16 %v990_v24, %v987_v23  ;;  %v670_v28 = vld [vmem:[%s942_s23 + $0x80] sm:$0xff] }
  0x17   : > { %533 = vmatpush.bf16.msra.mxu1 %v758_v16  ;;  %v997_v27 = vld [vmem:[%s942_s23 + $0x70] sm:$0xff]  ;;  %v839_v29 = vpack.i.bf16 %v213_v25, %v212_v10  ;;  %v678_v31 = vld [vmem:[%s942_s23 + $0x81] sm:$0xff] }
  0x18   : > { %v844_v30 = vpack.i.bf16 %v670_v28, %v997_v27  ;;  %v208_v32 = vld [vmem:[%s942_s23 + $0x21] sm:$0xff]  ;;  %v849_v33 = vpack.i.bf16 %v678_v31, %v213_v25 }
  0x19   : > { %764 = vmatpush.bf16.msra.mxu2 %v750_v21  ;;  %v854_v34 = vpack.i.bf16 %v673_v11, %v208_v32  ;;  %v859_v35 = vpack.i.bf16 %v208_v32, %v207_v19  ;;  %v746_v42 = vld [vmem:[%s1120_s1] sm:$0xff] }
  0x1a   : > { %504 = vmatpush.bf16.msra.mxu0 %v750_v21  ;;  %772 = vmatpush.bf16.msra.mxu3 %v757_v37  ;;  %v754_v43 = vld [vmem:[%s1120_s1 + $0x40] sm:$0xff] }
  0x1b   : > { %810 = vrot.lane.b32.xlu0 %v809_v17, %s891_s7  ;;  %534 = vmatpush.bf16.msra.mxu1 %v757_v37  ;;  %v198_v7 = vld [vmem:[%s942_s23] sm:$0xff] }
  0x1c   : > { %820 = vrot.lane.b32.xlu1 %v819_v20, %s889_s28 }
  0x1d   : > { %830 = vrot.lane.b32.xlu2 %v829_v22, %s890_s29  ;;  %765 = vmatpush.bf16.msra.mxu2 %v749_v36 }
  0x1e   : > { %505 = vmatpush.bf16.msra.mxu0 %v749_v36  ;;  %773 = vmatpush.bf16.msra.mxu3 %v756_v39 }
  0x1f   : > { %535 = vmatpush.bf16.msra.mxu1 %v756_v39 }
  0x21   : > { %766 = vmatpush.bf16.msra.mxu2 %v748_v38 }
  0x22   : > { %506 = vmatpush.bf16.msra.mxu0 %v748_v38  ;;  %774 = vmatpush.bf16.msra.mxu3 %v755_v41 }
  0x23   : > { %835 = vrot.lane.b32.xlu0 %v834_v26, %s889_s28  ;;  %536 = vmatpush.bf16.msra.mxu1 %v755_v41 }
  0x24   : > { %840 = vrot.lane.b32.xlu1 %v839_v29, %s890_s29 }
  0x25   : > { %845 = vrot.lane.b32.xlu2 %v844_v30, %s889_s28  ;;  %767 = vmatpush.bf16.msra.mxu2 %v747_v40 }
  0x26   : > { %507 = vmatpush.bf16.msra.mxu0 %v747_v40  ;;  %775 = vmatpush.bf16.msra.mxu3 %v754_v43 }
  0x27   : > { %537 = vmatpush.bf16.msra.mxu1 %v754_v43 }
  0x29   : > { %768 = vmatpush.bf16.msra.mxu2 %v746_v42 }
  0x2a   : > { %508 = vmatpush.bf16.msra.mxu0 %v746_v42 }
  0x2b   : > { %850 = vrot.lane.b32.xlu0 %v849_v33, %s891_s7 }
  0x2c   : > { %855 = vrot.lane.b32.xlu1 %v854_v34, %s890_s29 }
  0x2d   : > { %860 = vrot.lane.b32.xlu2 %v859_v35, %s891_s7 }
  0x6f   : > { %v1033_v44 = vpop.permute.xlu2 %825 }
  0x70   : > { %v827_v30 = vunpack.i.l.bf16 %v1033_v44 }
  0x77   : > { %v831_v45 = vpop.permute.xlu2 %830 }
  0x78   : > { %v833_v61 = vunpack.i.h.bf16 %v831_v45  ;;  %v832_v0 = vunpack.i.l.bf16 %v831_v45 }
  0x7a   : > { %v330_v11 = vsel %vm329_vm0, %v198_v7, %v832_v0  ;;  %v331_v12 = vsel %vm329_vm0, %v987_v23, %v833_v61  ;;  %v828_v23 = vunpack.i.h.bf16 %v1033_v44 }
  0x7f   : > { %v1037_v48 = vpop.permute.xlu2 %845 }
  0x80   : > { %v848_v25 = vunpack.i.h.bf16 %v1037_v48  ;;  %v847_v26 = vunpack.i.l.bf16 %v1037_v48 }
  0x85   : > { %v1035_v46 = vpop.permute.xlu0 %805 }
  0x86   : > { %v816_v47 = vpop.permute.xlu1 %815  ;;  %v808_v51 = vunpack.i.h.bf16 %v1035_v46  ;;  %v807_v52 = vunpack.i.l.bf16 %v1035_v46 }
  0x87   : > { %v818_v49 = vunpack.i.h.bf16 %v816_v47  ;;  %v817_v50 = vunpack.i.l.bf16 %v816_v47 }
  0x89   : > { %v334_v57 = vsel %vm329_vm0, %v951_v4, %v817_v50  ;;  %v335_v58 = vsel %vm329_vm0, %v968_v14, %v818_v49  ;;  %v861_v4 = vpop.permute.xlu2 %860 }
  0x8a   : > { %v863_v8 = vunpack.i.h.bf16 %v861_v4  ;;  %v862_v9 = vunpack.i.l.bf16 %v861_v4 }
  0x8d   : > { %v811_v53 = vpop.permute.xlu0 %810 }
  0x8e   : > { %v813_v54 = vunpack.i.h.bf16 %v811_v53  ;;  %v812_v55 = vunpack.i.l.bf16 %v811_v53  ;;  %v821_v56 = vpop.permute.xlu1 %820 }
  0x8f   : > { %v823_v59 = vunpack.i.h.bf16 %v821_v56  ;;  %v822_v60 = vunpack.i.l.bf16 %v821_v56 }
  0x90   : > { %v350_v62 = vsel %vm347_vm2, %v807_v52, %v812_v55  ;;  %v351_v63 = vsel %vm347_vm2, %v808_v51, %v813_v54 }
  0x91   : > { %v343_v1 = vsel %vm338_vm1, %v334_v57, %v822_v60  ;;  %v344_v2 = vsel %vm338_vm1, %v335_v58, %v823_v59  ;;  %v359_v5 = vpack.c.bf16 %v351_v63, %v350_v62  ;;  %v352_v36 = vsel %vm347_vm2, %v822_v60, %v827_v30 }
  0x92   : > { %v360_v6 = vpack.c.bf16 %v344_v2, %v343_v1  ;;  %v353_v37 = vsel %vm347_vm2, %v823_v59, %v828_v23 }
  0x93   : > { %740 = vmatmul.msk.bf16.vlgmr.msra.gmra.mxu3 %vm488_vm3, %v359_v5  ;;  %v361_v41 = vpack.c.bf16 %v353_v37, %v352_v36 }
  0x94   : > { %519 = vmatmul.bf16.vlgmr.msra.gmra.mxu2 %v360_v6 }
  0x95   : > { %v836_v10 = vpop.permute.xlu0 %835 }
  0x96   : > { %v838_v13 = vunpack.i.h.bf16 %v836_v10  ;;  %v837_v14 = vunpack.i.l.bf16 %v836_v10  ;;  %v841_v16 = vpop.permute.xlu1 %840 }
  0x97   : > { %v843_v17 = vunpack.i.h.bf16 %v841_v16  ;;  %v842_v18 = vunpack.i.l.bf16 %v841_v16 }
  0x98   : > { %v339_v19 = vsel %vm338_vm1, %v330_v11, %v837_v14  ;;  %v340_v20 = vsel %vm338_vm1, %v331_v12, %v838_v13  ;;  %v348_v21 = vsel %vm347_vm2, %v837_v14, %v862_v9  ;;  %v349_v22 = vsel %vm347_vm2, %v838_v13, %v863_v8 }
  0x99   : > { %v356_v28 = vpack.c.bf16 %v340_v20, %v339_v19  ;;  %v357_v29 = vpack.c.bf16 %v349_v22, %v348_v21  ;;  %v336_v31 = vsel %vm329_vm0, %v971_v15, %v842_v18  ;;  %v337_v32 = vsel %vm329_vm0, %v997_v27, %v843_v17 }
  0x9a   : > { %v345_v33 = vsel %vm338_vm1, %v336_v31, %v847_v26  ;;  %v346_v34 = vsel %vm338_vm1, %v337_v32, %v848_v25 }
  0x9b   : > { %509 = vmatmul.bf16.vlgmr.msra.gmra.mxu0 %v356_v28  ;;  %739 = vmatmul.msk.bf16.vlgmr.msra.gmra.mxu1 %vm488_vm3, %v357_v29  ;;  %v362_v40 = vpack.c.bf16 %v346_v34, %v345_v33 }
  0x9d   : > { %v851_v44 = vpop.permute.xlu0 %850 }
  0x9e   : > { %v856_v35 = vpop.permute.xlu1 %855  ;;  %v853_v47 = vunpack.i.h.bf16 %v851_v44  ;;  %v852_v48 = vunpack.i.l.bf16 %v851_v44 }
  0x9f   : > { %v858_v38 = vunpack.i.h.bf16 %v856_v35  ;;  %v857_v39 = vunpack.i.l.bf16 %v856_v35 }
  0xa0   : > { %v354_v49 = vsel %vm347_vm2, %v847_v26, %v852_v48 }
  0xa1   : > { %v332_v15 = vsel %vm329_vm0, %v990_v24, %v857_v39  ;;  %v333_v27 = vsel %vm329_vm0, %v948_v3, %v858_v38  ;;  %v355_v24 = vsel %vm347_vm2, %v848_v25, %v853_v47 }
  0xa2   : > { %v341_v42 = vsel %vm338_vm1, %v332_v15, %v807_v52  ;;  %v342_v43 = vsel %vm338_vm1, %v333_v27, %v808_v51  ;;  %v363_v50 = vpack.c.bf16 %v355_v24, %v354_v49  ;;  %v864_v52 = vld [vmem:[%s1121_s2] ss:$0 sm:$0xff] }
  0xa3   : > { %741 = vmatmul.msk.bf16.gmra.mxu3 %vm488_vm3, %v361_v41  ;;  %v358_v45 = vpack.c.bf16 %v342_v43, %v341_v42 }
  0xa4   : > { %524 = vmatmul.bf16.gmra.mxu2 %v362_v40 }
  0xab   : > { %514 = vmatmul.bf16.gmra.mxu0 %v358_v45 }
  0xb3   : > { %742 = vmatmul.msk.bf16.gmra.mxu3 %vm488_vm3, %v363_v50 }
 0x116   : > { %v544_v3 = vpop.f32.mrf.mxu3 }
 0x117   : > { %v520_v55 = vpop.f32.mrf.mxu2 }
 0x118   : > { %v510_v46 = vpop.f32.mrf.mxu0  ;;  %v539_v51 = vpop.f32.mrf.mxu1  ;;  %v521_v61 = vadd.f32 %v864_v52, %v520_v55 }
 0x119   : > { %v511_v53 = vadd.f32 %v864_v52, %v510_v46 }
 0x11b   : > { %v540_v54 = vadd.f32 %v539_v51, %v511_v53 }
 0x11d   : > { %560 = vst.msk [vmem:[%s1092_s8] sm:$0xff] %vm559_vm4, %v540_v54 }
 0x11e   : > { %v546_v56 = vpop.f32.mrf.mxu3 }
 0x11f   : > { %v522_v0 = vpop.f32.mrf.mxu2 }
 0x120   : > { %v512_v57 = vpop.f32.mrf.mxu0  ;;  %v541_v58 = vpop.f32.mrf.mxu1  ;;  %v523_v4 = vadd.f32 %v864_v52, %v522_v0 }
 0x121   : > { %v513_v59 = vadd.f32 %v864_v52, %v512_v57 }
 0x123   : > { %v542_v60 = vadd.f32 %v541_v58, %v513_v59 }
 0x125   : > { %561 = vst.msk [vmem:[%s1092_s8 + $0x8] sm:$0xff] %vm559_vm4, %v542_v60 }
 0x126   : > { %v549_v62 = vpop.f32.mrf.mxu3 }
 0x127   : > { %v550_v63 = vadd.f32 %v549_v62, %v521_v61  ;;  %v525_v8 = vpop.f32.mrf.mxu2 }
 0x128   : > { %v515_v1 = vpop.f32.mrf.mxu0  ;;  %v526_v12 = vadd.f32 %v864_v52, %v525_v8 }
 0x129   : > { %564 = vst.msk [vmem:[%s1092_s8 + $0x20] sm:$0xff] %vm559_vm4, %v550_v63  ;;  %v516_v2 = vadd.f32 %v864_v52, %v515_v1 }
 0x12b   : > { %v545_v5 = vadd.f32 %v544_v3, %v516_v2 }
 0x12d   : > { %562 = vst.msk [vmem:[%s1092_s8 + $0x10] sm:$0xff] %vm559_vm4, %v545_v5 }
 0x12e   : > { %v551_v6 = vpop.f32.mrf.mxu3 }
 0x12f   : > { %v552_v7 = vadd.f32 %v551_v6, %v523_v4  ;;  %v527_v16 = vpop.f32.mrf.mxu2 }
 0x130   : > { %v517_v9 = vpop.f32.mrf.mxu0  ;;  %v528_v17 = vadd.f32 %v864_v52, %v527_v16 }
 0x131   : > { %565 = vst.msk [vmem:[%s1092_s8 + $0x28] sm:$0xff] %vm559_vm4, %v552_v7  ;;  %v518_v10 = vadd.f32 %v864_v52, %v517_v9 }
 0x133   : > { %v547_v11 = vadd.f32 %v546_v56, %v518_v10 }
 0x135   : > { %563 = vst.msk [vmem:[%s1092_s8 + $0x18] sm:$0xff] %vm559_vm4, %v547_v11 }
 0x136   : > { %v554_v13 = vpop.f32.mrf.mxu3 }
 0x137   : > { %v555_v14 = vadd.f32 %v554_v13, %v526_v12 }
 0x139   : > { %566 = vst.msk [vmem:[%s1092_s8 + $0x30] sm:$0xff] %vm559_vm4, %v555_v14 }
 0x13e   : > { %v556_v18 = vpop.f32.mrf.mxu3 }
 0x13f   : > { %v557_v19 = vadd.f32 %v556_v18, %v528_v17 }
 0x141   : > { %567 = vst.msk [vmem:[%s1092_s8 + $0x38] sm:$0xff] %vm559_vm4, %v557_v19 }
 0x142 PF: > { %s13_s14 = sadd.s32 1, %s887_s14   ;;  %s1123_s12 = smov %s883_s13 }
 0x143   : > { %p10_p5 = scmp.ge.s32.totalorder %s13_s14, 4   ;;  %s1124_s13 = smov %s1126_s15 }
 0x145   :  { %12 = sbr.rel (!%p10_p5) target bundleno = 2 (0x2), region = 64 }

// kernel: reconstructor_forward.4
= control target key start
LH: loop header
LB: loop body
LE: loop exit
PB: predicated region body
PF: predicated region fallthrough
CT: control target
= control target key end

     0   :  { %s1024_s12 = smov 0   ;;  %s1026_s13 = smov 0   ;;  %s1296_s0 = inlined_call_operand.vmem [shape: f32[2,17,17,8], index: 0, kind: input, shape index: {}]   ;;  %s1297_s1 = inlined_call_operand.vmem [shape: bf16[1,32,16], index: 1, kind: input, shape index: {}]   ;;  %s1298_s2 = inlined_call_operand.vmem [shape: f32[1,16], index: 2, kind: input, shape index: {}]   ;;  %s1299_s3 = inlined_call_operand.vmem [shape: f32[2,16,16,16], index: 3, kind: output, shape index: {}]  }
   0x1   :  { %s1028_s14 = smov 0   ;;  %s1030_s15 = smov 0  }
   0x2   :  { %s1032_s16 = smov 0  }
   0x3 LB: > { %s22_s17 = sadd.s32 1, %s991_s14  ;;  %s25_s18 = sadd.s32 1, %s995_s15  ;;  %s999_s16 = sphi %s1032_s16, %s13_s16   ;;  %s995_s15 = sphi %s1030_s15, %s1303_s15   ;;  %s991_s14 = sphi %s1028_s14, %s1302_s14   ;;  %s987_s13 = sphi %s1026_s13, %s1301_s13   ;;  %s983_s12 = sphi %s1024_s12, %s1300_s12  }
   0x4   : > { %p23_p0 = scmp.ge.s32.totalorder %s22_s17, 2  ;;  %p728_p1 = scmp.ge.s32.totalorder %s999_s16, 1 }
   0x5   : > { %p151_p2 = scmp.lt.s32.totalorder %s999_s16, 5 }
   0x6   : > { %s1305_s17 = smov (%p23_p0, %s22_s17), 0  ;;  %s1307_s18 = smov (!%p23_p0, %s25_s18), %s995_s15 }
   0x7   : > { %p152_p3 = pnand %p728_p1, %p151_p2  ;;  %p27_p4 = scmp.ge.s32.totalorder %s1307_s18, 2 }
   0x8   : > { %p180_p5 = scmp.lt.s32.totalorder (!%p152_p3), %s987_s13, 1  ;;  %s735_s19 = smul.u32 (!%p152_p3), 192, %s983_s12 }
   0x9   : > { %s1309_s18 = smov (%p27_p4, %s1307_s18), 0  ;;  %155 = sbr.rel (%p152_p3) target bundleno = 337 (0x151), region = 32 }
   0xa   : > { %s1001_s25 = smov (!%p152_p3), 16   ;;  %s1002_s26 = smov (!%p152_p3), 8  }
   0xb   : > { %s1003_s27 = smov (!%p152_p3), 24   ;;  %s730_s5 = sshll.u32 (!%p152_p3), %s983_s12, 3 }
   0xc   : > { %p188_p6 = scmp.lt.s32.totalorder (!%p152_p3), %s730_s5, 15 }
   0xe   : > { %s1311_s13 = smov (!%p180_p5, %s987_s13), 1  ;;  %v789_v51 = vld [vmem:[%s1297_s1 + $0x8] sm:$0xff]  ;;  %v788_v52 = vld [vmem:[%s1297_s1] sm:$0xff]  ;;  %vm459_vm0 = vcmask 64512   ;;  %vm476_vm1 = vcmask 130048   ;;  %vm493_vm2 = vcmask 195584  }
   0xf   : > { %s796_s20 = smul.u32 408, %s1311_s13  ;;  %791 = vmatpush.bf16.msra.mxu2 %v789_v51  ;;  %792 = vmatpush.bf16.msra.mxu3 %v789_v51  ;;  %vm538_vm3 = vcmask 261120   ;;  %s1313_s5 = smov (!%p188_p6, %s730_s5), 15 }
  0x10   : > { %569 = vmatpush.bf16.msra.mxu0 %v789_v51  ;;  %790 = vmatpush.bf16.msra.mxu1 %v789_v51  ;;  %s731_s6 = sshll.u32 %s1313_s5, 1  ;;  %s732_s7 = sshll.u32 %s1311_s13, 5 }
  0x11   : > { %s184_s23 = scalar_lea.vmem %s1296_s0, %s796_s20  ;;  %s192_s8 = sadd.s32 %s732_s7, %s731_s6 }
  0x12   : > { %s1063_s24 = scalar_lea.vmem %s184_s23, %s735_s19  ;;  %s733_s9 = sshll.u32 %s192_s8, 3 }
  0x13   : > { %v1066_v0 = vld [vmem:[%s1063_s24 + $0x78] sm:$0xff]  ;;  %v1069_v1 = vld [vmem:[%s1063_s24 + $0x80] sm:$0xff]  ;;  %v225_v4 = vld [vmem:[%s1063_s24 + $0x69] sm:$0xff]  ;;  %794 = vmatpush.bf16.msra.mxu2 %v788_v52  ;;  %795 = vmatpush.bf16.msra.mxu3 %v788_v52  ;;  %s1247_s21 = scalar_lea.vmem %s1299_s3, %s733_s9 }
  0x14   : > { %v224_v2 = vld [vmem:[%s1063_s24 + $0x61] sm:$0xff]  ;;  %v850_v3 = vpack.i.bf16 %v1069_v1, %v1066_v0  ;;  %v1084_v7 = vld [vmem:[%s1063_s24 + $0xb0] sm:$0xff]  ;;  %v229_v9 = vld [vmem:[%s1063_s24 + $0x99] sm:$0xff]  ;;  %570 = vmatpush.bf16.msra.mxu0 %v788_v52  ;;  %793 = vmatpush.bf16.msra.mxu1 %v788_v52 }
  0x15   : > { %v1075_v5 = vpack.i.bf16 %v225_v4, %v224_v2  ;;  %v1081_v6 = vld [vmem:[%s1063_s24 + $0xa8] sm:$0xff]  ;;  %v228_v8 = vld [vmem:[%s1063_s24 + $0x91] sm:$0xff]  ;;  %v762_v10 = vld [vmem:[%s1063_s24 + $0x79] sm:$0xff] }
  0x16   : > { %851 = vrot.lane.b32.xlu1 %v850_v3, %s1001_s25  ;;  %v763_v11 = vld [vmem:[%s1063_s24 + $0x81] sm:$0xff]  ;;  %v855_v13 = vpack.i.bf16 %v1084_v7, %v1081_v6  ;;  %v845_v14 = vpack.i.bf16 %v229_v9, %v228_v8  ;;  %v230_v15 = vld [vmem:[%s1063_s24 + $0xa9] sm:$0xff]  ;;  %v231_v16 = vld [vmem:[%s1063_s24 + $0xb1] sm:$0xff] }
  0x17   : > { %841 = vrot.lane.b32.xlu0 %v1075_v5, %s1002_s26  ;;  %v860_v12 = vpack.i.bf16 %v763_v11, %v762_v10  ;;  %v220_v17 = vld [vmem:[%s1063_s24 + $0x31] sm:$0xff]  ;;  %v221_v18 = vld [vmem:[%s1063_s24 + $0x39] sm:$0xff]  ;;  %v905_v19 = vpack.i.bf16 %v231_v16, %v230_v15  ;;  %v216_v20 = vld [vmem:[%s1063_s24 + $0x1] sm:$0xff] }
  0x18   : > { %v217_v21 = vld [vmem:[%s1063_s24 + $0x9] sm:$0xff]  ;;  %v875_v22 = vpack.i.bf16 %v221_v18, %v220_v17  ;;  %v1103_v24 = vld [vmem:[%s1063_s24 + $0x18] sm:$0xff]  ;;  %v1106_v25 = vld [vmem:[%s1063_s24 + $0x20] sm:$0xff] }
  0x19   : > { %861 = vrot.lane.b32.xlu2 %v860_v12, %s1003_s27  ;;  %v870_v23 = vpack.i.bf16 %v217_v21, %v216_v20  ;;  %v754_v26 = vld [vmem:[%s1063_s24 + $0x19] sm:$0xff]  ;;  %v755_v27 = vld [vmem:[%s1063_s24 + $0x21] sm:$0xff]  ;;  %v880_v28 = vpack.i.bf16 %v1106_v25, %v1103_v24  ;;  %v1118_v30 = vld [vmem:[%s1063_s24 + $0x50] sm:$0xff] }
  0x1a   : > { %v1115_v29 = vld [vmem:[%s1063_s24 + $0x48] sm:$0xff]  ;;  %v890_v31 = vpack.i.bf16 %v755_v27, %v754_v26  ;;  %v223_v34 = vld [vmem:[%s1063_s24 + $0x51] sm:$0xff]  ;;  %v752_v39 = vld [vmem:[%s1063_s24 + $0xc0] sm:$0xff] }
  0x1b   : > { %v885_v32 = vpack.i.bf16 %v1118_v30, %v1115_v29  ;;  %v222_v33 = vld [vmem:[%s1063_s24 + $0x49] sm:$0xff]  ;;  %v1132_v37 = vld [vmem:[%s1063_s24 + $0x98] sm:$0xff]  ;;  %v768_v42 = vld [vmem:[%s1063_s24 + $0xc1] sm:$0xff] }
  0x1c   : > { %v935_v35 = vpack.i.bf16 %v223_v34, %v222_v33  ;;  %v1129_v36 = vld [vmem:[%s1063_s24 + $0x90] sm:$0xff]  ;;  %v753_v40 = vld [vmem:[%s1063_s24 + $0xc8] sm:$0xff]  ;;  %v1150_v46 = vld [vmem:[%s1063_s24 + $0x38] sm:$0xff] }
  0x1d   : > { %v910_v38 = vpack.i.bf16 %v1132_v37, %v1129_v36  ;;  %v915_v41 = vpack.i.bf16 %v753_v40, %v752_v39  ;;  %v769_v43 = vld [vmem:[%s1063_s24 + $0xc9] sm:$0xff]  ;;  %v744_v48 = vld [vmem:[%s1063_s24 + $0x60] sm:$0xff] }
  0x1e   : > { %856 = vrot.lane.b32.xlu1 %v855_v13, %s1001_s25  ;;  %v925_v44 = vpack.i.bf16 %v769_v43, %v768_v42  ;;  %v1147_v45 = vld [vmem:[%s1063_s24 + $0x30] sm:$0xff]  ;;  %v745_v49 = vld [vmem:[%s1063_s24 + $0x68] sm:$0xff] }
  0x1f   : > { %846 = vrot.lane.b32.xlu0 %v845_v14, %s1002_s26  ;;  %v940_v47 = vpack.i.bf16 %v1150_v46, %v1147_v45  ;;  %v945_v50 = vpack.i.bf16 %v745_v49, %v744_v48 }
  0x21   : > { %866 = vrot.lane.b32.xlu2 %v905_v19, %s1003_s27 }
  0x26   : > { %876 = vrot.lane.b32.xlu1 %v875_v22, %s1002_s26 }
  0x27   : > { %871 = vrot.lane.b32.xlu0 %v870_v23, %s1002_s26 }
  0x29   : > { %881 = vrot.lane.b32.xlu2 %v880_v28, %s1001_s25 }
  0x2e   : > { %891 = vrot.lane.b32.xlu1 %v890_v31, %s1003_s27 }
  0x2f   : > { %886 = vrot.lane.b32.xlu0 %v885_v32, %s1001_s25 }
  0x31   : > { %896 = vrot.lane.b32.xlu2 %v935_v35, %s1003_s27 }
  0x36   : > { %906 = vrot.lane.b32.xlu1 %v905_v19, %s1002_s26 }
  0x37   : > { %901 = vrot.lane.b32.xlu0 %v860_v12, %s1002_s26 }
  0x39   : > { %911 = vrot.lane.b32.xlu2 %v910_v38, %s1001_s25 }
  0x3e   : > { %921 = vrot.lane.b32.xlu1 %v845_v14, %s1003_s27 }
  0x3f   : > { %916 = vrot.lane.b32.xlu0 %v915_v41, %s1001_s25 }
  0x41   : > { %926 = vrot.lane.b32.xlu2 %v925_v44, %s1003_s27 }
  0x46   : > { %936 = vrot.lane.b32.xlu1 %v935_v35, %s1002_s26  ;;  %v200_v35 = vld [vmem:[%s1063_s24] sm:$0xff] }
  0x47   : > { %931 = vrot.lane.b32.xlu0 %v890_v31, %s1002_s26 }
  0x49   : > { %941 = vrot.lane.b32.xlu2 %v940_v47, %s1001_s25 }
  0x4e   : > { %951 = vrot.lane.b32.xlu1 %v875_v22, %s1003_s27 }
  0x4f   : > { %946 = vrot.lane.b32.xlu0 %v945_v50, %s1001_s25 }
  0x51   : > { %956 = vrot.lane.b32.xlu2 %v1075_v5, %s1003_s27 }
  0x73   : > { %v862_v53 = vpop.permute.xlu2 %861 }
  0x74   : > { %v864_v61 = vunpack.i.h.bf16 %v862_v53  ;;  %v863_v62 = vunpack.i.l.bf16 %v862_v53 }
  0x7b   : > { %v867_v54 = vpop.permute.xlu2 %866 }
  0x7c   : > { %v869_v17 = vunpack.i.h.bf16 %v867_v54  ;;  %v868_v18 = vunpack.i.l.bf16 %v867_v54 }
  0x83   : > { %v882_v3 = vpop.permute.xlu2 %881 }
  0x84   : > { %v884_v38 = vunpack.i.h.bf16 %v882_v3 }
  0x88   : > { %v852_v55 = vpop.permute.xlu1 %851 }
  0x89   : > { %v854_v56 = vunpack.i.h.bf16 %v852_v55  ;;  %v853_v57 = vunpack.i.l.bf16 %v852_v55  ;;  %v842_v58 = vpop.permute.xlu0 %841 }
  0x8a   : > { %v844_v59 = vunpack.i.h.bf16 %v842_v58  ;;  %v843_v60 = vunpack.i.l.bf16 %v842_v58 }
  0x8b   : > { %v897_v27 = vpop.permute.xlu2 %896 }
  0x8c   : > { %v468_v63 = vsel %vm459_vm0, %v744_v48, %v843_v60  ;;  %v469_v2 = vsel %vm459_vm0, %v745_v49, %v844_v59  ;;  %v899_v50 = vunpack.i.h.bf16 %v897_v27  ;;  %v898_v51 = vunpack.i.l.bf16 %v897_v27 }
  0x8d   : > { %v485_v4 = vsel %vm476_vm1, %v468_v63, %v853_v57  ;;  %v486_v5 = vsel %vm476_vm1, %v469_v2, %v854_v56 }
  0x8e   : > { %v502_v8 = vsel %vm493_vm2, %v485_v4, %v863_v62  ;;  %v503_v9 = vsel %vm493_vm2, %v486_v5, %v864_v61 }
  0x8f   : > { %v514_v10 = vpack.c.bf16 %v503_v9, %v502_v8 }
  0x90   : > { %v857_v11 = vpop.permute.xlu1 %856 }
  0x91   : > { %v859_v12 = vunpack.i.h.bf16 %v857_v11  ;;  %v858_v13 = vunpack.i.l.bf16 %v857_v11  ;;  %v847_v14 = vpop.permute.xlu0 %846  ;;  %782 = vmatmul.msk.bf16.vlgmr.msra.gmra.mxu2 %vm538_vm3, %v514_v10 }
  0x92   : > { %v849_v15 = vunpack.i.h.bf16 %v847_v14  ;;  %v848_v16 = vunpack.i.l.bf16 %v847_v14 }
  0x93   : > { %v912_v44 = vpop.permute.xlu2 %911 }
  0x94   : > { %v472_v19 = vsel %vm459_vm0, %v1129_v36, %v848_v16  ;;  %v473_v20 = vsel %vm459_vm0, %v1132_v37, %v849_v15  ;;  %v201_v36 = vld [vmem:[%s1063_s24 + $0x8] sm:$0xff]  ;;  %v883_v37 = vunpack.i.l.bf16 %v882_v3  ;;  %v914_v9 = vunpack.i.h.bf16 %v912_v44 }
  0x95   : > { %v489_v21 = vsel %vm476_vm1, %v472_v19, %v858_v13  ;;  %v490_v22 = vsel %vm476_vm1, %v473_v20, %v859_v12  ;;  %v913_v10 = vunpack.i.l.bf16 %v912_v44 }
  0x96   : > { %v506_v23 = vsel %vm493_vm2, %v489_v21, %v868_v18  ;;  %v507_v26 = vsel %vm493_vm2, %v490_v22, %v869_v17 }
  0x97   : > { %v516_v28 = vpack.c.bf16 %v507_v26, %v506_v23 }
  0x98   : > { %v877_v31 = vpop.permute.xlu1 %876 }
  0x99   : > { %v872_v32 = vpop.permute.xlu0 %871  ;;  %784 = vmatmul.msk.bf16.vlgmr.msra.gmra.mxu3 %vm538_vm3, %v516_v28  ;;  %v879_v39 = vunpack.i.h.bf16 %v877_v31  ;;  %v878_v40 = vunpack.i.l.bf16 %v877_v31 }
  0x9a   : > { %v874_v33 = vunpack.i.h.bf16 %v872_v32  ;;  %v873_v34 = vunpack.i.l.bf16 %v872_v32 }
  0x9b   : > { %v464_v56 = vsel %vm459_vm0, %v1147_v45, %v878_v40  ;;  %v465_v57 = vsel %vm459_vm0, %v1150_v46, %v879_v39  ;;  %v927_v4 = vpop.permute.xlu2 %926 }
  0x9c   : > { %v460_v41 = vsel %vm459_vm0, %v200_v35, %v873_v34  ;;  %v461_v42 = vsel %vm459_vm0, %v201_v36, %v874_v33  ;;  %v929_v19 = vunpack.i.h.bf16 %v927_v4  ;;  %v928_v20 = vunpack.i.l.bf16 %v927_v4 }
  0x9d   : > { %v477_v52 = vsel %vm476_vm1, %v460_v41, %v883_v37  ;;  %v478_v53 = vsel %vm476_vm1, %v461_v42, %v884_v38 }
  0xa0   : > { %v892_v43 = vpop.permute.xlu1 %891 }
  0xa1   : > { %v894_v47 = vunpack.i.h.bf16 %v892_v43  ;;  %v893_v48 = vunpack.i.l.bf16 %v892_v43  ;;  %v887_v49 = vpop.permute.xlu0 %886 }
  0xa2   : > { %v889_v54 = vunpack.i.h.bf16 %v887_v49  ;;  %v888_v55 = vunpack.i.l.bf16 %v887_v49 }
  0xa3   : > { %v494_v58 = vsel %vm493_vm2, %v477_v52, %v893_v48  ;;  %v495_v59 = vsel %vm493_vm2, %v478_v53, %v894_v47  ;;  %v942_v34 = vpop.permute.xlu2 %941 }
  0xa4   : > { %v481_v60 = vsel %vm476_vm1, %v464_v56, %v888_v55  ;;  %v482_v61 = vsel %vm476_vm1, %v465_v57, %v889_v54  ;;  %v510_v62 = vpack.c.bf16 %v495_v59, %v494_v58  ;;  %v944_v40 = vunpack.i.h.bf16 %v942_v34 }
  0xa5   : > { %v498_v63 = vsel %vm493_vm2, %v481_v60, %v898_v51  ;;  %v499_v2 = vsel %vm493_vm2, %v482_v61, %v899_v50  ;;  %v943_v41 = vunpack.i.l.bf16 %v942_v34 }
  0xa6   : > { %778 = vmatmul.msk.bf16.vlgmr.msra.gmra.mxu0 %vm538_vm3, %v510_v62  ;;  %v512_v3 = vpack.c.bf16 %v499_v2, %v498_v63 }
  0xa8   : > { %780 = vmatmul.msk.bf16.vlgmr.msra.gmra.mxu1 %vm538_vm3, %v512_v3  ;;  %v907_v45 = vpop.permute.xlu1 %906 }
  0xa9   : > { %v902_v46 = vpop.permute.xlu0 %901  ;;  %v909_v11 = vunpack.i.h.bf16 %v907_v45  ;;  %v908_v12 = vunpack.i.l.bf16 %v907_v45 }
  0xaa   : > { %v904_v5 = vunpack.i.h.bf16 %v902_v46  ;;  %v903_v8 = vunpack.i.l.bf16 %v902_v46 }
  0xab   : > { %v474_v27 = vsel %vm459_vm0, %v1081_v6, %v908_v12  ;;  %v957_v42 = vpop.permute.xlu2 %956 }
  0xac   : > { %v470_v13 = vsel %vm459_vm0, %v1066_v0, %v903_v8  ;;  %v471_v14 = vsel %vm459_vm0, %v1069_v1, %v904_v5  ;;  %v475_v0 = vsel %vm459_vm0, %v1084_v7, %v909_v11  ;;  %v959_v53 = vunpack.i.h.bf16 %v957_v42 }
  0xad   : > { %v487_v21 = vsel %vm476_vm1, %v470_v13, %v913_v10  ;;  %v488_v22 = vsel %vm476_vm1, %v471_v14, %v914_v9  ;;  %v958_v54 = vunpack.i.l.bf16 %v957_v42 }
  0xb0   : > { %v922_v15 = vpop.permute.xlu1 %921 }
  0xb1   : > { %v924_v16 = vunpack.i.h.bf16 %v922_v15  ;;  %v923_v17 = vunpack.i.l.bf16 %v922_v15  ;;  %v917_v18 = vpop.permute.xlu0 %916 }
  0xb2   : > { %v919_v23 = vunpack.i.h.bf16 %v917_v18  ;;  %v918_v26 = vunpack.i.l.bf16 %v917_v18 }
  0xb3   : > { %v504_v1 = vsel %vm493_vm2, %v487_v21, %v923_v17  ;;  %v505_v28 = vsel %vm493_vm2, %v488_v22, %v924_v16 }
  0xb4   : > { %v491_v31 = vsel %vm476_vm1, %v474_v27, %v918_v26  ;;  %v492_v32 = vsel %vm476_vm1, %v475_v0, %v919_v23  ;;  %v515_v33 = vpack.c.bf16 %v505_v28, %v504_v1 }
  0xb5   : > { %v508_v35 = vsel %vm493_vm2, %v491_v31, %v928_v20  ;;  %v509_v36 = vsel %vm493_vm2, %v492_v32, %v929_v19 }
  0xb6   : > { %783 = vmatmul.msk.bf16.gmra.mxu2 %vm538_vm3, %v515_v33  ;;  %v517_v6 = vpack.c.bf16 %v509_v36, %v508_v35 }
  0xb8   : > { %785 = vmatmul.msk.bf16.gmra.mxu3 %vm538_vm3, %v517_v6  ;;  %v937_v7 = vpop.permute.xlu1 %936 }
  0xb9   : > { %v932_v38 = vpop.permute.xlu0 %931  ;;  %v939_v43 = vunpack.i.h.bf16 %v937_v7  ;;  %v938_v44 = vunpack.i.l.bf16 %v937_v7 }
  0xba   : > { %v934_v37 = vunpack.i.h.bf16 %v932_v38  ;;  %v933_v39 = vunpack.i.l.bf16 %v932_v38 }
  0xbb   : > { %v466_v59 = vsel %vm459_vm0, %v1115_v29, %v938_v44 }
  0xbc   : > { %v462_v47 = vsel %vm459_vm0, %v1103_v24, %v933_v39  ;;  %v463_v48 = vsel %vm459_vm0, %v1106_v25, %v934_v37  ;;  %v467_v24 = vsel %vm459_vm0, %v1118_v30, %v939_v43  ;;  %v960_v30 = vld [vmem:[%s1298_s2] ss:$0 sm:$0xff] }
  0xbd   : > { %v479_v55 = vsel %vm476_vm1, %v462_v47, %v943_v41  ;;  %v480_v56 = vsel %vm476_vm1, %v463_v48, %v944_v40 }
  0xc0   : > { %v952_v49 = vpop.permute.xlu1 %951 }
  0xc1   : > { %v954_v50 = vunpack.i.h.bf16 %v952_v49  ;;  %v953_v51 = vunpack.i.l.bf16 %v952_v49  ;;  %v947_v52 = vpop.permute.xlu0 %946 }
  0xc2   : > { %v949_v57 = vunpack.i.h.bf16 %v947_v52  ;;  %v948_v58 = vunpack.i.l.bf16 %v947_v52 }
  0xc3   : > { %v496_v25 = vsel %vm493_vm2, %v479_v55, %v953_v51  ;;  %v497_v60 = vsel %vm493_vm2, %v480_v56, %v954_v50 }
  0xc4   : > { %v483_v61 = vsel %vm476_vm1, %v466_v59, %v948_v58  ;;  %v484_v62 = vsel %vm476_vm1, %v467_v24, %v949_v57  ;;  %v511_v63 = vpack.c.bf16 %v497_v60, %v496_v25 }
  0xc5   : > { %v500_v2 = vsel %vm493_vm2, %v483_v61, %v958_v54  ;;  %v501_v3 = vsel %vm493_vm2, %v484_v62, %v959_v53 }
  0xc6   : > { %779 = vmatmul.msk.bf16.gmra.mxu0 %vm538_vm3, %v511_v63  ;;  %v513_v29 = vpack.c.bf16 %v501_v3, %v500_v2 }
  0xc8   : > { %781 = vmatmul.msk.bf16.gmra.mxu1 %vm538_vm3, %v513_v29 }
 0x114   : > { %v592_v45 = vpop.f32.mrf.mxu2 }
 0x115   : > { %v593_v46 = vadd.f32 %v960_v30, %v592_v45 }
 0x117   : > { %620 = vst.msk [vmem:[%s1247_s21 + $0x40] sm:$0xff] %vm476_vm1, %v593_v46 }
 0x11c   : > { %v594_v4 = vpop.f32.mrf.mxu2  ;;  %v602_v5 = vpop.f32.mrf.mxu3 }
 0x11d   : > { %v595_v8 = vadd.f32 %v960_v30, %v594_v4  ;;  %v603_v9 = vadd.f32 %v960_v30, %v602_v5 }
 0x11f   : > { %621 = vst.msk [vmem:[%s1247_s21 + $0x48] sm:$0xff] %vm476_vm1, %v595_v8 }
 0x120   : > { %624 = vst.msk [vmem:[%s1247_s21 + $0x60] sm:$0xff] %vm476_vm1, %v603_v9 }
 0x123   : > { %v572_v10 = vpop.f32.mrf.mxu0 }
 0x124   : > { %v573_v11 = vadd.f32 %v960_v30, %v572_v10  ;;  %v604_v12 = vpop.f32.mrf.mxu3 }
 0x125   : > { %v605_v13 = vadd.f32 %v960_v30, %v604_v12  ;;  %v582_v14 = vpop.f32.mrf.mxu1 }
 0x126   : > { %612 = vst.msk [vmem:[%s1247_s21] sm:$0xff] %vm476_vm1, %v573_v11  ;;  %v583_v15 = vadd.f32 %v960_v30, %v582_v14 }
 0x127   : > { %625 = vst.msk [vmem:[%s1247_s21 + $0x68] sm:$0xff] %vm476_vm1, %v605_v13 }
 0x128   : > { %616 = vst.msk [vmem:[%s1247_s21 + $0x20] sm:$0xff] %vm476_vm1, %v583_v15 }
 0x12b   : > { %v574_v16 = vpop.f32.mrf.mxu0 }
 0x12c   : > { %v575_v17 = vadd.f32 %v960_v30, %v574_v16 }
 0x12d   : > { %v584_v18 = vpop.f32.mrf.mxu1 }
 0x12e   : > { %613 = vst.msk [vmem:[%s1247_s21 + $0x8] sm:$0xff] %vm476_vm1, %v575_v17  ;;  %v585_v19 = vadd.f32 %v960_v30, %v584_v18 }
 0x130   : > { %617 = vst.msk [vmem:[%s1247_s21 + $0x28] sm:$0xff] %vm476_vm1, %v585_v19 }
 0x139   : > { %v597_v20 = vpop.f32.mrf.mxu2 }
 0x13a   : > { %v598_v21 = vadd.f32 %v960_v30, %v597_v20 }
 0x13b   : > { %v607_v22 = vpop.f32.mrf.mxu3 }
 0x13c   : > { %622 = vst.msk [vmem:[%s1247_s21 + $0x50] sm:$0xff] %vm476_vm1, %v598_v21  ;;  %v608_v23 = vadd.f32 %v960_v30, %v607_v22 }
 0x13e   : > { %626 = vst.msk [vmem:[%s1247_s21 + $0x70] sm:$0xff] %vm476_vm1, %v608_v23 }
 0x141   : > { %v599_v26 = vpop.f32.mrf.mxu2 }
 0x142   : > { %v600_v27 = vadd.f32 %v960_v30, %v599_v26 }
 0x143   : > { %v609_v0 = vpop.f32.mrf.mxu3  ;;  %v577_v1 = vpop.f32.mrf.mxu0 }
 0x144   : > { %623 = vst.msk [vmem:[%s1247_s21 + $0x58] sm:$0xff] %vm476_vm1, %v600_v27  ;;  %v610_v28 = vadd.f32 %v960_v30, %v609_v0  ;;  %v578_v31 = vadd.f32 %v960_v30, %v577_v1 }
 0x145   : > { %v587_v32 = vpop.f32.mrf.mxu1 }
 0x146   : > { %627 = vst.msk [vmem:[%s1247_s21 + $0x78] sm:$0xff] %vm476_vm1, %v610_v28  ;;  %v588_v33 = vadd.f32 %v960_v30, %v587_v32 }
 0x147   : > { %614 = vst.msk [vmem:[%s1247_s21 + $0x10] sm:$0xff] %vm476_vm1, %v578_v31 }
 0x148   : > { %618 = vst.msk [vmem:[%s1247_s21 + $0x30] sm:$0xff] %vm476_vm1, %v588_v33 }
 0x14b   : > { %v579_v34 = vpop.f32.mrf.mxu0 }
 0x14c   : > { %v580_v35 = vadd.f32 %v960_v30, %v579_v34 }
 0x14d   : > { %v589_v36 = vpop.f32.mrf.mxu1 }
 0x14e   : > { %615 = vst.msk [vmem:[%s1247_s21 + $0x18] sm:$0xff] %vm476_vm1, %v580_v35  ;;  %v590_v6 = vadd.f32 %v960_v30, %v589_v36 }
 0x150   : > { %619 = vst.msk [vmem:[%s1247_s21 + $0x38] sm:$0xff] %vm476_vm1, %v590_v6 }
 0x151 PF: > { %s13_s16 = sadd.s32 1, %s999_s16   ;;  %s1300_s12 = smov %s991_s14 }
 0x152   : > { %p10_p7 = scmp.ge.s32.totalorder %s13_s16, 6   ;;  %s1301_s13 = smov %s995_s15 }
 0x153   : > { %s1302_s14 = smov %s1305_s17  ;;  %s1303_s15 = smov %s1309_s18 }
 0x154   :  { %12 = sbr.rel (!%p10_p7) target bundleno = 3 (0x3), region = 64 }

// kernel: reconstructor_forward.5
= control target key start
LH: loop header
LB: loop body
LE: loop exit
PB: predicated region body
PF: predicated region fallthrough
CT: control target
= control target key end

     0   :  { %s7850_s12 = smov 0   ;;  %s7852_s13 = smov 0   ;;  %s11719_s0 = inlined_call_operand.vmem [shape: f32[2,36,36,4], index: 0, kind: input, shape index: {}]   ;;  %s11720_s1 = inlined_call_operand.vmem [shape: bf16[5,20,3], index: 1, kind: input, shape index: {}]   ;;  %s11721_s2 = inlined_call_operand.vmem [shape: f32[1,3], index: 2, kind: input, shape index: {}]   ;;  %s11722_s3 = inlined_call_operand.vmem [shape: f32[2,32,32,3], index: 3, kind: output, shape index: {}]  }
   0x1   :  { %s7854_s14 = smov 0   ;;  %s7856_s15 = smov 0  }
   0x2   :  { %s7858_s16 = smov 0  }
   0x3 LB: > { %s22_s17 = sadd.s32 1, %s7816_s14  ;;  %s25_s18 = sadd.s32 1, %s7820_s15  ;;  %s7824_s16 = sphi %s7858_s16, %s13_s16   ;;  %s7820_s15 = sphi %s7856_s15, %s12191_s15   ;;  %s7816_s14 = sphi %s7854_s14, %s12190_s14   ;;  %s7812_s13 = sphi %s7852_s13, %s12189_s13   ;;  %s7808_s12 = sphi %s7850_s12, %s12188_s12  }
   0x4   : > { %p23_p0 = scmp.ge.s32.totalorder %s22_s17, 4  ;;  %p5339_p1 = scmp.ge.s32.totalorder %s7824_s16, 1 }
   0x5   : > { %p151_p2 = scmp.lt.s32.totalorder %s7824_s16, 9 }
   0x6   : > { %s12193_s17 = smov (%p23_p0, %s22_s17), 0  ;;  %s12195_s18 = smov (!%p23_p0, %s25_s18), %s7820_s15 }
   0x7   : > { %p152_p3 = pnand %p5339_p1, %p151_p2  ;;  %p27_p4 = scmp.ge.s32.totalorder %s12195_s18, 2 }
   0x9   : > { %s12197_s18 = smov (%p27_p4, %s12195_s18), 0  ;;  %155 = sbr.rel (%p152_p3) target bundleno = 1198 (0x4ae), region = 32 }
   0xe   : > { %p180_p5 = scmp.lt.s32.totalorder %s7812_s13, 1  ;;  %s5346_s19 = smul.u32 320, %s7808_s12  ;;  %vm1904_vm0 = vcmask 1041408   ;;  %vm872_vm1 = vcmask 31744   ;;  %vm905_vm2 = vcmask 64512   ;;  %vm938_vm3 = vcmask 97280  }
   0xf   : > { %s7826_s25 = smov 4   ;;  %s7827_s26 = smov 8   ;;  %vm971_vm4 = vcmask 130048   ;;  %vm1855_vm5 = vcmask 162816   ;;  %vm5194_vm6 = vcmask 23552  }
  0x10   : > { %s12199_s13 = smov (!%p180_p5, %s7812_s13), 1  ;;  %s7828_s27 = smov 12  }
  0x11   : > { %s6120_s20 = smul.u32 1440, %s12199_s13  ;;  %s7829_s28 = smov 16  }
  0x13   : > { %s184_s23 = scalar_lea.vmem %s11719_s0, %s6120_s20 }
  0x14   : > { %s7889_s24 = scalar_lea.vmem %s184_s23, %s5346_s19 }
  0x15   : > { %v240_v0 = vld [vmem:[%s7889_s24 + $0x51] sm:$0xff]  ;;  %v241_v1 = vld [vmem:[%s7889_s24 + $0x59] sm:$0xff]  ;;  %v236_v2 = vld [vmem:[%s7889_s24 + $0x29] sm:$0xff] }
  0x16   : > { %v7894_v3 = vpack.i.bf16 %v241_v1, %v240_v0  ;;  %v237_v4 = vld [vmem:[%s7889_s24 + $0x31] sm:$0xff]  ;;  %v232_v5 = vld [vmem:[%s7889_s24 + $0x1] sm:$0xff]  ;;  %v233_v6 = vld [vmem:[%s7889_s24 + $0x9] sm:$0xff] }
  0x17   : > { %v7899_v7 = vpack.i.bf16 %v237_v4, %v236_v2  ;;  %v6165_v8 = vpack.i.bf16 %v233_v6, %v232_v5  ;;  %v242_v9 = vld [vmem:[%s7889_s24 + $0x61] sm:$0xff]  ;;  %v243_v10 = vld [vmem:[%s7889_s24 + $0x69] sm:$0xff]  ;;  %v238_v11 = vld [vmem:[%s7889_s24 + $0x39] sm:$0xff] }
  0x18   : > { %6186 = vrot.lane.b32.xlu2 %v7894_v3, %s7826_s25  ;;  %v239_v12 = vld [vmem:[%s7889_s24 + $0x41] sm:$0xff]  ;;  %v234_v13 = vld [vmem:[%s7889_s24 + $0x11] sm:$0xff]  ;;  %v235_v14 = vld [vmem:[%s7889_s24 + $0x19] sm:$0xff]  ;;  %v7912_v15 = vpack.i.bf16 %v243_v10, %v242_v9 }
  0x19   : > { %6176 = vrot.lane.b32.xlu1 %v7899_v7, %s7826_s25  ;;  %6166 = vrot.lane.b32.xlu0 %v6165_v8, %s7826_s25  ;;  %v7914_v16 = vpack.i.bf16 %v239_v12, %v238_v11  ;;  %v6170_v17 = vpack.i.bf16 %v235_v14, %v234_v13  ;;  %v248_v18 = vld [vmem:[%s7889_s24 + $0xa1] sm:$0xff]  ;;  %v249_v19 = vld [vmem:[%s7889_s24 + $0xa9] sm:$0xff] }
  0x1a   : > { %v246_v20 = vld [vmem:[%s7889_s24 + $0x89] sm:$0xff]  ;;  %v247_v21 = vld [vmem:[%s7889_s24 + $0x91] sm:$0xff]  ;;  %v244_v22 = vld [vmem:[%s7889_s24 + $0x79] sm:$0xff]  ;;  %v7927_v24 = vpack.i.bf16 %v249_v19, %v248_v18 }
  0x1b   : > { %v245_v23 = vld [vmem:[%s7889_s24 + $0x81] sm:$0xff]  ;;  %v7929_v25 = vpack.i.bf16 %v247_v21, %v246_v20  ;;  %v254_v27 = vld [vmem:[%s7889_s24 + $0xd9] sm:$0xff]  ;;  %v252_v29 = vld [vmem:[%s7889_s24 + $0xc9] sm:$0xff] }
  0x1c   : > { %v7931_v26 = vpack.i.bf16 %v245_v23, %v244_v22  ;;  %v255_v28 = vld [vmem:[%s7889_s24 + $0xe1] sm:$0xff]  ;;  %v253_v30 = vld [vmem:[%s7889_s24 + $0xd1] sm:$0xff]  ;;  %v251_v32 = vld [vmem:[%s7889_s24 + $0xb9] sm:$0xff] }
  0x1d   : > { %v250_v31 = vld [vmem:[%s7889_s24 + $0xb1] sm:$0xff]  ;;  %v7945_v33 = vpack.i.bf16 %v255_v28, %v254_v27  ;;  %v7947_v34 = vpack.i.bf16 %v253_v30, %v252_v29  ;;  %v260_v36 = vld [vmem:[%s7889_s24 + $0x119] sm:$0xff]  ;;  %v261_v37 = vld [vmem:[%s7889_s24 + $0x121] sm:$0xff] }
  0x1e   : > { %v7949_v35 = vpack.i.bf16 %v251_v32, %v250_v31  ;;  %v258_v38 = vld [vmem:[%s7889_s24 + $0x101] sm:$0xff]  ;;  %v259_v39 = vld [vmem:[%s7889_s24 + $0x109] sm:$0xff]  ;;  %v256_v40 = vld [vmem:[%s7889_s24 + $0xf1] sm:$0xff]  ;;  %v7963_v42 = vpack.i.bf16 %v261_v37, %v260_v36 }
  0x1f   : > { %v257_v41 = vld [vmem:[%s7889_s24 + $0xf9] sm:$0xff]  ;;  %v7965_v43 = vpack.i.bf16 %v259_v39, %v258_v38  ;;  %v264_v47 = vld [vmem:[%s7889_s24 + $0x2] sm:$0xff]  ;;  %v265_v48 = vld [vmem:[%s7889_s24 + $0xa] sm:$0xff] }
  0x20   : > { %6191 = vrot.lane.b32.xlu2 %v7912_v15, %s7826_s25  ;;  %v7967_v44 = vpack.i.bf16 %v257_v41, %v256_v40  ;;  %v266_v45 = vld [vmem:[%s7889_s24 + $0x12] sm:$0xff]  ;;  %v267_v46 = vld [vmem:[%s7889_s24 + $0x1a] sm:$0xff]  ;;  %v262_v49 = vld [vmem:[%s7889_s24 + $0x129] sm:$0xff]  ;;  %v6245_v52 = vpack.i.bf16 %v265_v48, %v264_v47 }
  0x21   : > { %6181 = vrot.lane.b32.xlu1 %v7914_v16, %s7826_s25  ;;  %6171 = vrot.lane.b32.xlu0 %v6170_v17, %s7826_s25  ;;  %v263_v50 = vld [vmem:[%s7889_s24 + $0x131] sm:$0xff]  ;;  %v6250_v51 = vpack.i.bf16 %v267_v46, %v266_v45  ;;  %v273_v55 = vld [vmem:[%s7889_s24 + $0x5a] sm:$0xff] }
  0x22   : > { %v7981_v53 = vpack.i.bf16 %v263_v50, %v262_v49  ;;  %v272_v54 = vld [vmem:[%s7889_s24 + $0x52] sm:$0xff]  ;;  %v270_v56 = vld [vmem:[%s7889_s24 + $0x3a] sm:$0xff]  ;;  %v271_v57 = vld [vmem:[%s7889_s24 + $0x42] sm:$0xff] }
  0x23   : > { %v268_v58 = vld [vmem:[%s7889_s24 + $0x2a] sm:$0xff]  ;;  %v269_v59 = vld [vmem:[%s7889_s24 + $0x32] sm:$0xff]  ;;  %v7993_v60 = vpack.i.bf16 %v273_v55, %v272_v54  ;;  %v7995_v61 = vpack.i.bf16 %v271_v57, %v270_v56  ;;  %v276_v1 = vld [vmem:[%s7889_s24 + $0x7a] sm:$0xff] }
  0x24   : > { %v7997_v62 = vpack.i.bf16 %v269_v59, %v268_v58  ;;  %v278_v63 = vld [vmem:[%s7889_s24 + $0x8a] sm:$0xff]  ;;  %v279_v0 = vld [vmem:[%s7889_s24 + $0x92] sm:$0xff]  ;;  %v277_v2 = vld [vmem:[%s7889_s24 + $0x82] sm:$0xff] }
  0x25   : > { %v274_v4 = vld [vmem:[%s7889_s24 + $0x62] sm:$0xff]  ;;  %v275_v5 = vld [vmem:[%s7889_s24 + $0x6a] sm:$0xff]  ;;  %v8011_v6 = vpack.i.bf16 %v279_v0, %v278_v63  ;;  %v8013_v8 = vpack.i.bf16 %v277_v2, %v276_v1  ;;  %v285_v11 = vld [vmem:[%s7889_s24 + $0xd2] sm:$0xff] }
  0x26   : > { %v8015_v9 = vpack.i.bf16 %v275_v5, %v274_v4  ;;  %v284_v10 = vld [vmem:[%s7889_s24 + $0xca] sm:$0xff]  ;;  %v282_v12 = vld [vmem:[%s7889_s24 + $0xb2] sm:$0xff]  ;;  %v283_v13 = vld [vmem:[%s7889_s24 + $0xba] sm:$0xff] }
  0x27   : > { %v280_v14 = vld [vmem:[%s7889_s24 + $0xa2] sm:$0xff]  ;;  %v281_v17 = vld [vmem:[%s7889_s24 + $0xaa] sm:$0xff]  ;;  %v6295_v18 = vpack.i.bf16 %v285_v11, %v284_v10  ;;  %v6290_v19 = vpack.i.bf16 %v283_v13, %v282_v12  ;;  %v288_v23 = vld [vmem:[%s7889_s24 + $0xf2] sm:$0xff] }
  0x28   : > { %6206 = vrot.lane.b32.xlu2 %v7927_v24, %s7826_s25  ;;  %v8029_v20 = vpack.i.bf16 %v281_v17, %v280_v14  ;;  %v290_v21 = vld [vmem:[%s7889_s24 + $0x102] sm:$0xff]  ;;  %v291_v22 = vld [vmem:[%s7889_s24 + $0x10a] sm:$0xff]  ;;  %v289_v27 = vld [vmem:[%s7889_s24 + $0xfa] sm:$0xff] }
  0x29   : > { %6201 = vrot.lane.b32.xlu1 %v7929_v25, %s7826_s25  ;;  %6196 = vrot.lane.b32.xlu0 %v7931_v26, %s7826_s25  ;;  %v286_v28 = vld [vmem:[%s7889_s24 + $0xda] sm:$0xff]  ;;  %v287_v29 = vld [vmem:[%s7889_s24 + $0xe2] sm:$0xff]  ;;  %v6310_v30 = vpack.i.bf16 %v291_v22, %v290_v21  ;;  %v6305_v31 = vpack.i.bf16 %v289_v27, %v288_v23 }
  0x2a   : > { %v8041_v32 = vpack.i.bf16 %v287_v29, %v286_v28  ;;  %v296_v36 = vld [vmem:[%s7889_s24 + $0x3] sm:$0xff]  ;;  %v297_v37 = vld [vmem:[%s7889_s24 + $0xb] sm:$0xff]  ;;  %v292_v40 = vld [vmem:[%s7889_s24 + $0x11a] sm:$0xff] }
  0x2b   : > { %v294_v38 = vld [vmem:[%s7889_s24 + $0x12a] sm:$0xff]  ;;  %v295_v39 = vld [vmem:[%s7889_s24 + $0x132] sm:$0xff]  ;;  %v293_v41 = vld [vmem:[%s7889_s24 + $0x122] sm:$0xff]  ;;  %v6325_v45 = vpack.i.bf16 %v297_v37, %v296_v36 }
  0x2c   : > { %v6320_v46 = vpack.i.bf16 %v295_v39, %v294_v38  ;;  %v8053_v47 = vpack.i.bf16 %v293_v41, %v292_v40  ;;  %v302_v48 = vld [vmem:[%s7889_s24 + $0x3b] sm:$0xff]  ;;  %v303_v49 = vld [vmem:[%s7889_s24 + $0x43] sm:$0xff]  ;;  %v300_v50 = vld [vmem:[%s7889_s24 + $0x2b] sm:$0xff] }
  0x2d   : > { %v299_v54 = vld [vmem:[%s7889_s24 + $0x1b] sm:$0xff]  ;;  %v6340_v55 = vpack.i.bf16 %v303_v49, %v302_v48  ;;  %v309_v59 = vld [vmem:[%s7889_s24 + $0x83] sm:$0xff]  ;;  %v307_v1 = vld [vmem:[%s7889_s24 + $0x6b] sm:$0xff] }
  0x2e   : > { %v308_v58 = vld [vmem:[%s7889_s24 + $0x7b] sm:$0xff]  ;;  %v306_v63 = vld [vmem:[%s7889_s24 + $0x63] sm:$0xff]  ;;  %v304_v2 = vld [vmem:[%s7889_s24 + $0x53] sm:$0xff] }
  0x2f   : > { %v305_v4 = vld [vmem:[%s7889_s24 + $0x5b] sm:$0xff]  ;;  %v6355_v5 = vpack.i.bf16 %v309_v59, %v308_v58  ;;  %v6350_v10 = vpack.i.bf16 %v307_v1, %v306_v63  ;;  %v314_v12 = vld [vmem:[%s7889_s24 + $0xb3] sm:$0xff]  ;;  %v312_v14 = vld [vmem:[%s7889_s24 + $0xa3] sm:$0xff] }
  0x30   : > { %6221 = vrot.lane.b32.xlu2 %v7945_v33, %s7826_s25  ;;  %v6345_v11 = vpack.i.bf16 %v305_v4, %v304_v2  ;;  %v315_v13 = vld [vmem:[%s7889_s24 + $0xbb] sm:$0xff]  ;;  %v311_v21 = vld [vmem:[%s7889_s24 + $0x93] sm:$0xff]  ;;  %v319_v36 = vld [vmem:[%s7889_s24 + $0xe3] sm:$0xff] }
  0x31   : > { %6216 = vrot.lane.b32.xlu1 %v7947_v34, %s7826_s25  ;;  %6211 = vrot.lane.b32.xlu0 %v7949_v35, %s7826_s25  ;;  %v6370_v22 = vpack.i.bf16 %v315_v13, %v314_v12  ;;  %v320_v28 = vld [vmem:[%s7889_s24 + $0xf3] sm:$0xff]  ;;  %v321_v29 = vld [vmem:[%s7889_s24 + $0xfb] sm:$0xff] }
  0x32   : > { %v316_v37 = vld [vmem:[%s7889_s24 + $0xcb] sm:$0xff]  ;;  %v317_v38 = vld [vmem:[%s7889_s24 + $0xd3] sm:$0xff]  ;;  %v6385_v39 = vpack.i.bf16 %v321_v29, %v320_v28  ;;  %v324_v48 = vld [vmem:[%s7889_s24 + $0x11b] sm:$0xff] }
  0x33   : > { %v6375_v41 = vpack.i.bf16 %v317_v38, %v316_v37  ;;  %v332_v59 = vld [vmem:[%s7889_s24 + $0x2c] sm:$0xff]  ;;  %v333_v63 = vld [vmem:[%s7889_s24 + $0x34] sm:$0xff]  ;;  %v331_v4 = vld [vmem:[%s7889_s24 + $0x1c] sm:$0xff] }
  0x34   : > { %v330_v1 = vld [vmem:[%s7889_s24 + $0x14] sm:$0xff]  ;;  %v6415_v13 = vpack.i.bf16 %v333_v63, %v332_v59  ;;  %v334_v28 = vld [vmem:[%s7889_s24 + $0x3c] sm:$0xff]  ;;  %v335_v29 = vld [vmem:[%s7889_s24 + $0x44] sm:$0xff] }
  0x35   : > { %v350_v63 = vld [vmem:[%s7889_s24 + $0xdc] sm:$0xff] }
  0x38   : > { %6236 = vrot.lane.b32.xlu2 %v7963_v42, %s7826_s25 }
  0x39   : > { %6231 = vrot.lane.b32.xlu1 %v7965_v43, %s7826_s25  ;;  %6226 = vrot.lane.b32.xlu0 %v7967_v44, %s7826_s25 }
  0x40   : > { %6251 = vrot.lane.b32.xlu2 %v6250_v51, %s7827_s26  ;;  %v301_v51 = vld [vmem:[%s7889_s24 + $0x33] sm:$0xff] }
  0x41   : > { %6246 = vrot.lane.b32.xlu1 %v6245_v52, %s7827_s26  ;;  %6241 = vrot.lane.b32.xlu0 %v7981_v53, %s7826_s25  ;;  %v298_v52 = vld [vmem:[%s7889_s24 + $0x13] sm:$0xff]  ;;  %v6335_v56 = vpack.i.bf16 %v301_v51, %v300_v50  ;;  %v325_v50 = vld [vmem:[%s7889_s24 + $0x123] sm:$0xff] }
  0x42   : > { %v6330_v57 = vpack.i.bf16 %v299_v54, %v298_v52  ;;  %v322_v51 = vld [vmem:[%s7889_s24 + $0x103] sm:$0xff]  ;;  %v323_v52 = vld [vmem:[%s7889_s24 + $0x10b] sm:$0xff] }
  0x43   : > { %v6390_v58 = vpack.i.bf16 %v323_v52, %v322_v51  ;;  %v341_v51 = vld [vmem:[%s7889_s24 + $0x84] sm:$0xff] }
  0x48   : > { %6266 = vrot.lane.b32.xlu2 %v7993_v60, %s7827_s26 }
  0x49   : > { %6261 = vrot.lane.b32.xlu1 %v7995_v61, %s7827_s26  ;;  %6256 = vrot.lane.b32.xlu0 %v7997_v62, %s7827_s26 }
  0x50   : > { %6281 = vrot.lane.b32.xlu2 %v8011_v6, %s7827_s26 }
  0x51   : > { %6276 = vrot.lane.b32.xlu1 %v8013_v8, %s7827_s26  ;;  %6271 = vrot.lane.b32.xlu0 %v8015_v9, %s7827_s26 }
  0x58   : > { %6296 = vrot.lane.b32.xlu2 %v6295_v18, %s7827_s26  ;;  %v313_v18 = vld [vmem:[%s7889_s24 + $0xab] sm:$0xff] }
  0x59   : > { %6291 = vrot.lane.b32.xlu1 %v6290_v19, %s7827_s26  ;;  %6286 = vrot.lane.b32.xlu0 %v8029_v20, %s7827_s26  ;;  %v310_v19 = vld [vmem:[%s7889_s24 + $0x8b] sm:$0xff]  ;;  %v6365_v23 = vpack.i.bf16 %v313_v18, %v312_v14  ;;  %v6410_v14 = vpack.i.bf16 %v331_v4, %v330_v1 }
  0x5a   : > { %v6360_v27 = vpack.i.bf16 %v311_v21, %v310_v19  ;;  %v338_v19 = vld [vmem:[%s7889_s24 + $0x64] sm:$0xff]  ;;  %v339_v21 = vld [vmem:[%s7889_s24 + $0x6c] sm:$0xff] }
  0x5b   : > { %v6430_v37 = vpack.i.bf16 %v339_v21, %v338_v19  ;;  %v351_v1 = vld [vmem:[%s7889_s24 + $0xe4] sm:$0xff]  ;;  %v348_v4 = vld [vmem:[%s7889_s24 + $0xcc] sm:$0xff] }
  0x5c   : > { %v6460_v21 = vpack.i.bf16 %v351_v1, %v350_v63  ;;  %v359_v63 = vld [vmem:[%s7889_s24 + $0x134] sm:$0xff] }
  0x60   : > { %6311 = vrot.lane.b32.xlu2 %v6310_v30, %s7827_s26  ;;  %v318_v30 = vld [vmem:[%s7889_s24 + $0xdb] sm:$0xff] }
  0x61   : > { %6306 = vrot.lane.b32.xlu1 %v6305_v31, %s7827_s26  ;;  %6301 = vrot.lane.b32.xlu0 %v8041_v32, %s7827_s26  ;;  %v6380_v40 = vpack.i.bf16 %v319_v36, %v318_v30 }
  0x68   : > { %6326 = vrot.lane.b32.xlu2 %v6325_v45, %s7828_s27  ;;  %v326_v45 = vld [vmem:[%s7889_s24 + $0x12b] sm:$0xff] }
  0x69   : > { %6321 = vrot.lane.b32.xlu1 %v6320_v46, %s7827_s26  ;;  %6316 = vrot.lane.b32.xlu0 %v8053_v47, %s7827_s26  ;;  %v327_v46 = vld [vmem:[%s7889_s24 + $0x133] sm:$0xff] }
  0x70   : > { %6341 = vrot.lane.b32.xlu2 %v6340_v55, %s7828_s27 }
  0x71   : > { %6336 = vrot.lane.b32.xlu1 %v6335_v56, %s7828_s27  ;;  %6331 = vrot.lane.b32.xlu0 %v6330_v57, %s7828_s27  ;;  %v6400_v56 = vpack.i.bf16 %v327_v46, %v326_v45  ;;  %v6395_v57 = vpack.i.bf16 %v325_v50, %v324_v48  ;;  %v342_v45 = vld [vmem:[%s7889_s24 + $0x8c] sm:$0xff]  ;;  %v343_v48 = vld [vmem:[%s7889_s24 + $0x94] sm:$0xff] }
  0x72   : > { %v8071_v0 = vpop.permute.xlu2 %6186  ;;  %v340_v50 = vld [vmem:[%s7889_s24 + $0x7c] sm:$0xff] }
  0x73   : > { %11844 = vst [vmem:[#allocation2_spill] sm:$0xff] %v8071_v0  ;;  %v6435_v59 = vpack.i.bf16 %v341_v51, %v340_v50  ;;  %v5609_v0 = vld [vmem:[%s7889_s24 + $0x131] sm:$0xff] }
  0x78   : > { %6356 = vrot.lane.b32.xlu2 %v6355_v5, %s7828_s27  ;;  %v328_v5 = vld [vmem:[%s7889_s24 + $0x4] sm:$0xff] }
  0x79   : > { %6351 = vrot.lane.b32.xlu1 %v6350_v10, %s7828_s27  ;;  %6346 = vrot.lane.b32.xlu0 %v6345_v11, %s7828_s27  ;;  %v329_v10 = vld [vmem:[%s7889_s24 + $0xc] sm:$0xff] }
  0x7a   : > { %v8082_v17 = vpop.permute.xlu2 %6191  ;;  %v6405_v18 = vpack.i.bf16 %v329_v10, %v328_v5  ;;  %v349_v10 = vld [vmem:[%s7889_s24 + $0xd4] sm:$0xff] }
  0x7b   : > { %11845 = vst [vmem:[#allocation3_spill] sm:$0xff] %v8082_v17  ;;  %v5600_v17 = vld [vmem:[%s7889_s24 + $0xd9] sm:$0xff] }
  0x80   : > { %6371 = vrot.lane.b32.xlu2 %v6370_v22, %s7828_s27  ;;  %v336_v22 = vld [vmem:[%s7889_s24 + $0x54] sm:$0xff] }
  0x81   : > { %6366 = vrot.lane.b32.xlu1 %v6365_v23, %s7828_s27  ;;  %6361 = vrot.lane.b32.xlu0 %v6360_v27, %s7828_s27  ;;  %v337_v27 = vld [vmem:[%s7889_s24 + $0x5c] sm:$0xff] }
  0x82   : > { %v8093_v31 = vpop.permute.xlu2 %6206  ;;  %v6425_v38 = vpack.i.bf16 %v337_v27, %v336_v22  ;;  %v6455_v22 = vpack.i.bf16 %v349_v10, %v348_v4 }
  0x83   : > { %11846 = vst [vmem:[#allocation4_spill] sm:$0xff] %v8093_v31 }
  0x88   : > { %6386 = vrot.lane.b32.xlu2 %v6385_v39, %s7828_s27  ;;  %v6420_v39 = vpack.i.bf16 %v335_v29, %v334_v28  ;;  %v356_v28 = vld [vmem:[%s7889_s24 + $0x11c] sm:$0xff]  ;;  %v357_v29 = vld [vmem:[%s7889_s24 + $0x124] sm:$0xff] }
  0x89   : > { %6381 = vrot.lane.b32.xlu1 %v6380_v40, %s7828_s27  ;;  %6376 = vrot.lane.b32.xlu0 %v6375_v41, %s7828_s27  ;;  %v344_v40 = vld [vmem:[%s7889_s24 + $0xa4] sm:$0xff]  ;;  %v345_v41 = vld [vmem:[%s7889_s24 + $0xac] sm:$0xff]  ;;  %v6475_v50 = vpack.i.bf16 %v357_v29, %v356_v28 }
  0x8a   : > { %v8104_v49 = vpop.permute.xlu2 %6221  ;;  %v5410_v28 = vld [vmem:[%s7889_s24 + $0x149] sm:$0xff] }
  0x8b   : > { %11847 = vst [vmem:[#allocation5_spill] sm:$0xff] %v8104_v49  ;;  %v8109_v54 = vpop.permute.xlu1 %6176  ;;  %v8111_v55 = vpop.permute.xlu0 %6166  ;;  %v5590_v49 = vld [vmem:[%s7889_s24 + $0x79] sm:$0xff] }
  0x8c   : > { %11848 = vst [vmem:[#allocation6_spill] sm:$0xff] %v8109_v54  ;;  %v5624_v54 = vld [vmem:[%s7889_s24 + $0x8a] sm:$0xff] }
  0x8d   : > { %11849 = vst [vmem:[#allocation7_spill] sm:$0xff] %v8111_v55 }
  0x90   : > { %6401 = vrot.lane.b32.xlu2 %v6400_v56, %s7828_s27 }
  0x91   : > { %6396 = vrot.lane.b32.xlu1 %v6395_v57, %s7828_s27  ;;  %6391 = vrot.lane.b32.xlu0 %v6390_v58, %s7828_s27  ;;  %v6445_v57 = vpack.i.bf16 %v345_v41, %v344_v40  ;;  %v6440_v58 = vpack.i.bf16 %v343_v48, %v342_v45  ;;  %v352_v40 = vld [vmem:[%s7889_s24 + $0xf4] sm:$0xff]  ;;  %v353_v41 = vld [vmem:[%s7889_s24 + $0xfc] sm:$0xff] }
  0x92   : > { %v8119_v2 = vpop.permute.xlu2 %6236 }
  0x93   : > { %11850 = vst [vmem:[#allocation8_spill] sm:$0xff] %v8119_v2  ;;  %v8124_v11 = vpop.permute.xlu1 %6181  ;;  %v8126_v12 = vpop.permute.xlu0 %6171  ;;  %v5508_v2 = vld [vmem:[%s7889_s24 + $0x15c] sm:$0xff] }
  0x94   : > { %11851 = vst [vmem:[#allocation9_spill] sm:$0xff] %v8124_v11  ;;  %v5621_v11 = vld [vmem:[%s7889_s24 + $0x6a] sm:$0xff] }
  0x95   : > { %11852 = vst [vmem:[#allocation10_spill] sm:$0xff] %v8126_v12 }
  0x98   : > { %6416 = vrot.lane.b32.xlu2 %v6415_v13, %s7829_s28  ;;  %v346_v13 = vld [vmem:[%s7889_s24 + $0xb4] sm:$0xff] }
  0x99   : > { %6411 = vrot.lane.b32.xlu1 %v6410_v14, %s7829_s28  ;;  %6406 = vrot.lane.b32.xlu0 %v6405_v18, %s7829_s28  ;;  %v347_v14 = vld [vmem:[%s7889_s24 + $0xbc] sm:$0xff] }
  0x9a   : > { %v8134_v23 = vpop.permute.xlu2 %6251  ;;  %v6450_v27 = vpack.i.bf16 %v347_v14, %v346_v13 }
  0x9b   : > { %11853 = vst [vmem:[#allocation11_spill] sm:$0xff] %v8134_v23  ;;  %v8139_v30 = vpop.permute.xlu1 %6201  ;;  %v8141_v36 = vpop.permute.xlu0 %6196 }
  0x9c   : > { %11854 = vst [vmem:[#allocation12_spill] sm:$0xff] %v8139_v30 }
  0x9d   : > { %11855 = vst [vmem:[#allocation13_spill] sm:$0xff] %v8141_v36  ;;  %v5597_v36 = vld [vmem:[%s7889_s24 + $0xb9] sm:$0xff] }
  0xa0   : > { %6431 = vrot.lane.b32.xlu2 %v6430_v37, %s7829_s28  ;;  %v354_v37 = vld [vmem:[%s7889_s24 + $0x104] sm:$0xff] }
  0xa1   : > { %6426 = vrot.lane.b32.xlu1 %v6425_v38, %s7829_s28  ;;  %6421 = vrot.lane.b32.xlu0 %v6420_v39, %s7829_s28  ;;  %v355_v39 = vld [vmem:[%s7889_s24 + $0x10c] sm:$0xff] }
  0xa2   : > { %v8149_v46 = vpop.permute.xlu2 %6266  ;;  %v6470_v51 = vpack.i.bf16 %v355_v39, %v354_v37 }
  0xa3   : > { %11856 = vst [vmem:[#allocation14_spill] sm:$0xff] %v8149_v46  ;;  %v8154_v52 = vpop.permute.xlu1 %6216  ;;  %v8156_v56 = vpop.permute.xlu0 %6211 }
  0xa4   : > { %11857 = vst [vmem:[#allocation15_spill] sm:$0xff] %v8154_v52  ;;  %v5496_v52 = vld [vmem:[%s7889_s24 + $0xe4] sm:$0xff] }
  0xa5   : > { %11858 = vst [vmem:[#allocation16_spill] sm:$0xff] %v8156_v56  ;;  %v5501_v56 = vld [vmem:[%s7889_s24 + $0x11c] sm:$0xff] }
  0xa8   : > { %6446 = vrot.lane.b32.xlu2 %v6445_v57, %s7829_s28  ;;  %v6465_v57 = vpack.i.bf16 %v353_v41, %v352_v40 }
  0xa9   : > { %6441 = vrot.lane.b32.xlu1 %v6440_v58, %s7829_s28  ;;  %6436 = vrot.lane.b32.xlu0 %v6435_v59, %s7829_s28  ;;  %v358_v59 = vld [vmem:[%s7889_s24 + $0x12c] sm:$0xff] }
  0xaa   : > { %v8164_v5 = vpop.permute.xlu2 %6281  ;;  %v6480_v10 = vpack.i.bf16 %v359_v63, %v358_v59 }
  0xab   : > { %11859 = vst [vmem:[#allocation17_spill] sm:$0xff] %v8164_v5  ;;  %v8169_v18 = vpop.permute.xlu1 %6231  ;;  %v8171_v19 = vpop.permute.xlu0 %6226  ;;  %v5507_v5 = vld [vmem:[%s7889_s24 + $0x154] sm:$0xff] }
  0xac   : > { %11860 = vst [vmem:[#allocation18_spill] sm:$0xff] %v8169_v18 }
  0xad   : > { %11861 = vst [vmem:[#allocation19_spill] sm:$0xff] %v8171_v19  ;;  %v5478_v19 = vld [vmem:[%s7889_s24 + $0x34] sm:$0xff] }
  0xb0   : > { %6461 = vrot.lane.b32.xlu2 %v6460_v21, %s7829_s28 }
  0xb1   : > { %6456 = vrot.lane.b32.xlu1 %v6455_v22, %s7829_s28  ;;  %6451 = vrot.lane.b32.xlu0 %v6450_v27, %s7829_s28  ;;  %v5412_v27 = vld [vmem:[%s7889_s24 + $0x159] sm:$0xff] }
  0xb2   : > { %v8179_v38 = vpop.permute.xlu2 %6296 }
  0xb3   : > { %11862 = vst [vmem:[#allocation20_spill] sm:$0xff] %v8179_v38  ;;  %v8184_v45 = vpop.permute.xlu1 %6246  ;;  %v8186_v48 = vpop.permute.xlu0 %6241 }
  0xb4   : > { %11863 = vst [vmem:[#allocation21_spill] sm:$0xff] %v8184_v45 }
  0xb5   : > { %11864 = vst [vmem:[#allocation22_spill] sm:$0xff] %v8186_v48 }
  0xb8   : > { %6476 = vrot.lane.b32.xlu2 %v6475_v50, %s7829_s28 }
  0xb9   : > { %6471 = vrot.lane.b32.xlu1 %v6470_v51, %s7829_s28  ;;  %6466 = vrot.lane.b32.xlu0 %v6465_v57, %s7829_s28  ;;  %v5427_v51 = vld [vmem:[%s7889_s24 + $0xb2] sm:$0xff]  ;;  %v5428_v57 = vld [vmem:[%s7889_s24 + $0xba] sm:$0xff] }
  0xba   : > { %v8191_v58 = vpop.permute.xlu2 %6311 }
  0xbb   : > { %11865 = vst [vmem:[#allocation23_spill] sm:$0xff] %v8191_v58  ;;  %v8195_v1 = vpop.permute.xlu1 %6261  ;;  %v8197_v4 = vpop.permute.xlu0 %6256  ;;  %v5471_v58 = vld [vmem:[%s7889_s24 + $0x12b] sm:$0xff] }
  0xbc   : > { %11866 = vst [vmem:[#allocation24_spill] sm:$0xff] %v8195_v1 }
  0xbd   : > { %11867 = vst [vmem:[#allocation25_spill] sm:$0xff] %v8197_v4  ;;  %v5627_v4 = vld [vmem:[%s7889_s24 + $0xaa] sm:$0xff] }
  0xc0   : > { %6491 = vrot.lane.b32.xlu2 %v7914_v16, %s7826_s25 }
  0xc1   : > { %6486 = vrot.lane.b32.xlu1 %v7899_v7, %s7826_s25  ;;  %6481 = vrot.lane.b32.xlu0 %v6480_v10, %s7829_s28  ;;  %v6600_v10 = vpack.i.bf16 %v5428_v57, %v5427_v51  ;;  %v5441_v51 = vld [vmem:[%s7889_s24 + $0x142] sm:$0xff] }
  0xc2   : > { %v8204_v13 = vpop.permute.xlu2 %6326 }
  0xc3   : > { %11868 = vst [vmem:[#allocation26_spill] sm:$0xff] %v8204_v13  ;;  %v8206_v14 = vpop.permute.xlu1 %6276  ;;  %v8208_v21 = vpop.permute.xlu0 %6271 }
  0xc4   : > { %11869 = vst [vmem:[#allocation27_spill] sm:$0xff] %v8206_v14 }
  0xc5   : > { %11870 = vst [vmem:[#allocation28_spill] sm:$0xff] %v8208_v21  ;;  %v5603_v21 = vld [vmem:[%s7889_s24 + $0xf9] sm:$0xff] }
  0xc8   : > { %6506 = vrot.lane.b32.xlu2 %v7931_v26, %s7826_s25 }
  0xc9   : > { %6501 = vrot.lane.b32.xlu1 %v7912_v15, %s7826_s25  ;;  %6496 = vrot.lane.b32.xlu0 %v7894_v3, %s7826_s25 }
  0xca   : > { %v8216_v16 = vpop.permute.xlu2 %6341 }
  0xcb   : > { %11871 = vst [vmem:[#allocation29_spill] sm:$0xff] %v8216_v16  ;;  %v8218_v7 = vpop.permute.xlu1 %6291  ;;  %v8220_v22 = vpop.permute.xlu0 %6286  ;;  %v5620_v16 = vld [vmem:[%s7889_s24 + $0x62] sm:$0xff] }
  0xcc   : > { %11872 = vst [vmem:[#allocation30_spill] sm:$0xff] %v8218_v7 }
  0xcd   : > { %11873 = vst [vmem:[#allocation31_spill] sm:$0xff] %v8220_v22  ;;  %v5495_v22 = vld [vmem:[%s7889_s24 + $0xdc] sm:$0xff] }
  0xd0   : > { %6521 = vrot.lane.b32.xlu2 %v7949_v35, %s7826_s25 }
  0xd1   : > { %6516 = vrot.lane.b32.xlu1 %v7927_v24, %s7826_s25  ;;  %6511 = vrot.lane.b32.xlu0 %v7929_v25, %s7826_s25 }
  0xd2   : > { %v8228_v15 = vpop.permute.xlu2 %6356 }
  0xd3   : > { %11874 = vst [vmem:[#allocation32_spill] sm:$0xff] %v8228_v15  ;;  %v8230_v3 = vpop.permute.xlu1 %6306  ;;  %v8232_v26 = vpop.permute.xlu0 %6301  ;;  %v5596_v15 = vld [vmem:[%s7889_s24 + $0xb1] sm:$0xff] }
  0xd4   : > { %11875 = vst [vmem:[#allocation33_spill] sm:$0xff] %v8230_v3 }
  0xd5   : > { %11876 = vst [vmem:[#allocation34_spill] sm:$0xff] %v8232_v26  ;;  %v5465_v26 = vld [vmem:[%s7889_s24 + $0xf3] sm:$0xff] }
  0xd8   : > { %6536 = vrot.lane.b32.xlu2 %v7967_v44, %s7826_s25  ;;  %v5411_v44 = vld [vmem:[%s7889_s24 + $0x151] sm:$0xff] }
  0xd9   : > { %6531 = vrot.lane.b32.xlu1 %v7945_v33, %s7826_s25  ;;  %6526 = vrot.lane.b32.xlu0 %v7947_v34, %s7826_s25  ;;  %v5409_v34 = vld [vmem:[%s7889_s24 + $0x141] sm:$0xff]  ;;  %v6560_v39 = vpack.i.bf16 %v5412_v27, %v5411_v44  ;;  %v5436_v44 = vld [vmem:[%s7889_s24 + $0x10a] sm:$0xff] }
  0xda   : > { %v8240_v24 = vpop.permute.xlu2 %6371  ;;  %v6555_v40 = vpack.i.bf16 %v5410_v28, %v5409_v34  ;;  %v5433_v27 = vld [vmem:[%s7889_s24 + $0xf2] sm:$0xff]  ;;  %v5434_v34 = vld [vmem:[%s7889_s24 + $0xfa] sm:$0xff] }
  0xdb   : > { %11877 = vst [vmem:[#allocation35_spill] sm:$0xff] %v8240_v24  ;;  %v8242_v25 = vpop.permute.xlu1 %6321  ;;  %v8244_v35 = vpop.permute.xlu0 %6316  ;;  %v5489_v24 = vld [vmem:[%s7889_s24 + $0xa4] sm:$0xff] }
  0xdc   : > { %11878 = vst [vmem:[#allocation36_spill] sm:$0xff] %v8242_v25  ;;  %v5447_v25 = vld [vmem:[%s7889_s24 + $0x3b] sm:$0xff] }
  0xdd   : > { %11879 = vst [vmem:[#allocation37_spill] sm:$0xff] %v8244_v35 }
  0xe0   : > { %6551 = vrot.lane.b32.xlu2 %v7981_v53, %s7826_s25 }
  0xe1   : > { %6546 = vrot.lane.b32.xlu1 %v7963_v42, %s7826_s25  ;;  %6541 = vrot.lane.b32.xlu0 %v7965_v43, %s7826_s25 }
  0xe2   : > { %v8253_v33 = vpop.permute.xlu2 %6386 }
  0xe3   : > { %11880 = vst [vmem:[#allocation38_spill] sm:$0xff] %v8253_v33  ;;  %v8258_v29 = vpop.permute.xlu1 %6336  ;;  %v8260_v37 = vpop.permute.xlu0 %6331  ;;  %v5454_v33 = vld [vmem:[%s7889_s24 + $0x83] sm:$0xff] }
  0xe4   : > { %11881 = vst [vmem:[#allocation39_spill] sm:$0xff] %v8258_v29 }
  0xe5   : > { %11882 = vst [vmem:[#allocation40_spill] sm:$0xff] %v8260_v37 }
  0xe8   : > { %6566 = vrot.lane.b32.xlu2 %v7997_v62, %s7827_s26 }
  0xe9   : > { %6561 = vrot.lane.b32.xlu1 %v6560_v39, %s7826_s25  ;;  %6556 = vrot.lane.b32.xlu0 %v6555_v40, %s7826_s25  ;;  %v6615_v40 = vpack.i.bf16 %v5434_v34, %v5433_v27 }
  0xea   : > { %v8266_v42 = vpop.permute.xlu2 %6401 }
  0xeb   : > { %11883 = vst [vmem:[#allocation41_spill] sm:$0xff] %v8266_v42  ;;  %v8268_v43 = vpop.permute.xlu1 %6351  ;;  %v8270_v53 = vpop.permute.xlu0 %6346  ;;  %v5450_v42 = vld [vmem:[%s7889_s24 + $0x5b] sm:$0xff] }
  0xec   : > { %11884 = vst [vmem:[#allocation42_spill] sm:$0xff] %v8268_v43 }
  0xed   : > { %11885 = vst [vmem:[#allocation43_spill] sm:$0xff] %v8270_v53  ;;  %v5611_v53 = vld [vmem:[%s7889_s24 + $0x149] sm:$0xff] }
  0xf0   : > { %6581 = vrot.lane.b32.xlu2 %v8015_v9, %s7827_s26  ;;  %v5430_v9 = vld [vmem:[%s7889_s24 + $0xd2] sm:$0xff] }
  0xf1   : > { %6576 = vrot.lane.b32.xlu1 %v7993_v60, %s7827_s26  ;;  %6571 = vrot.lane.b32.xlu0 %v7995_v61, %s7827_s26  ;;  %v5429_v60 = vld [vmem:[%s7889_s24 + $0xca] sm:$0xff] }
  0xf2   : > { %v8278_v62 = vpop.permute.xlu2 %6416 }
  0xf3   : > { %11886 = vst [vmem:[#allocation44_spill] sm:$0xff] %v8278_v62  ;;  %v8280_v41 = vpop.permute.xlu1 %6366  ;;  %v8282_v50 = vpop.permute.xlu0 %6361  ;;  %v5626_v62 = vld [vmem:[%s7889_s24 + $0xa2] sm:$0xff] }
  0xf4   : > { %11887 = vst [vmem:[#allocation45_spill] sm:$0xff] %v8280_v41  ;;  %v5490_v41 = vld [vmem:[%s7889_s24 + $0xac] sm:$0xff] }
  0xf5   : > { %11888 = vst [vmem:[#allocation46_spill] sm:$0xff] %v8282_v50  ;;  %v5502_v50 = vld [vmem:[%s7889_s24 + $0x124] sm:$0xff] }
  0xf8   : > { %6596 = vrot.lane.b32.xlu2 %v8029_v20, %s7827_s26  ;;  %v6605_v20 = vpack.i.bf16 %v5430_v9, %v5429_v60  ;;  %v5443_v60 = vld [vmem:[%s7889_s24 + $0x152] sm:$0xff]  ;;  %v5444_v9 = vld [vmem:[%s7889_s24 + $0x15a] sm:$0xff] }
  0xf9   : > { %6591 = vrot.lane.b32.xlu1 %v8011_v6, %s7827_s26  ;;  %6586 = vrot.lane.b32.xlu0 %v8013_v8, %s7827_s26  ;;  %v5435_v6 = vld [vmem:[%s7889_s24 + $0x102] sm:$0xff]  ;;  %v6640_v27 = vpack.i.bf16 %v5444_v9, %v5443_v60  ;;  %v5445_v60 = vld [vmem:[%s7889_s24 + $0x2b] sm:$0xff] }
  0xfa   : > { %v8291_v61 = vpop.permute.xlu2 %6431  ;;  %v5446_v9 = vld [vmem:[%s7889_s24 + $0x33] sm:$0xff] }
  0xfb   : > { %11889 = vst [vmem:[#allocation47_spill] sm:$0xff] %v8291_v61  ;;  %v8296_v59 = vpop.permute.xlu1 %6381  ;;  %v8298_v63 = vpop.permute.xlu0 %6376  ;;  %v5602_v61 = vld [vmem:[%s7889_s24 + $0xf1] sm:$0xff] }
  0xfc   : > { %11890 = vst [vmem:[#allocation48_spill] sm:$0xff] %v8296_v59  ;;  %v5459_v59 = vld [vmem:[%s7889_s24 + $0xb3] sm:$0xff] }
  0xfd   : > { %11891 = vst [vmem:[#allocation49_spill] sm:$0xff] %v8298_v63  ;;  %v5460_v63 = vld [vmem:[%s7889_s24 + $0xbb] sm:$0xff] }
 0x100   : > { %6611 = vrot.lane.b32.xlu2 %v8041_v32, %s7827_s26  ;;  %v6620_v32 = vpack.i.bf16 %v5436_v44, %v5435_v6  ;;  %v5440_v6 = vld [vmem:[%s7889_s24 + $0x132] sm:$0xff] }
 0x101   : > { %6606 = vrot.lane.b32.xlu1 %v6605_v20, %s7827_s26  ;;  %6601 = vrot.lane.b32.xlu0 %v6600_v10, %s7827_s26  ;;  %v5442_v20 = vld [vmem:[%s7889_s24 + $0x14a] sm:$0xff] }
 0x102   : > { %v8305_v8 = vpop.permute.xlu2 %6446  ;;  %v5439_v10 = vld [vmem:[%s7889_s24 + $0x12a] sm:$0xff]  ;;  %v6635_v34 = vpack.i.bf16 %v5442_v20, %v5441_v51 }
 0x103   : > { %11892 = vst [vmem:[#allocation50_spill] sm:$0xff] %v8305_v8  ;;  %v8310_v28 = vpop.permute.xlu1 %6396  ;;  %v8312_v39 = vpop.permute.xlu0 %6391 }
 0x104   : > { %11893 = vst [vmem:[#allocation51_spill] sm:$0xff] %v8310_v28 }
 0x105   : > { %11894 = vst [vmem:[#allocation52_spill] sm:$0xff] %v8312_v39 }
 0x108   : > { %6626 = vrot.lane.b32.xlu2 %v8053_v47, %s7827_s26 }
 0x109   : > { %6621 = vrot.lane.b32.xlu1 %v6620_v32, %s7827_s26  ;;  %6616 = vrot.lane.b32.xlu0 %v6615_v40, %s7827_s26  ;;  %v6630_v32 = vpack.i.bf16 %v5440_v6, %v5439_v10  ;;  %v5449_v40 = vld [vmem:[%s7889_s24 + $0x53] sm:$0xff] }
 0x10a   : > { %v8321_v57 = vpop.permute.xlu2 %6461  ;;  %v6655_v10 = vpack.i.bf16 %v5450_v42, %v5449_v40  ;;  %v5451_v42 = vld [vmem:[%s7889_s24 + $0x63] sm:$0xff] }
 0x10b   : > { %11895 = vst [vmem:[#allocation53_spill] sm:$0xff] %v8321_v57  ;;  %v8326_v44 = vpop.permute.xlu1 %6411  ;;  %v8328_v47 = vpop.permute.xlu0 %6406  ;;  %v5448_v57 = vld [vmem:[%s7889_s24 + $0x43] sm:$0xff] }
 0x10c   : > { %11896 = vst [vmem:[#allocation54_spill] sm:$0xff] %v8326_v44  ;;  %v6650_v6 = vpack.i.bf16 %v5448_v57, %v5447_v25  ;;  %v5452_v25 = vld [vmem:[%s7889_s24 + $0x6b] sm:$0xff]  ;;  %v213_v44 = vld [vmem:[%s7889_s24 + $0x80] sm:$0xff] }
 0x10d   : > { %11897 = vst [vmem:[#allocation55_spill] sm:$0xff] %v8328_v47 }
 0x110   : > { %6641 = vrot.lane.b32.xlu2 %v6640_v27, %s7827_s26  ;;  %v6645_v27 = vpack.i.bf16 %v5446_v9, %v5445_v60 }
 0x111   : > { %6636 = vrot.lane.b32.xlu1 %v6635_v34, %s7827_s26  ;;  %6631 = vrot.lane.b32.xlu0 %v6630_v32, %s7827_s26  ;;  %v5455_v34 = vld [vmem:[%s7889_s24 + $0x8b] sm:$0xff]  ;;  %v5456_v32 = vld [vmem:[%s7889_s24 + $0x93] sm:$0xff] }
 0x112   : > { %v8336_v39 = vpop.permute.xlu2 %6476  ;;  %v6670_v60 = vpack.i.bf16 %v5456_v32, %v5455_v34  ;;  %v5457_v34 = vld [vmem:[%s7889_s24 + $0xa3] sm:$0xff] }
 0x113   : > { %11898 = vst [vmem:[#allocation56_spill] sm:$0xff] %v8336_v39  ;;  %v8341_v51 = vpop.permute.xlu1 %6426  ;;  %v8343_v20 = vpop.permute.xlu0 %6421  ;;  %v5453_v39 = vld [vmem:[%s7889_s24 + $0x7b] sm:$0xff] }
 0x114   : > { %11899 = vst [vmem:[#allocation57_spill] sm:$0xff] %v8341_v51  ;;  %v6665_v9 = vpack.i.bf16 %v5454_v33, %v5453_v39  ;;  %v5458_v33 = vld [vmem:[%s7889_s24 + $0xab] sm:$0xff]  ;;  %v5601_v51 = vld [vmem:[%s7889_s24 + $0xe1] sm:$0xff] }
 0x115   : > { %11900 = vst [vmem:[#allocation58_spill] sm:$0xff] %v8343_v20  ;;  %v5606_v20 = vld [vmem:[%s7889_s24 + $0x119] sm:$0xff] }
 0x118   : > { %6656 = vrot.lane.b32.xlu2 %v6655_v10, %s7828_s27  ;;  %v6660_v10 = vpack.i.bf16 %v5452_v25, %v5451_v42  ;;  %v6680_v25 = vpack.i.bf16 %v5460_v63, %v5459_v59  ;;  %v5464_v59 = vld [vmem:[%s7889_s24 + $0xe3] sm:$0xff] }
 0x119   : > { %6651 = vrot.lane.b32.xlu1 %v6650_v6, %s7828_s27  ;;  %6646 = vrot.lane.b32.xlu0 %v6645_v27, %s7828_s27  ;;  %v5461_v6 = vld [vmem:[%s7889_s24 + $0xcb] sm:$0xff]  ;;  %v5462_v27 = vld [vmem:[%s7889_s24 + $0xd3] sm:$0xff] }
 0x11a   : > { %v8351_v28 = vpop.permute.xlu2 %6491  ;;  %v6685_v42 = vpack.i.bf16 %v5462_v27, %v5461_v6  ;;  %v5463_v6 = vld [vmem:[%s7889_s24 + $0xdb] sm:$0xff] }
 0x11b   : > { %v8356_v57 = vpop.permute.xlu1 %6441  ;;  %v8358_v40 = vpop.permute.xlu0 %6436 }
 0x11c   : > { %11901 = vst [vmem:[#allocation59_spill] sm:$0xff] %v8356_v57 }
 0x11d   : > { %11902 = vst [vmem:[#allocation60_spill] sm:$0xff] %v8358_v40  ;;  %v5591_v40 = vld [vmem:[%s7889_s24 + $0x81] sm:$0xff] }
 0x120   : > { %6671 = vrot.lane.b32.xlu2 %v6670_v60, %s7828_s27  ;;  %v6675_v60 = vpack.i.bf16 %v5458_v33, %v5457_v34 }
 0x121   : > { %6666 = vrot.lane.b32.xlu1 %v6665_v9, %s7828_s27  ;;  %6661 = vrot.lane.b32.xlu0 %v6660_v10, %s7828_s27  ;;  %v5467_v9 = vld [vmem:[%s7889_s24 + $0x103] sm:$0xff]  ;;  %v5468_v10 = vld [vmem:[%s7889_s24 + $0x10b] sm:$0xff] }
 0x122   : > { %v8366_v35 = vpop.permute.xlu2 %6506  ;;  %v6700_v34 = vpack.i.bf16 %v5468_v10, %v5467_v9  ;;  %v5469_v9 = vld [vmem:[%s7889_s24 + $0x11b] sm:$0xff] }
 0x123   : > { %v8371_v39 = vpop.permute.xlu1 %6456  ;;  %v8373_v32 = vpop.permute.xlu0 %6451 }
 0x124   : > { %11903 = vst [vmem:[#allocation61_spill] sm:$0xff] %v8371_v39  ;;  %v5466_v39 = vld [vmem:[%s7889_s24 + $0xfb] sm:$0xff] }
 0x125   : > { %11904 = vst [vmem:[#allocation62_spill] sm:$0xff] %v8373_v32  ;;  %v6695_v33 = vpack.i.bf16 %v5466_v39, %v5465_v26  ;;  %v5470_v26 = vld [vmem:[%s7889_s24 + $0x123] sm:$0xff]  ;;  %v5484_v32 = vld [vmem:[%s7889_s24 + $0x6c] sm:$0xff] }
 0x128   : > { %6686 = vrot.lane.b32.xlu2 %v6685_v42, %s7828_s27  ;;  %v6690_v42 = vpack.i.bf16 %v5464_v59, %v5463_v6 }
 0x129   : > { %6681 = vrot.lane.b32.xlu1 %v6680_v25, %s7828_s27  ;;  %6676 = vrot.lane.b32.xlu0 %v6675_v60, %s7828_s27  ;;  %v5473_v25 = vld [vmem:[%s7889_s24 + $0x143] sm:$0xff]  ;;  %v5474_v60 = vld [vmem:[%s7889_s24 + $0x14b] sm:$0xff] }
 0x12a   : > { %v8381_v3 = vpop.permute.xlu2 %6521  ;;  %v6715_v6 = vpack.i.bf16 %v5474_v60, %v5473_v25  ;;  %v5475_v25 = vld [vmem:[%s7889_s24 + $0x153] sm:$0xff] }
 0x12b   : > { %v8386_v63 = vpop.permute.xlu1 %6471  ;;  %v8388_v27 = vpop.permute.xlu0 %6466 }
 0x12c   : > { %11905 = vst [vmem:[#allocation63_spill] sm:$0xff] %v8386_v63  ;;  %v5472_v63 = vld [vmem:[%s7889_s24 + $0x133] sm:$0xff] }
 0x12d   : > { %11906 = vst [vmem:[#allocation64_spill] sm:$0xff] %v8388_v27  ;;  %v6710_v59 = vpack.i.bf16 %v5472_v63, %v5471_v58  ;;  %v5477_v27 = vld [vmem:[%s7889_s24 + $0x2c] sm:$0xff]  ;;  %v5476_v58 = vld [vmem:[%s7889_s24 + $0x15b] sm:$0xff] }
 0x130   : > { %6701 = vrot.lane.b32.xlu2 %v6700_v34, %s7828_s27  ;;  %v6705_v34 = vpack.i.bf16 %v5470_v26, %v5469_v9  ;;  %v6725_v26 = vpack.i.bf16 %v5478_v19, %v5477_v27  ;;  %v5482_v19 = vld [vmem:[%s7889_s24 + $0x5c] sm:$0xff] }
 0x131   : > { %6696 = vrot.lane.b32.xlu1 %v6695_v33, %s7828_s27  ;;  %6691 = vrot.lane.b32.xlu0 %v6690_v42, %s7828_s27  ;;  %v5479_v33 = vld [vmem:[%s7889_s24 + $0x3c] sm:$0xff]  ;;  %v5480_v42 = vld [vmem:[%s7889_s24 + $0x44] sm:$0xff] }
 0x132   : > { %v8396_v48 = vpop.permute.xlu2 %6536  ;;  %v6730_v9 = vpack.i.bf16 %v5480_v42, %v5479_v33  ;;  %v5481_v33 = vld [vmem:[%s7889_s24 + $0x54] sm:$0xff] }
 0x133   : > { %11907 = vst [vmem:[#allocation65_spill] sm:$0xff] %v8396_v48  ;;  %v8401_v39 = vpop.permute.xlu1 %6486  ;;  %v8403_v10 = vpop.permute.xlu0 %6481 }
 0x134   : > { %11908 = vst [vmem:[#allocation66_spill] sm:$0xff] %v8403_v10  ;;  %v5483_v10 = vld [vmem:[%s7889_s24 + $0x64] sm:$0xff] }
 0x138   : > { %6716 = vrot.lane.b32.xlu2 %v6715_v6, %s7828_s27  ;;  %v6720_v6 = vpack.i.bf16 %v5476_v58, %v5475_v25  ;;  %v6740_v58 = vpack.i.bf16 %v5484_v32, %v5483_v10  ;;  %v5488_v32 = vld [vmem:[%s7889_s24 + $0x94] sm:$0xff] }
 0x139   : > { %6711 = vrot.lane.b32.xlu1 %v6710_v59, %s7828_s27  ;;  %6706 = vrot.lane.b32.xlu0 %v6705_v34, %s7828_s27  ;;  %v5485_v59 = vld [vmem:[%s7889_s24 + $0x7c] sm:$0xff]  ;;  %v5486_v34 = vld [vmem:[%s7889_s24 + $0x84] sm:$0xff] }
 0x13a   : > { %v8411_v38 = vpop.permute.xlu2 %6551  ;;  %v6745_v25 = vpack.i.bf16 %v5486_v34, %v5485_v59  ;;  %v5487_v59 = vld [vmem:[%s7889_s24 + $0x8c] sm:$0xff] }
 0x13b   : > { %v8416_v63 = vpop.permute.xlu1 %6501  ;;  %v8418_v60 = vpop.permute.xlu0 %6496 }
 0x140   : > { %6731 = vrot.lane.b32.xlu2 %v6730_v9, %s7829_s28  ;;  %v6735_v9 = vpack.i.bf16 %v5482_v19, %v5481_v33  ;;  %v6755_v19 = vpack.i.bf16 %v5490_v41, %v5489_v24  ;;  %v5494_v24 = vld [vmem:[%s7889_s24 + $0xd4] sm:$0xff] }
 0x141   : > { %6726 = vrot.lane.b32.xlu1 %v6725_v26, %s7829_s28  ;;  %6721 = vrot.lane.b32.xlu0 %v6720_v6, %s7828_s27  ;;  %v5491_v26 = vld [vmem:[%s7889_s24 + $0xb4] sm:$0xff]  ;;  %v5492_v6 = vld [vmem:[%s7889_s24 + $0xbc] sm:$0xff] }
 0x142   : > { %v8426_v18 = vpop.permute.xlu2 %6566  ;;  %v6760_v33 = vpack.i.bf16 %v5492_v6, %v5491_v26  ;;  %v5493_v26 = vld [vmem:[%s7889_s24 + $0xcc] sm:$0xff] }
 0x143   : > { %v8431_v27 = vpop.permute.xlu1 %6516  ;;  %v8433_v42 = vpop.permute.xlu0 %6511 }
 0x148   : > { %6746 = vrot.lane.b32.xlu2 %v6745_v25, %s7829_s28  ;;  %v6750_v25 = vpack.i.bf16 %v5488_v32, %v5487_v59  ;;  %v6770_v32 = vpack.i.bf16 %v5496_v52, %v5495_v22  ;;  %v5500_v52 = vld [vmem:[%s7889_s24 + $0x10c] sm:$0xff] }
 0x149   : > { %6741 = vrot.lane.b32.xlu1 %v6740_v58, %s7829_s28  ;;  %6736 = vrot.lane.b32.xlu0 %v6735_v9, %s7829_s28  ;;  %v5497_v58 = vld [vmem:[%s7889_s24 + $0xf4] sm:$0xff]  ;;  %v5498_v9 = vld [vmem:[%s7889_s24 + $0xfc] sm:$0xff] }
 0x14a   : > { %v8441_v8 = vpop.permute.xlu2 %6581  ;;  %v6775_v59 = vpack.i.bf16 %v5498_v9, %v5497_v58  ;;  %v5499_v58 = vld [vmem:[%s7889_s24 + $0x104] sm:$0xff] }
 0x14b   : > { %v8446_v10 = vpop.permute.xlu1 %6531  ;;  %v8448_v34 = vpop.permute.xlu0 %6526 }
 0x150   : > { %6761 = vrot.lane.b32.xlu2 %v6760_v33, %s7829_s28  ;;  %v6765_v33 = vpack.i.bf16 %v5494_v24, %v5493_v26  ;;  %v6785_v24 = vpack.i.bf16 %v5502_v50, %v5501_v56  ;;  %v5506_v56 = vld [vmem:[%s7889_s24 + $0x14c] sm:$0xff] }
 0x151   : > { %6756 = vrot.lane.b32.xlu1 %v6755_v19, %s7829_s28  ;;  %6751 = vrot.lane.b32.xlu0 %v6750_v25, %s7829_s28  ;;  %v5503_v19 = vld [vmem:[%s7889_s24 + $0x12c] sm:$0xff]  ;;  %v5504_v25 = vld [vmem:[%s7889_s24 + $0x134] sm:$0xff] }
 0x152   : > { %v8456_v7 = vpop.permute.xlu2 %6596  ;;  %v6790_v26 = vpack.i.bf16 %v5504_v25, %v5503_v19  ;;  %v5505_v19 = vld [vmem:[%s7889_s24 + $0x144] sm:$0xff] }
 0x153   : > { %v8461_v41 = vpop.permute.xlu1 %6546  ;;  %v8463_v6 = vpop.permute.xlu0 %6541 }
 0x154   : > { %11909 = vst [vmem:[#allocation67_spill] sm:$0xff] %v8463_v6 }
 0x158   : > { %6776 = vrot.lane.b32.xlu2 %v6775_v59, %s7829_s28  ;;  %v6780_v59 = vpack.i.bf16 %v5500_v52, %v5499_v58  ;;  %v6800_v52 = vpack.i.bf16 %v5508_v2, %v5507_v5  ;;  %v5589_v2 = vld [vmem:[%s7889_s24 + $0x69] sm:$0xff] }
 0x159   : > { %6771 = vrot.lane.b32.xlu1 %v6770_v32, %s7829_s28  ;;  %6766 = vrot.lane.b32.xlu0 %v6765_v33, %s7829_s28  ;;  %v5586_v32 = vld [vmem:[%s7889_s24 + $0x51] sm:$0xff]  ;;  %v5587_v33 = vld [vmem:[%s7889_s24 + $0x59] sm:$0xff] }
 0x15a   : > { %v8471_v57 = vpop.permute.xlu2 %6611  ;;  %v6805_v58 = vpack.i.bf16 %v5587_v33, %v5586_v32  ;;  %v5588_v32 = vld [vmem:[%s7889_s24 + $0x61] sm:$0xff] }
 0x15b   : > { %v8476_v22 = vpop.permute.xlu1 %6561  ;;  %v8478_v9 = vpop.permute.xlu0 %6556 }
 0x15c   : > { %11910 = vst [vmem:[#allocation68_spill] sm:$0xff] %v8476_v22 }
 0x15d   : > { %11911 = vst [vmem:[#allocation69_spill] sm:$0xff] %v8478_v9 }
 0x160   : > { %6791 = vrot.lane.b32.xlu2 %v6790_v26, %s7829_s28  ;;  %v6795_v26 = vpack.i.bf16 %v5506_v56, %v5505_v19  ;;  %v6815_v56 = vpack.i.bf16 %v5591_v40, %v5590_v49  ;;  %v5595_v49 = vld [vmem:[%s7889_s24 + $0xa9] sm:$0xff] }
 0x161   : > { %6786 = vrot.lane.b32.xlu1 %v6785_v24, %s7829_s28  ;;  %6781 = vrot.lane.b32.xlu0 %v6780_v59, %s7829_s28  ;;  %v5592_v24 = vld [vmem:[%s7889_s24 + $0x89] sm:$0xff]  ;;  %v5593_v59 = vld [vmem:[%s7889_s24 + $0x91] sm:$0xff] }
 0x162   : > { %v8486_v30 = vpop.permute.xlu2 %6626  ;;  %v6820_v19 = vpack.i.bf16 %v5593_v59, %v5592_v24  ;;  %v5594_v24 = vld [vmem:[%s7889_s24 + $0xa1] sm:$0xff] }
 0x163   : > { %v8491_v50 = vpop.permute.xlu1 %6576  ;;  %v8493_v25 = vpop.permute.xlu0 %6571 }
 0x168   : > { %6806 = vrot.lane.b32.xlu2 %v6805_v58, %s7826_s25  ;;  %v6810_v58 = vpack.i.bf16 %v5589_v2, %v5588_v32  ;;  %v6830_v2 = vpack.i.bf16 %v5597_v36, %v5596_v15 }
 0x169   : > { %6801 = vrot.lane.b32.xlu1 %v6800_v52, %s7829_s28  ;;  %6796 = vrot.lane.b32.xlu0 %v6795_v26, %s7829_s28  ;;  %v5598_v52 = vld [vmem:[%s7889_s24 + $0xc9] sm:$0xff]  ;;  %v5599_v26 = vld [vmem:[%s7889_s24 + $0xd1] sm:$0xff] }
 0x16a   : > { %v8501_v31 = vpop.permute.xlu2 %6641  ;;  %v6835_v32 = vpack.i.bf16 %v5599_v26, %v5598_v52  ;;  %v5511_v26 = vld [vmem:[%s11720_s1 + $0x14] sm:$0x3] }
 0x16b   : > { %11912 = vst [vmem:[#allocation70_spill] sm:$0xff] %v8501_v31  ;;  %v8506_v5 = vpop.permute.xlu1 %6591  ;;  %v8508_v33 = vpop.permute.xlu0 %6586  ;;  %v5625_v31 = vld [vmem:[%s7889_s24 + $0x92] sm:$0xff] }
 0x16c   : > { %v6588_v22 = vunpack.i.l.bf16 %v8508_v33 }
 0x170   : > { %6821 = vrot.lane.b32.xlu2 %v6820_v19, %s7826_s25  ;;  %v6825_v19 = vpack.i.bf16 %v5595_v49, %v5594_v24  ;;  %v6845_v24 = vpack.i.bf16 %v5603_v21, %v5602_v61  ;;  %v6840_v49 = vpack.i.bf16 %v5601_v51, %v5600_v17  ;;  %v5607_v17 = vld [vmem:[%s7889_s24 + $0x121] sm:$0xff] }
 0x171   : > { %6816 = vrot.lane.b32.xlu1 %v6815_v56, %s7826_s25  ;;  %6811 = vrot.lane.b32.xlu0 %v6810_v58, %s7826_s25  ;;  %v5604_v56 = vld [vmem:[%s7889_s24 + $0x101] sm:$0xff]  ;;  %v5605_v58 = vld [vmem:[%s7889_s24 + $0x109] sm:$0xff] }
 0x172   : > { %v8516_v14 = vpop.permute.xlu2 %6656  ;;  %v6850_v15 = vpack.i.bf16 %v5605_v58, %v5604_v56  ;;  %v5608_v56 = vld [vmem:[%s7889_s24 + $0x129] sm:$0xff] }
 0x173   : > { %v8521_v40 = vpop.permute.xlu1 %6606  ;;  %v8523_v59 = vpop.permute.xlu0 %6601 }
 0x178   : > { %6836 = vrot.lane.b32.xlu2 %v6835_v32, %s7826_s25  ;;  %v1851_v32 = vunpack.c.l.b16 %v5511_v26  ;;  %v6860_v26 = vpack.i.bf16 %v5609_v0, %v5608_v56  ;;  %v5615_v0 = vld [vmem:[%s7889_s24 + $0x171] sm:$0xff] }
 0x179   : > { %6831 = vrot.lane.b32.xlu1 %v6830_v2, %s7826_s25  ;;  %6826 = vrot.lane.b32.xlu0 %v6825_v19, %s7826_s25  ;;  %v5610_v19 = vld [vmem:[%s7889_s24 + $0x141] sm:$0xff] }
 0x17a   : > { %v8531_v43 = vpop.permute.xlu2 %6671  ;;  %v1853_v2 = vpack.c.b16 %v1851_v32, %v1851_v32  ;;  %v6865_v51 = vpack.i.bf16 %v5611_v53, %v5610_v19  ;;  %v5617_v53 = vld [vmem:[%s7889_s24 + $0x181] sm:$0xff]  ;;  %v5614_v32 = vld [vmem:[%s7889_s24 + $0x169] sm:$0xff]  ;;  %v5613_v19 = vld [vmem:[%s7889_s24 + $0x159] sm:$0xff] }
 0x17b   : > { %v8536_v52 = vpop.permute.xlu1 %6621  ;;  %v8538_v36 = vpop.permute.xlu0 %6616 }
 0x17c   : > { %11913 = vst [vmem:[#allocation71_spill] sm:$0xff] %v8536_v52  ;;  %v1906_v58 = vsel %vm1904_vm0, %v1853_v2, 0 }
 0x17d   : > { %11914 = vst [vmem:[#allocation72_spill] sm:$0xff] %v8538_v36  ;;  %6114 = vmatpush.bf16.msra.mxu1 %v1906_v58  ;;  %1914 = vmatpush.bf16.msra.mxu0 %v1906_v58 }
 0x17e   : > { %6115 = vmatpush.bf16.msra.mxu2 %v1906_v58  ;;  %6116 = vmatpush.bf16.msra.mxu3 %v1906_v58 }
 0x180   : > { %6851 = vrot.lane.b32.xlu2 %v6850_v15, %s7826_s25  ;;  %v6110_v15 = vld [vmem:[%s11720_s1 + $0xc] sm:$0xff] }
 0x181   : > { %6846 = vrot.lane.b32.xlu1 %v6845_v24, %s7826_s25  ;;  %6841 = vrot.lane.b32.xlu0 %v6840_v49, %s7826_s25  ;;  %v6855_v24 = vpack.i.bf16 %v5607_v17, %v5606_v20  ;;  %v5616_v49 = vld [vmem:[%s7889_s24 + $0x179] sm:$0xff]  ;;  %v5612_v20 = vld [vmem:[%s7889_s24 + $0x151] sm:$0xff] }
 0x182   : > { %v8550_v46 = vpop.permute.xlu2 %6686  ;;  %6117 = vmatpush.bf16.msra.mxu1 %v6110_v15  ;;  %1915 = vmatpush.bf16.msra.mxu0 %v6110_v15  ;;  %v6880_v17 = vpack.i.bf16 %v5617_v53, %v5616_v49  ;;  %v5618_v49 = vld [vmem:[%s7889_s24 + $0x52] sm:$0xff]  ;;  %v5619_v53 = vld [vmem:[%s7889_s24 + $0x5a] sm:$0xff] }
 0x183   : > { %v8555_v21 = vpop.permute.xlu1 %6636  ;;  %v8557_v61 = vpop.permute.xlu0 %6631  ;;  %6118 = vmatpush.bf16.msra.mxu2 %v6110_v15  ;;  %6119 = vmatpush.bf16.msra.mxu3 %v6110_v15  ;;  %v6870_v15 = vpack.i.bf16 %v5613_v19, %v5612_v20  ;;  %v6890_v19 = vpack.i.bf16 %v5621_v11, %v5620_v16 }
 0x184   : > { %11915 = vst [vmem:[#allocation73_spill] sm:$0xff] %v8555_v21 }
 0x188   : > { %6866 = vrot.lane.b32.xlu2 %v6865_v51, %s7826_s25  ;;  %v6875_v51 = vpack.i.bf16 %v5615_v0, %v5614_v32 }
 0x189   : > { %6861 = vrot.lane.b32.xlu1 %v6860_v26, %s7826_s25  ;;  %6856 = vrot.lane.b32.xlu0 %v6855_v24, %s7826_s25  ;;  %v5622_v26 = vld [vmem:[%s7889_s24 + $0x7a] sm:$0xff]  ;;  %v5623_v24 = vld [vmem:[%s7889_s24 + $0x82] sm:$0xff] }
 0x18a   : > { %v8568_v2 = vpop.permute.xlu2 %6701  ;;  %v6895_v20 = vpack.i.bf16 %v5623_v24, %v5622_v26  ;;  %v6905_v24 = vpack.i.bf16 %v5627_v4, %v5626_v62  ;;  %v5634_v4 = vld [vmem:[%s7889_s24 + $0xf2] sm:$0xff] }
 0x18b   : > { %11916 = vst [vmem:[#allocation74_spill] sm:$0xff] %v8568_v2  ;;  %v8573_v56 = vpop.permute.xlu1 %6651  ;;  %v8575_v58 = vpop.permute.xlu0 %6646 }
 0x190   : > { %6881 = vrot.lane.b32.xlu2 %v6880_v17, %s7826_s25  ;;  %v6885_v17 = vpack.i.bf16 %v5619_v53, %v5618_v49  ;;  %v6900_v49 = vpack.i.bf16 %v5625_v31, %v5624_v54  ;;  %v6509_v53 = vunpack.i.h.bf16 %v8366_v35  ;;  %v5635_v31 = vld [vmem:[%s7889_s24 + $0xfa] sm:$0xff] }
 0x191   : > { %6876 = vrot.lane.b32.xlu1 %v6875_v51, %s7826_s25  ;;  %6871 = vrot.lane.b32.xlu0 %v6870_v15, %s7826_s25  ;;  %v5628_v51 = vld [vmem:[%s7889_s24 + $0xb2] sm:$0xff]  ;;  %v5629_v15 = vld [vmem:[%s7889_s24 + $0xba] sm:$0xff]  ;;  %v6925_v6 = vpack.i.bf16 %v5635_v31, %v5634_v4 }
 0x192   : > { %v8583_v1 = vpop.permute.xlu2 %6716  ;;  %v6910_v26 = vpack.i.bf16 %v5629_v15, %v5628_v51  ;;  %v5632_v54 = vld [vmem:[%s7889_s24 + $0xda] sm:$0xff]  ;;  %v1707_v62 = vsel %vm872_vm1, %v213_v44, %v6509_v53  ;;  %v5630_v51 = vld [vmem:[%s7889_s24 + $0xca] sm:$0xff]  ;;  %v5631_v15 = vld [vmem:[%s7889_s24 + $0xd2] sm:$0xff] }
 0x193   : > { %11917 = vst [vmem:[#allocation75_spill] sm:$0xff] %v8583_v1  ;;  %v6667_v32 = vpop.permute.xlu1 %6666  ;;  %v8588_v0 = vpop.permute.xlu0 %6661  ;;  %v5640_v4 = vld [vmem:[%s7889_s24 + $0x12a] sm:$0xff]  ;;  %v5639_v31 = vld [vmem:[%s7889_s24 + $0x122] sm:$0xff] }
 0x194   : > { %v6669_v37 = vunpack.i.h.bf16 %v6667_v32  ;;  %v6668_v23 = vunpack.i.l.bf16 %v6667_v32 }
 0x198   : > { %6896 = vrot.lane.b32.xlu2 %v6895_v20, %s7827_s26  ;;  %v6508_v20 = vunpack.i.l.bf16 %v8366_v35  ;;  %v5633_v35 = vld [vmem:[%s7889_s24 + $0xe2] sm:$0xff] }
 0x199   : > { %6891 = vrot.lane.b32.xlu1 %v6890_v19, %s7827_s26  ;;  %6886 = vrot.lane.b32.xlu0 %v6885_v17, %s7827_s26  ;;  %v212_v19 = vld [vmem:[%s7889_s24 + $0x78] sm:$0xff]  ;;  %v6589_v17 = vunpack.i.h.bf16 %v8508_v33  ;;  %v6920_v44 = vpack.i.bf16 %v5633_v35, %v5632_v54  ;;  %v5637_v54 = vld [vmem:[%s7889_s24 + $0x10a] sm:$0xff] }
 0x19a   : > { %v8596_v29 = vpop.permute.xlu2 %6731  ;;  %v1706_v33 = vsel %vm872_vm1, %v212_v19, %v6508_v20  ;;  %v6915_v19 = vpack.i.bf16 %v5631_v15, %v5630_v51  ;;  %v6488_v15 = vunpack.i.l.bf16 %v8401_v39 }
 0x19b   : > { %v8601_v11 = vpop.permute.xlu1 %6681  ;;  %v8603_v16 = vpop.permute.xlu0 %6676  ;;  %v1738_v12 = vsel %vm905_vm2, %v1706_v33, %v6588_v22 }
 0x19c   : > { %v1770_v53 = vsel %vm938_vm3, %v1738_v12, %v6668_v23  ;;  %v5641_v12 = vld [vmem:[%s7889_s24 + $0x132] sm:$0xff]  ;;  %v5638_v23 = vld [vmem:[%s7889_s24 + $0x11a] sm:$0xff] }
 0x19d   : > { %v6940_v33 = vpack.i.bf16 %v5641_v12, %v5640_v4  ;;  %v5644_v4 = vld [vmem:[%s7889_s24 + $0x152] sm:$0xff] }
 0x1a0   : > { %6911 = vrot.lane.b32.xlu2 %v6910_v26, %s7827_s26  ;;  %v1739_v26 = vsel %vm905_vm2, %v1707_v62, %v6589_v17 }
 0x1a1   : > { %6906 = vrot.lane.b32.xlu1 %v6905_v24, %s7827_s26  ;;  %6901 = vrot.lane.b32.xlu0 %v6900_v49, %s7827_s26  ;;  %v1771_v20 = vsel %vm938_vm3, %v1739_v26, %v6669_v37  ;;  %v5349_v26 = vld [vmem:[%s7889_s24 + $0x28] sm:$0xff] }
 0x1a2   : > { %v6747_v32 = vpop.permute.xlu2 %6746 }
 0x1a3   : > { %v6749_v2 = vunpack.i.h.bf16 %v6747_v32  ;;  %v6748_v24 = vunpack.i.l.bf16 %v6747_v32  ;;  %v8624_v52 = vpop.permute.xlu1 %6696  ;;  %v8626_v49 = vpop.permute.xlu0 %6691  ;;  %v6935_v32 = vpack.i.bf16 %v5639_v31, %v5638_v23  ;;  %v5645_v23 = vld [vmem:[%s7889_s24 + $0x15a] sm:$0xff]  ;;  %v5642_v31 = vld [vmem:[%s7889_s24 + $0x142] sm:$0xff] }
 0x1a4   : > { %11918 = vst [vmem:[#allocation76_spill] sm:$0xff] %v8624_v52  ;;  %v6950_v9 = vpack.i.bf16 %v5645_v23, %v5644_v4  ;;  %v218_v4 = vld [vmem:[%s7889_s24 + $0xb0] sm:$0xff]  ;;  %v219_v23 = vld [vmem:[%s7889_s24 + $0xb8] sm:$0xff] }
 0x1a5   : > { %v1802_v22 = vsel %vm971_vm4, %v1770_v53, %v6748_v24  ;;  %v1803_v17 = vsel %vm971_vm4, %v1771_v20, %v6749_v2  ;;  %v5636_v2 = vld [vmem:[%s7889_s24 + $0x102] sm:$0xff]  ;;  %v6489_v24 = vunpack.i.h.bf16 %v8401_v39  ;;  %v5350_v53 = vld [vmem:[%s7889_s24 + $0x30] sm:$0xff]  ;;  %v6569_v20 = vunpack.i.h.bf16 %v8426_v18 }
 0x1a6   : > { %v1830_v62 = vpack.c.bf16 %v1803_v17, %v1802_v22  ;;  %v6930_v51 = vpack.i.bf16 %v5637_v54, %v5636_v2  ;;  %v6649_v22 = vunpack.i.h.bf16 %v8575_v58  ;;  %v6648_v17 = vunpack.i.l.bf16 %v8575_v58 }
 0x1a7   : > { %v1698_v39 = vsel %vm872_vm1, %v5349_v26, %v6488_v15  ;;  %v6494_v2 = vunpack.i.h.bf16 %v8351_v28  ;;  %v6493_v54 = vunpack.i.l.bf16 %v8351_v28  ;;  %v1699_v58 = vsel %vm872_vm1, %v5350_v53, %v6489_v24 }
 0x1a8   : > { %6926 = vrot.lane.b32.xlu2 %v6925_v6, %s7827_s26  ;;  %5520 = vmatmul.msk.bf16.vlgmr.msra.gmra.mxu1 %vm1855_vm5, %v1830_v62  ;;  %v5647_v62 = vld [vmem:[%s7889_s24 + $0x172] sm:$0xff]  ;;  %v1731_v15 = vsel %vm905_vm2, %v1699_v58, %v6569_v20  ;;  %v6524_v53 = vunpack.i.h.bf16 %v8381_v3  ;;  %v230_v58 = vld [vmem:[%s7889_s24 + $0x128] sm:$0xff] }
 0x1a9   : > { %6921 = vrot.lane.b32.xlu1 %v6920_v44, %s7827_s26  ;;  %6916 = vrot.lane.b32.xlu0 %v6915_v19, %s7827_s26  ;;  %v6568_v44 = vunpack.i.l.bf16 %v8426_v18  ;;  %v5646_v19 = vld [vmem:[%s7889_s24 + $0x16a] sm:$0xff]  ;;  %v1763_v24 = vsel %vm938_vm3, %v1731_v15, %v6649_v22 }
 0x1aa   : > { %v8639_v37 = vpop.permute.xlu2 %6761  ;;  %v5643_v18 = vld [vmem:[%s7889_s24 + $0x14a] sm:$0xff]  ;;  %v6955_v21 = vpack.i.bf16 %v5647_v62, %v5646_v19  ;;  %v206_v62 = vld [vmem:[%s7889_s24 + $0x38] sm:$0xff] }
 0x1ab   : > { %v8644_v35 = vpop.permute.xlu1 %6711  ;;  %v8646_v6 = vpop.permute.xlu0 %6706  ;;  %v6945_v47 = vpack.i.bf16 %v5643_v18, %v5642_v31  ;;  %v6554_v31 = vunpack.i.h.bf16 %v8411_v38  ;;  %v5353_v22 = vld [vmem:[%s7889_s24 + $0x50] sm:$0xff]  ;;  %v5362_v15 = vld [vmem:[%s7889_s24 + $0xa8] sm:$0xff] }
 0x1b0   : > { %6941 = vrot.lane.b32.xlu2 %v6940_v33, %s7827_s26  ;;  %v1730_v33 = vsel %vm905_vm2, %v1698_v39, %v6568_v44  ;;  %v207_v44 = vld [vmem:[%s7889_s24 + $0x40] sm:$0xff]  ;;  %v6523_v39 = vunpack.i.l.bf16 %v8381_v3  ;;  %v6499_v3 = vunpack.i.h.bf16 %v8418_v60 }
 0x1b1   : > { %6936 = vrot.lane.b32.xlu1 %v6935_v32, %s7827_s26  ;;  %6931 = vrot.lane.b32.xlu0 %v6930_v51, %s7827_s26  ;;  %v1762_v28 = vsel %vm938_vm3, %v1730_v33, %v6648_v17  ;;  %v6553_v17 = vunpack.i.l.bf16 %v8411_v38  ;;  %v231_v33 = vld [vmem:[%s7889_s24 + $0x130] sm:$0xff]  ;;  %v6519_v38 = vunpack.i.h.bf16 %v8431_v27 }
 0x1b2   : > { %v8663_v12 = vpop.permute.xlu2 %6776  ;;  %v8719_v13 = vsel %vm872_vm1, %v231_v33, %v6554_v31  ;;  %v6513_v31 = vunpack.i.l.bf16 %v8433_v42 }
 0x1b3   : > { %11919 = vst [vmem:[#allocation77_spill] sm:$0xff] %v8663_v12  ;;  %v6727_v32 = vpop.permute.xlu1 %6726  ;;  %v8672_v51 = vpop.permute.xlu0 %6721 }
 0x1b4   : > { %11920 = vst [vmem:[#allocation78_spill] sm:$0xff] %v8672_v51  ;;  %v6729_v26 = vunpack.i.h.bf16 %v6727_v32  ;;  %v6728_v1 = vunpack.i.l.bf16 %v6727_v32  ;;  %v5354_v32 = vld [vmem:[%s7889_s24 + $0x58] sm:$0xff]  ;;  %v5649_v51 = vld [vmem:[%s7889_s24 + $0x182] sm:$0xff] }
 0x1b6   : > { %v1794_v20 = vsel %vm971_vm4, %v1762_v28, %v6728_v1  ;;  %v1795_v19 = vsel %vm971_vm4, %v1763_v24, %v6729_v26  ;;  %v6498_v1 = vunpack.i.l.bf16 %v8418_v60  ;;  %v5652_v26 = vld [vmem:[%s7889_s24 + $0x63] sm:$0xff]  ;;  %v8697_v28 = vsel %vm872_vm1, %v207_v44, %v6494_v2  ;;  %v5653_v24 = vld [vmem:[%s7889_s24 + $0x6b] sm:$0xff] }
 0x1b7   : > { %v1826_v18 = vpack.c.bf16 %v1795_v19, %v1794_v20  ;;  %v5650_v20 = vld [vmem:[%s7889_s24 + $0x53] sm:$0xff]  ;;  %v1700_v60 = vsel %vm872_vm1, %v206_v62, %v6493_v54  ;;  %v8706_v19 = vsel %vm872_vm1, %v219_v23, %v6524_v53  ;;  %v6514_v2 = vunpack.i.h.bf16 %v8433_v42 }
 0x1b8   : > { %6956 = vrot.lane.b32.xlu2 %v6955_v21, %s7827_s26  ;;  %v8709_v21 = vsel %vm872_vm1, %v218_v4, %v6523_v39  ;;  %v8722_v54 = vsel %vm872_vm1, %v230_v58, %v6553_v17  ;;  %v5360_v62 = vld [vmem:[%s7889_s24 + $0x90] sm:$0xff]  ;;  %v8735_v45 = vsel %vm872_vm1, %v5353_v22, %v6498_v1  ;;  %v6970_v33 = vpack.i.bf16 %v5653_v24, %v5652_v26  ;;  %v5359_v39 = vld [vmem:[%s7889_s24 + $0x88] sm:$0xff] }
 0x1b9   : > { %6951 = vrot.lane.b32.xlu1 %v6950_v9, %s7827_s26  ;;  %6946 = vrot.lane.b32.xlu0 %v6945_v47, %s7827_s26  ;;  %v5651_v9 = vld [vmem:[%s7889_s24 + $0x5b] sm:$0xff]  ;;  %11922 = vst [vmem:[#allocation80_spill] sm:$0xff] %v8722_v54  ;;  %v8739_v17 = vsel %vm872_vm1, %v5362_v15, %v6519_v38  ;;  %v6518_v58 = vunpack.i.l.bf16 %v8431_v27  ;;  %v1709_v12 = vsel %vm872_vm1, %v5360_v62, %v6514_v2  ;;  %v6593_v22 = vunpack.i.l.bf16 %v8506_v5 }
 0x1ba   : > { %5516 = vmatmul.msk.bf16.vlgmr.msra.gmra.mxu0 %vm1855_vm5, %v1826_v18  ;;  %v8713_v44 = vpop.permute.xlu2 %6791  ;;  %v5648_v47 = vld [vmem:[%s7889_s24 + $0x17a] sm:$0xff]  ;;  %v8732_v18 = vsel %vm872_vm1, %v5354_v32, %v6499_v3  ;;  %v6965_v53 = vpack.i.bf16 %v5651_v9, %v5650_v20  ;;  %v6573_v32 = vunpack.i.l.bf16 %v8493_v25  ;;  %v6594_v3 = vunpack.i.h.bf16 %v8506_v5 }
 0x1bb   : > { %11921 = vst [vmem:[#allocation79_spill] sm:$0xff] %v8713_v44  ;;  %v8727_v4 = vpop.permute.xlu1 %6741  ;;  %v8729_v23 = vpop.permute.xlu0 %6736  ;;  %v6960_v55 = vpack.i.bf16 %v5649_v51, %v5648_v47  ;;  %v6574_v42 = vunpack.i.h.bf16 %v8493_v25  ;;  %v6674_v1 = vunpack.i.h.bf16 %v8531_v43  ;;  %v6673_v27 = vunpack.i.l.bf16 %v8531_v43  ;;  %v5658_v25 = vld [vmem:[%s7889_s24 + $0xa3] sm:$0xff] }
 0x1bc   : > { %11923 = vst [vmem:[#allocation81_spill] sm:$0xff] %v8727_v4  ;;  %v6653_v15 = vunpack.i.l.bf16 %v8573_v56  ;;  %v1708_v51 = vsel %vm872_vm1, %v5359_v39, %v6513_v31  ;;  %v6529_v26 = vunpack.i.h.bf16 %v8448_v34  ;;  %v6528_v38 = vunpack.i.l.bf16 %v8448_v34  ;;  %v5659_v34 = vld [vmem:[%s7889_s24 + $0xab] sm:$0xff]  ;;  %v5657_v31 = vld [vmem:[%s7889_s24 + $0x93] sm:$0xff] }
 0x1bd   : > { %v6654_v24 = vunpack.i.h.bf16 %v8573_v56  ;;  %v6599_v5 = vunpack.i.h.bf16 %v8456_v7  ;;  %v6598_v43 = vunpack.i.l.bf16 %v8456_v7  ;;  %v6734_v20 = vunpack.i.h.bf16 %v8596_v29  ;;  %v5656_v56 = vld [vmem:[%s7889_s24 + $0x8b] sm:$0xff] }
 0x1be   : > { %v6733_v2 = vunpack.i.l.bf16 %v8596_v29  ;;  %v6549_v9 = vunpack.i.h.bf16 %v8461_v41  ;;  %v1732_v47 = vsel %vm905_vm2, %v1700_v60, %v6573_v32  ;;  %v1740_v39 = vsel %vm905_vm2, %v1708_v51, %v6593_v22  ;;  %v5654_v29 = vld [vmem:[%s7889_s24 + $0x7b] sm:$0xff]  ;;  %v5365_v44 = vld [vmem:[%s7889_s24 + $0xc8] sm:$0xff] }
 0x1bf   : > { %v1741_v62 = vsel %vm905_vm2, %v1709_v12, %v6594_v3  ;;  %v1764_v60 = vsel %vm938_vm3, %v1732_v47, %v6653_v15  ;;  %v1772_v32 = vsel %vm938_vm3, %v1740_v39, %v6673_v27  ;;  %v5366_v3 = vld [vmem:[%s7889_s24 + $0xd0] sm:$0xff]  ;;  %v6980_v54 = vpack.i.bf16 %v5657_v31, %v5656_v56  ;;  %v5374_v27 = vld [vmem:[%s7889_s24 + $0x120] sm:$0xff] }
 0x1c0   : > { %6971 = vrot.lane.b32.xlu2 %v6970_v33, %s7828_s27  ;;  %v5655_v33 = vld [vmem:[%s7889_s24 + $0x83] sm:$0xff]  ;;  %v1773_v12 = vsel %vm938_vm3, %v1741_v62, %v6674_v1  ;;  %v6548_v1 = vunpack.i.l.bf16 %v8461_v41  ;;  %v6609_v41 = vunpack.i.h.bf16 %v8521_v40  ;;  %v5664_v39 = vld [vmem:[%s7889_s24 + $0xdb] sm:$0xff]  ;;  %v1723_v62 = vsel %vm872_vm1, %v5374_v27, %v6549_v9 }
 0x1c1   : > { %6966 = vrot.lane.b32.xlu1 %v6965_v53, %s7828_s27  ;;  %6961 = vrot.lane.b32.xlu0 %v6960_v55, %s7827_s26  ;;  %v5361_v53 = vld [vmem:[%s7889_s24 + $0xa0] sm:$0xff]  ;;  %v1733_v55 = vsel %vm905_vm2, %v8697_v28, %v6574_v42  ;;  %v6975_v28 = vpack.i.bf16 %v5655_v33, %v5654_v29  ;;  %v1796_v42 = vsel %vm971_vm4, %v1764_v60, %v6733_v2  ;;  %v6608_v2 = vunpack.i.l.bf16 %v8521_v40 }
 0x1c2   : > { %v8769_v7 = vpop.permute.xlu2 %6806  ;;  %v1765_v48 = vsel %vm938_vm3, %v1733_v55, %v6654_v24  ;;  %v1710_v15 = vsel %vm872_vm1, %v5361_v53, %v6518_v58  ;;  %v5373_v24 = vld [vmem:[%s7889_s24 + $0x118] sm:$0xff]  ;;  %v5665_v40 = vld [vmem:[%s7889_s24 + $0xe3] sm:$0xff]  ;;  %v6659_v33 = vunpack.i.h.bf16 %v8516_v14  ;;  %v6658_v53 = vunpack.i.l.bf16 %v8516_v14 }
 0x1c3   : > { %11924 = vst [vmem:[#allocation82_spill] sm:$0xff] %v8769_v7  ;;  %v8777_v52 = vpop.permute.xlu1 %6756  ;;  %v6752_v36 = vpop.permute.xlu0 %6751  ;;  %v6985_v7 = vpack.i.bf16 %v5659_v34, %v5658_v25  ;;  %v1797_v4 = vsel %vm971_vm4, %v1765_v48, %v6734_v20  ;;  %v1715_v25 = vsel %vm872_vm1, %v5366_v3, %v6529_v26  ;;  %v6628_v34 = vunpack.i.l.bf16 %v8486_v30  ;;  %v5661_v31 = vld [vmem:[%s7889_s24 + $0xbb] sm:$0xff] }
 0x1c4   : > { %v6754_v22 = vunpack.i.h.bf16 %v6752_v36  ;;  %v6753_v51 = vunpack.i.l.bf16 %v6752_v36  ;;  %v1714_v20 = vsel %vm872_vm1, %v5365_v44, %v6528_v38  ;;  %v8798_v58 = vsel %vm905_vm2, %v1710_v15, %v6598_v43 }
 0x1c5   : > { %v1827_v56 = vpack.c.bf16 %v1797_v4, %v1796_v42  ;;  %v8805_v26 = vsel %vm905_vm2, %v8739_v17, %v6599_v5  ;;  %v6689_v44 = vunpack.i.h.bf16 %v8550_v46  ;;  %v6688_v38 = vunpack.i.l.bf16 %v8550_v46  ;;  %v5662_v4 = vld [vmem:[%s7889_s24 + $0xcb] sm:$0xff]  ;;  %v5663_v46 = vld [vmem:[%s7889_s24 + $0xd3] sm:$0xff] }
 0x1c6   : > { %v1804_v47 = vsel %vm971_vm4, %v1772_v32, %v6753_v51  ;;  %v1805_v36 = vsel %vm971_vm4, %v1773_v12, %v6754_v22  ;;  %v1722_v43 = vsel %vm872_vm1, %v5373_v24, %v6548_v1  ;;  %v6579_v17 = vunpack.i.h.bf16 %v8491_v50 }
 0x1c7   : > { %v1831_v48 = vpack.c.bf16 %v1805_v36, %v1804_v47  ;;  %v6578_v5 = vunpack.i.l.bf16 %v8491_v50  ;;  %v1754_v29 = vsel %vm905_vm2, %v1722_v43, %v6628_v34  ;;  %v1747_v60 = vsel %vm905_vm2, %v1715_v25, %v6609_v41  ;;  %v5670_v34 = vld [vmem:[%s7889_s24 + $0x11b] sm:$0xff]  ;;  %v5671_v41 = vld [vmem:[%s7889_s24 + $0x123] sm:$0xff] }
 0x1c8   : > { %6986 = vrot.lane.b32.xlu2 %v6985_v7, %s7828_s27  ;;  %v6629_v7 = vunpack.i.h.bf16 %v8486_v30  ;;  %v1746_v30 = vsel %vm905_vm2, %v1714_v20, %v6608_v2  ;;  %v7000_v3 = vpack.i.bf16 %v5665_v40, %v5664_v39  ;;  %v6995_v22 = vpack.i.bf16 %v5663_v46, %v5662_v4  ;;  %v1022_v2 = vld [vmem:[%s11720_s1 + $0x8] sm:$0x3] }
 0x1c9   : > { %6981 = vrot.lane.b32.xlu1 %v6980_v54, %s7828_s27  ;;  %6976 = vrot.lane.b32.xlu0 %v6975_v28, %s7828_s27  ;;  %v5660_v54 = vld [vmem:[%s7889_s24 + $0xb3] sm:$0xff]  ;;  %v1778_v28 = vsel %vm938_vm3, %v1746_v30, %v6688_v38  ;;  %v1779_v42 = vsel %vm938_vm3, %v1747_v60, %v6689_v44  ;;  %v6679_v14 = vunpack.i.h.bf16 %v8603_v16  ;;  %v6678_v15 = vunpack.i.l.bf16 %v8603_v16 }
 0x1ca   : > { %5517 = vmatmul.msk.bf16.gmra.mxu0 %vm1855_vm5, %v1827_v56  ;;  %5521 = vmatmul.msk.bf16.gmra.mxu1 %vm1855_vm5, %v1831_v48  ;;  %v8820_v9 = vpop.permute.xlu2 %6821  ;;  %v6990_v51 = vpack.i.bf16 %v5661_v31, %v5660_v54  ;;  %v1755_v47 = vsel %vm905_vm2, %v1723_v62, %v6629_v7  ;;  %v6709_v36 = vunpack.i.h.bf16 %v8646_v6  ;;  %v6708_v25 = vunpack.i.l.bf16 %v8646_v6  ;;  %v5668_v6 = vld [vmem:[%s7889_s24 + $0x103] sm:$0xff]  ;;  %v5669_v56 = vld [vmem:[%s7889_s24 + $0x10b] sm:$0xff] }
 0x1cb   : > { %v8829_v55 = vpop.permute.xlu1 %6771  ;;  %v6767_v50 = vpop.permute.xlu0 %6766  ;;  %v1734_v16 = vsel %vm905_vm2, %v8735_v45, %v6578_v5  ;;  %v1735_v48 = vsel %vm905_vm2, %v8732_v18, %v6579_v17  ;;  %v6738_v20 = vunpack.i.l.bf16 %v8729_v23  ;;  %v2002_v39 = vunpack.c.l.b16 %v1022_v2  ;;  %v5666_v45 = vld [vmem:[%s7889_s24 + $0xf3] sm:$0xff]  ;;  %v5667_v18 = vld [vmem:[%s7889_s24 + $0xfb] sm:$0xff] }
 0x1cc   : > { %v6769_v32 = vunpack.i.h.bf16 %v6767_v50  ;;  %v6768_v12 = vunpack.i.l.bf16 %v6767_v50  ;;  %v6739_v62 = vunpack.i.h.bf16 %v8729_v23  ;;  %v6759_v44 = vunpack.i.h.bf16 %v8777_v52 }
 0x1cd   : > { %v6758_v38 = vunpack.i.l.bf16 %v8777_v52  ;;  %v1766_v40 = vsel %vm938_vm3, %v1734_v16, %v6658_v53  ;;  %v1767_v43 = vsel %vm938_vm3, %v1735_v48, %v6659_v33  ;;  %v1774_v23 = vsel %vm938_vm3, %v8798_v58, %v6678_v15  ;;  %v5367_v15 = vld [vmem:[%s7889_s24 + $0xd8] sm:$0xff] }
 0x1ce   : > { %v1810_v27 = vsel %vm971_vm4, %v1778_v28, %v6768_v12  ;;  %v1811_v1 = vsel %vm971_vm4, %v1779_v42, %v6769_v32  ;;  %v1775_v52 = vsel %vm938_vm3, %v8805_v26, %v6679_v14  ;;  %v2004_v7 = vpack.c.b16 %v2002_v39, %v2002_v39  ;;  %v5676_v16 = vld [vmem:[%s7889_s24 + $0x153] sm:$0xff]  ;;  %v5674_v39 = vld [vmem:[%s7889_s24 + $0x143] sm:$0xff] }
 0x1cf   : > { %v1834_v24 = vpack.c.bf16 %v1811_v1, %v1810_v27  ;;  %v7015_v46 = vpack.i.bf16 %v5671_v41, %v5670_v34  ;;  %v7010_v54 = vpack.i.bf16 %v5669_v56, %v5668_v6  ;;  %v1786_v31 = vsel %vm938_vm3, %v1754_v29, %v6708_v25  ;;  %v5368_v27 = vld [vmem:[%s7889_s24 + $0xe0] sm:$0xff] }
 0x1d0   : > { %7001 = vrot.lane.b32.xlu2 %v7000_v3, %s7828_s27  ;;  %v1787_v53 = vsel %vm938_vm3, %v1755_v47, %v6709_v36  ;;  %v7005_v58 = vpack.i.bf16 %v5667_v18, %v5666_v45  ;;  %v1798_v50 = vsel %vm971_vm4, %v1766_v40, %v6738_v20  ;;  %v1799_v26 = vsel %vm971_vm4, %v1767_v43, %v6739_v62  ;;  %v5355_v3 = vld [vmem:[%s7889_s24 + $0x60] sm:$0xff]  ;;  %v5672_v18 = vld [vmem:[%s7889_s24 + $0x12b] sm:$0xff]  ;;  %v5673_v40 = vld [vmem:[%s7889_s24 + $0x133] sm:$0xff] }
 0x1d1   : > { %6996 = vrot.lane.b32.xlu1 %v6995_v22, %s7828_s27  ;;  %6991 = vrot.lane.b32.xlu0 %v6990_v51, %s7828_s27  ;;  %v1806_v60 = vsel %vm971_vm4, %v1774_v23, %v6758_v38  ;;  %v1807_v32 = vsel %vm971_vm4, %v1775_v52, %v6759_v44  ;;  %v2055_v12 = vsel %vm1904_vm0, %v2004_v7, 0  ;;  %v5356_v22 = vld [vmem:[%s7889_s24 + $0x68] sm:$0xff]  ;;  %v6534_v29 = vunpack.i.h.bf16 %v8446_v10  ;;  %v5677_v56 = vld [vmem:[%s7889_s24 + $0x15b] sm:$0xff] }
 0x1d2   : > { %5524 = vmatmul.msk.bf16.vlgmr.msra.gmra.mxu2 %vm1855_vm5, %v1834_v24  ;;  %v8863_v4 = vpop.permute.xlu2 %6836  ;;  %v6533_v51 = vunpack.i.l.bf16 %v8446_v10  ;;  %2063 = vmatpush.bf16.msrb.mxu1 %v2055_v12  ;;  %v6583_v14 = vunpack.i.l.bf16 %v8441_v8  ;;  %v6614_v1 = vunpack.i.h.bf16 %v8471_v57  ;;  %v6613_v47 = vunpack.i.l.bf16 %v8471_v57  ;;  %v6109_v10 = vld [vmem:[%s11720_s1] sm:$0xff] }
 0x1d3   : > { %v6787_v17 = vpop.permute.xlu1 %6786  ;;  %v8870_v5 = vpop.permute.xlu0 %6781  ;;  %v6694_v25 = vunpack.i.h.bf16 %v8626_v49  ;;  %v6693_v24 = vunpack.i.l.bf16 %v8626_v49  ;;  %v1828_v34 = vpack.c.bf16 %v1799_v26, %v1798_v50  ;;  %v1832_v2 = vpack.c.bf16 %v1807_v32, %v1806_v60 }
 0x1d4   : > { %v6789_v30 = vunpack.i.h.bf16 %v6787_v17  ;;  %v6788_v33 = vunpack.i.l.bf16 %v6787_v17  ;;  %v11925_v48 = vunpack.i.h.bf16 %v8416_v63  ;;  %v11926_v20 = vunpack.i.l.bf16 %v8416_v63 }
 0x1d5   : > { %v6774_v6 = vunpack.i.h.bf16 %v8829_v55  ;;  %v6773_v49 = vunpack.i.l.bf16 %v8829_v55  ;;  %v6584_v62 = vunpack.i.h.bf16 %v8441_v8  ;;  %v1717_v44 = vsel %vm872_vm1, %v5368_v27, %v6534_v29  ;;  %v5675_v55 = vld [vmem:[%s7889_s24 + $0x14b] sm:$0xff]  ;;  %v5680_v27 = vld [vmem:[%s7889_s24 + $0x17b] sm:$0xff] }
 0x1d6   : > { %v1818_v28 = vsel %vm971_vm4, %v1786_v31, %v6788_v33  ;;  %v1819_v42 = vsel %vm971_vm4, %v1787_v53, %v6789_v30  ;;  %v1705_v57 = vsel %vm872_vm1, %v5356_v22, %v11925_v48  ;;  %v1704_v41 = vsel %vm872_vm1, %v5355_v3, %v11926_v20  ;;  %2064 = vmatpush.bf16.msrb.mxu1 %v6109_v10 }
 0x1d7   : > { %v1838_v36 = vpack.c.bf16 %v1819_v42, %v1818_v28  ;;  %v1716_v63 = vsel %vm872_vm1, %v5367_v15, %v6533_v51  ;;  %v6604_v38 = vunpack.i.h.bf16 %v8523_v59  ;;  %v1736_v43 = vsel %vm905_vm2, %v1704_v41, %v6583_v14  ;;  %v5682_v42 = vld [vmem:[%s7889_s24 + $0x54] sm:$0xff] }
 0x1d8   : > { %7016 = vrot.lane.b32.xlu2 %v7015_v46, %s7828_s27  ;;  %v1748_v23 = vsel %vm905_vm2, %v1716_v63, %v6613_v47  ;;  %v1749_v8 = vsel %vm905_vm2, %v1717_v44, %v6614_v1  ;;  %v6603_v52 = vunpack.i.l.bf16 %v8523_v59  ;;  %v6634_v46 = vunpack.i.h.bf16 %v8557_v61  ;;  %v11928_v14 = vld [vmem:[#allocation81_spill] sm:$0xff]  ;;  %v11929_v1 = vld [vmem:[#allocation80_spill] sm:$0xff] }
 0x1d9   : > { %7011 = vrot.lane.b32.xlu1 %v7010_v54, %s7828_s27  ;;  %7006 = vrot.lane.b32.xlu0 %v7005_v58, %s7828_s27  ;;  %v7030_v54 = vpack.i.bf16 %v5677_v56, %v5676_v16  ;;  %v1780_v31 = vsel %vm938_vm3, %v1748_v23, %v6693_v24  ;;  %v1781_v53 = vsel %vm938_vm3, %v1749_v8, %v6694_v25  ;;  %v6633_v60 = vunpack.i.l.bf16 %v8557_v61  ;;  %v5681_v25 = vld [vmem:[%s7889_s24 + $0x183] sm:$0xff]  ;;  %v5678_v24 = vld [vmem:[%s7889_s24 + $0x16b] sm:$0xff] }
 0x1da   : > { %5518 = vmatmul.msk.bf16.gmra.mxu0 %vm1855_vm5, %v1828_v34  ;;  %5522 = vmatmul.msk.bf16.gmra.mxu1 %vm1855_vm5, %v1832_v2  ;;  %v8915_v45 = vpop.permute.xlu2 %6851  ;;  %v7025_v30 = vpack.i.bf16 %v5675_v55, %v5674_v39  ;;  %v7020_v33 = vpack.i.bf16 %v5673_v40, %v5672_v18  ;;  %v1812_v58 = vsel %vm971_vm4, %v1780_v31, %v6773_v49  ;;  %v6683_v32 = vunpack.i.l.bf16 %v8601_v11  ;;  %v5679_v34 = vld [vmem:[%s7889_s24 + $0x173] sm:$0xff] }
 0x1db   : > { %11927 = vst [vmem:[#allocation83_spill] sm:$0xff] %v8915_v45  ;;  %5528 = vmatmul.msk.bf16.vlgmr.msra.gmra.mxu3 %vm1855_vm5, %v1838_v36  ;;  %v8925_v7 = vpop.permute.xlu1 %6801  ;;  %v8927_v17 = vpop.permute.xlu0 %6796  ;;  %v1813_v59 = vsel %vm971_vm4, %v1781_v53, %v6774_v6  ;;  %v1737_v50 = vsel %vm905_vm2, %v1705_v57, %v6584_v62  ;;  %v1745_v26 = vsel %vm905_vm2, %v8706_v19, %v6604_v38  ;;  %v6664_v12 = vunpack.i.h.bf16 %v8588_v0  ;;  %v11930_v36 = vld [vmem:[#allocation79_spill] sm:$0xff]  ;;  %v11932_v18 = vld [vmem:[#allocation65_spill] sm:$0xff]  ;;  %v224_v31 = vld [vmem:[%s7889_s24 + $0xf0] sm:$0xff] }
 0x1dc   : > { %v6663_v3 = vunpack.i.l.bf16 %v8588_v0  ;;  %v6684_v22 = vunpack.i.h.bf16 %v8601_v11  ;;  %v6763_v29 = vunpack.i.l.bf16 %v8639_v37  ;;  %v6764_v51 = vunpack.i.h.bf16 %v8639_v37  ;;  %v225_v53 = vld [vmem:[%s7889_s24 + $0xf8] sm:$0xff]  ;;  %v5556_v45 = vld [vmem:[%s7889_s24 + $0x60] sm:$0xff] }
 0x1dd   : > { %v6714_v28 = vunpack.i.h.bf16 %v8644_v35  ;;  %v6713_v19 = vunpack.i.l.bf16 %v8644_v35  ;;  %v1835_v61 = vpack.c.bf16 %v1813_v59, %v1812_v58  ;;  %v1744_v0 = vsel %vm905_vm2, %v8709_v21, %v6603_v52  ;;  %v5683_v35 = vld [vmem:[%s7889_s24 + $0x5c] sm:$0xff]  ;;  %v11933_v52 = vld [vmem:[#allocation72_spill] sm:$0xff] }
 0x1de   : > { %v1757_v11 = vsel %vm905_vm2, %v8719_v13, %v6634_v46  ;;  %v6744_v15 = vunpack.i.h.bf16 %v11928_v14  ;;  %v6743_v37 = vunpack.i.l.bf16 %v11928_v14  ;;  %v1756_v47 = vsel %vm905_vm2, %v11929_v1, %v6633_v60  ;;  %v11935_v60 = vld [vmem:[#allocation77_spill] sm:$0xff]  ;;  %v5685_v14 = vld [vmem:[%s7889_s24 + $0x6c] sm:$0xff] }
 0x1df   : > { %v6794_v10 = vunpack.i.h.bf16 %v11930_v36  ;;  %v6793_v21 = vunpack.i.l.bf16 %v11930_v36  ;;  %v1776_v2 = vsel %vm938_vm3, %v1744_v0, %v6683_v32  ;;  %v1768_v57 = vsel %vm938_vm3, %v1736_v43, %v6663_v3  ;;  %v5687_v0 = vld [vmem:[%s7889_s24 + $0x84] sm:$0xff]  ;;  %v11937_v36 = vld [vmem:[#allocation21_spill] sm:$0xff] }
 0x1e0   : > { %7031 = vrot.lane.b32.xlu2 %v7030_v54, %s7828_s27  ;;  %v1769_v20 = vsel %vm938_vm3, %v1737_v50, %v6664_v12  ;;  %v1777_v41 = vsel %vm938_vm3, %v1745_v26, %v6684_v22  ;;  %v1808_v6 = vsel %vm971_vm4, %v1776_v2, %v6763_v29  ;;  %v7045_v49 = vpack.i.bf16 %v5683_v35, %v5682_v42  ;;  %v5688_v26 = vld [vmem:[%s7889_s24 + $0x8c] sm:$0xff]  ;;  %v5689_v22 = vld [vmem:[%s7889_s24 + $0x94] sm:$0xff]  ;;  %v5686_v29 = vld [vmem:[%s7889_s24 + $0x7c] sm:$0xff] }
 0x1e1   : > { %7026 = vrot.lane.b32.xlu1 %v7025_v30, %s7828_s27  ;;  %7021 = vrot.lane.b32.xlu0 %v7020_v33, %s7828_s27  ;;  %v1809_v56 = vsel %vm971_vm4, %v1777_v41, %v6764_v51  ;;  %v1788_v39 = vsel %vm938_vm3, %v1756_v47, %v6713_v19  ;;  %v1789_v62 = vsel %vm938_vm3, %v1757_v11, %v6714_v28  ;;  %v6539_v40 = vunpack.i.h.bf16 %v11932_v18  ;;  %v11934_v30 = vld [vmem:[#allocation76_spill] sm:$0xff]  ;;  %v11936_v51 = vld [vmem:[#allocation7_spill] sm:$0xff] }
 0x1e2   : > { %5525 = vmatmul.msk.bf16.gmra.mxu2 %vm1855_vm5, %v1835_v61  ;;  %v8963_v13 = vpop.permute.xlu2 %6866  ;;  %v7040_v44 = vpack.i.bf16 %v5681_v25, %v5680_v27  ;;  %v7035_v63 = vpack.i.bf16 %v5679_v34, %v5678_v24  ;;  %v1800_v38 = vsel %vm971_vm4, %v1768_v57, %v6743_v37  ;;  %v1801_v55 = vsel %vm971_vm4, %v1769_v20, %v6744_v15  ;;  %v5684_v11 = vld [vmem:[%s7889_s24 + $0x64] sm:$0xff] }
 0x1e3   : > { %11931 = vst [vmem:[#allocation81_spill] sm:$0xff] %v8963_v13  ;;  %v8969_v16 = vpop.permute.xlu1 %6816  ;;  %v8971_v48 = vpop.permute.xlu0 %6811  ;;  %v6538_v43 = vunpack.i.l.bf16 %v11932_v18  ;;  %v1820_v23 = vsel %vm971_vm4, %v1788_v39, %v6793_v21  ;;  %v1821_v8 = vsel %vm971_vm4, %v1789_v62, %v6794_v10  ;;  %v6619_v46 = vunpack.i.h.bf16 %v11933_v52  ;;  %v200_v37 = vld [vmem:[%s7889_s24] sm:$0xff]  ;;  %v201_v41 = vld [vmem:[%s7889_s24 + $0x8] sm:$0xff] }
 0x1e4   : > { %v6618_v54 = vunpack.i.l.bf16 %v11933_v52  ;;  %v6699_v33 = vunpack.i.h.bf16 %v11934_v30  ;;  %v6698_v58 = vunpack.i.l.bf16 %v11934_v30  ;;  %v1829_v59 = vpack.c.bf16 %v1801_v55, %v1800_v38  ;;  %v11940_v38 = vld [vmem:[#allocation69_spill] sm:$0xff] }
 0x1e5   : > { %v1833_v50 = vpack.c.bf16 %v1809_v56, %v1808_v6  ;;  %v6779_v32 = vunpack.i.h.bf16 %v11935_v60  ;;  %v6778_v12 = vunpack.i.l.bf16 %v11935_v60  ;;  %v1839_v3 = vpack.c.bf16 %v1821_v8, %v1820_v23  ;;  %v11938_v56 = vld [vmem:[#allocation26_spill] sm:$0xff]  ;;  %v5378_v23 = vld [vmem:[%s7889_s24 + $0x148] sm:$0xff]  ;;  %v11941_v8 = vld [vmem:[#allocation73_spill] sm:$0xff] }
 0x1e6   : > { %v6168_v28 = vunpack.i.l.bf16 %v11936_v51  ;;  %v1719_v19 = vsel %vm872_vm1, %v225_v53, %v6539_v40  ;;  %v1718_v61 = vsel %vm872_vm1, %v224_v31, %v6538_v43  ;;  %v6169_v15 = vunpack.i.h.bf16 %v11936_v51  ;;  %v5377_v43 = vld [vmem:[%s7889_s24 + $0x140] sm:$0xff]  ;;  %v5694_v31 = vld [vmem:[%s7889_s24 + $0xcc] sm:$0xff] }
 0x1e7   : > { %v1751_v35 = vsel %vm905_vm2, %v1719_v19, %v6619_v46  ;;  %v1750_v27 = vsel %vm905_vm2, %v1718_v61, %v6618_v54  ;;  %v6248_v10 = vunpack.i.l.bf16 %v11937_v36  ;;  %v7060_v21 = vpack.i.bf16 %v5689_v22, %v5688_v26  ;;  %v5692_v26 = vld [vmem:[%s7889_s24 + $0xb4] sm:$0xff]  ;;  %v5690_v51 = vld [vmem:[%s7889_s24 + $0xa4] sm:$0xff] }
 0x1e8   : > { %7046 = vrot.lane.b32.xlu2 %v7045_v49, %s7829_s28  ;;  %v1782_v25 = vsel %vm938_vm3, %v1750_v27, %v6698_v58  ;;  %v1783_v24 = vsel %vm938_vm3, %v1751_v35, %v6699_v33  ;;  %v7055_v34 = vpack.i.bf16 %v5687_v0, %v5686_v29  ;;  %v7050_v2 = vpack.i.bf16 %v5685_v14, %v5684_v11  ;;  %v11942_v33 = vld [vmem:[#allocation75_spill] sm:$0xff]  ;;  %v5693_v29 = vld [vmem:[%s7889_s24 + $0xbc] sm:$0xff] }
 0x1e9   : > { %7041 = vrot.lane.b32.xlu1 %v7040_v44, %s7828_s27  ;;  %7036 = vrot.lane.b32.xlu0 %v7035_v63, %s7828_s27  ;;  %v1814_v57 = vsel %vm971_vm4, %v1782_v25, %v6778_v12  ;;  %v1815_v20 = vsel %vm971_vm4, %v1783_v24, %v6779_v32  ;;  %v873_v6 = vsel %vm872_vm1, %v200_v37, %v6168_v28  ;;  %v6249_v49 = vunpack.i.h.bf16 %v11937_v36  ;;  %v11939_v44 = vld [vmem:[#allocation55_spill] sm:$0xff] }
 0x1ea   : > { %5519 = vmatmul.msk.bf16.gmra.mxu0 %vm1855_vm5, %v1829_v59  ;;  %5523 = vmatmul.msk.bf16.gmra.mxu1 %vm1855_vm5, %v1833_v50  ;;  %v9005_v42 = vpop.permute.xlu2 %6881  ;;  %v6328_v39 = vunpack.i.l.bf16 %v11938_v56  ;;  %v6329_v62 = vunpack.i.h.bf16 %v11938_v56  ;;  %v6408_v63 = vunpack.i.l.bf16 %v11939_v44  ;;  %v6559_v55 = vunpack.i.h.bf16 %v11940_v38  ;;  %v5695_v50 = vld [vmem:[%s7889_s24 + $0xd4] sm:$0xff]  ;;  %v5691_v28 = vld [vmem:[%s7889_s24 + $0xac] sm:$0xff] }
 0x1eb   : > { %5529 = vmatmul.msk.bf16.gmra.mxu3 %vm1855_vm5, %v1839_v3  ;;  %v9015_v1 = vpop.permute.xlu1 %6831  ;;  %v9017_v47 = vpop.permute.xlu0 %6826  ;;  %v6558_v18 = vunpack.i.l.bf16 %v11940_v38  ;;  %v6409_v40 = vunpack.i.h.bf16 %v11939_v44  ;;  %v6639_v52 = vunpack.i.h.bf16 %v11941_v8  ;;  %v6638_v46 = vunpack.i.l.bf16 %v11941_v8  ;;  %v11944_v24 = vld [vmem:[#allocation67_spill] sm:$0xff]  ;;  %v5698_v8 = vld [vmem:[%s7889_s24 + $0xf4] sm:$0xff] }
 0x1ec   : > { %v1836_v54 = vpack.c.bf16 %v1815_v20, %v1814_v57  ;;  %v874_v53 = vsel %vm872_vm1, %v201_v41, %v6169_v15  ;;  %v906_v30 = vsel %vm905_vm2, %v873_v6, %v6248_v10  ;;  %v6719_v58 = vunpack.i.h.bf16 %v11942_v33  ;;  %v5371_v41 = vld [vmem:[%s7889_s24 + $0x100] sm:$0xff]  ;;  %v5372_v6 = vld [vmem:[%s7889_s24 + $0x108] sm:$0xff] }
 0x1ed   : > { %v6718_v59 = vunpack.i.l.bf16 %v11942_v33  ;;  %v907_v60 = vsel %vm905_vm2, %v874_v53, %v6249_v49  ;;  %v939_v32 = vsel %vm938_vm3, %v906_v30, %v6328_v39  ;;  %v6799_v12 = vunpack.i.h.bf16 %v8927_v17  ;;  %v11945_v49 = vld [vmem:[#allocation71_spill] sm:$0xff]  ;;  %v5699_v30 = vld [vmem:[%s7889_s24 + $0xfc] sm:$0xff] }
 0x1ee   : > { %v6798_v3 = vunpack.i.l.bf16 %v8927_v17  ;;  %v940_v19 = vsel %vm938_vm3, %v907_v60, %v6329_v62  ;;  %v972_v61 = vsel %vm971_vm4, %v939_v32, %v6408_v63  ;;  %v1727_v0 = vsel %vm872_vm1, %v5378_v23, %v6559_v55  ;;  %v11946_v62 = vld [vmem:[#allocation74_spill] sm:$0xff]  ;;  %v5701_v23 = vld [vmem:[%s7889_s24 + $0x10c] sm:$0xff] }
 0x1ef   : > { %v1726_v11 = vsel %vm872_vm1, %v5377_v43, %v6558_v18  ;;  %v973_v15 = vsel %vm971_vm4, %v940_v19, %v6409_v40  ;;  %v1759_v35 = vsel %vm905_vm2, %v1727_v0, %v6639_v52  ;;  %v7075_v27 = vpack.i.bf16 %v5695_v50, %v5694_v31  ;;  %v5700_v55 = vld [vmem:[%s7889_s24 + $0x104] sm:$0xff]  ;;  %v5696_v33 = vld [vmem:[%s7889_s24 + $0xdc] sm:$0xff] }
 0x1f0   : > { %7061 = vrot.lane.b32.xlu2 %v7060_v21, %s7829_s28  ;;  %v1758_v37 = vsel %vm905_vm2, %v1726_v11, %v6638_v46  ;;  %v7070_v36 = vpack.i.bf16 %v5693_v29, %v5692_v26  ;;  %v7065_v10 = vpack.i.bf16 %v5691_v28, %v5690_v51  ;;  %v1791_v25 = vsel %vm938_vm3, %v1759_v35, %v6719_v58  ;;  %v11947_v52 = vld [vmem:[#allocation10_spill] sm:$0xff] }
 0x1f1   : > { %7056 = vrot.lane.b32.xlu1 %v7055_v34, %s7829_s28  ;;  %7051 = vrot.lane.b32.xlu0 %v7050_v2, %s7829_s28  ;;  %v1790_v21 = vsel %vm938_vm3, %v1758_v37, %v6718_v59  ;;  %v6544_v34 = vunpack.i.h.bf16 %v11944_v24  ;;  %v6543_v2 = vunpack.i.l.bf16 %v11944_v24  ;;  %v1823_v20 = vsel %vm971_vm4, %v1791_v25, %v6799_v12  ;;  %v202_v59 = vld [vmem:[%s7889_s24 + $0x10] sm:$0xff]  ;;  %v11950_v12 = vld [vmem:[#allocation11_spill] sm:$0xff] }
 0x1f2   : > { %5526 = vmatmul.msk.bf16.gmra.mxu2 %vm1855_vm5, %v1836_v54  ;;  %v9052_v22 = vpop.permute.xlu2 %6896  ;;  %v1822_v57 = vsel %vm971_vm4, %v1790_v21, %v6798_v3  ;;  %v6624_v56 = vunpack.i.h.bf16 %v11945_v49  ;;  %v6623_v39 = vunpack.i.l.bf16 %v11945_v49  ;;  %v6704_v44 = vunpack.i.h.bf16 %v11946_v62  ;;  %v11952_v21 = vld [vmem:[#allocation54_spill] sm:$0xff]  ;;  %v11953_v24 = vld [vmem:[#allocation68_spill] sm:$0xff] }
 0x1f3   : > { %v9061_v14 = vpop.permute.xlu1 %6846  ;;  %v9063_v17 = vpop.permute.xlu0 %6841  ;;  %v6703_v63 = vunpack.i.l.bf16 %v11946_v62  ;;  %v1004_v38 = vpack.c.bf16 %v973_v15, %v972_v61  ;;  %v6784_v18 = vunpack.i.h.bf16 %v8870_v5  ;;  %v6783_v40 = vunpack.i.l.bf16 %v8870_v5  ;;  %v5697_v5 = vld [vmem:[%s7889_s24 + $0xe4] sm:$0xff]  ;;  %v203_v15 = vld [vmem:[%s7889_s24 + $0x18] sm:$0xff] }
 0x1f4   : > { %11943 = vst [vmem:[#allocation80_spill] sm:$0xff] %v9063_v17  ;;  %v1840_v43 = vpack.c.bf16 %v1823_v20, %v1822_v57  ;;  %v6173_v46 = vunpack.i.l.bf16 %v11947_v52  ;;  %v1721_v54 = vsel %vm872_vm1, %v5372_v6, %v6544_v34  ;;  %v1720_v31 = vsel %vm872_vm1, %v5371_v41, %v6543_v2  ;;  %v5379_v20 = vld [vmem:[%s7889_s24 + $0x150] sm:$0xff]  ;;  %v5380_v41 = vld [vmem:[%s7889_s24 + $0x158] sm:$0xff]  ;;  %v11954_v6 = vld [vmem:[#allocation70_spill] sm:$0xff] }
 0x1f5   : > { %v6174_v58 = vunpack.i.h.bf16 %v11947_v52  ;;  %v1752_v50 = vsel %vm905_vm2, %v1720_v31, %v6623_v39  ;;  %v1753_v26 = vsel %vm905_vm2, %v1721_v54, %v6624_v56  ;;  %v6253_v3 = vunpack.i.l.bf16 %v11950_v12  ;;  %v5706_v62 = vld [vmem:[%s7889_s24 + $0x144] sm:$0xff]  ;;  %v5705_v54 = vld [vmem:[%s7889_s24 + $0x134] sm:$0xff]  ;;  %v5702_v31 = vld [vmem:[%s7889_s24 + $0x11c] sm:$0xff] }
 0x1f6   : > { %v7090_v29 = vpack.i.bf16 %v5701_v23, %v5700_v55  ;;  %v1784_v51 = vsel %vm938_vm3, %v1752_v50, %v6703_v63  ;;  %v1785_v28 = vsel %vm938_vm3, %v1753_v26, %v6704_v44  ;;  %v7085_v19 = vpack.i.bf16 %v5699_v30, %v5698_v8  ;;  %v5703_v30 = vld [vmem:[%s7889_s24 + $0x124] sm:$0xff] }
 0x1f7   : > { %v7080_v61 = vpack.i.bf16 %v5697_v5, %v5696_v33  ;;  %v1816_v0 = vsel %vm971_vm4, %v1784_v51, %v6783_v40  ;;  %v1817_v11 = vsel %vm971_vm4, %v1785_v28, %v6784_v18  ;;  %v875_v37 = vsel %vm872_vm1, %v202_v59, %v6173_v46  ;;  %v5707_v40 = vld [vmem:[%s7889_s24 + $0x14c] sm:$0xff] }
 0x1f8   : > { %7076 = vrot.lane.b32.xlu2 %v7075_v27, %s7829_s28  ;;  %v6254_v35 = vunpack.i.h.bf16 %v11950_v12  ;;  %v11951_v27 = vld [vmem:[#allocation40_spill] sm:$0xff]  ;;  %v6413_v25 = vunpack.i.l.bf16 %v11952_v21  ;;  %v6564_v34 = vunpack.i.h.bf16 %v11953_v24  ;;  %v6563_v2 = vunpack.i.l.bf16 %v11953_v24 }
 0x1f9   : > { %7071 = vrot.lane.b32.xlu1 %v7070_v36, %s7829_s28  ;;  %7066 = vrot.lane.b32.xlu0 %v7065_v10, %s7829_s28  ;;  %v6333_v36 = vunpack.i.l.bf16 %v11951_v27  ;;  %v6334_v10 = vunpack.i.h.bf16 %v11951_v27  ;;  %v6414_v57 = vunpack.i.h.bf16 %v11952_v21  ;;  %v6644_v49 = vunpack.i.h.bf16 %v11954_v6  ;;  %v5708_v24 = vld [vmem:[%s7889_s24 + $0x154] sm:$0xff] }
 0x1fa   : > { %5536 = vmatmul.msk.bf16.vlgmr.msrb.gmra.mxu1 %vm1855_vm5, %v1004_v38  ;;  %v9092_v53 = vpop.permute.xlu2 %6911  ;;  %v6643_v56 = vunpack.i.l.bf16 %v11954_v6  ;;  %v1837_v39 = vpack.c.bf16 %v1817_v11, %v1816_v0  ;;  %v876_v44 = vsel %vm872_vm1, %v203_v15, %v6174_v58  ;;  %v908_v63 = vsel %vm905_vm2, %v875_v37, %v6253_v3  ;;  %v11955_v38 = vld [vmem:[#allocation78_spill] sm:$0xff] }
 0x1fb   : > { %5530 = vmatmul.msk.bf16.gmra.mxu3 %vm1855_vm5, %v1840_v43  ;;  %v9102_v60 = vpop.permute.xlu1 %6861  ;;  %v9104_v32 = vpop.permute.xlu0 %6856  ;;  %v6724_v55 = vunpack.i.h.bf16 %v11955_v38  ;;  %v6723_v18 = vunpack.i.l.bf16 %v11955_v38  ;;  %v5704_v43 = vld [vmem:[%s7889_s24 + $0x12c] sm:$0xff]  ;;  %v909_v23 = vsel %vm905_vm2, %v876_v44, %v6254_v35  ;;  %v6804_v8 = vunpack.i.h.bf16 %v8925_v7  ;;  %v5712_v35 = vld [vmem:[%s7889_s24 + $0x17c] sm:$0xff] }
 0x1fc   : > { %11948 = vst [vmem:[#allocation79_spill] sm:$0xff] %v9102_v60  ;;  %v6803_v52 = vunpack.i.l.bf16 %v8925_v7  ;;  %v941_v33 = vsel %vm938_vm3, %v908_v63, %v6333_v36  ;;  %v1729_v5 = vsel %vm872_vm1, %v5380_v41, %v6564_v34  ;;  %v1728_v58 = vsel %vm872_vm1, %v5379_v20, %v6563_v2  ;;  %v5713_v36 = vld [vmem:[%s7889_s24 + $0x184] sm:$0xff]  ;;  %v5709_v34 = vld [vmem:[%s7889_s24 + $0x15c] sm:$0xff]  ;;  %v205_v44 = vld [vmem:[%s7889_s24 + $0x30] sm:$0xff] }
 0x1fd   : > { %11949 = vst [vmem:[#allocation65_spill] sm:$0xff] %v9104_v32  ;;  %v942_v7 = vsel %vm938_vm3, %v909_v23, %v6334_v10  ;;  %v974_v26 = vsel %vm971_vm4, %v941_v33, %v6413_v25  ;;  %v1760_v12 = vsel %vm905_vm2, %v1728_v58, %v6643_v56  ;;  %v1761_v3 = vsel %vm905_vm2, %v1729_v5, %v6644_v49  ;;  %v5710_v10 = vld [vmem:[%s7889_s24 + $0x16c] sm:$0xff]  ;;  %v5711_v25 = vld [vmem:[%s7889_s24 + $0x174] sm:$0xff]  ;;  %v11958_v49 = vld [vmem:[#allocation6_spill] sm:$0xff] }
 0x1fe   : > { %v975_v51 = vsel %vm971_vm4, %v942_v7, %v6414_v57  ;;  %v7100_v28 = vpack.i.bf16 %v5705_v54, %v5704_v43  ;;  %v1793_v0 = vsel %vm938_vm3, %v1761_v3, %v6724_v55  ;;  %v7120_v20 = vpack.i.bf16 %v5713_v36, %v5712_v35  ;;  %v11959_v63 = vld [vmem:[#allocation25_spill] sm:$0xff]  ;;  %v5775_v23 = vld [vmem:[%s7889_s24 + $0xa1] sm:$0xff] }
 0x1ff   : > { %v1825_v15 = vsel %vm971_vm4, %v1793_v0, %v6804_v8  ;;  %v1005_v37 = vpack.c.bf16 %v975_v51, %v974_v26  ;;  %v7115_v41 = vpack.i.bf16 %v5711_v25, %v5710_v10  ;;  %v7110_v6 = vpack.i.bf16 %v5709_v34, %v5708_v24  ;;  %v11961_v8 = vld [vmem:[#allocation44_spill] sm:$0xff]  ;;  %v5771_v26 = vld [vmem:[%s7889_s24 + $0x79] sm:$0xff]  ;;  %v5782_v10 = vld [vmem:[%s7889_s24 + $0xe1] sm:$0xff] }
 0x200   : > { %7091 = vrot.lane.b32.xlu2 %v7090_v29, %s7829_s28  ;;  %v7105_v29 = vpack.i.bf16 %v5707_v40, %v5706_v62  ;;  %v6179_v56 = vunpack.i.h.bf16 %v11958_v49  ;;  %v204_v62 = vld [vmem:[%s7889_s24 + $0x28] sm:$0xff]  ;;  %v6259_v38 = vunpack.i.h.bf16 %v11959_v63  ;;  %v6258_v55 = vunpack.i.l.bf16 %v11959_v63  ;;  %v5774_v7 = vld [vmem:[%s7889_s24 + $0x91] sm:$0xff]  ;;  %v5781_v36 = vld [vmem:[%s7889_s24 + $0xd9] sm:$0xff] }
 0x201   : > { %7086 = vrot.lane.b32.xlu1 %v7085_v19, %s7829_s28  ;;  %7081 = vrot.lane.b32.xlu0 %v7080_v61, %s7829_s28  ;;  %v7095_v19 = vpack.i.bf16 %v5703_v30, %v5702_v31  ;;  %v1792_v61 = vsel %vm938_vm3, %v1760_v12, %v6723_v18  ;;  %v11960_v18 = vld [vmem:[#allocation39_spill] sm:$0xff]  ;;  %v6418_v54 = vunpack.i.l.bf16 %v11961_v8  ;;  %v5780_v34 = vld [vmem:[%s7889_s24 + $0xd1] sm:$0xff] }
 0x202   : > { %5527 = vmatmul.msk.bf16.gmra.mxu2 %vm1855_vm5, %v1837_v39  ;;  %v9138_v46 = vpop.permute.xlu2 %6926  ;;  %v1824_v11 = vsel %vm971_vm4, %v1792_v61, %v6803_v52  ;;  %v6178_v39 = vunpack.i.l.bf16 %v11958_v49  ;;  %v6339_v40 = vunpack.i.h.bf16 %v11960_v18  ;;  %v6338_v43 = vunpack.i.l.bf16 %v11960_v18  ;;  %v5776_v31 = vld [vmem:[%s7889_s24 + $0xa9] sm:$0xff]  ;;  %v5772_v12 = vld [vmem:[%s7889_s24 + $0x81] sm:$0xff] }
 0x203   : > { %11956 = vst [vmem:[#allocation72_spill] sm:$0xff] %v9138_v46  ;;  %v9146_v59 = vpop.permute.xlu1 %6876  ;;  %v9148_v50 = vpop.permute.xlu0 %6871  ;;  %v1841_v27 = vpack.c.bf16 %v1825_v15, %v1824_v11  ;;  %v6419_v52 = vunpack.i.h.bf16 %v11961_v8  ;;  %v5773_v30 = vld [vmem:[%s7889_s24 + $0x89] sm:$0xff]  ;;  %v878_v5 = vsel %vm872_vm1, %v205_v44, %v6179_v56  ;;  %v7125_v15 = vpack.i.bf16 %v5772_v12, %v5771_v26  ;;  %v11963_v44 = vld [vmem:[#allocation9_spill] sm:$0xff]  ;;  %v5785_v26 = vld [vmem:[%s7889_s24 + $0x101] sm:$0xff] }
 0x204   : > { %v877_v33 = vsel %vm872_vm1, %v204_v62, %v6178_v39  ;;  %v7130_v11 = vpack.i.bf16 %v5774_v7, %v5773_v30  ;;  %v5779_v25 = vld [vmem:[%s7889_s24 + $0xc9] sm:$0xff]  ;;  %v7150_v56 = vpack.i.bf16 %v5782_v10, %v5781_v36  ;;  %v6184_v63 = vunpack.i.h.bf16 %v11963_v44  ;;  %v11965_v8 = vld [vmem:[#allocation29_spill] sm:$0xff]  ;;  %v11966_v30 = vld [vmem:[#allocation58_spill] sm:$0xff] }
 0x205   : > { %v910_v3 = vsel %vm905_vm2, %v877_v33, %v6258_v55  ;;  %v7145_v39 = vpack.i.bf16 %v5780_v34, %v5779_v25  ;;  %v5716_v55 = vld [vmem:[%s11720_s1 + $0x20] sm:$0x3]  ;;  %v11964_v18 = vld [vmem:[#allocation24_spill] sm:$0xff]  ;;  %v6424_v33 = vunpack.i.h.bf16 %v11966_v30 }
 0x206   : > { %v943_v61 = vsel %vm938_vm3, %v910_v3, %v6338_v43  ;;  %v6263_v43 = vunpack.i.l.bf16 %v11964_v18  ;;  %v5788_v7 = vld [vmem:[%s7889_s24 + $0x121] sm:$0xff]  ;;  %v7766_v3 = vld [vmem:[%s7889_s24 + $0x38] sm:$0xff] }
 0x208   : > { %7106 = vrot.lane.b32.xlu2 %v7105_v29, %s7829_s28  ;;  %v911_v29 = vsel %vm905_vm2, %v878_v5, %v6259_v38  ;;  %v6183_v38 = vunpack.i.l.bf16 %v11963_v44  ;;  %v6423_v5 = vunpack.i.l.bf16 %v11966_v30 }
 0x209   : > { %7101 = vrot.lane.b32.xlu1 %v7100_v28, %s7829_s28  ;;  %7096 = vrot.lane.b32.xlu0 %v7095_v19, %s7829_s28  ;;  %v7135_v19 = vpack.i.bf16 %v5776_v31, %v5775_v23  ;;  %v944_v0 = vsel %vm938_vm3, %v911_v29, %v6339_v40  ;;  %v6264_v40 = vunpack.i.h.bf16 %v11964_v18  ;;  %v2974_v23 = vunpack.c.l.b16 %v5716_v55  ;;  %v5787_v31 = vld [vmem:[%s7889_s24 + $0x119] sm:$0xff]  ;;  %v5793_v55 = vld [vmem:[%s7889_s24 + $0x151] sm:$0xff] }
 0x20a   : > { %5537 = vmatmul.msk.bf16.gmra.mxu1 %vm1855_vm5, %v1005_v37  ;;  %v9166_v21 = vpop.permute.xlu2 %6941  ;;  %v976_v37 = vsel %vm971_vm4, %v943_v61, %v6418_v54  ;;  %v977_v35 = vsel %vm971_vm4, %v944_v0, %v6419_v52  ;;  %v6344_v52 = vunpack.i.h.bf16 %v11965_v8  ;;  %v6343_v54 = vunpack.i.l.bf16 %v11965_v8  ;;  %v5794_v18 = vld [vmem:[%s7889_s24 + $0x159] sm:$0xff]  ;;  %v5789_v8 = vld [vmem:[%s7889_s24 + $0x129] sm:$0xff] }
 0x20b   : > { %11957 = vst [vmem:[#allocation76_spill] sm:$0xff] %v9166_v21  ;;  %5531 = vmatmul.msk.bf16.gmra.mxu3 %vm1855_vm5, %v1841_v27  ;;  %v9172_v2 = vpop.permute.xlu1 %6891  ;;  %v9174_v57 = vpop.permute.xlu0 %6886  ;;  %v1006_v27 = vpack.c.bf16 %v977_v35, %v976_v37  ;;  %v2976_v12 = vpack.c.b16 %v2974_v23, %v2974_v23  ;;  %v879_v29 = vsel %vm872_vm1, %v7766_v3, %v6183_v38  ;;  %v5784_v37 = vld [vmem:[%s7889_s24 + $0xf9] sm:$0xff]  ;;  %v5792_v23 = vld [vmem:[%s7889_s24 + $0x149] sm:$0xff] }
 0x20c   : > { %v912_v35 = vsel %vm905_vm2, %v879_v29, %v6263_v43  ;;  %v7165_v34 = vpack.i.bf16 %v5788_v7, %v5787_v31  ;;  %v7180_v30 = vpack.i.bf16 %v5794_v18, %v5793_v55  ;;  %v11971_v7 = vld [vmem:[#allocation2_spill] sm:$0xff]  ;;  %v208_v3 = vld [vmem:[%s7889_s24 + $0x50] sm:$0xff]  ;;  %v209_v29 = vld [vmem:[%s7889_s24 + $0x58] sm:$0xff]  ;;  %v6894_v32 = vunpack.i.h.bf16 %v9172_v2 }
 0x20d   : > { %v3027_v25 = vsel %vm1904_vm0, %v2976_v12, 0  ;;  %v6188_v12 = vunpack.i.l.bf16 %v11971_v7  ;;  %v5796_v55 = vld [vmem:[%s7889_s24 + $0x171] sm:$0xff] }
 0x20e   : > { %3035 = vmatpush.bf16.msrb.mxu2 %v3027_v25  ;;  %v11974_v25 = vld [vmem:[#allocation57_spill] sm:$0xff] }
 0x210   : > { %7121 = vrot.lane.b32.xlu2 %v7120_v20, %s7829_s28  ;;  %v5777_v20 = vld [vmem:[%s7889_s24 + $0xb1] sm:$0xff] }
 0x211   : > { %7116 = vrot.lane.b32.xlu1 %v7115_v41, %s7829_s28  ;;  %7111 = vrot.lane.b32.xlu0 %v7110_v6, %s7829_s28  ;;  %v5778_v41 = vld [vmem:[%s7889_s24 + $0xb9] sm:$0xff] }
 0x212   : > { %v9194_v58 = vpop.permute.xlu2 %6956  ;;  %v7140_v62 = vpack.i.bf16 %v5778_v41, %v5777_v20  ;;  %v945_v20 = vsel %vm938_vm3, %v912_v35, %v6343_v54 }
 0x213   : > { %v9201_v51 = vpop.permute.xlu1 %6906  ;;  %v9203_v28 = vpop.permute.xlu0 %6901 }
 0x218   : > { %7136 = vrot.lane.b32.xlu2 %v7135_v19, %s7826_s25  ;;  %v7767_v19 = vld [vmem:[%s7889_s24 + $0x40] sm:$0xff] }
 0x219   : > { %7131 = vrot.lane.b32.xlu1 %v7130_v11, %s7826_s25  ;;  %7126 = vrot.lane.b32.xlu0 %v7125_v15, %s7826_s25  ;;  %v880_v61 = vsel %vm872_vm1, %v7767_v19, %v6184_v63  ;;  %v5786_v11 = vld [vmem:[%s7889_s24 + $0x109] sm:$0xff]  ;;  %v5783_v15 = vld [vmem:[%s7889_s24 + $0xf1] sm:$0xff]  ;;  %v11972_v19 = vld [vmem:[#allocation14_spill] sm:$0xff] }
 0x21a   : > { %5538 = vmatmul.msk.bf16.gmra.mxu1 %vm1855_vm5, %v1006_v27  ;;  %v9216_v24 = vpop.permute.xlu2 %6971  ;;  %v913_v27 = vsel %vm905_vm2, %v880_v61, %v6264_v40  ;;  %v6111_v63 = vld [vmem:[%s11720_s1 + $0x18] sm:$0xff]  ;;  %v5791_v40 = vld [vmem:[%s7889_s24 + $0x141] sm:$0xff]  ;;  %v6269_v61 = vunpack.i.h.bf16 %v11972_v19 }
 0x21b   : > { %v9221_v6 = vpop.permute.xlu1 %6921  ;;  %v9223_v49 = vpop.permute.xlu0 %6916  ;;  %v946_v41 = vsel %vm938_vm3, %v913_v27, %v6344_v52  ;;  %3036 = vmatpush.bf16.msrb.mxu2 %v6111_v63  ;;  %v5790_v52 = vld [vmem:[%s7889_s24 + $0x131] sm:$0xff]  ;;  %v5798_v63 = vld [vmem:[%s7889_s24 + $0x181] sm:$0xff] }
 0x21c   : > { %11962 = vst [vmem:[#allocation77_spill] sm:$0xff] %v9221_v6  ;;  %v979_v44 = vsel %vm971_vm4, %v946_v41, %v6424_v33  ;;  %v7175_v33 = vpack.i.bf16 %v5792_v23, %v5791_v40  ;;  %v5799_v27 = vld [vmem:[%s7889_s24 + $0x191] sm:$0xff]  ;;  %v5800_v41 = vld [vmem:[%s7889_s24 + $0x199] sm:$0xff] }
 0x21d   : > { %v5834_v6 = vld [vmem:[%s7889_s24 + $0x1aa] sm:$0xff] }
 0x220   : > { %7151 = vrot.lane.b32.xlu2 %v7150_v56, %s7826_s25  ;;  %v7160_v56 = vpack.i.bf16 %v5786_v11, %v5785_v26  ;;  %v6189_v26 = vunpack.i.h.bf16 %v11971_v7  ;;  %v6268_v11 = vunpack.i.l.bf16 %v11972_v19  ;;  %v5806_v19 = vld [vmem:[%s7889_s24 + $0x92] sm:$0xff] }
 0x221   : > { %7146 = vrot.lane.b32.xlu1 %v7145_v39, %s7826_s25  ;;  %7141 = vrot.lane.b32.xlu0 %v7140_v62, %s7826_s25  ;;  %v7155_v39 = vpack.i.bf16 %v5784_v37, %v5783_v15  ;;  %v978_v62 = vsel %vm971_vm4, %v945_v20, %v6423_v5  ;;  %v7170_v5 = vpack.i.bf16 %v5790_v52, %v5789_v8  ;;  %v11973_v15 = vld [vmem:[#allocation43_spill] sm:$0xff]  ;;  %v6428_v20 = vunpack.i.l.bf16 %v11974_v25 }
 0x222   : > { %v9246_v0 = vpop.permute.xlu2 %6986  ;;  %v1007_v38 = vpack.c.bf16 %v979_v44, %v978_v62  ;;  %v6349_v37 = vunpack.i.h.bf16 %v11973_v15  ;;  %v6348_v35 = vunpack.i.l.bf16 %v11973_v15  ;;  %v882_v62 = vsel %vm872_vm1, %v209_v29, %v6189_v26  ;;  %v5805_v29 = vld [vmem:[%s7889_s24 + $0x8a] sm:$0xff]  ;;  %v5804_v15 = vld [vmem:[%s7889_s24 + $0x82] sm:$0xff] }
 0x223   : > { %v9253_v36 = vpop.permute.xlu1 %6936  ;;  %v9255_v10 = vpop.permute.xlu0 %6931  ;;  %v915_v40 = vsel %vm905_vm2, %v882_v62, %v6269_v61  ;;  %v7195_v52 = vpack.i.bf16 %v5800_v41, %v5799_v27  ;;  %v5803_v61 = vld [vmem:[%s7889_s24 + $0x7a] sm:$0xff]  ;;  %v11976_v27 = vld [vmem:[#allocation3_spill] sm:$0xff]  ;;  %v11977_v62 = vld [vmem:[#allocation28_spill] sm:$0xff] }
 0x224   : > { %11967 = vst [vmem:[#allocation7_spill] sm:$0xff] %v9253_v36 }
 0x225   : > { %11968 = vst [vmem:[#allocation21_spill] sm:$0xff] %v9255_v10  ;;  %v6813_v10 = vunpack.i.l.bf16 %v8971_v48 }
 0x228   : > { %7166 = vrot.lane.b32.xlu2 %v7165_v34, %s7826_s25  ;;  %v6429_v34 = vunpack.i.h.bf16 %v11974_v25  ;;  %v6194_v25 = vunpack.i.h.bf16 %v11976_v27 }
 0x229   : > { %7161 = vrot.lane.b32.xlu1 %v7160_v56, %s7826_s25  ;;  %7156 = vrot.lane.b32.xlu0 %v7155_v39, %s7826_s25  ;;  %v5797_v56 = vld [vmem:[%s7889_s24 + $0x179] sm:$0xff]  ;;  %v881_v39 = vsel %vm872_vm1, %v208_v3, %v6188_v12 }
 0x22a   : > { %5539 = vmatmul.msk.bf16.gmra.mxu1 %vm1855_vm5, %v1007_v38  ;;  %v9272_v43 = vpop.permute.xlu2 %7001  ;;  %v5795_v38 = vld [vmem:[%s7889_s24 + $0x169] sm:$0xff]  ;;  %v914_v18 = vsel %vm905_vm2, %v881_v39, %v6268_v11 }
 0x22b   : > { %11969 = vst [vmem:[#allocation26_spill] sm:$0xff] %v9272_v43  ;;  %v9277_v54 = vpop.permute.xlu1 %6951  ;;  %v9279_v31 = vpop.permute.xlu0 %6946  ;;  %v7185_v7 = vpack.i.bf16 %v5796_v55, %v5795_v38  ;;  %v211_v39 = vld [vmem:[%s7889_s24 + $0x68] sm:$0xff]  ;;  %v7210_v38 = vpack.i.bf16 %v5806_v19, %v5805_v29  ;;  %v6274_v55 = vunpack.i.h.bf16 %v11977_v62  ;;  %v6889_v19 = vunpack.i.h.bf16 %v9174_v57 }
 0x22c   : > { %11970 = vst [vmem:[#allocation55_spill] sm:$0xff] %v9279_v31  ;;  %v884_v29 = vsel %vm872_vm1, %v211_v39, %v6194_v25  ;;  %v5808_v31 = vld [vmem:[%s7889_s24 + $0xaa] sm:$0xff] }
 0x22d   : > { %v917_v25 = vsel %vm905_vm2, %v884_v29, %v6274_v55 }
 0x230   : > { %7181 = vrot.lane.b32.xlu2 %v7180_v30, %s7826_s25  ;;  %v947_v30 = vsel %vm938_vm3, %v914_v18, %v6348_v35  ;;  %v5802_v35 = vld [vmem:[%s7889_s24 + $0x1a9] sm:$0xff]  ;;  %v11978_v18 = vld [vmem:[#allocation42_spill] sm:$0xff] }
 0x231   : > { %7176 = vrot.lane.b32.xlu1 %v7175_v33, %s7826_s25  ;;  %7171 = vrot.lane.b32.xlu0 %v7170_v5, %s7826_s25  ;;  %v948_v33 = vsel %vm938_vm3, %v915_v40, %v6349_v37  ;;  %v7190_v5 = vpack.i.bf16 %v5798_v63, %v5797_v56  ;;  %v980_v26 = vsel %vm971_vm4, %v947_v30, %v6428_v20  ;;  %v5801_v37 = vld [vmem:[%s7889_s24 + $0x1a1] sm:$0xff]  ;;  %v6273_v63 = vunpack.i.l.bf16 %v11977_v62 }
 0x232   : > { %v9299_v44 = vpop.permute.xlu2 %7016  ;;  %v981_v12 = vsel %vm971_vm4, %v948_v33, %v6429_v34  ;;  %v6193_v34 = vunpack.i.l.bf16 %v11976_v27  ;;  %v210_v56 = vld [vmem:[%s7889_s24 + $0x60] sm:$0xff]  ;;  %v6353_v40 = vunpack.i.l.bf16 %v11978_v18  ;;  %v7200_v30 = vpack.i.bf16 %v5802_v35, %v5801_v37 }
 0x233   : > { %11975 = vst [vmem:[#allocation69_spill] sm:$0xff] %v9299_v44  ;;  %v9306_v23 = vpop.permute.xlu1 %6966  ;;  %v9308_v8 = vpop.permute.xlu0 %6961  ;;  %v1008_v3 = vpack.c.bf16 %v981_v12, %v980_v26  ;;  %v6354_v33 = vunpack.i.h.bf16 %v11978_v18  ;;  %v11980_v26 = vld [vmem:[#allocation82_spill] sm:$0xff]  ;;  %v214_v44 = vld [vmem:[%s7889_s24 + $0x88] sm:$0xff] }
 0x234   : > { %v6809_v12 = vunpack.i.h.bf16 %v11980_v26  ;;  %v883_v27 = vsel %vm872_vm1, %v210_v56, %v6193_v34  ;;  %v6969_v35 = vunpack.i.h.bf16 %v9306_v23  ;;  %v6968_v62 = vunpack.i.l.bf16 %v9306_v23  ;;  %v5811_v34 = vld [vmem:[%s7889_s24 + $0xca] sm:$0xff]  ;;  %v5809_v56 = vld [vmem:[%s7889_s24 + $0xb2] sm:$0xff] }
 0x235   : > { %v950_v55 = vsel %vm938_vm3, %v917_v25, %v6354_v33 }
 0x238   : > { %7196 = vrot.lane.b32.xlu2 %v7195_v52, %s7826_s25  ;;  %v7205_v52 = vpack.i.bf16 %v5804_v15, %v5803_v61  ;;  %v6888_v61 = vunpack.i.l.bf16 %v9174_v57  ;;  %v916_v15 = vsel %vm905_vm2, %v883_v27, %v6273_v63  ;;  %v5812_v57 = vld [vmem:[%s7889_s24 + $0xd2] sm:$0xff]  ;;  %v5810_v27 = vld [vmem:[%s7889_s24 + $0xba] sm:$0xff] }
 0x239   : > { %7191 = vrot.lane.b32.xlu1 %v7190_v5, %s7826_s25  ;;  %7186 = vrot.lane.b32.xlu0 %v7185_v7, %s7826_s25  ;;  %v11979_v5 = vld [vmem:[#allocation47_spill] sm:$0xff]  ;;  %v949_v39 = vsel %vm938_vm3, %v916_v15, %v6353_v40  ;;  %v7768_v63 = vld [vmem:[%s7889_s24 + $0x58] sm:$0xff]  ;;  %v7225_v33 = vpack.i.bf16 %v5812_v57, %v5811_v34  ;;  %v7220_v25 = vpack.i.bf16 %v5810_v27, %v5809_v56 }
 0x23a   : > { %5540 = vmatmul.msk.bf16.gmra.mxu1 %vm1855_vm5, %v1008_v3  ;;  %v9321_v11 = vpop.permute.xlu2 %7031  ;;  %v6433_v7 = vunpack.i.l.bf16 %v11979_v5  ;;  %v6808_v3 = vunpack.i.l.bf16 %v11980_v26  ;;  %v6434_v37 = vunpack.i.h.bf16 %v11979_v5  ;;  %v2822_v18 = vsel %vm872_vm1, %v7768_v63, %v6809_v12  ;;  %v7769_v5 = vld [vmem:[%s7889_s24 + $0x50] sm:$0xff]  ;;  %v5813_v57 = vld [vmem:[%s7889_s24 + $0xda] sm:$0xff]  ;;  %v5814_v56 = vld [vmem:[%s7889_s24 + $0xe2] sm:$0xff] }
 0x23b   : > { %v9328_v20 = vpop.permute.xlu1 %6981  ;;  %v9330_v41 = vpop.permute.xlu0 %6976  ;;  %v5815_v34 = vld [vmem:[%s7889_s24 + $0xf2] sm:$0xff] }
 0x23c   : > { %v2821_v23 = vsel %vm872_vm1, %v7769_v5, %v6808_v3 }
 0x23d   : > { %v2853_v29 = vsel %vm905_vm2, %v2821_v23, %v6888_v61 }
 0x23e   : > { %v2885_v3 = vsel %vm938_vm3, %v2853_v29, %v6968_v62  ;;  %v11985_v29 = vld [vmem:[#allocation27_spill] sm:$0xff] }
 0x240   : > { %7211 = vrot.lane.b32.xlu2 %v7210_v38, %s7827_s26  ;;  %v5807_v38 = vld [vmem:[%s7889_s24 + $0xa2] sm:$0xff] }
 0x241   : > { %7206 = vrot.lane.b32.xlu1 %v7205_v52, %s7827_s26  ;;  %7201 = vrot.lane.b32.xlu0 %v7200_v30, %s7826_s25  ;;  %v982_v52 = vsel %vm971_vm4, %v949_v39, %v6433_v7  ;;  %v2854_v30 = vsel %vm905_vm2, %v2822_v18, %v6889_v19  ;;  %v983_v7 = vsel %vm971_vm4, %v950_v55, %v6434_v37  ;;  %v5818_v37 = vld [vmem:[%s7889_s24 + $0x10a] sm:$0xff]  ;;  %v11984_v55 = vld [vmem:[#allocation13_spill] sm:$0xff] }
 0x242   : > { %v7047_v26 = vpop.permute.xlu2 %7046  ;;  %v2886_v63 = vsel %vm938_vm3, %v2854_v30, %v6969_v35  ;;  %v9377_v39 = vpack.i.bf16 %v5808_v31, %v5807_v38  ;;  %v1009_v62 = vpack.c.bf16 %v983_v7, %v982_v52  ;;  %v5817_v35 = vld [vmem:[%s7889_s24 + $0x102] sm:$0xff]  ;;  %v5816_v31 = vld [vmem:[%s7889_s24 + $0xfa] sm:$0xff]  ;;  %v7230_v38 = vpack.i.bf16 %v5814_v56, %v5813_v57 }
 0x243   : > { %v7049_v13 = vunpack.i.h.bf16 %v7047_v26  ;;  %v7048_v40 = vunpack.i.l.bf16 %v7047_v26  ;;  %v9368_v15 = vpop.permute.xlu1 %6996  ;;  %v9370_v12 = vpop.permute.xlu0 %6991  ;;  %v7240_v26 = vpack.i.bf16 %v5818_v37, %v5817_v35  ;;  %v7235_v27 = vpack.i.bf16 %v5816_v31, %v5815_v34  ;;  %v5821_v35 = vld [vmem:[%s7889_s24 + $0x12a] sm:$0xff]  ;;  %v7770_v37 = vld [vmem:[%s7889_s24 + $0x78] sm:$0xff]  ;;  %v7771_v31 = vld [vmem:[%s7889_s24 + $0x80] sm:$0xff] }
 0x244   : > { %11981 = vst [vmem:[#allocation73_spill] sm:$0xff] %v9377_v39  ;;  %v6199_v52 = vunpack.i.h.bf16 %v11984_v55  ;;  %v6198_v30 = vunpack.i.l.bf16 %v11984_v55  ;;  %v5819_v55 = vld [vmem:[%s7889_s24 + $0x11a] sm:$0xff] }
 0x245   : > { %v2917_v19 = vsel %vm971_vm4, %v2885_v3, %v7048_v40  ;;  %v2918_v61 = vsel %vm971_vm4, %v2886_v63, %v7049_v13  ;;  %v6279_v40 = vunpack.i.h.bf16 %v11985_v29  ;;  %v6278_v3 = vunpack.i.l.bf16 %v11985_v29  ;;  %v11986_v63 = vld [vmem:[#allocation32_spill] sm:$0xff]  ;;  %v5820_v29 = vld [vmem:[%s7889_s24 + $0x122] sm:$0xff] }
 0x246   : > { %v2949_v18 = vpack.c.bf16 %v2918_v61, %v2917_v19  ;;  %v6358_v7 = vunpack.i.l.bf16 %v11986_v63  ;;  %v5823_v19 = vld [vmem:[%s7889_s24 + $0x142] sm:$0xff]  ;;  %v11987_v61 = vld [vmem:[#allocation60_spill] sm:$0xff]  ;;  %v885_v34 = vsel %vm872_vm1, %v7770_v37, %v6198_v30  ;;  %v886_v57 = vsel %vm872_vm1, %v7771_v31, %v6199_v52 }
 0x247   : > { %v7245_v21 = vpack.i.bf16 %v5820_v29, %v5819_v55  ;;  %v5827_v29 = vld [vmem:[%s7889_s24 + $0x16a] sm:$0xff] }
 0x248   : > { %7226 = vrot.lane.b32.xlu2 %v7225_v33, %s7827_s26  ;;  %5721 = vmatmul.msk.bf16.vlgmr.msrb.gmra.mxu2 %vm1855_vm5, %v2949_v18  ;;  %v6359_v33 = vunpack.i.h.bf16 %v11986_v63  ;;  %v6438_v18 = vunpack.i.l.bf16 %v11987_v61  ;;  %v918_v63 = vsel %vm905_vm2, %v885_v34, %v6278_v3 }
 0x249   : > { %7221 = vrot.lane.b32.xlu1 %v7220_v25, %s7827_s26  ;;  %7216 = vrot.lane.b32.xlu0 %v9377_v39, %s7827_s26  ;;  %v6439_v25 = vunpack.i.h.bf16 %v11987_v61  ;;  %v951_v52 = vsel %vm938_vm3, %v918_v63, %v6358_v7  ;;  %v216_v7 = vld [vmem:[%s7889_s24 + $0xa0] sm:$0xff] }
 0x24a   : > { %5541 = vmatmul.msk.bf16.gmra.mxu1 %vm1855_vm5, %v1009_v62  ;;  %v9388_v13 = vpop.permute.xlu2 %7061  ;;  %v5824_v62 = vld [vmem:[%s7889_s24 + $0x14a] sm:$0xff]  ;;  %v984_v3 = vsel %vm971_vm4, %v951_v52, %v6438_v18  ;;  %v5829_v18 = vld [vmem:[%s7889_s24 + $0x17a] sm:$0xff]  ;;  %v5825_v52 = vld [vmem:[%s7889_s24 + $0x152] sm:$0xff] }
 0x24b   : > { %v9393_v5 = vpop.permute.xlu1 %7011  ;;  %v9395_v23 = vpop.permute.xlu0 %7006  ;;  %v7255_v30 = vpack.i.bf16 %v5824_v62, %v5823_v19  ;;  %v11992_v62 = vld [vmem:[#allocation5_spill] sm:$0xff] }
 0x24c   : > { %11982 = vst [vmem:[#allocation75_spill] sm:$0xff] %v9393_v5 }
 0x24d   : > { %11983 = vst [vmem:[#allocation67_spill] sm:$0xff] %v9395_v23  ;;  %v6814_v23 = vunpack.i.h.bf16 %v8971_v48  ;;  %v5835_v48 = vld [vmem:[%s7889_s24 + $0x7b] sm:$0xff] }
 0x250   : > { %7241 = vrot.lane.b32.xlu2 %v7240_v26, %s7827_s26  ;;  %v5822_v26 = vld [vmem:[%s7889_s24 + $0x132] sm:$0xff] }
 0x251   : > { %7236 = vrot.lane.b32.xlu1 %v7235_v27, %s7827_s26  ;;  %7231 = vrot.lane.b32.xlu0 %v7230_v38, %s7827_s26  ;;  %v919_v27 = vsel %vm905_vm2, %v886_v57, %v6279_v40  ;;  %v7250_v31 = vpack.i.bf16 %v5822_v26, %v5821_v35  ;;  %v9430_v40 = vpop.f32.mrf.mxu1  ;;  %v11991_v57 = vld [vmem:[#allocation4_spill] sm:$0xff]  ;;  %v217_v35 = vld [vmem:[%s7889_s24 + $0xa8] sm:$0xff]  ;;  %v222_v26 = vld [vmem:[%s7889_s24 + $0xd8] sm:$0xff] }
 0x252   : > { %v9415_v56 = vpop.permute.xlu2 %7076  ;;  %v952_v37 = vsel %vm938_vm3, %v919_v27, %v6359_v33  ;;  %11990 = vst [vmem:[#allocation10_spill] sm:$0xff] %v9430_v40  ;;  %v6208_v19 = vunpack.i.l.bf16 %v11991_v57  ;;  %v6223_v33 = vunpack.i.l.bf16 %v11992_v62  ;;  %v5828_v27 = vld [vmem:[%s7889_s24 + $0x172] sm:$0xff] }
 0x253   : > { %v9422_v38 = vpop.permute.xlu1 %7026  ;;  %v9424_v61 = vpop.permute.xlu0 %7021  ;;  %v985_v34 = vsel %vm971_vm4, %v952_v37, %v6439_v25  ;;  %v5830_v25 = vld [vmem:[%s7889_s24 + $0x182] sm:$0xff]  ;;  %v5826_v37 = vld [vmem:[%s7889_s24 + $0x15a] sm:$0xff] }
 0x254   : > { %11988 = vst [vmem:[#allocation71_spill] sm:$0xff] %v9422_v38  ;;  %v6209_v38 = vunpack.i.h.bf16 %v11991_v57  ;;  %v1010_v55 = vpack.c.bf16 %v985_v34, %v984_v3  ;;  %v9451_v57 = vsel %vm872_vm1, %v216_v7, %v6208_v19  ;;  %v7270_v7 = vpack.i.bf16 %v5830_v25, %v5829_v18 }
 0x255   : > { %11989 = vst [vmem:[#allocation74_spill] sm:$0xff] %v9424_v61  ;;  %v11995_v61 = vld [vmem:[#allocation12_spill] sm:$0xff] }
 0x256   : > { %v6204_v60 = vunpack.i.h.bf16 %v11995_v61  ;;  %v6203_v19 = vunpack.i.l.bf16 %v11995_v61  ;;  %v11998_v61 = vld [vmem:[#allocation59_spill] sm:$0xff] }
 0x257   : > { %v6444_v18 = vunpack.i.h.bf16 %v11998_v61  ;;  %v6443_v25 = vunpack.i.l.bf16 %v11998_v61 }
 0x258   : > { %7256 = vrot.lane.b32.xlu2 %v7255_v30, %s7827_s26  ;;  %v9454_v30 = vsel %vm872_vm1, %v217_v35, %v6209_v38  ;;  %v215_v38 = vld [vmem:[%s7889_s24 + $0x90] sm:$0xff]  ;;  %v11996_v35 = vld [vmem:[#allocation17_spill] sm:$0xff] }
 0x259   : > { %7251 = vrot.lane.b32.xlu1 %v7250_v31, %s7827_s26  ;;  %7246 = vrot.lane.b32.xlu0 %v7245_v21, %s7827_s26  ;;  %v9458_v21 = vsel %vm872_vm1, %v222_v26, %v6223_v33  ;;  %v6284_v36 = vunpack.i.h.bf16 %v11996_v35  ;;  %v6283_v33 = vunpack.i.l.bf16 %v11996_v35  ;;  %v7265_v26 = vpack.i.bf16 %v5828_v27, %v5827_v29  ;;  %v9485_v46 = vpop.f32.mrf.mxu1 }
 0x25a   : > { %5542 = vmatmul.msk.bf16.gmra.mxu1 %vm1855_vm5, %v1010_v55  ;;  %v9445_v63 = vpop.permute.xlu2 %7091  ;;  %v11994_v55 = vld [vmem:[#allocation8_spill] sm:$0xff]  ;;  %v7260_v31 = vpack.i.bf16 %v5826_v37, %v5825_v52  ;;  %v6893_v29 = vunpack.i.l.bf16 %v9172_v2  ;;  %v887_v27 = vsel %vm872_vm1, %v214_v44, %v6203_v19  ;;  %v888_v52 = vsel %vm872_vm1, %v215_v38, %v6204_v60  ;;  %12000 = vst [vmem:[#allocation40_spill] sm:$0xff] %v9485_v46  ;;  %v5836_v2 = vld [vmem:[%s7889_s24 + $0x83] sm:$0xff] }
 0x25b   : > { %11993 = vst [vmem:[#allocation11_spill] sm:$0xff] %v9445_v63  ;;  %v9460_v3 = vpop.permute.xlu1 %7041  ;;  %v9462_v34 = vpop.permute.xlu0 %7036  ;;  %v11997_v63 = vld [vmem:[#allocation46_spill] sm:$0xff]  ;;  %v11999_v37 = vld [vmem:[#allocation16_spill] sm:$0xff]  ;;  %v920_v61 = vsel %vm905_vm2, %v887_v27, %v6283_v33  ;;  %v921_v43 = vsel %vm905_vm2, %v888_v52, %v6284_v36  ;;  %v6974_v44 = vunpack.i.h.bf16 %v9216_v24  ;;  %v6973_v60 = vunpack.i.l.bf16 %v9216_v24 }
 0x25c   : > { %v6364_v40 = vunpack.i.h.bf16 %v11997_v63  ;;  %v6363_v5 = vunpack.i.l.bf16 %v11997_v63  ;;  %v6214_v35 = vunpack.i.h.bf16 %v11999_v37  ;;  %v5557_v63 = vld [vmem:[%s7889_s24 + $0x68] sm:$0xff]  ;;  %v6213_v38 = vunpack.i.l.bf16 %v11999_v37  ;;  %v5831_v33 = vld [vmem:[%s7889_s24 + $0x192] sm:$0xff]  ;;  %v5832_v27 = vld [vmem:[%s7889_s24 + $0x19a] sm:$0xff] }
 0x25d   : > { %v5833_v19 = vld [vmem:[%s7889_s24 + $0x1a2] sm:$0xff]  ;;  %v2823_v46 = vsel %vm872_vm1, %v5556_v45, %v6813_v10  ;;  %v2824_v24 = vsel %vm872_vm1, %v5557_v63, %v6814_v23  ;;  %v5584_v63 = vld [vmem:[%s7889_s24 + $0x178] sm:$0xff] }
 0x25e   : > { %v953_v36 = vsel %vm938_vm3, %v920_v61, %v6363_v5  ;;  %v954_v52 = vsel %vm938_vm3, %v921_v43, %v6364_v40  ;;  %v2856_v10 = vsel %vm905_vm2, %v2824_v24, %v6894_v32  ;;  %v7285_v5 = vpack.i.bf16 %v5836_v2, %v5835_v48  ;;  %v12002_v32 = vld [vmem:[#allocation15_spill] sm:$0xff]  ;;  %v12004_v24 = vld [vmem:[#allocation30_spill] sm:$0xff] }
 0x25f   : > { %v986_v37 = vsel %vm971_vm4, %v953_v36, %v6443_v25  ;;  %v987_v45 = vsel %vm971_vm4, %v954_v52, %v6444_v18  ;;  %v7280_v61 = vpack.i.bf16 %v5834_v6, %v5833_v19  ;;  %v7275_v43 = vpack.i.bf16 %v5832_v27, %v5831_v33  ;;  %v5585_v6 = vld [vmem:[%s7889_s24 + $0x180] sm:$0xff]  ;;  %v5841_v33 = vld [vmem:[%s7889_s24 + $0xb3] sm:$0xff] }
 0x260   : > { %7271 = vrot.lane.b32.xlu2 %v7270_v7, %s7827_s26  ;;  %v6884_v40 = vunpack.i.h.bf16 %v9005_v42  ;;  %v6964_v48 = vunpack.i.h.bf16 %v9308_v8  ;;  %v7043_v19 = vunpack.i.l.bf16 %v9460_v3  ;;  %v7772_v27 = vld [vmem:[%s7889_s24 + $0xb0] sm:$0xff] }
 0x261   : > { %7266 = vrot.lane.b32.xlu1 %v7265_v26, %s7827_s26  ;;  %7261 = vrot.lane.b32.xlu0 %v7260_v31, %s7827_s26  ;;  %v2855_v26 = vsel %vm905_vm2, %v2823_v46, %v6893_v29  ;;  %v2888_v46 = vsel %vm938_vm3, %v2856_v10, %v6974_v44  ;;  %v6883_v29 = vunpack.i.l.bf16 %v9005_v42  ;;  %v9525_v42 = vpop.f32.mrf.mxu1  ;;  %v9533_v36 = vsel %vm872_vm1, %v7772_v27, %v6213_v38 }
 0x262   : > { %v9499_v7 = vpop.permute.xlu2 %7106  ;;  %v2887_v23 = vsel %vm938_vm3, %v2855_v26, %v6973_v60  ;;  %v6963_v60 = vunpack.i.l.bf16 %v9308_v8  ;;  %12003 = vst [vmem:[#allocation68_spill] sm:$0xff] %v9525_v42  ;;  %v7773_v8 = vld [vmem:[%s7889_s24 + $0xb8] sm:$0xff]  ;;  %v5843_v42 = vld [vmem:[%s7889_s24 + $0xcb] sm:$0xff] }
 0x263   : > { %12001 = vst [vmem:[#allocation54_spill] sm:$0xff] %v9499_v7  ;;  %v9508_v31 = vpop.permute.xlu1 %7056  ;;  %v7052_v17 = vpop.permute.xlu0 %7051  ;;  %v9537_v52 = vsel %vm872_vm1, %v7773_v8, %v6214_v35  ;;  %v2851_v35 = vsel %vm872_vm1, %v5584_v63, %v6883_v29  ;;  %v12006_v29 = vld [vmem:[#allocation45_spill] sm:$0xff] }
 0x264   : > { %v7054_v7 = vunpack.i.h.bf16 %v7052_v17  ;;  %v7053_v39 = vunpack.i.l.bf16 %v7052_v17  ;;  %v2883_v27 = vsel %vm905_vm2, %v2851_v35, %v6963_v60  ;;  %v6369_v63 = vunpack.i.h.bf16 %v12006_v29 }
 0x265   : > { %v6368_v35 = vunpack.i.l.bf16 %v12006_v29  ;;  %v5847_v29 = vld [vmem:[%s7889_s24 + $0xf3] sm:$0xff] }
 0x266   : > { %v2919_v25 = vsel %vm971_vm4, %v2887_v23, %v7053_v39  ;;  %v2920_v18 = vsel %vm971_vm4, %v2888_v46, %v7054_v7  ;;  %v7044_v39 = vunpack.i.h.bf16 %v9460_v3  ;;  %v1011_v7 = vpack.c.bf16 %v987_v45, %v986_v37  ;;  %v5842_v3 = vld [vmem:[%s7889_s24 + $0xbb] sm:$0xff]  ;;  %v5839_v37 = vld [vmem:[%s7889_s24 + $0xa3] sm:$0xff] }
 0x267   : > { %v2950_v44 = vpack.c.bf16 %v2920_v18, %v2919_v25  ;;  %v12005_v45 = vld [vmem:[#allocation31_spill] sm:$0xff]  ;;  %v2852_v23 = vsel %vm872_vm1, %v5585_v6, %v6884_v40  ;;  %v2915_v6 = vsel %vm938_vm3, %v2883_v27, %v7043_v19  ;;  %v6818_v19 = vunpack.i.l.bf16 %v8969_v16  ;;  %v5559_v27 = vld [vmem:[%s7889_s24 + $0x80] sm:$0xff] }
 0x268   : > { %7286 = vrot.lane.b32.xlu2 %v7285_v5, %s7828_s27  ;;  %v6289_v38 = vunpack.i.h.bf16 %v12005_v45  ;;  %v6288_v5 = vunpack.i.l.bf16 %v12005_v45  ;;  %v5840_v25 = vld [vmem:[%s7889_s24 + $0xab] sm:$0xff] }
 0x269   : > { %7281 = vrot.lane.b32.xlu1 %v7280_v61, %s7827_s26  ;;  %7276 = vrot.lane.b32.xlu0 %v7275_v43, %s7827_s26  ;;  %v5837_v18 = vld [vmem:[%s7889_s24 + $0x8b] sm:$0xff]  ;;  %v5838_v61 = vld [vmem:[%s7889_s24 + $0x93] sm:$0xff]  ;;  %v2884_v43 = vsel %vm905_vm2, %v2852_v23, %v6964_v48  ;;  %v9571_v45 = vpack.i.bf16 %v5840_v25, %v5839_v37  ;;  %v6899_v37 = vunpack.i.h.bf16 %v9052_v22  ;;  %v6898_v25 = vunpack.i.l.bf16 %v9052_v22 }
 0x26a   : > { %5543 = vmatmul.msk.bf16.gmra.mxu1 %vm1855_vm5, %v1011_v7  ;;  %5722 = vmatmul.msk.bf16.gmra.mxu2 %vm1855_vm5, %v2950_v44  ;;  %v7122_v46 = vpop.permute.xlu2 %7121  ;;  %v2916_v44 = vsel %vm938_vm3, %v2884_v43, %v7044_v39  ;;  %v9563_v7 = vpack.i.bf16 %v5842_v3, %v5841_v33  ;;  %v7290_v23 = vpack.i.bf16 %v5838_v61, %v5837_v18  ;;  %v12010_v33 = vld [vmem:[#allocation50_spill] sm:$0xff]  ;;  %v5558_v43 = vld [vmem:[%s7889_s24 + $0x78] sm:$0xff]  ;;  %v6979_v61 = vunpack.i.h.bf16 %v9330_v41 }
 0x26b   : > { %v7124_v8 = vunpack.i.h.bf16 %v7122_v46  ;;  %v7123_v17 = vunpack.i.l.bf16 %v7122_v46  ;;  %v9556_v2 = vpop.permute.xlu1 %7071  ;;  %v9558_v40 = vpop.permute.xlu0 %7066  ;;  %v6819_v46 = vunpack.i.h.bf16 %v8969_v16  ;;  %v6449_v3 = vunpack.i.h.bf16 %v12010_v33 }
 0x26c   : > { %12007 = vst [vmem:[#allocation70_spill] sm:$0xff] %v9563_v7  ;;  %v922_v18 = vsel %vm905_vm2, %v9451_v57, %v6288_v5  ;;  %v923_v16 = vsel %vm905_vm2, %v9454_v30, %v6289_v38  ;;  %v7059_v57 = vunpack.i.h.bf16 %v9508_v31  ;;  %v7058_v5 = vunpack.i.l.bf16 %v9508_v31  ;;  %v5845_v30 = vld [vmem:[%s7889_s24 + $0xdb] sm:$0xff]  ;;  %v5846_v31 = vld [vmem:[%s7889_s24 + $0xe3] sm:$0xff] }
 0x26d   : > { %v9566_v48 = vsel %vm971_vm4, %v2915_v6, %v7123_v17  ;;  %v9569_v60 = vsel %vm971_vm4, %v2916_v44, %v7124_v8  ;;  %v6448_v17 = vunpack.i.l.bf16 %v12010_v33  ;;  %v6978_v8 = vunpack.i.l.bf16 %v9330_v41  ;;  %v12011_v6 = vld [vmem:[#allocation35_spill] sm:$0xff]  ;;  %v5848_v41 = vld [vmem:[%s7889_s24 + $0xfb] sm:$0xff] }
 0x26e   : > { %12008 = vst [vmem:[#allocation78_spill] sm:$0xff] %v9566_v48  ;;  %v6374_v44 = vunpack.i.h.bf16 %v12011_v6  ;;  %v6373_v22 = vunpack.i.l.bf16 %v12011_v6  ;;  %v955_v38 = vsel %vm938_vm3, %v922_v18, %v6368_v35  ;;  %v956_v33 = vsel %vm938_vm3, %v923_v16, %v6369_v63  ;;  %v9606_v6 = vpop.f32.mrf.mxu1  ;;  %v5844_v48 = vld [vmem:[%s7889_s24 + $0xd3] sm:$0xff] }
 0x26f   : > { %12009 = vst [vmem:[#allocation6_spill] sm:$0xff] %v9569_v60  ;;  %v2826_v39 = vsel %vm872_vm1, %v5559_v27, %v6819_v46  ;;  %v2825_v26 = vsel %vm872_vm1, %v5558_v43, %v6818_v19  ;;  %v988_v60 = vsel %vm971_vm4, %v955_v38, %v6448_v17  ;;  %v12014_v19 = vld [vmem:[#allocation62_spill] sm:$0xff]  ;;  %v9622_v27 = vpack.i.bf16 %v5848_v41, %v5847_v29  ;;  %v5582_v38 = vld [vmem:[%s7889_s24 + $0x168] sm:$0xff] }
 0x270   : > { %7301 = vrot.lane.b32.xlu2 %v9563_v7, %s7828_s27  ;;  %12012 = vst [vmem:[#allocation25_spill] sm:$0xff] %v9606_v6  ;;  %v2857_v7 = vsel %vm905_vm2, %v2825_v26, %v6898_v25  ;;  %v2858_v35 = vsel %vm905_vm2, %v2826_v39, %v6899_v37  ;;  %v6453_v43 = vunpack.i.l.bf16 %v12014_v19  ;;  %v9626_v17 = vpack.i.bf16 %v5846_v31, %v5845_v30  ;;  %v12018_v37 = vld [vmem:[#allocation18_spill] sm:$0xff] }
 0x271   : > { %7296 = vrot.lane.b32.xlu1 %v9571_v45, %s7828_s27  ;;  %7291 = vrot.lane.b32.xlu0 %v7290_v23, %s7828_s27  ;;  %v989_v23 = vsel %vm971_vm4, %v956_v33, %v6449_v3  ;;  %12015 = vst [vmem:[#allocation44_spill] sm:$0xff] %v9622_v27  ;;  %v2889_v18 = vsel %vm938_vm3, %v2857_v7, %v6978_v8  ;;  %v6454_v29 = vunpack.i.h.bf16 %v12014_v19  ;;  %v6824_v41 = vunpack.i.h.bf16 %v8820_v9  ;;  %v5583_v33 = vld [vmem:[%s7889_s24 + $0x170] sm:$0xff]  ;;  %v12021_v19 = vld [vmem:[#allocation19_spill] sm:$0xff] }
 0x272   : > { %v9608_v10 = vpop.permute.xlu2 %7136  ;;  %v2890_v16 = vsel %vm938_vm3, %v2858_v35, %v6979_v61  ;;  %12016 = vst [vmem:[#allocation9_spill] sm:$0xff] %v9626_v17  ;;  %v9628_v3 = vpack.i.bf16 %v5844_v48, %v5843_v42  ;;  %v2921_v26 = vsel %vm971_vm4, %v2889_v18, %v7058_v5  ;;  %v6823_v7 = vunpack.i.l.bf16 %v8820_v9  ;;  %v5853_v35 = vld [vmem:[%s7889_s24 + $0x12b] sm:$0xff] }
 0x273   : > { %v9617_v63 = vpop.permute.xlu1 %7086  ;;  %v9619_v46 = vpop.permute.xlu0 %7081  ;;  %v2922_v39 = vsel %vm971_vm4, %v2890_v16, %v7059_v57  ;;  %v12019_v8 = vunpack.i.l.bf16 %v12004_v24  ;;  %v6879_v48 = vunpack.i.h.bf16 %v9146_v59  ;;  %v6878_v57 = vunpack.i.l.bf16 %v9146_v59 }
 0x274   : > { %12013 = vst [vmem:[#allocation39_spill] sm:$0xff] %v9617_v63  ;;  %v12020_v5 = vunpack.i.h.bf16 %v12004_v24  ;;  %v2951_v31 = vpack.c.bf16 %v2922_v39, %v2921_v26  ;;  %v7774_v39 = vld [vmem:[%s7889_s24 + $0x90] sm:$0xff]  ;;  %v6874_v16 = vunpack.i.h.bf16 %v9148_v50  ;;  %v6904_v59 = vunpack.i.h.bf16 %v9203_v28 }
 0x275   : > { %12017 = vst [vmem:[#allocation24_spill] sm:$0xff] %v9628_v3  ;;  %v924_v42 = vsel %vm905_vm2, %v9533_v36, %v12019_v8  ;;  %v1012_v36 = vpack.c.bf16 %v989_v23, %v988_v60  ;;  %v5854_v60 = vld [vmem:[%s7889_s24 + $0x133] sm:$0xff]  ;;  %v6954_v61 = vunpack.i.h.bf16 %v9277_v54  ;;  %v7033_v6 = vunpack.i.l.bf16 %v9321_v11 }
 0x276   : > { %v925_v30 = vsel %vm905_vm2, %v9537_v52, %v12020_v5  ;;  %v957_v9 = vsel %vm938_vm3, %v924_v42, %v6373_v22  ;;  %v5851_v22 = vld [vmem:[%s7889_s24 + $0x11b] sm:$0xff]  ;;  %v12022_v23 = vld [vmem:[#allocation20_spill] sm:$0xff]  ;;  %v5852_v5 = vld [vmem:[%s7889_s24 + $0x123] sm:$0xff]  ;;  %v9692_v24 = vpop.f32.mrf.mxu1 }
 0x277   : > { %v958_v18 = vsel %vm938_vm3, %v925_v30, %v6374_v44  ;;  %v9657_v52 = vsel %vm971_vm4, %v957_v9, %v6453_v43  ;;  %v2828_v44 = vsel %vm872_vm1, %v7774_v39, %v6824_v41  ;;  %v7775_v43 = vld [vmem:[%s7889_s24 + $0x88] sm:$0xff]  ;;  %v6873_v41 = vunpack.i.l.bf16 %v9148_v50  ;;  %12025 = vst [vmem:[#allocation2_spill] sm:$0xff] %v9692_v24  ;;  %v9703_v24 = vpop.f32.mrf.mxu2 }
 0x278   : > { %7316 = vrot.lane.b32.xlu2 %v9622_v27, %s7828_s27  ;;  %v9667_v26 = vsel %vm971_vm4, %v958_v18, %v6454_v29  ;;  %v2827_v8 = vsel %vm872_vm1, %v7775_v43, %v6823_v7  ;;  %v5849_v30 = vld [vmem:[%s7889_s24 + $0x103] sm:$0xff]  ;;  %v5850_v9 = vld [vmem:[%s7889_s24 + $0x10b] sm:$0xff]  ;;  %v2850_v29 = vsel %vm872_vm1, %v5583_v33, %v6879_v48  ;;  %v2849_v18 = vsel %vm872_vm1, %v5582_v38, %v6878_v57 }
 0x279   : > { %7311 = vrot.lane.b32.xlu1 %v9626_v17, %s7828_s27  ;;  %7306 = vrot.lane.b32.xlu0 %v9628_v3, %s7828_s27  ;;  %v6958_v43 = vunpack.i.l.bf16 %v9194_v58  ;;  %v7330_v48 = vpack.i.bf16 %v5854_v60, %v5853_v35  ;;  %v5580_v33 = vld [vmem:[%s7889_s24 + $0x150] sm:$0xff]  ;;  %v6903_v57 = vunpack.i.l.bf16 %v9203_v28  ;;  %v6953_v38 = vunpack.i.l.bf16 %v9277_v54  ;;  %12027 = vst [vmem:[#allocation43_spill] sm:$0xff] %v9703_v24  ;;  %v5867_v3 = vld [vmem:[%s7889_s24 + $0x7c] sm:$0xff] }
 0x27a   : > { %5544 = vmatmul.msk.bf16.gmra.mxu1 %vm1855_vm5, %v1012_v36  ;;  %5723 = vmatmul.msk.bf16.gmra.mxu2 %vm1855_vm5, %v2951_v31  ;;  %v9675_v42 = vpop.permute.xlu2 %7151  ;;  %v5581_v36 = vld [vmem:[%s7889_s24 + $0x158] sm:$0xff]  ;;  %v6959_v31 = vunpack.i.h.bf16 %v9194_v58  ;;  %v7325_v50 = vpack.i.bf16 %v5852_v5, %v5851_v22  ;;  %v9697_v25 = vpack.i.bf16 %v5850_v9, %v5849_v30  ;;  %v6984_v58 = vunpack.i.h.bf16 %v9328_v20 }
 0x27b   : > { %v9684_v39 = vpop.permute.xlu1 %7101  ;;  %v9686_v7 = vpop.permute.xlu0 %7096  ;;  %v2848_v35 = vsel %vm872_vm1, %v5581_v36, %v6874_v16  ;;  %v7034_v28 = vunpack.i.h.bf16 %v9321_v11  ;;  %v7064_v60 = vunpack.i.h.bf16 %v9388_v13  ;;  %v7063_v22 = vunpack.i.l.bf16 %v9388_v13  ;;  %v5859_v16 = vld [vmem:[%s7889_s24 + $0x16b] sm:$0xff]  ;;  %v5860_v11 = vld [vmem:[%s7889_s24 + $0x173] sm:$0xff] }
 0x27c   : > { %12023 = vst [vmem:[#allocation29_spill] sm:$0xff] %v9684_v39  ;;  %v6983_v39 = vunpack.i.l.bf16 %v9328_v20  ;;  %v2847_v5 = vsel %vm872_vm1, %v5580_v33, %v6873_v41  ;;  %v2881_v54 = vsel %vm905_vm2, %v2849_v18, %v6958_v43  ;;  %v2882_v30 = vsel %vm905_vm2, %v2850_v29, %v6959_v31  ;;  %v5857_v29 = vld [vmem:[%s7889_s24 + $0x153] sm:$0xff]  ;;  %v5855_v31 = vld [vmem:[%s7889_s24 + $0x143] sm:$0xff]  ;;  %v5856_v43 = vld [vmem:[%s7889_s24 + $0x14b] sm:$0xff] }
 0x27d   : > { %12024 = vst [vmem:[#allocation58_spill] sm:$0xff] %v9686_v7  ;;  %v2860_v20 = vsel %vm905_vm2, %v2828_v44, %v6904_v59  ;;  %v2859_v9 = vsel %vm905_vm2, %v2827_v8, %v6903_v57  ;;  %v2879_v36 = vsel %vm905_vm2, %v2847_v5, %v6953_v38  ;;  %v7039_v13 = vunpack.i.h.bf16 %v9462_v34  ;;  %v5858_v8 = vld [vmem:[%s7889_s24 + $0x15b] sm:$0xff] }
 0x27e   : > { %12026 = vst [vmem:[#allocation14_spill] sm:$0xff] %v9697_v25  ;;  %v7038_v41 = vunpack.i.l.bf16 %v9462_v34  ;;  %v2880_v59 = vsel %vm905_vm2, %v2848_v35, %v6954_v61  ;;  %v2911_v44 = vsel %vm938_vm3, %v2879_v36, %v7033_v6  ;;  %v2892_v34 = vsel %vm938_vm3, %v2860_v20, %v6984_v58  ;;  %v228_v58 = vld [vmem:[%s7889_s24 + $0x118] sm:$0xff]  ;;  %v229_v7 = vld [vmem:[%s7889_s24 + $0x120] sm:$0xff] }
 0x27f   : > { %v2912_v33 = vsel %vm938_vm3, %v2880_v59, %v7034_v28  ;;  %v7345_v61 = vpack.i.bf16 %v5860_v11, %v5859_v16  ;;  %v2914_v28 = vsel %vm938_vm3, %v2882_v30, %v7039_v13  ;;  %v7335_v59 = vpack.i.bf16 %v5856_v43, %v5855_v31  ;;  %v220_v16 = vld [vmem:[%s7889_s24 + $0xc8] sm:$0xff]  ;;  %v221_v11 = vld [vmem:[%s7889_s24 + $0xd0] sm:$0xff]  ;;  %v12051_v31 = vld [vmem:[#allocation49_spill] sm:$0xff] }
 0x280   : > { %7331 = vrot.lane.b32.xlu2 %v7330_v48, %s7828_s27  ;;  %v2891_v48 = vsel %vm938_vm3, %v2859_v9, %v6983_v39  ;;  %v223_v39 = vld [vmem:[%s7889_s24 + $0xe0] sm:$0xff]  ;;  %v2913_v20 = vsel %vm938_vm3, %v2881_v54, %v7038_v41  ;;  %v7340_v9 = vpack.i.bf16 %v5858_v8, %v5857_v29  ;;  %v227_v13 = vld [vmem:[%s7889_s24 + $0x108] sm:$0xff]  ;;  %v6298_v41 = vunpack.i.l.bf16 %v12022_v23 }
 0x281   : > { %7326 = vrot.lane.b32.xlu1 %v7325_v50, %s7828_s27  ;;  %7321 = vrot.lane.b32.xlu0 %v9697_v25, %s7828_s27  ;;  %v2923_v6 = vsel %vm971_vm4, %v2891_v48, %v7063_v22  ;;  %v2924_v50 = vsel %vm971_vm4, %v2892_v34, %v7064_v60  ;;  %v9743_v22 = vpop.f32.mrf.mxu1  ;;  %v226_v54 = vld [vmem:[%s7889_s24 + $0x100] sm:$0xff]  ;;  %v6378_v43 = vunpack.i.l.bf16 %v12051_v31  ;;  %v12055_v25 = vld [vmem:[#allocation48_spill] sm:$0xff]  ;;  %v7069_v27 = vunpack.i.h.bf16 %v9558_v40 }
 0x282   : > { %v9726_v18 = vpop.permute.xlu2 %7166  ;;  %12029 = vst [vmem:[#allocation3_spill] sm:$0xff] %v9743_v22  ;;  %v12034_v29 = vld [vmem:[#allocation22_spill] sm:$0xff]  ;;  %v6828_v22 = vunpack.i.l.bf16 %v9017_v47 }
 0x283   : > { %12028 = vst [vmem:[#allocation57_spill] sm:$0xff] %v9726_v18  ;;  %v7117_v57 = vpop.permute.xlu1 %7116  ;;  %v7112_v38 = vpop.permute.xlu0 %7111  ;;  %v6243_v8 = vunpack.i.l.bf16 %v12034_v29 }
 0x284   : > { %v7119_v35 = vunpack.i.h.bf16 %v7117_v57  ;;  %v7118_v5 = vunpack.i.l.bf16 %v7117_v57  ;;  %v7114_v36 = vunpack.i.h.bf16 %v7112_v38  ;;  %v7113_v24 = vunpack.i.l.bf16 %v7112_v38  ;;  %v9775_v38 = vpop.f32.mrf.mxu2 }
 0x285   : > { %12037 = vst [vmem:[#allocation13_spill] sm:$0xff] %v9775_v38  ;;  %v6829_v38 = vunpack.i.h.bf16 %v9017_v47  ;;  %v6988_v47 = vunpack.i.l.bf16 %v9246_v0 }
 0x286   : > { %v9746_v60 = vsel %vm971_vm4, %v2913_v20, %v7118_v5  ;;  %v9749_v48 = vsel %vm971_vm4, %v2914_v28, %v7119_v35  ;;  %v9752_v34 = vsel %vm971_vm4, %v2911_v44, %v7113_v24  ;;  %v9755_v30 = vsel %vm971_vm4, %v2912_v33, %v7114_v36  ;;  %v5865_v36 = vld [vmem:[%s7889_s24 + $0x1a3] sm:$0xff] }
 0x287   : > { %12030 = vst [vmem:[#allocation28_spill] sm:$0xff] %v9746_v60  ;;  %v12035_v24 = vunpack.i.h.bf16 %v11992_v62  ;;  %v12036_v33 = vunpack.i.l.bf16 %v11994_v55  ;;  %v1013_v35 = vpack.c.bf16 %v9667_v26, %v9657_v52  ;;  %v2952_v5 = vpack.c.bf16 %v2924_v50, %v2923_v6  ;;  %v5866_v52 = vld [vmem:[%s7889_s24 + $0x1ab] sm:$0xff]  ;;  %v12052_v60 = vld [vmem:[#allocation61_spill] sm:$0xff] }
 0x288   : > { %12031 = vst [vmem:[#allocation42_spill] sm:$0xff] %v9749_v48  ;;  %7346 = vrot.lane.b32.xlu2 %v7345_v61, %s7828_s27  ;;  %v12038_v62 = vunpack.i.h.bf16 %v11994_v55  ;;  %v12039_v28 = vunpack.i.l.bf16 %v12002_v32  ;;  %v12040_v20 = vunpack.i.h.bf16 %v12002_v32  ;;  %v5863_v55 = vld [vmem:[%s7889_s24 + $0x193] sm:$0xff]  ;;  %v12041_v26 = vunpack.i.l.bf16 %v12018_v37 }
 0x289   : > { %12032 = vst [vmem:[#allocation47_spill] sm:$0xff] %v9752_v34  ;;  %v9768_v44 = vsel %vm872_vm1, %v223_v39, %v12035_v24  ;;  %v9773_v57 = vsel %vm872_vm1, %v228_v58, %v12036_v33  ;;  %7341 = vrot.lane.b32.xlu1 %v7340_v9, %s7828_s27  ;;  %7336 = vrot.lane.b32.xlu0 %v7335_v59, %s7828_s27  ;;  %v12042_v6 = vunpack.i.h.bf16 %v12018_v37  ;;  %v7776_v32 = vld [vmem:[%s7889_s24 + $0xf0] sm:$0xff]  ;;  %v5862_v24 = vld [vmem:[%s7889_s24 + $0x183] sm:$0xff]  ;;  %v12045_v37 = vunpack.i.h.bf16 %v12021_v19  ;;  %v9856_v34 = vpop.f32.mrf.mxu1 }
 0x28a   : > { %12033 = vst [vmem:[#allocation82_spill] sm:$0xff] %v9755_v30  ;;  %v9784_v39 = vsel %vm872_vm1, %v229_v7, %v12038_v62  ;;  %v893_v58 = vsel %vm872_vm1, %v220_v16, %v12039_v28  ;;  %v894_v61 = vsel %vm872_vm1, %v221_v11, %v12040_v20  ;;  %v9799_v7 = vsel %vm872_vm1, %v226_v54, %v12041_v26  ;;  %v9814_v59 = vpop.permute.xlu2 %7181  ;;  %v5864_v11 = vld [vmem:[%s7889_s24 + $0x19b] sm:$0xff] }
 0x28b   : > { %v9804_v50 = vsel %vm872_vm1, %v227_v13, %v12042_v6  ;;  %v12043_v16 = vunpack.i.l.bf16 %v12021_v19  ;;  %5545 = vmatmul.msk.bf16.gmra.mxu1 %vm1855_vm5, %v1013_v35  ;;  %5724 = vmatmul.msk.bf16.gmra.mxu2 %vm1855_vm5, %v2952_v5  ;;  %12044 = vst [vmem:[#allocation27_spill] sm:$0xff] %v9814_v59  ;;  %v5861_v54 = vld [vmem:[%s7889_s24 + $0x17b] sm:$0xff]  ;;  %v926_v62 = vsel %vm905_vm2, %v893_v58, %v6298_v41  ;;  %v12046_v28 = vunpack.i.h.bf16 %v12022_v23  ;;  %v7778_v35 = vld [vmem:[%s7889_s24 + $0x128] sm:$0xff]  ;;  %v9833_v26 = vpop.permute.xlu1 %7131  ;;  %v9835_v6 = vpop.permute.xlu0 %7126 }
 0x28c   : > { %v7777_v33 = vld [vmem:[%s7889_s24 + $0xf8] sm:$0xff]  ;;  %v9831_v5 = vsel %vm872_vm1, %v7778_v35, %v6243_v8  ;;  %v7360_v58 = vpack.i.bf16 %v5866_v52, %v5865_v36  ;;  %v7350_v8 = vpack.i.bf16 %v5862_v24, %v5861_v54  ;;  %v6458_v48 = vunpack.i.l.bf16 %v12052_v60  ;;  %v5562_v36 = vld [vmem:[%s7889_s24 + $0xa0] sm:$0xff]  ;;  %v5563_v52 = vld [vmem:[%s7889_s24 + $0xa8] sm:$0xff]  ;;  %12054 = vst [vmem:[#allocation60_spill] sm:$0xff] %v9856_v34  ;;  %v9876_v29 = vpop.f32.mrf.mxu2 }
 0x28d   : > { %v9810_v9 = vsel %vm872_vm1, %v7776_v32, %v12043_v16  ;;  %v9823_v13 = vsel %vm872_vm1, %v7777_v33, %v12045_v37  ;;  %v927_v20 = vsel %vm905_vm2, %v894_v61, %v12046_v28  ;;  %12047 = vst [vmem:[#allocation32_spill] sm:$0xff] %v9831_v5  ;;  %v12048_v32 = vld [vmem:[#allocation23_spill] sm:$0xff]  ;;  %v12049_v33 = vld [vmem:[#allocation33_spill] sm:$0xff]  ;;  %v12050_v61 = vld [vmem:[#allocation34_spill] sm:$0xff]  ;;  %v7355_v28 = vpack.i.bf16 %v5864_v11, %v5863_v55 }
 0x28e   : > { %v6314_v19 = vunpack.i.h.bf16 %v12048_v32  ;;  %v6313_v16 = vunpack.i.l.bf16 %v12048_v32  ;;  %v6309_v41 = vunpack.i.h.bf16 %v12049_v33  ;;  %v6308_v23 = vunpack.i.l.bf16 %v12049_v33  ;;  %v12053_v11 = vld [vmem:[#allocation37_spill] sm:$0xff]  ;;  %12056 = vst [vmem:[#allocation4_spill] sm:$0xff] %v9876_v29 }
 0x28f   : > { %v6304_v37 = vunpack.i.h.bf16 %v12050_v61  ;;  %v6303_v35 = vunpack.i.l.bf16 %v12050_v61  ;;  %v6379_v32 = vunpack.i.h.bf16 %v12051_v31  ;;  %v6909_v33 = vunpack.i.h.bf16 %v9201_v51  ;;  %v9860_v31 = vld [vmem:[%s7889_s24 + $0xa4] sm:$0xff] }
 0x290   : > { %v6908_v55 = vunpack.i.l.bf16 %v9201_v51  ;;  %v6319_v54 = vunpack.i.h.bf16 %v12053_v11  ;;  %v6459_v24 = vunpack.i.h.bf16 %v12052_v60  ;;  %v6989_v61 = vunpack.i.h.bf16 %v9246_v0  ;;  %7361 = vrot.lane.b32.xlu2 %v7360_v58, %s7828_s27  ;;  %v9869_v0 = vld [vmem:[%s7889_s24 + $0xac] sm:$0xff] }
 0x291   : > { %v6318_v30 = vunpack.i.l.bf16 %v12053_v11  ;;  %v6384_v51 = vunpack.i.h.bf16 %v12055_v25  ;;  %v7068_v60 = vunpack.i.l.bf16 %v9558_v40  ;;  %7356 = vrot.lane.b32.xlu1 %v7355_v28, %s7828_s27  ;;  %7351 = vrot.lane.b32.xlu0 %v7350_v8, %s7828_s27  ;;  %v5869_v58 = vld [vmem:[%s7889_s24 + $0x8c] sm:$0xff]  ;;  %v6383_v34 = vunpack.i.l.bf16 %v12055_v25  ;;  %v5870_v40 = vld [vmem:[%s7889_s24 + $0x94] sm:$0xff] }
 0x292   : > { %v959_v5 = vsel %vm938_vm3, %v926_v62, %v6378_v43  ;;  %v2830_v11 = vsel %vm872_vm1, %v5563_v52, %v6829_v38  ;;  %v2829_v17 = vsel %vm872_vm1, %v5562_v36, %v6828_v22  ;;  %v9878_v59 = vpop.permute.xlu2 %7196  ;;  %v5868_v28 = vld [vmem:[%s7889_s24 + $0x84] sm:$0xff]  ;;  %v960_v8 = vsel %vm938_vm3, %v927_v20, %v6379_v32 }
 0x293   : > { %12057 = vst [vmem:[#allocation5_spill] sm:$0xff] %v9878_v59  ;;  %v992_v63 = vsel %vm971_vm4, %v959_v5, %v6458_v48  ;;  %v2861_v18 = vsel %vm905_vm2, %v2829_v17, %v6908_v55  ;;  %v2862_v25 = vsel %vm905_vm2, %v2830_v11, %v6909_v33  ;;  %v9887_v43 = vpop.permute.xlu1 %7146  ;;  %v9889_v38 = vpop.permute.xlu0 %7141  ;;  %v993_v22 = vsel %vm971_vm4, %v960_v8, %v6459_v24  ;;  %v9958_v11 = vld [vmem:[%s7889_s24 + $0xb4] sm:$0xff]  ;;  %v5747_v24 = vld [vmem:[%s7889_s24 + $0xc8] sm:$0xff] }
 0x294   : > { %v7375_v62 = vpack.i.bf16 %v9869_v0, %v9860_v31  ;;  %v2893_v36 = vsel %vm938_vm3, %v2861_v18, %v6988_v47  ;;  %v2894_v20 = vsel %vm938_vm3, %v2862_v25, %v6989_v61  ;;  %v7370_v48 = vpack.i.bf16 %v5870_v40, %v5869_v58  ;;  %v12062_v61 = vld [vmem:[#allocation53_spill] sm:$0xff] }
 0x295   : > { %v7365_v5 = vpack.i.bf16 %v5868_v28, %v5867_v3  ;;  %v2925_v17 = vsel %vm971_vm4, %v2893_v36, %v7068_v60  ;;  %v2926_v32 = vsel %vm971_vm4, %v2894_v20, %v7069_v27  ;;  %v9900_v52 = vsel %vm905_vm2, %v9799_v7, %v6313_v16  ;;  %v9955_v58 = vld [vmem:[%s7889_s24 + $0xd4] sm:$0xff]  ;;  %v9961_v40 = vld [vmem:[%s7889_s24 + $0xbc] sm:$0xff] }
 0x296   : > { %v9904_v33 = vsel %vm905_vm2, %v9804_v50, %v6314_v19  ;;  %v9908_v18 = vsel %vm905_vm2, %v9810_v9, %v6308_v23  ;;  %v9912_v3 = vsel %vm905_vm2, %v9823_v13, %v6309_v41  ;;  %v928_v27 = vsel %vm905_vm2, %v9458_v21, %v6303_v35  ;;  %v5741_v9 = vld [vmem:[%s7889_s24 + $0x88] sm:$0xff]  ;;  %v5742_v19 = vld [vmem:[%s7889_s24 + $0x90] sm:$0xff]  ;;  %v9932_v41 = vld [vmem:[%s7889_s24 + $0xdc] sm:$0xff]  ;;  %12064 = vst [vmem:[#allocation46_spill] sm:$0xff] %v9955_v58 }
 0x297   : > { %v929_v55 = vsel %vm905_vm2, %v9768_v44, %v6304_v37  ;;  %v9920_v7 = vsel %vm905_vm2, %v9773_v57, %v6318_v30  ;;  %v9924_v50 = vsel %vm905_vm2, %v9784_v39, %v6319_v54  ;;  %v7134_v13 = vunpack.i.h.bf16 %v9833_v26  ;;  %12058 = vst [vmem:[#allocation8_spill] sm:$0xff] %v9932_v41  ;;  %v12059_v30 = vld [vmem:[#allocation38_spill] sm:$0xff]  ;;  %v12061_v35 = vld [vmem:[#allocation51_spill] sm:$0xff] }
 0x298   : > { %v7133_v16 = vunpack.i.l.bf16 %v9833_v26  ;;  %7376 = vrot.lane.b32.xlu2 %v7375_v62, %s7829_s28  ;;  %v1014_v21 = vpack.c.bf16 %v993_v22, %v992_v63  ;;  %v2953_v44 = vpack.c.bf16 %v2926_v32, %v2925_v17  ;;  %v961_v39 = vsel %vm938_vm3, %v928_v27, %v6383_v34  ;;  %v9941_v26 = vld [vmem:[%s7889_s24 + $0xe4] sm:$0xff]  ;;  %v9944_v63 = vld [vmem:[%s7889_s24 + $0xcc] sm:$0xff]  ;;  %v9950_v34 = vpop.f32.mrf.mxu1 }
 0x299   : > { %v962_v37 = vsel %vm938_vm3, %v929_v55, %v6384_v51  ;;  %7371 = vrot.lane.b32.xlu1 %v7370_v48, %s7829_s28  ;;  %7366 = vrot.lane.b32.xlu0 %v7365_v5, %s7829_s28  ;;  %12060 = vst [vmem:[#allocation12_spill] sm:$0xff] %v9941_v26  ;;  %v6464_v47 = vunpack.i.h.bf16 %v12062_v61  ;;  %v6463_v60 = vunpack.i.l.bf16 %v12062_v61  ;;  %v6834_v28 = vunpack.i.h.bf16 %v9015_v1  ;;  %v9970_v48 = vpop.f32.mrf.mxu2  ;;  %v5564_v27 = vld [vmem:[%s7889_s24 + $0xb0] sm:$0xff] }
 0x29a   : > { %12063 = vst [vmem:[#allocation17_spill] sm:$0xff] %v9950_v34  ;;  %v7212_v51 = vpop.permute.xlu2 %7211  ;;  %v6833_v8 = vunpack.i.l.bf16 %v9015_v1  ;;  %v6913_v20 = vunpack.i.l.bf16 %v9092_v53  ;;  %v3828_v5 = vsel %vm872_vm1, %v5742_v19, %v7134_v13  ;;  %v3827_v17 = vsel %vm872_vm1, %v5741_v9, %v7133_v16  ;;  %v12068_v13 = vld [vmem:[#allocation52_spill] sm:$0xff] }
 0x29b   : > { %5546 = vmatmul.msk.bf16.gmra.mxu1 %vm1855_vm5, %v1014_v21  ;;  %5725 = vmatmul.msk.bf16.gmra.mxu2 %vm1855_vm5, %v2953_v44  ;;  %v7214_v25 = vunpack.i.h.bf16 %v7212_v51  ;;  %v7213_v22 = vunpack.i.l.bf16 %v7212_v51  ;;  %v9965_v62 = vpop.permute.xlu1 %7161  ;;  %v9967_v36 = vpop.permute.xlu0 %7156  ;;  %12065 = vst [vmem:[#allocation59_spill] sm:$0xff] %v9970_v48  ;;  %v7390_v32 = vpack.i.bf16 %v9941_v26, %v9932_v41  ;;  %v7385_v21 = vpack.i.bf16 %v9955_v58, %v9944_v63  ;;  %v5565_v44 = vld [vmem:[%s7889_s24 + $0xb8] sm:$0xff] }
 0x29c   : > { %v7380_v19 = vpack.i.bf16 %v9961_v40, %v9958_v11  ;;  %v6393_v16 = vunpack.i.l.bf16 %v12068_v13  ;;  %v6914_v61 = vunpack.i.h.bf16 %v9092_v53  ;;  %v6993_v51 = vunpack.i.l.bf16 %v9370_v12  ;;  %v5748_v53 = vld [vmem:[%s7889_s24 + $0xd0] sm:$0xff] }
 0x29d   : > { %v9978_v1 = vsel %vm905_vm2, %v3827_v17, %v7213_v22  ;;  %v9981_v55 = vsel %vm905_vm2, %v3828_v5, %v7214_v25  ;;  %v9993_v22 = vsel %vm971_vm4, %v961_v39, %v6463_v60  ;;  %v9996_v25 = vsel %vm971_vm4, %v962_v37, %v6464_v47  ;;  %v12069_v37 = vld [vmem:[#allocation56_spill] sm:$0xff]  ;;  %v12070_v60 = vld [vmem:[#allocation63_spill] sm:$0xff] }
 0x29e   : > { %12066 = vst [vmem:[#allocation16_spill] sm:$0xff] %v9978_v1  ;;  %v6994_v5 = vunpack.i.h.bf16 %v9370_v12  ;;  %v7073_v17 = vunpack.i.l.bf16 %v9556_v2  ;;  %v2831_v9 = vsel %vm872_vm1, %v5564_v27, %v6833_v8  ;;  %v7074_v54 = vunpack.i.h.bf16 %v9556_v2  ;;  %v10008_v12 = vld [vmem:[%s7889_s24 + $0x11c] sm:$0xff]  ;;  %v10017_v27 = vld [vmem:[%s7889_s24 + $0x124] sm:$0xff] }
 0x29f   : > { %12067 = vst [vmem:[#allocation15_spill] sm:$0xff] %v9981_v55  ;;  %v7149_v57 = vunpack.i.h.bf16 %v9887_v43  ;;  %v7148_v39 = vunpack.i.l.bf16 %v9887_v43  ;;  %v6478_v47 = vunpack.i.l.bf16 %v12069_v37  ;;  %v6473_v23 = vunpack.i.l.bf16 %v12070_v60  ;;  %v10020_v43 = vld [vmem:[%s7889_s24 + $0x104] sm:$0xff]  ;;  %v10026_v55 = vld [vmem:[%s7889_s24 + $0x10c] sm:$0xff] }
 0x2a0   : > { %7391 = vrot.lane.b32.xlu2 %v7390_v32, %s7829_s28  ;;  %v2832_v8 = vsel %vm872_vm1, %v5565_v44, %v6834_v28  ;;  %v2863_v2 = vsel %vm905_vm2, %v2831_v9, %v6913_v20  ;;  %v12071_v32 = vld [vmem:[#allocation64_spill] sm:$0xff]  ;;  %v10032_v20 = vld [vmem:[%s7889_s24 + $0xfc] sm:$0xff]  ;;  %v7405_v58 = vpack.i.bf16 %v10017_v27, %v10008_v12 }
 0x2a1   : > { %7386 = vrot.lane.b32.xlu1 %v7385_v21, %s7829_s28  ;;  %7381 = vrot.lane.b32.xlu0 %v7380_v19, %s7829_s28  ;;  %v6469_v48 = vunpack.i.h.bf16 %v12071_v32  ;;  %v6468_v29 = vunpack.i.l.bf16 %v12071_v32  ;;  %v2864_v34 = vsel %vm905_vm2, %v2832_v8, %v6914_v61  ;;  %v10029_v28 = vld [vmem:[%s7889_s24 + $0xf4] sm:$0xff]  ;;  %v2895_v21 = vsel %vm938_vm3, %v2863_v2, %v6993_v51  ;;  %v10041_v61 = vpop.f32.mrf.mxu1 }
 0x2a2   : > { %v7227_v1 = vpop.permute.xlu2 %7226  ;;  %v2896_v59 = vsel %vm938_vm3, %v2864_v34, %v6994_v5  ;;  %v2927_v32 = vsel %vm971_vm4, %v2895_v21, %v7073_v17  ;;  %v3834_v8 = vsel %vm872_vm1, %v5748_v53, %v7149_v57  ;;  %v3833_v41 = vsel %vm872_vm1, %v5747_v24, %v7148_v39  ;;  %v10071_v39 = vpop.f32.mrf.mxu2 }
 0x2a3   : > { %v7229_v19 = vunpack.i.h.bf16 %v7227_v1  ;;  %v7228_v9 = vunpack.i.l.bf16 %v7227_v1  ;;  %v10035_v44 = vpop.permute.xlu1 %7176  ;;  %v10037_v26 = vpop.permute.xlu0 %7171  ;;  %v2928_v51 = vsel %vm971_vm4, %v2896_v59, %v7074_v54  ;;  %v7400_v34 = vpack.i.bf16 %v10026_v55, %v10020_v43  ;;  %12075 = vst [vmem:[#allocation30_spill] sm:$0xff] %v10071_v39 }
 0x2a4   : > { %v7395_v5 = vpack.i.bf16 %v10032_v20, %v10029_v28  ;;  %v12072_v57 = vunpack.i.l.bf16 %v12059_v30  ;;  %v12073_v17 = vunpack.i.h.bf16 %v12059_v30  ;;  %v6474_v53 = vunpack.i.h.bf16 %v12070_v60 }
 0x2a5   : > { %v10049_v1 = vsel %vm905_vm2, %v3833_v41, %v7228_v9  ;;  %v10052_v2 = vsel %vm905_vm2, %v3834_v8, %v7229_v19  ;;  %v12074_v41 = vunpack.i.l.bf16 %v12061_v35  ;;  %v12076_v21 = vunpack.i.h.bf16 %v12061_v35 }
 0x2a6   : > { %v963_v24 = vsel %vm938_vm3, %v9908_v18, %v12072_v57  ;;  %v964_v59 = vsel %vm938_vm3, %v9912_v3, %v12073_v17  ;;  %v965_v3 = vsel %vm938_vm3, %v9900_v52, %v6393_v16  ;;  %v7164_v60 = vunpack.i.h.bf16 %v9965_v62  ;;  %v5754_v16 = vld [vmem:[%s7889_s24 + $0x108] sm:$0xff] }
 0x2a7   : > { %v967_v54 = vsel %vm938_vm3, %v9920_v7, %v12074_v41  ;;  %v10077_v18 = vsel %vm938_vm3, %v9924_v50, %v12076_v21  ;;  %v10082_v30 = vsel %vm971_vm4, %v963_v24, %v6468_v29  ;;  %v10085_v7 = vsel %vm971_vm4, %v964_v59, %v6469_v48 }
 0x2a8   : > { %v7163_v19 = vunpack.i.l.bf16 %v9965_v62  ;;  %7406 = vrot.lane.b32.xlu2 %v7405_v58, %s7829_s28  ;;  %v1015_v35 = vpack.c.bf16 %v9996_v25, %v9993_v22  ;;  %v2954_v50 = vpack.c.bf16 %v2928_v51, %v2927_v32  ;;  %v12077_v9 = vunpack.i.h.bf16 %v12068_v13  ;;  %v5753_v58 = vld [vmem:[%s7889_s24 + $0x100] sm:$0xff]  ;;  %v10117_v32 = vld [vmem:[%s7889_s24 + $0x12c] sm:$0xff] }
 0x2a9   : > { %v10098_v48 = vsel %vm971_vm4, %v967_v54, %v6478_v47  ;;  %v10101_v62 = vsel %vm971_vm4, %v965_v3, %v6473_v23  ;;  %7401 = vrot.lane.b32.xlu1 %v7400_v34, %s7829_s28  ;;  %7396 = vrot.lane.b32.xlu0 %v7395_v5, %s7829_s28  ;;  %v6838_v22 = vunpack.i.l.bf16 %v8863_v4  ;;  %v5956_v23 = vld [vmem:[%s7889_s24 + $0xa1] sm:$0xff]  ;;  %v5957_v47 = vld [vmem:[%s7889_s24 + $0xa9] sm:$0xff]  ;;  %v6919_v51 = vunpack.i.h.bf16 %v9223_v49 }
 0x2aa   : > { %v966_v29 = vsel %vm938_vm3, %v9904_v33, %v12077_v9  ;;  %v6839_v33 = vunpack.i.h.bf16 %v8863_v4  ;;  %v7242_v25 = vpop.permute.xlu2 %7241  ;;  %v6918_v34 = vunpack.i.l.bf16 %v9223_v49  ;;  %v6999_v17 = vunpack.i.h.bf16 %v9368_v15  ;;  %v5739_v9 = vld [vmem:[%s7889_s24 + $0x78] sm:$0xff] }
 0x2ab   : > { %v10108_v13 = vsel %vm971_vm4, %v966_v29, %v6474_v53  ;;  %5547 = vmatmul.msk.bf16.gmra.mxu1 %vm1855_vm5, %v1015_v35  ;;  %5726 = vmatmul.msk.bf16.gmra.mxu2 %vm1855_vm5, %v2954_v50  ;;  %v7244_v5 = vunpack.i.h.bf16 %v7242_v25  ;;  %v7243_v57 = vunpack.i.l.bf16 %v7242_v25  ;;  %v10123_v4 = vpop.permute.xlu1 %7191  ;;  %v10125_v24 = vpop.permute.xlu0 %7186  ;;  %v6998_v59 = vunpack.i.l.bf16 %v9368_v15  ;;  %v7779_v35 = vld [vmem:[%s7889_s24 + $0xd0] sm:$0xff]  ;;  %v7780_v29 = vld [vmem:[%s7889_s24 + $0xc8] sm:$0xff] }
 0x2ac   : > { %v3840_v41 = vsel %vm872_vm1, %v5754_v16, %v7164_v60  ;;  %v3839_v54 = vsel %vm872_vm1, %v5753_v58, %v7163_v19  ;;  %v7415_v21 = vpack.i.bf16 %v5957_v47, %v5956_v23  ;;  %v7410_v3 = vpack.i.bf16 %v9860_v31, %v10117_v32  ;;  %v10143_v19 = vpop.f32.mrf.mxu1  ;;  %v10154_v23 = vpop.f32.mrf.mxu2  ;;  %v5740_v47 = vld [vmem:[%s7889_s24 + $0x80] sm:$0xff] }
 0x2ad   : > { %v10132_v53 = vsel %vm905_vm2, %v3839_v54, %v7243_v57  ;;  %v10135_v49 = vsel %vm905_vm2, %v3840_v41, %v7244_v5  ;;  %v2834_v50 = vsel %vm872_vm1, %v7779_v35, %v6839_v33  ;;  %v7079_v15 = vunpack.i.h.bf16 %v9415_v56  ;;  %12078 = vst [vmem:[#allocation31_spill] sm:$0xff] %v10143_v19  ;;  %v5958_v41 = vld [vmem:[%s7889_s24 + $0xb1] sm:$0xff]  ;;  %v5959_v54 = vld [vmem:[%s7889_s24 + $0xb9] sm:$0xff] }
 0x2ae   : > { %v7078_v60 = vunpack.i.l.bf16 %v9415_v56  ;;  %v2833_v58 = vsel %vm872_vm1, %v7780_v29, %v6838_v22  ;;  %v7129_v33 = vunpack.i.h.bf16 %v9835_v6  ;;  %v2866_v25 = vsel %vm905_vm2, %v2834_v50, %v6919_v51  ;;  %12079 = vst [vmem:[#allocation45_spill] sm:$0xff] %v10154_v23  ;;  %v12080_v22 = vld [vmem:[#allocation73_spill] sm:$0xff]  ;;  %v12081_v35 = vld [vmem:[#allocation80_spill] sm:$0xff]  ;;  %v5759_v51 = vld [vmem:[%s7889_s24 + $0x140] sm:$0xff] }
 0x2af   : > { %v2865_v56 = vsel %vm905_vm2, %v2833_v58, %v6918_v34  ;;  %v7179_v5 = vunpack.i.h.bf16 %v10035_v44  ;;  %v7178_v57 = vunpack.i.l.bf16 %v10035_v44  ;;  %v7128_v52 = vunpack.i.l.bf16 %v9835_v6  ;;  %v5760_v50 = vld [vmem:[%s7889_s24 + $0x148] sm:$0xff]  ;;  %v5756_v19 = vld [vmem:[%s7889_s24 + $0x120] sm:$0xff] }
 0x2b0   : > { %7421 = vrot.lane.b32.xlu2 %v12080_v22, %s7827_s26  ;;  %v2897_v34 = vsel %vm938_vm3, %v2865_v56, %v6998_v59  ;;  %v2898_v58 = vsel %vm938_vm3, %v2866_v25, %v6999_v17  ;;  %v7139_v44 = vunpack.i.h.bf16 %v9608_v10  ;;  %v7138_v22 = vunpack.i.l.bf16 %v9608_v10 }
 0x2b1   : > { %7416 = vrot.lane.b32.xlu1 %v7415_v21, %s7826_s25  ;;  %7411 = vrot.lane.b32.xlu0 %v7410_v3, %s7829_s28  ;;  %v2929_v31 = vsel %vm971_vm4, %v2897_v34, %v7078_v60  ;;  %v2930_v6 = vsel %vm971_vm4, %v2898_v58, %v7079_v15  ;;  %v3826_v29 = vsel %vm872_vm1, %v5740_v47, %v7129_v33  ;;  %v6843_v47 = vunpack.i.l.bf16 %v12081_v35  ;;  %v12085_v34 = vld [vmem:[#allocation26_spill] sm:$0xff] }
 0x2b2   : > { %v7257_v16 = vpop.permute.xlu2 %7256  ;;  %v7435_v17 = vpack.i.bf16 %v5959_v54, %v5958_v41  ;;  %v3846_v25 = vsel %vm872_vm1, %v5760_v50, %v7179_v5  ;;  %v3845_v10 = vsel %vm872_vm1, %v5759_v51, %v7178_v57  ;;  %v3825_v60 = vsel %vm872_vm1, %v5739_v9, %v7128_v52  ;;  %v5743_v5 = vld [vmem:[%s7889_s24 + $0xa0] sm:$0xff]  ;;  %v5744_v41 = vld [vmem:[%s7889_s24 + $0xa8] sm:$0xff]  ;;  %v12084_v9 = vld [vmem:[#allocation77_spill] sm:$0xff] }
 0x2b3   : > { %v7259_v21 = vunpack.i.h.bf16 %v7257_v16  ;;  %v7258_v3 = vunpack.i.l.bf16 %v7257_v16  ;;  %v7207_v8 = vpop.permute.xlu1 %7206  ;;  %v10177_v59 = vpop.permute.xlu0 %7201  ;;  %v7430_v16 = vpack.i.bf16 %v9958_v11, %v9869_v0  ;;  %v7144_v57 = vunpack.i.h.bf16 %v9889_v38  ;;  %v5746_v50 = vld [vmem:[%s7889_s24 + $0xb8] sm:$0xff] }
 0x2b4   : > { %v7209_v56 = vunpack.i.h.bf16 %v7207_v8  ;;  %v7208_v23 = vunpack.i.l.bf16 %v7207_v8  ;;  %v6924_v54 = vunpack.i.h.bf16 %v12084_v9  ;;  %v6923_v51 = vunpack.i.l.bf16 %v12084_v9 }
 0x2b5   : > { %v10183_v15 = vsel %vm905_vm2, %v3845_v10, %v7258_v3  ;;  %v10186_v33 = vsel %vm905_vm2, %v3846_v25, %v7259_v21  ;;  %v7194_v0 = vunpack.i.h.bf16 %v10123_v4  ;;  %v7193_v11 = vunpack.i.l.bf16 %v10123_v4  ;;  %v10208_v3 = vpop.f32.mrf.mxu1  ;;  %v5766_v25 = vld [vmem:[%s7889_s24 + $0x180] sm:$0xff] }
 0x2b6   : > { %v10195_v8 = vsel %vm905_vm2, %v3825_v60, %v7208_v23  ;;  %v10198_v52 = vsel %vm905_vm2, %v3826_v29, %v7209_v56  ;;  %v5765_v29 = vld [vmem:[%s7889_s24 + $0x178] sm:$0xff]  ;;  %v2955_v10 = vpack.c.bf16 %v2930_v6, %v2929_v31  ;;  %v3830_v56 = vsel %vm872_vm1, %v5744_v41, %v7139_v44  ;;  %v10222_v31 = vpop.f32.mrf.mxu2  ;;  %v5745_v44 = vld [vmem:[%s7889_s24 + $0xb0] sm:$0xff] }
 0x2b7   : > { %12082 = vst [vmem:[#allocation50_spill] sm:$0xff] %v10195_v8  ;;  %v3829_v4 = vsel %vm872_vm1, %v5743_v5, %v7138_v22  ;;  %v7143_v9 = vunpack.i.l.bf16 %v9889_v38  ;;  %v7154_v23 = vunpack.i.h.bf16 %v9675_v42  ;;  %v3832_v22 = vsel %vm872_vm1, %v5746_v50, %v7144_v57 }
 0x2b8   : > { %12083 = vst [vmem:[#allocation35_spill] sm:$0xff] %v10198_v52  ;;  %7436 = vrot.lane.b32.xlu2 %v7435_v17, %s7826_s25  ;;  %v7153_v17 = vunpack.i.l.bf16 %v9675_v42  ;;  %v12087_v6 = vpack.c.bf16 %v10085_v7, %v10082_v30  ;;  %v5990_v42 = vld [vmem:[%s7889_s24 + $0xb2] sm:$0xff]  ;;  %v3852_v5 = vsel %vm872_vm1, %v5766_v25, %v7194_v0  ;;  %v3851_v41 = vsel %vm872_vm1, %v5765_v29, %v7193_v11  ;;  %v5757_v52 = vld [vmem:[%s7889_s24 + $0x128] sm:$0xff] }
 0x2b9   : > { %7431 = vrot.lane.b32.xlu1 %v7430_v16, %s7829_s28  ;;  %7426 = vrot.lane.b32.xlu0 %v9571_v45, %s7828_s27  ;;  %12086 = vst [vmem:[#allocation62_spill] sm:$0xff] %v10222_v31  ;;  %v7450_v45 = vpack.i.bf16 %v9944_v63, %v9961_v40  ;;  %v5991_v16 = vld [vmem:[%s7889_s24 + $0xba] sm:$0xff]  ;;  %v5570_v63 = vld [vmem:[%s7889_s24 + $0xf0] sm:$0xff]  ;;  %v3831_v39 = vsel %vm872_vm1, %v5745_v44, %v7143_v9  ;;  %v12090_v44 = vunpack.i.h.bf16 %v12081_v35 }
 0x2ba   : > { %v7272_v38 = vpop.permute.xlu2 %7271  ;;  %v5568_v7 = vld [vmem:[%s7889_s24 + $0xd8] sm:$0xff]  ;;  %v7440_v29 = vpack.i.bf16 %v5991_v16, %v5990_v42  ;;  %v5750_v16 = vld [vmem:[%s7889_s24 + $0xe0] sm:$0xff] }
 0x2bb   : > { %5548 = vmatmul.msk.bf16.gmra.mxu1 %vm1855_vm5, %v12087_v6  ;;  %5727 = vmatmul.msk.bf16.gmra.mxu2 %vm1855_vm5, %v2955_v10  ;;  %v7274_v57 = vunpack.i.h.bf16 %v7272_v38  ;;  %v7273_v50 = vunpack.i.l.bf16 %v7272_v38  ;;  %v7222_v60 = vpop.permute.xlu1 %7221  ;;  %v7217_v30 = vpop.permute.xlu0 %7216  ;;  %v5569_v6 = vld [vmem:[%s7889_s24 + $0xe0] sm:$0xff]  ;;  %v5571_v40 = vld [vmem:[%s7889_s24 + $0xf8] sm:$0xff] }
 0x2bc   : > { %v7224_v58 = vunpack.i.h.bf16 %v7222_v60  ;;  %v7223_v10 = vunpack.i.l.bf16 %v7222_v60  ;;  %v7219_v21 = vunpack.i.h.bf16 %v7217_v30  ;;  %v7218_v31 = vunpack.i.l.bf16 %v7217_v30  ;;  %v5749_v42 = vld [vmem:[%s7889_s24 + $0xd8] sm:$0xff] }
 0x2bd   : > { %v10243_v0 = vsel %vm905_vm2, %v3851_v41, %v7273_v50  ;;  %v10246_v11 = vsel %vm905_vm2, %v3852_v5, %v7274_v57  ;;  %v2836_v5 = vsel %vm872_vm1, %v5569_v6, %v12090_v44  ;;  %v2835_v41 = vsel %vm872_vm1, %v5568_v7, %v6843_v47  ;;  %v5752_v57 = vld [vmem:[%s7889_s24 + $0xf8] sm:$0xff]  ;;  %v12094_v7 = vld [vmem:[#allocation70_spill] sm:$0xff] }
 0x2be   : > { %12088 = vst [vmem:[#allocation18_spill] sm:$0xff] %v10243_v0  ;;  %v10249_v25 = vsel %vm905_vm2, %v3831_v39, %v7223_v10  ;;  %v10252_v60 = vsel %vm905_vm2, %v3832_v22, %v7224_v58  ;;  %v10255_v38 = vsel %vm905_vm2, %v3830_v56, %v7219_v21  ;;  %v10258_v9 = vsel %vm905_vm2, %v3829_v4, %v7218_v31  ;;  %v5751_v31 = vld [vmem:[%s7889_s24 + $0xf0] sm:$0xff] }
 0x2bf   : > { %12089 = vst [vmem:[#allocation19_spill] sm:$0xff] %v10246_v11  ;;  %v7159_v39 = vunpack.i.h.bf16 %v9967_v36  ;;  %v7158_v58 = vunpack.i.l.bf16 %v9967_v36  ;;  %v12091_v22 = vunpack.i.h.bf16 %v9061_v14  ;;  %v12092_v56 = vunpack.i.l.bf16 %v9061_v14  ;;  %v12093_v36 = vld [vmem:[#allocation72_spill] sm:$0xff] }
 0x2c0   : > { %v2867_v4 = vsel %vm905_vm2, %v2835_v41, %v6923_v51  ;;  %v2868_v47 = vsel %vm905_vm2, %v2836_v5, %v6924_v54  ;;  %7451 = vrot.lane.b32.xlu2 %v7450_v45, %s7829_s28  ;;  %v6928_v30 = vunpack.i.l.bf16 %v12093_v36  ;;  %v5992_v14 = vld [vmem:[%s7889_s24 + $0xca] sm:$0xff]  ;;  %v12095_v51 = vunpack.i.l.bf16 %v12085_v34  ;;  %v5993_v5 = vld [vmem:[%s7889_s24 + $0xd2] sm:$0xff] }
 0x2c1   : > { %v10271_v21 = vsel %vm872_vm1, %v5571_v40, %v12091_v22  ;;  %v2837_v35 = vsel %vm872_vm1, %v5570_v63, %v12092_v56  ;;  %7446 = vrot.lane.b32.xlu1 %v12094_v7, %s7828_s27  ;;  %7441 = vrot.lane.b32.xlu0 %v7440_v29, %s7827_s26  ;;  %v12096_v6 = vunpack.i.h.bf16 %v12085_v34  ;;  %v3836_v45 = vsel %vm872_vm1, %v5750_v16, %v7154_v23  ;;  %v10295_v40 = vpop.f32.mrf.mxu1  ;;  %v5960_v29 = vld [vmem:[%s7889_s24 + $0xc9] sm:$0xff]  ;;  %v5961_v41 = vld [vmem:[%s7889_s24 + $0xd1] sm:$0xff] }
 0x2c2   : > { %v2899_v54 = vsel %vm938_vm3, %v2867_v4, %v12095_v51  ;;  %v3835_v63 = vsel %vm872_vm1, %v5749_v42, %v7153_v17  ;;  %v10297_v44 = vpop.permute.xlu2 %7286  ;;  %v12098_v22 = vunpack.i.l.bf16 %v9619_v46  ;;  %v12099_v34 = vunpack.i.h.bf16 %v9619_v46 }
 0x2c3   : > { %v2900_v10 = vsel %vm938_vm3, %v2868_v47, %v12096_v6  ;;  %12097 = vst [vmem:[#allocation20_spill] sm:$0xff] %v10297_v44  ;;  %v12100_v47 = vld [vmem:[#allocation57_spill] sm:$0xff]  ;;  %v3838_v42 = vsel %vm872_vm1, %v5752_v57, %v7159_v39  ;;  %v3837_v16 = vsel %vm872_vm1, %v5751_v31, %v7158_v58  ;;  %v7237_v7 = vpop.permute.xlu1 %7236  ;;  %v7232_v51 = vpop.permute.xlu0 %7231  ;;  %v7455_v39 = vpack.i.bf16 %v5961_v41, %v5960_v29  ;;  %v5758_v58 = vld [vmem:[%s7889_s24 + $0x130] sm:$0xff] }
 0x2c4   : > { %v2931_v56 = vsel %vm971_vm4, %v2899_v54, %v12098_v22  ;;  %v2932_v4 = vsel %vm971_vm4, %v2900_v10, %v12099_v34  ;;  %v7169_v23 = vunpack.i.h.bf16 %v12100_v47  ;;  %v7168_v17 = vunpack.i.l.bf16 %v12100_v47  ;;  %v10312_v6 = vpop.f32.mrf.mxu2  ;;  %v5755_v57 = vld [vmem:[%s7889_s24 + $0x118] sm:$0xff] }
 0x2c5   : > { %12101 = vst [vmem:[#allocation23_spill] sm:$0xff] %v10312_v6  ;;  %v7239_v50 = vunpack.i.h.bf16 %v7237_v7  ;;  %v7238_v54 = vunpack.i.l.bf16 %v7237_v7  ;;  %v7234_v22 = vunpack.i.h.bf16 %v7232_v51  ;;  %v7233_v46 = vunpack.i.l.bf16 %v7232_v51 }
 0x2c6   : > { %v7174_v10 = vunpack.i.h.bf16 %v10037_v26  ;;  %v7173_v34 = vunpack.i.l.bf16 %v10037_v26  ;;  %v7460_v47 = vpack.i.bf16 %v5993_v5, %v5992_v14  ;;  %v2869_v26 = vsel %vm905_vm2, %v2837_v35, %v6928_v30  ;;  %v1917_v14 = vpop.f32.mrf.mxu0  ;;  %v12102_v5 = vld [vmem:[#allocation67_spill] sm:$0xff]  ;;  %v5962_v30 = vld [vmem:[%s7889_s24 + $0xd9] sm:$0xff] }
 0x2c7   : > { %v10320_v31 = vsel %vm905_vm2, %v3837_v16, %v7238_v54  ;;  %v10323_v6 = vsel %vm905_vm2, %v3838_v42, %v7239_v50  ;;  %v10326_v7 = vsel %vm905_vm2, %v3836_v45, %v7234_v22  ;;  %v10329_v51 = vsel %vm905_vm2, %v3835_v63, %v7233_v46  ;;  %v12103_v16 = vld [vmem:[#allocation39_spill] sm:$0xff]  ;;  %v5994_v50 = vld [vmem:[%s7889_s24 + $0xda] sm:$0xff]  ;;  %v12104_v63 = vld [vmem:[#allocation24_spill] sm:$0xff] }
 0x2c8   : > { %v7009_v29 = vunpack.i.h.bf16 %v12102_v5  ;;  %v7008_v41 = vunpack.i.l.bf16 %v12102_v5  ;;  %v5995_v42 = vld [vmem:[%s7889_s24 + $0xe2] sm:$0xff]  ;;  %v7088_v8 = vunpack.i.l.bf16 %v12103_v16  ;;  %v2067_v45 = vadd.f32 %v10041_v61, %v1917_v14  ;;  %7466 = vrot.lane.b32.xlu2 %v12104_v63, %s7828_s27 }
 0x2c9   : > { %v3842_v22 = vsel %vm872_vm1, %v5756_v19, %v7169_v23  ;;  %v2956_v35 = vpack.c.bf16 %v2932_v4, %v2931_v56  ;;  %v5963_v46 = vld [vmem:[%s7889_s24 + $0xe1] sm:$0xff]  ;;  %v3841_v0 = vsel %vm872_vm1, %v5755_v57, %v7168_v17  ;;  %v3844_v11 = vsel %vm872_vm1, %v5758_v58, %v7174_v10  ;;  %7461 = vrot.lane.b32.xlu1 %v7460_v47, %s7827_s26  ;;  %v12108_v57 = vld [vmem:[#allocation8_spill] sm:$0xff]  ;;  %v5901_v47 = vld [vmem:[%s11720_s1 + $0x2c] sm:$0x3]  ;;  %v10363_v14 = vpop.f32.mrf.mxu1 }
 0x2ca   : > { %v12105_v5 = vld [vmem:[#allocation27_spill] sm:$0xff]  ;;  %7456 = vrot.lane.b32.xlu0 %v7455_v39, %s7826_s25  ;;  %v3843_v61 = vsel %vm872_vm1, %v5757_v52, %v7173_v34  ;;  %v7189_v19 = vunpack.i.h.bf16 %v10125_v24  ;;  %v12106_v56 = vpack.c.bf16 %v10108_v13, %v10101_v62  ;;  %v7302_v4 = vpop.permute.xlu2 %7301  ;;  %v7480_v23 = vpack.i.bf16 %v5995_v42, %v5994_v50  ;;  %v12107_v17 = vld [vmem:[#allocation46_spill] sm:$0xff] }
 0x2cb   : > { %v7184_v44 = vunpack.i.h.bf16 %v12105_v5  ;;  %v7183_v54 = vunpack.i.l.bf16 %v12105_v5  ;;  %5728 = vmatmul.msk.bf16.gmra.mxu2 %vm1855_vm5, %v2956_v35  ;;  %v7470_v10 = vpack.i.bf16 %v12108_v57, %v12107_v17  ;;  %v7304_v39 = vunpack.i.h.bf16 %v7302_v4  ;;  %v7252_v34 = vpop.permute.xlu1 %7251  ;;  %v7247_v58 = vpop.permute.xlu0 %7246  ;;  %v5762_v57 = vld [vmem:[%s7889_s24 + $0x158] sm:$0xff] }
 0x2cc   : > { %5549 = vmatmul.msk.bf16.gmra.mxu1 %vm1855_vm5, %v12106_v56  ;;  %v7303_v52 = vunpack.i.l.bf16 %v7302_v4  ;;  %v7475_v62 = vpack.i.bf16 %v5963_v46, %v5962_v30  ;;  %v3978_v13 = vunpack.c.l.b16 %v5901_v47  ;;  %v7254_v63 = vunpack.i.h.bf16 %v7252_v34  ;;  %v3038_v5 = vpop.f32.mrf.mxu2  ;;  %v5761_v46 = vld [vmem:[%s7889_s24 + $0x150] sm:$0xff] }
 0x2cd   : > { %v7253_v35 = vunpack.i.l.bf16 %v7252_v34  ;;  %v7249_v50 = vunpack.i.h.bf16 %v7247_v58  ;;  %v7248_v42 = vunpack.i.l.bf16 %v7247_v58  ;;  %v10371_v4 = vsel %vm938_vm3, %v10252_v60, %v7304_v39  ;;  %v5764_v58 = vld [vmem:[%s7889_s24 + $0x170] sm:$0xff] }
 0x2ce   : > { %v10367_v56 = vsel %vm938_vm3, %v10249_v25, %v7303_v52  ;;  %v10373_v17 = vadd.f32 %v3038_v5, %v2067_v45  ;;  %v3980_v30 = vpack.c.b16 %v3978_v13, %v3978_v13  ;;  %v10381_v34 = vsel %vm905_vm2, %v3844_v11, %v7254_v63  ;;  %v12111_v11 = vld [vmem:[#allocation22_spill] sm:$0xff] }
 0x2cf   : > { %v10378_v47 = vsel %vm905_vm2, %v3843_v61, %v7253_v35  ;;  %v10384_v25 = vsel %vm905_vm2, %v3842_v22, %v7249_v50  ;;  %v10387_v60 = vsel %vm905_vm2, %v3841_v0, %v7248_v42  ;;  %v12110_v45 = vunpack.i.h.bf16 %v12093_v36  ;;  %v5997_v50 = vld [vmem:[%s7889_s24 + $0xfa] sm:$0xff] }
 0x2d0   : > { %12109 = vst [vmem:[#allocation33_spill] sm:$0xff] %v10373_v17  ;;  %v2901_v52 = vsel %vm938_vm3, %v2869_v26, %v7008_v41  ;;  %v7188_v61 = vunpack.i.l.bf16 %v10125_v24  ;;  %v4031_v13 = vsel %vm1904_vm0, %v3980_v30, 0  ;;  %v12112_v22 = vunpack.i.h.bf16 %v12069_v37  ;;  %7481 = vrot.lane.b32.xlu2 %v7480_v23, %s7827_s26  ;;  %v5964_v26 = vld [vmem:[%s7889_s24 + $0xf1] sm:$0xff]  ;;  %v5965_v24 = vld [vmem:[%s7889_s24 + $0xf9] sm:$0xff] }
 0x2d1   : > { %v2870_v39 = vsel %vm905_vm2, %v10271_v21, %v12110_v45  ;;  %v10406_v35 = vsel %vm971_vm4, %v2901_v52, %v7088_v8  ;;  %v5763_v21 = vld [vmem:[%s7889_s24 + $0x168] sm:$0xff]  ;;  %4039 = vmatpush.bf16.msrb.mxu3 %v4031_v13  ;;  %v12113_v41 = vld [vmem:[#allocation36_spill] sm:$0xff]  ;;  %v12114_v42 = vunpack.i.h.bf16 %v12103_v16  ;;  %v3847_v5 = vsel %vm872_vm1, %v5761_v46, %v7183_v54  ;;  %7476 = vrot.lane.b32.xlu1 %v7475_v62, %s7826_s25  ;;  %v6086_v8 = vld [vmem:[%s11720_s1 + $0x38] sm:$0x3] }
 0x2d2   : > { %v10402_v0 = vsel %vm971_vm4, %v10077_v18, %v12112_v22  ;;  %v2902_v36 = vsel %vm938_vm3, %v2870_v39, %v7009_v29  ;;  %v3848_v18 = vsel %vm872_vm1, %v5762_v57, %v7184_v44  ;;  %7471 = vrot.lane.b32.xlu0 %v7470_v10, %s7829_s28  ;;  %v12115_v29 = vld [vmem:[#allocation5_spill] sm:$0xff]  ;;  %v3850_v16 = vsel %vm872_vm1, %v5764_v58, %v7189_v19  ;;  %v7317_v45 = vpop.permute.xlu2 %7316 }
 0x2d3   : > { %v2934_v37 = vsel %vm971_vm4, %v2902_v36, %v12114_v42  ;;  %v7199_v23 = vunpack.i.h.bf16 %v12115_v29  ;;  %v7198_v30 = vunpack.i.l.bf16 %v12115_v29  ;;  %v4982_v39 = vunpack.c.l.b16 %v6086_v8  ;;  %v7267_v46 = vpop.permute.xlu1 %7266  ;;  %v7262_v62 = vpop.permute.xlu0 %7261 }
 0x2d4   : > { %v3849_v44 = vsel %vm872_vm1, %v5763_v21, %v7188_v61  ;;  %v7319_v57 = vunpack.i.h.bf16 %v7317_v45  ;;  %v7318_v54 = vunpack.i.l.bf16 %v7317_v45  ;;  %v7495_v52 = vpack.i.bf16 %v5965_v24, %v5964_v26  ;;  %v10427_v42 = vpop.f32.mrf.mxu0  ;;  %v12117_v61 = vld [vmem:[#allocation12_spill] sm:$0xff]  ;;  %v10439_v24 = vpop.f32.mrf.mxu1 }
 0x2d5   : > { %v7269_v10 = vunpack.i.h.bf16 %v7267_v46  ;;  %v7268_v13 = vunpack.i.l.bf16 %v7267_v46  ;;  %v7264_v22 = vunpack.i.h.bf16 %v7262_v62  ;;  %v7263_v36 = vunpack.i.l.bf16 %v7262_v62  ;;  %12116 = vst [vmem:[#allocation34_spill] sm:$0xff] %v10427_v42 }
 0x2d6   : > { %v10431_v19 = vsel %vm938_vm3, %v10320_v31, %v7318_v54  ;;  %v10435_v58 = vsel %vm938_vm3, %v10323_v6, %v7319_v57  ;;  %v7490_v21 = vpack.i.bf16 %v10029_v28, %v12117_v61  ;;  %v4984_v26 = vpack.c.b16 %v4982_v39, %v4982_v39  ;;  %v12118_v57 = vld [vmem:[#allocation41_spill] sm:$0xff]  ;;  %v5767_v54 = vld [vmem:[%s7889_s24 + $0x190] sm:$0xff] }
 0x2d7   : > { %v10442_v8 = vsel %vm905_vm2, %v3849_v44, %v7268_v13  ;;  %v10445_v29 = vsel %vm905_vm2, %v3850_v16, %v7269_v10  ;;  %v10448_v31 = vsel %vm905_vm2, %v3848_v18, %v7264_v22  ;;  %v10451_v45 = vsel %vm905_vm2, %v3847_v5, %v7263_v36  ;;  %v5768_v39 = vld [vmem:[%s7889_s24 + $0x198] sm:$0xff]  ;;  %v12119_v16 = vld [vmem:[#allocation66_spill] sm:$0xff]  ;;  %v5770_v13 = vld [vmem:[%s7889_s24 + $0x1a8] sm:$0xff] }
 0x2d8   : > { %v6323_v6 = vunpack.i.l.bf16 %v12113_v41  ;;  %v6404_v28 = vunpack.i.h.bf16 %v12118_v57  ;;  %v7204_v46 = vunpack.i.h.bf16 %v10177_v59  ;;  %v5035_v44 = vsel %vm1904_vm0, %v4984_v26, 0  ;;  %7496 = vrot.lane.b32.xlu2 %v7495_v52, %s7826_s25  ;;  %v12120_v36 = vld [vmem:[#allocation83_spill] sm:$0xff] }
 0x2d9   : > { %v6403_v62 = vunpack.i.l.bf16 %v12118_v57  ;;  %v6484_v10 = vunpack.i.h.bf16 %v12119_v16  ;;  %v2957_v18 = vpack.c.bf16 %v2934_v37, %v10406_v35  ;;  %v1018_v5 = vpack.c.bf16 %v10402_v0, %v10098_v48  ;;  %5043 = vmatpush.bf16.msrb.mxu0 %v5035_v44  ;;  %7491 = vrot.lane.b32.xlu1 %v7490_v21, %s7829_s28  ;;  %v12121_v35 = vld [vmem:[#allocation9_spill] sm:$0xff] }
 0x2da   : > { %v6483_v22 = vunpack.i.l.bf16 %v12119_v16  ;;  %v6854_v61 = vunpack.i.h.bf16 %v12120_v36  ;;  %v6853_v26 = vunpack.i.l.bf16 %v12120_v36  ;;  %v7203_v57 = vunpack.i.l.bf16 %v10177_v59  ;;  %7486 = vrot.lane.b32.xlu0 %v12121_v35, %s7828_s27  ;;  %v12122_v37 = vld [vmem:[#allocation21_spill] sm:$0xff]  ;;  %v5769_v16 = vld [vmem:[%s7889_s24 + $0x1a0] sm:$0xff]  ;;  %v7332_v36 = vpop.permute.xlu2 %7331 }
 0x2db   : > { %v6934_v52 = vunpack.i.h.bf16 %v12122_v37  ;;  %v6933_v48 = vunpack.i.l.bf16 %v12122_v37  ;;  %v3854_v0 = vsel %vm872_vm1, %v5768_v39, %v7199_v23  ;;  %v3853_v44 = vsel %vm872_vm1, %v5767_v54, %v7198_v30  ;;  %5729 = vmatmul.msk.bf16.gmra.mxu2 %vm1855_vm5, %v2957_v18  ;;  %v5996_v59 = vld [vmem:[%s7889_s24 + $0xf2] sm:$0xff]  ;;  %v7282_v42 = vpop.permute.xlu1 %7281  ;;  %v7277_v17 = vpop.permute.xlu0 %7276 }
 0x2dc   : > { %5550 = vmatmul.msk.bf16.gmra.mxu1 %vm1855_vm5, %v1018_v5  ;;  %v3856_v21 = vsel %vm872_vm1, %v5770_v13, %v7204_v46  ;;  %v7334_v63 = vunpack.i.h.bf16 %v7332_v36  ;;  %v7333_v35 = vunpack.i.l.bf16 %v7332_v36  ;;  %v7510_v23 = vpack.i.bf16 %v10020_v43, %v10032_v20 }
 0x2dd   : > { %v7284_v39 = vunpack.i.h.bf16 %v7282_v42  ;;  %v7283_v30 = vunpack.i.l.bf16 %v7282_v42  ;;  %v7279_v54 = vunpack.i.h.bf16 %v7277_v17  ;;  %v7278_v37 = vunpack.i.l.bf16 %v7277_v17 }
 0x2de   : > { %v3855_v5 = vsel %vm872_vm1, %v5769_v16, %v7203_v57  ;;  %v10488_v18 = vsel %vm938_vm3, %v10378_v47, %v7333_v35  ;;  %v10492_v46 = vsel %vm938_vm3, %v10381_v34, %v7334_v63  ;;  %v7500_v13 = vpack.i.bf16 %v5997_v50, %v5996_v59  ;;  %v7781_v47 = vld [vmem:[%s7889_s24 + $0x130] sm:$0xff]  ;;  %v10512_v57 = vpop.f32.mrf.mxu0  ;;  %v12125_v16 = vld [vmem:[#allocation75_spill] sm:$0xff] }
 0x2df   : > { %v10495_v36 = vsel %vm905_vm2, %v3855_v5, %v7283_v30  ;;  %v10498_v43 = vsel %vm905_vm2, %v3856_v21, %v7284_v39  ;;  %v10501_v20 = vsel %vm905_vm2, %v3854_v0, %v7279_v54  ;;  %v10504_v17 = vsel %vm905_vm2, %v3853_v44, %v7278_v37  ;;  %v12124_v63 = vld [vmem:[#allocation32_spill] sm:$0xff]  ;;  %v12127_v39 = vld [vmem:[#allocation11_spill] sm:$0xff]  ;;  %v10522_v54 = vpop.f32.mrf.mxu1  ;;  %v7783_v5 = vld [vmem:[%s7889_s24 + $0x100] sm:$0xff] }
 0x2e0   : > { %v12123_v42 = vunpack.i.h.bf16 %v12111_v11  ;;  %v936_v50 = vsel %vm905_vm2, %v12124_v63, %v6323_v6  ;;  %v7014_v59 = vunpack.i.h.bf16 %v12125_v16  ;;  %v7013_v0 = vunpack.i.l.bf16 %v12125_v16  ;;  %7511 = vrot.lane.b32.xlu2 %v7510_v23, %s7829_s28  ;;  %v7782_v37 = vld [vmem:[%s7889_s24 + $0x108] sm:$0xff] }
 0x2e1   : > { %v12126_v21 = vunpack.i.h.bf16 %v12113_v41  ;;  %v969_v35 = vsel %vm938_vm3, %v936_v50, %v6403_v62  ;;  %v7094_v11 = vunpack.i.h.bf16 %v12127_v39  ;;  %v7093_v30 = vunpack.i.l.bf16 %v12127_v39  ;;  %v12128_v62 = vld [vmem:[#allocation44_spill] sm:$0xff] }
 0x2e2   : > { %v904_v34 = vsel %vm872_vm1, %v7781_v47, %v12123_v42  ;;  %v2840_v41 = vsel %vm872_vm1, %v7782_v37, %v6854_v61  ;;  %v2839_v47 = vsel %vm872_vm1, %v7783_v5, %v6853_v26  ;;  %7506 = vrot.lane.b32.xlu1 %v12128_v62, %s7828_s27  ;;  %7501 = vrot.lane.b32.xlu0 %v7500_v13, %s7827_s26  ;;  %v5998_v42 = vld [vmem:[%s7889_s24 + $0x102] sm:$0xff]  ;;  %v7347_v50 = vpop.permute.xlu2 %7346  ;;  %v5999_v16 = vld [vmem:[%s7889_s24 + $0x10a] sm:$0xff] }
 0x2e3   : > { %v937_v44 = vsel %vm905_vm2, %v904_v34, %v12126_v21  ;;  %v1002_v34 = vsel %vm971_vm4, %v969_v35, %v6483_v22  ;;  %v2872_v23 = vsel %vm905_vm2, %v2840_v41, %v6934_v52  ;;  %v5966_v61 = vld [vmem:[%s7889_s24 + $0x101] sm:$0xff]  ;;  %v5967_v21 = vld [vmem:[%s7889_s24 + $0x109] sm:$0xff]  ;;  %v7349_v39 = vunpack.i.h.bf16 %v7347_v50  ;;  %v7297_v13 = vpop.permute.xlu1 %7296  ;;  %v10543_v5 = vpop.permute.xlu0 %7291 }
 0x2e4   : > { %v970_v6 = vsel %vm938_vm3, %v937_v44, %v6404_v28  ;;  %v2871_v28 = vsel %vm905_vm2, %v2839_v47, %v6933_v48  ;;  %v2904_v44 = vsel %vm938_vm3, %v2872_v23, %v7014_v59  ;;  %v7348_v37 = vunpack.i.l.bf16 %v7347_v50  ;;  %v10547_v35 = vpop.f32.mrf.mxu2  ;;  %v12132_v62 = vld [vmem:[#allocation14_spill] sm:$0xff]  ;;  %v12133_v50 = vld [vmem:[#allocation65_spill] sm:$0xff] }
 0x2e5   : > { %v1003_v63 = vsel %vm971_vm4, %v970_v6, %v6484_v10  ;;  %v2903_v26 = vsel %vm938_vm3, %v2871_v28, %v7013_v0  ;;  %v2936_v22 = vsel %vm971_vm4, %v2904_v44, %v7094_v11  ;;  %v7299_v52 = vunpack.i.h.bf16 %v7297_v13  ;;  %12129 = vst [vmem:[#allocation49_spill] sm:$0xff] %v10547_v35  ;;  %v6000_v23 = vld [vmem:[%s7889_s24 + $0x11a] sm:$0xff]  ;;  %v6001_v28 = vld [vmem:[%s7889_s24 + $0x122] sm:$0xff] }
 0x2e6   : > { %v2935_v10 = vsel %vm971_vm4, %v2903_v26, %v7093_v30  ;;  %v7298_v48 = vunpack.i.l.bf16 %v7297_v13  ;;  %v10551_v0 = vsel %vm938_vm3, %v10442_v8, %v7348_v37  ;;  %v10555_v59 = vsel %vm938_vm3, %v10445_v29, %v7349_v39 }
 0x2e7   : > { %12130 = vst [vmem:[#allocation61_spill] sm:$0xff] %v10551_v0  ;;  %v7520_v6 = vpack.i.bf16 %v5999_v16, %v5998_v42  ;;  %v7515_v41 = vpack.i.bf16 %v5967_v21, %v5966_v61  ;;  %v10563_v11 = vsel %vm938_vm3, %v10255_v38, %v7299_v52  ;;  %v2958_v30 = vpack.c.bf16 %v2936_v22, %v2935_v10  ;;  %v12134_v16 = vld [vmem:[#allocation7_spill] sm:$0xff]  ;;  %v1924_v21 = vpop.f32.mrf.mxu0  ;;  %v12135_v38 = vld [vmem:[#allocation69_spill] sm:$0xff]  ;;  %v10579_v37 = vpop.f32.mrf.mxu1 }
 0x2e8   : > { %12131 = vst [vmem:[#allocation37_spill] sm:$0xff] %v10555_v59  ;;  %v10559_v47 = vsel %vm938_vm3, %v10258_v9, %v7298_v48  ;;  %7526 = vrot.lane.b32.xlu2 %v12132_v62, %s7828_s27  ;;  %v1019_v8 = vpack.c.bf16 %v1003_v63, %v1002_v34  ;;  %v6859_v29 = vunpack.i.h.bf16 %v12133_v50  ;;  %v6858_v42 = vunpack.i.l.bf16 %v12133_v50  ;;  %v12136_v63 = vld [vmem:[#allocation58_spill] sm:$0xff] }
 0x2e9   : > { %v6939_v9 = vunpack.i.h.bf16 %v12134_v16  ;;  %v6938_v61 = vunpack.i.l.bf16 %v12134_v16  ;;  %v7019_v26 = vunpack.i.h.bf16 %v12135_v38  ;;  %v7018_v34 = vunpack.i.l.bf16 %v12135_v38  ;;  %v5968_v10 = vld [vmem:[%s7889_s24 + $0x119] sm:$0xff]  ;;  %v5969_v22 = vld [vmem:[%s7889_s24 + $0x121] sm:$0xff] }
 0x2ea   : > { %7521 = vrot.lane.b32.xlu1 %v7520_v6, %s7827_s26  ;;  %7516 = vrot.lane.b32.xlu0 %v7515_v41, %s7826_s25  ;;  %v7099_v44 = vunpack.i.h.bf16 %v12136_v63  ;;  %v7098_v39 = vunpack.i.l.bf16 %v12136_v63  ;;  %v7362_v13 = vpop.permute.xlu2 %7361  ;;  %v6112_v52 = vld [vmem:[%s11720_s1 + $0x24] sm:$0xff]  ;;  %v2072_v48 = vadd.f32 %v10208_v3, %v10512_v57  ;;  %v7540_v16 = vpack.i.bf16 %v6001_v28, %v6000_v23  ;;  %v5574_v38 = vld [vmem:[%s7889_s24 + $0x118] sm:$0xff] }
 0x2eb   : > { %5730 = vmatmul.msk.bf16.gmra.mxu2 %vm1855_vm5, %v2958_v30  ;;  %v7364_v6 = vunpack.i.h.bf16 %v7362_v13  ;;  %v7363_v41 = vunpack.i.l.bf16 %v7362_v13  ;;  %v7312_v62 = vpop.permute.xlu1 %7311  ;;  %v7307_v50 = vpop.permute.xlu0 %7306  ;;  %v5575_v63 = vld [vmem:[%s7889_s24 + $0x120] sm:$0xff]  ;;  %4040 = vmatpush.bf16.msrb.mxu3 %v6112_v52  ;;  %v7535_v13 = vpack.i.bf16 %v5969_v22, %v5968_v10  ;;  %v7530_v23 = vpack.i.bf16 %v10008_v12, %v10026_v55 }
 0x2ec   : > { %5551 = vmatmul.msk.bf16.gmra.mxu1 %vm1855_vm5, %v1019_v8  ;;  %v7314_v8 = vunpack.i.h.bf16 %v7312_v62  ;;  %v7313_v35 = vunpack.i.l.bf16 %v7312_v62  ;;  %v7309_v30 = vunpack.i.h.bf16 %v7307_v50  ;;  %v7308_v59 = vunpack.i.l.bf16 %v7307_v50 }
 0x2ed   : > { %v10594_v0 = vsel %vm938_vm3, %v10495_v36, %v7363_v41  ;;  %v10598_v3 = vsel %vm938_vm3, %v10498_v43, %v7364_v6  ;;  %v3043_v57 = vpop.f32.mrf.mxu2  ;;  %v2842_v10 = vsel %vm872_vm1, %v5575_v63, %v6859_v29  ;;  %v2841_v55 = vsel %vm872_vm1, %v5574_v38, %v6858_v42 }
 0x2ee   : > { %v10604_v28 = vsel %vm938_vm3, %v10329_v51, %v7313_v35  ;;  %v10608_v52 = vsel %vm938_vm3, %v10326_v7, %v7314_v8  ;;  %v10612_v36 = vsel %vm938_vm3, %v10052_v2, %v7309_v30  ;;  %v10616_v43 = vsel %vm938_vm3, %v10049_v1, %v7308_v59  ;;  %v5970_v2 = vld [vmem:[%s7889_s24 + $0x129] sm:$0xff]  ;;  %v5971_v35 = vld [vmem:[%s7889_s24 + $0x131] sm:$0xff] }
 0x2ef   : > { %v10620_v12 = vadd.f32 %v3043_v57, %v2072_v48  ;;  %v2873_v51 = vsel %vm905_vm2, %v2841_v55, %v6938_v61  ;;  %v2874_v7 = vsel %vm905_vm2, %v2842_v10, %v6939_v9  ;;  %v6032_v61 = vld [vmem:[%s7889_s24 + $0x11b] sm:$0xff]  ;;  %v6033_v48 = vld [vmem:[%s7889_s24 + $0x123] sm:$0xff]  ;;  %v6113_v9 = vld [vmem:[%s11720_s1 + $0x30] sm:$0xff]  ;;  %v2074_v6 = vadd.f32 %v10295_v40, %v1924_v21 }
 0x2f0   : > { %7541 = vrot.lane.b32.xlu2 %v7540_v16, %s7827_s26  ;;  %v2905_v22 = vsel %vm938_vm3, %v2873_v51, %v7018_v34  ;;  %v2906_v1 = vsel %vm938_vm3, %v2874_v7, %v7019_v26  ;;  %v7555_v50 = vpack.i.bf16 %v5971_v35, %v5970_v2  ;;  %v1927_v16 = vpop.f32.mrf.mxu0  ;;  %5044 = vmatpush.bf16.msrb.mxu0 %v6113_v9  ;;  %v10671_v10 = vld [vmem:[%s7889_s24 + $0x134] sm:$0xff]  ;;  %v6034_v35 = vld [vmem:[%s7889_s24 + $0x12b] sm:$0xff] }
 0x2f1   : > { %v2937_v59 = vsel %vm971_vm4, %v2905_v22, %v7098_v39  ;;  %v2938_v29 = vsel %vm971_vm4, %v2906_v1, %v7099_v44  ;;  %v7550_v30 = vpack.i.bf16 %v10117_v32, %v10017_v27  ;;  %v7545_v57 = vpack.i.bf16 %v6033_v48, %v6032_v61  ;;  %v12138_v51 = vld [vmem:[#allocation76_spill] sm:$0xff]  ;;  %v12139_v22 = vld [vmem:[#allocation74_spill] sm:$0xff] }
 0x2f2   : > { %7536 = vrot.lane.b32.xlu1 %v7535_v13, %s7826_s25  ;;  %7531 = vrot.lane.b32.xlu0 %v7530_v23, %s7829_s28  ;;  %v7377_v42 = vpop.permute.xlu2 %7376  ;;  %v6944_v7 = vunpack.i.h.bf16 %v12138_v51  ;;  %v6943_v2 = vunpack.i.l.bf16 %v12138_v51  ;;  %v7024_v1 = vunpack.i.h.bf16 %v12139_v22  ;;  %v6035_v9 = vld [vmem:[%s7889_s24 + $0x133] sm:$0xff] }
 0x2f3   : > { %v7379_v34 = vunpack.i.h.bf16 %v7377_v42  ;;  %v7378_v41 = vunpack.i.l.bf16 %v7377_v42  ;;  %v7327_v26 = vpop.permute.xlu1 %7326  ;;  %v7322_v62 = vpop.permute.xlu0 %7321  ;;  %v7565_v51 = vpack.i.bf16 %v6035_v9, %v6034_v35 }
 0x2f4   : > { %v7329_v38 = vunpack.i.h.bf16 %v7327_v26  ;;  %v7328_v63 = vunpack.i.l.bf16 %v7327_v26  ;;  %v7324_v39 = vunpack.i.h.bf16 %v7322_v62  ;;  %v7323_v44 = vunpack.i.l.bf16 %v7322_v62 }
 0x2f5   : > { %v3045_v8 = vpop.f32.mrf.mxu2  ;;  %v10643_v40 = vsel %vm971_vm4, %v10559_v47, %v7378_v41  ;;  %v10647_v21 = vsel %vm971_vm4, %v10563_v11, %v7379_v34  ;;  %v6003_v34 = vld [vmem:[%s7889_s24 + $0x132] sm:$0xff]  ;;  %v2077_v41 = vadd.f32 %v10363_v14, %v1927_v16 }
 0x2f6   : > { %v10651_v13 = vsel %vm938_vm3, %v10387_v60, %v7328_v63  ;;  %v10655_v23 = vsel %vm938_vm3, %v10384_v25, %v7329_v38  ;;  %v10659_v27 = vsel %vm938_vm3, %v10135_v49, %v7324_v39  ;;  %v10663_v32 = vsel %vm938_vm3, %v10132_v53, %v7323_v44  ;;  %v10674_v25 = vld [vmem:[%s7889_s24 + $0x144] sm:$0xff]  ;;  %v5577_v44 = vld [vmem:[%s7889_s24 + $0x130] sm:$0xff] }
 0x2f7   : > { %v10665_v47 = vadd.f32 %v3045_v8, %v2074_v6  ;;  %v2959_v60 = vpack.c.bf16 %v2938_v29, %v2937_v59  ;;  %v12137_v49 = vld [vmem:[#allocation79_spill] sm:$0xff]  ;;  %v7023_v59 = vunpack.i.l.bf16 %v12139_v22  ;;  %v12140_v29 = vld [vmem:[#allocation29_spill] sm:$0xff]  ;;  %v7570_v63 = vpack.i.bf16 %v10674_v25, %v10671_v10  ;;  %v12149_v11 = vld [vmem:[#allocation16_spill] sm:$0xff] }
 0x2f8   : > { %7556 = vrot.lane.b32.xlu2 %v7555_v50, %s7826_s25  ;;  %v6864_v55 = vunpack.i.h.bf16 %v12137_v49  ;;  %v6863_v53 = vunpack.i.l.bf16 %v12137_v49  ;;  %v7104_v42 = vunpack.i.h.bf16 %v12140_v29  ;;  %v7103_v61 = vunpack.i.l.bf16 %v12140_v29  ;;  %v6002_v6 = vld [vmem:[%s7889_s24 + $0x12a] sm:$0xff]  ;;  %v1929_v29 = vpop.f32.mrf.mxu0 }
 0x2f9   : > { %v5576_v39 = vld [vmem:[%s7889_s24 + $0x128] sm:$0xff]  ;;  %v7560_v22 = vpack.i.bf16 %v6003_v34, %v6002_v6 }
 0x2fa   : > { %7551 = vrot.lane.b32.xlu1 %v7550_v30, %s7829_s28  ;;  %7546 = vrot.lane.b32.xlu0 %v7545_v57, %s7828_s27  ;;  %v7392_v48 = vpop.permute.xlu2 %7391  ;;  %v2843_v9 = vsel %vm872_vm1, %v5576_v39, %v6863_v53  ;;  %v6037_v34 = vld [vmem:[%s7889_s24 + $0x14b] sm:$0xff] }
 0x2fb   : > { %5731 = vmatmul.msk.bf16.gmra.mxu2 %vm1855_vm5, %v2959_v60  ;;  %v7394_v26 = vunpack.i.h.bf16 %v7392_v48  ;;  %v7393_v62 = vunpack.i.l.bf16 %v7392_v48  ;;  %v7342_v50 = vpop.permute.xlu1 %7341  ;;  %v7337_v38 = vpop.permute.xlu0 %7336  ;;  %v2875_v6 = vsel %vm905_vm2, %v2843_v9, %v6943_v2  ;;  %v5973_v39 = vld [vmem:[%s7889_s24 + $0x149] sm:$0xff] }
 0x2fc   : > { %v7344_v8 = vunpack.i.h.bf16 %v7342_v50  ;;  %v7343_v30 = vunpack.i.l.bf16 %v7342_v50  ;;  %v7339_v57 = vunpack.i.h.bf16 %v7337_v38  ;;  %v7338_v49 = vunpack.i.l.bf16 %v7337_v38  ;;  %v6005_v38 = vld [vmem:[%s7889_s24 + $0x14a] sm:$0xff] }
 0x2fd   : > { %v3048_v60 = vpop.f32.mrf.mxu2  ;;  %v10698_v14 = vsel %vm971_vm4, %v10604_v28, %v7393_v62  ;;  %v10702_v16 = vsel %vm971_vm4, %v10608_v52, %v7394_v26  ;;  %v2844_v52 = vsel %vm872_vm1, %v5577_v44, %v6864_v55  ;;  %v2907_v53 = vsel %vm938_vm3, %v2875_v6, %v7023_v59  ;;  %v12141_v6 = vld [vmem:[#allocation19_spill] sm:$0xff] }
 0x2fe   : > { %v10706_v48 = vsel %vm938_vm3, %v10451_v45, %v7343_v30  ;;  %v10710_v50 = vsel %vm938_vm3, %v10448_v31, %v7344_v8  ;;  %v10714_v35 = vsel %vm938_vm3, %v10186_v33, %v7339_v57  ;;  %v10718_v28 = vsel %vm938_vm3, %v10183_v15, %v7338_v49  ;;  %v6036_v15 = vld [vmem:[%s7889_s24 + $0x143] sm:$0xff] }
 0x2ff   : > { %v10722_v45 = vadd.f32 %v3048_v60, %v2077_v41  ;;  %v2876_v33 = vsel %vm905_vm2, %v2844_v52, %v6944_v7  ;;  %v6004_v41 = vld [vmem:[%s7889_s24 + $0x142] sm:$0xff]  ;;  %v2939_v26 = vsel %vm971_vm4, %v2907_v53, %v7103_v61  ;;  %v7585_v59 = vpack.i.bf16 %v6037_v34, %v6036_v15 }
 0x300   : > { %7571 = vrot.lane.b32.xlu2 %v7570_v63, %s7829_s28  ;;  %v2908_v55 = vsel %vm938_vm3, %v2876_v33, %v7024_v1  ;;  %v5972_v7 = vld [vmem:[%s7889_s24 + $0x141] sm:$0xff]  ;;  %v2079_v63 = vadd.f32 %v10439_v24, %v1929_v29 }
 0x301   : > { %v2940_v62 = vsel %vm971_vm4, %v2908_v55, %v7104_v42  ;;  %v7575_v29 = vpack.i.bf16 %v5973_v39, %v5972_v7  ;;  %v12143_v55 = vld [vmem:[#allocation18_spill] sm:$0xff]  ;;  %v7294_v7 = vunpack.i.h.bf16 %v10543_v5  ;;  %v7293_v39 = vunpack.i.l.bf16 %v10543_v5  ;;  %v12148_v52 = vld [vmem:[#allocation15_spill] sm:$0xff] }
 0x302   : > { %7566 = vrot.lane.b32.xlu1 %v7565_v51, %s7828_s27  ;;  %7561 = vrot.lane.b32.xlu0 %v7560_v22, %s7827_s26  ;;  %v7407_v2 = vpop.permute.xlu2 %7406  ;;  %v7580_v22 = vpack.i.bf16 %v6005_v38, %v6004_v41  ;;  %v6007_v38 = vld [vmem:[%s7889_s24 + $0x15a] sm:$0xff] }
 0x303   : > { %v7409_v44 = vunpack.i.h.bf16 %v7407_v2  ;;  %v7408_v8 = vunpack.i.l.bf16 %v7407_v2  ;;  %v7357_v1 = vpop.permute.xlu1 %7356  ;;  %v7352_v30 = vpop.permute.xlu0 %7351  ;;  %v2960_v2 = vpack.c.bf16 %v2940_v62, %v2939_v26  ;;  %v3892_v31 = vsel %vm938_vm3, %v12148_v52, %v7294_v7  ;;  %v12150_v52 = vld [vmem:[#allocation71_spill] sm:$0xff] }
 0x304   : > { %v7359_v57 = vunpack.i.h.bf16 %v7357_v1  ;;  %v7358_v49 = vunpack.i.l.bf16 %v7357_v1  ;;  %v7354_v60 = vunpack.i.h.bf16 %v7352_v30  ;;  %v7353_v51 = vunpack.i.l.bf16 %v7352_v30  ;;  %v12145_v1 = vld [vmem:[#allocation55_spill] sm:$0xff] }
 0x305   : > { %v10744_v61 = vsel %vm971_vm4, %v10651_v13, %v7408_v8  ;;  %v10748_v42 = vsel %vm971_vm4, %v10655_v23, %v7409_v44  ;;  %v3050_v24 = vpop.f32.mrf.mxu2  ;;  %v12142_v23 = vld [vmem:[#allocation20_spill] sm:$0xff]  ;;  %v12144_v44 = vld [vmem:[#allocation81_spill] sm:$0xff]  ;;  %v6949_v30 = vunpack.i.h.bf16 %v12145_v1  ;;  %v6948_v26 = vunpack.i.l.bf16 %v12145_v1 }
 0x306   : > { %v10754_v9 = vsel %vm938_vm3, %v10504_v17, %v7358_v49  ;;  %v10758_v13 = vsel %vm938_vm3, %v10501_v20, %v7359_v57  ;;  %v10762_v33 = vsel %vm938_vm3, %v12141_v6, %v7354_v60  ;;  %v7289_v15 = vunpack.i.h.bf16 %v12142_v23  ;;  %v1932_v17 = vpop.f32.mrf.mxu0  ;;  %v6006_v20 = vld [vmem:[%s7889_s24 + $0x152] sm:$0xff]  ;;  %v12146_v60 = vld [vmem:[#allocation50_spill] sm:$0xff] }
 0x307   : > { %v7288_v34 = vunpack.i.l.bf16 %v12142_v23  ;;  %v10768_v53 = vsel %vm938_vm3, %v12143_v55, %v7353_v51  ;;  %v10770_v41 = vadd.f32 %v3050_v24, %v2079_v63  ;;  %v6869_v63 = vunpack.i.h.bf16 %v12144_v44  ;;  %v5975_v57 = vld [vmem:[%s7889_s24 + $0x159] sm:$0xff]  ;;  %v10789_v49 = vld [vmem:[%s7889_s24 + $0x14c] sm:$0xff] }
 0x308   : > { %7586 = vrot.lane.b32.xlu2 %v7585_v59, %s7828_s27  ;;  %v6868_v8 = vunpack.i.l.bf16 %v12144_v44  ;;  %v5974_v59 = vld [vmem:[%s7889_s24 + $0x151] sm:$0xff]  ;;  %v2082_v5 = vadd.f32 %v10522_v54, %v1932_v17  ;;  %v12147_v24 = vld [vmem:[#allocation35_spill] sm:$0xff]  ;;  %v7600_v23 = vpack.i.bf16 %v6007_v38, %v6006_v20  ;;  %v3891_v54 = vsel %vm938_vm3, %v12149_v11, %v7293_v39 }
 0x309   : > { %v3889_v51 = vsel %vm938_vm3, %v12146_v60, %v7288_v34  ;;  %v7595_v34 = vpack.i.bf16 %v5975_v57, %v5974_v59  ;;  %v7029_v7 = vunpack.i.h.bf16 %v12150_v52  ;;  %v7028_v11 = vunpack.i.l.bf16 %v12150_v52  ;;  %v7784_v57 = vld [vmem:[%s7889_s24 + $0x148] sm:$0xff] }
 0x30a   : > { %7581 = vrot.lane.b32.xlu1 %v7580_v22, %s7827_s26  ;;  %7576 = vrot.lane.b32.xlu0 %v7575_v29, %s7826_s25  ;;  %v10784_v62 = vpop.permute.xlu2 %7421  ;;  %v3890_v22 = vsel %vm938_vm3, %v12147_v24, %v7289_v15  ;;  %v7590_v15 = vpack.i.bf16 %v10671_v10, %v10789_v49 }
 0x30b   : > { %5732 = vmatmul.msk.bf16.gmra.mxu2 %vm1855_vm5, %v2960_v2  ;;  %v7372_v29 = vpop.permute.xlu1 %7371  ;;  %v7367_v6 = vpop.permute.xlu0 %7366 }
 0x30c   : > { %v7374_v55 = vunpack.i.h.bf16 %v7372_v29  ;;  %v7373_v44 = vunpack.i.l.bf16 %v7372_v29  ;;  %v7369_v2 = vunpack.i.h.bf16 %v7367_v6  ;;  %v7368_v1 = vunpack.i.l.bf16 %v7367_v6  ;;  %v12151_v29 = vld [vmem:[#allocation54_spill] sm:$0xff] }
 0x30d   : > { %v7109_v6 = vunpack.i.h.bf16 %v12151_v29 }
 0x30e   : > { %v3053_v17 = vpop.f32.mrf.mxu2  ;;  %v3921_v60 = vsel %vm971_vm4, %v3889_v51, %v7368_v1  ;;  %v3922_v20 = vsel %vm971_vm4, %v3890_v22, %v7369_v2  ;;  %v10807_v24 = vsel %vm971_vm4, %v3891_v54, %v7373_v44  ;;  %v10812_v59 = vsel %vm971_vm4, %v3892_v31, %v7374_v55  ;;  %v7785_v51 = vld [vmem:[%s7889_s24 + $0x140] sm:$0xff]  ;;  %v6070_v31 = vld [vmem:[%s7889_s24 + $0x154] sm:$0xff]  ;;  %v1934_v2 = vpop.f32.mrf.mxu0 }
 0x30f   : > { %v10804_v38 = vadd.f32 %v3053_v17, %v2082_v5  ;;  %v3953_v39 = vpack.c.bf16 %v3922_v20, %v3921_v60  ;;  %v3954_v10 = vpack.c.bf16 %v10812_v59, %v10807_v24  ;;  %v2846_v5 = vsel %vm872_vm1, %v7784_v57, %v6869_v63  ;;  %v6071_v1 = vld [vmem:[%s7889_s24 + $0x15c] sm:$0xff] }
 0x310   : > { %7601 = vrot.lane.b32.xlu2 %v7600_v23, %s7827_s26  ;;  %v2845_v22 = vsel %vm872_vm1, %v7785_v51, %v6868_v8  ;;  %v7108_v44 = vunpack.i.l.bf16 %v12151_v29  ;;  %v2878_v23 = vsel %vm905_vm2, %v2846_v5, %v6949_v30  ;;  %v6038_v8 = vld [vmem:[%s7889_s24 + $0x153] sm:$0xff]  ;;  %v6039_v54 = vld [vmem:[%s7889_s24 + $0x15b] sm:$0xff]  ;;  %v7615_v30 = vpack.i.bf16 %v10789_v49, %v10674_v25 }
 0x311   : > { %v2877_v55 = vsel %vm905_vm2, %v2845_v22, %v6948_v26  ;;  %5906 = vmatmul.msk.bf16.vlgmr.msrb.gmra.mxu3 %vm1855_vm5, %v3953_v39  ;;  %v2910_v60 = vsel %vm938_vm3, %v2878_v23, %v7029_v7  ;;  %v7610_v7 = vpack.i.bf16 %v6071_v1, %v6070_v31  ;;  %v7605_v22 = vpack.i.bf16 %v6039_v54, %v6038_v8  ;;  %v6041_v23 = vld [vmem:[%s7889_s24 + $0x173] sm:$0xff]  ;;  %v5924_v59 = vld [vmem:[%s7889_s24 + $0xa0] sm:$0xff] }
 0x312   : > { %7596 = vrot.lane.b32.xlu1 %v7595_v34, %s7826_s25  ;;  %7591 = vrot.lane.b32.xlu0 %v7590_v15, %s7829_s28  ;;  %v10829_v63 = vpop.permute.xlu2 %7436  ;;  %v2909_v17 = vsel %vm938_vm3, %v2877_v55, %v7028_v11  ;;  %v2084_v34 = vadd.f32 %v10579_v37, %v1934_v2  ;;  %v2942_v51 = vsel %vm971_vm4, %v2910_v60, %v7109_v6  ;;  %v6009_v2 = vld [vmem:[%s7889_s24 + $0x172] sm:$0xff] }
 0x313   : > { %v7387_v15 = vpop.permute.xlu1 %7386  ;;  %v7382_v20 = vpop.permute.xlu0 %7381  ;;  %v2941_v5 = vsel %vm971_vm4, %v2909_v17, %v7108_v44  ;;  %v5977_v1 = vld [vmem:[%s7889_s24 + $0x171] sm:$0xff] }
 0x314   : > { %v7389_v26 = vunpack.i.h.bf16 %v7387_v15  ;;  %v7388_v52 = vunpack.i.l.bf16 %v7387_v15  ;;  %v7384_v39 = vunpack.i.h.bf16 %v7382_v20  ;;  %v7383_v57 = vunpack.i.l.bf16 %v7382_v20 }
 0x315   : > { %v2961_v31 = vpack.c.bf16 %v2942_v51, %v2941_v5  ;;  %v7439_v5 = vunpack.i.h.bf16 %v10829_v63 }
 0x316   : > { %v3055_v11 = vpop.f32.mrf.mxu2  ;;  %v10845_v25 = vsel %vm971_vm4, %v10367_v56, %v7383_v57  ;;  %v10849_v49 = vsel %vm971_vm4, %v10371_v4, %v7384_v39  ;;  %v10853_v29 = vsel %vm971_vm4, %v10616_v43, %v7388_v52  ;;  %v10859_v44 = vsel %vm971_vm4, %v10612_v36, %v7389_v26  ;;  %v6040_v56 = vld [vmem:[%s7889_s24 + $0x16b] sm:$0xff] }
 0x317   : > { %v10841_v37 = vadd.f32 %v3055_v11, %v2084_v34  ;;  %v3956_v6 = vpack.c.bf16 %v10849_v49, %v10845_v25  ;;  %v3957_v4 = vpack.c.bf16 %v10859_v44, %v10853_v29  ;;  %v6008_v43 = vld [vmem:[%s7889_s24 + $0x16a] sm:$0xff]  ;;  %v7630_v17 = vpack.i.bf16 %v6041_v23, %v6040_v56  ;;  %v11000_v49 = vpop.f32.mrf.mxu3 }
 0x318   : > { %7616 = vrot.lane.b32.xlu2 %v7615_v30, %s7829_s28  ;;  %v5976_v36 = vld [vmem:[%s7889_s24 + $0x169] sm:$0xff]  ;;  %v7625_v30 = vpack.i.bf16 %v6009_v2, %v6008_v43 }
 0x319   : > { %v7620_v26 = vpack.i.bf16 %v5977_v1, %v5976_v36  ;;  %v6072_v11 = vld [vmem:[%s7889_s24 + $0x16c] sm:$0xff] }
 0x31a   : > { %7611 = vrot.lane.b32.xlu1 %v7610_v7, %s7829_s28  ;;  %7606 = vrot.lane.b32.xlu0 %v7605_v22, %s7828_s27  ;;  %v10870_v55 = vpop.permute.xlu2 %7451  ;;  %v6073_v22 = vld [vmem:[%s7889_s24 + $0x174] sm:$0xff] }
 0x31b   : > { %5733 = vmatmul.msk.bf16.gmra.mxu2 %vm1855_vm5, %v2961_v31  ;;  %v7402_v8 = vpop.permute.xlu1 %7401  ;;  %v7397_v54 = vpop.permute.xlu0 %7396  ;;  %v10908_v2 = vpack.i.bf16 %v6073_v22, %v6072_v11  ;;  %v6010_v11 = vld [vmem:[%s7889_s24 + $0x17a] sm:$0xff] }
 0x31c   : > { %v7404_v60 = vunpack.i.h.bf16 %v7402_v8  ;;  %v7403_v34 = vunpack.i.l.bf16 %v7402_v8  ;;  %v7399_v15 = vunpack.i.h.bf16 %v7397_v54  ;;  %v7398_v20 = vunpack.i.l.bf16 %v7397_v54  ;;  %v6074_v8 = vld [vmem:[%s7889_s24 + $0x17c] sm:$0xff]  ;;  %v6075_v54 = vld [vmem:[%s7889_s24 + $0x184] sm:$0xff] }
 0x31e   : > { %v10877_v52 = vsel %vm971_vm4, %v10431_v19, %v7398_v20  ;;  %v10881_v39 = vsel %vm971_vm4, %v10435_v58, %v7399_v15  ;;  %v10885_v57 = vsel %vm971_vm4, %v10663_v32, %v7403_v34  ;;  %v10891_v51 = vsel %vm971_vm4, %v10659_v27, %v7404_v60  ;;  %v5978_v58 = vld [vmem:[%s7889_s24 + $0x179] sm:$0xff]  ;;  %v5979_v32 = vld [vmem:[%s7889_s24 + $0x181] sm:$0xff] }
 0x31f   : > { %v7645_v43 = vpack.i.bf16 %v5979_v32, %v5978_v58  ;;  %v7423_v60 = vunpack.i.l.bf16 %v10784_v62  ;;  %v6042_v34 = vld [vmem:[%s7889_s24 + $0x17b] sm:$0xff] }
 0x320   : > { %7631 = vrot.lane.b32.xlu2 %v7630_v17, %s7828_s27  ;;  %v7424_v17 = vunpack.i.h.bf16 %v10784_v62  ;;  %v6011_v62 = vld [vmem:[%s7889_s24 + $0x182] sm:$0xff] }
 0x321   : > { %5907 = vmatmul.msk.bf16.gmra.mxu3 %vm1855_vm5, %v3954_v10  ;;  %v5925_v10 = vld [vmem:[%s7889_s24 + $0xa8] sm:$0xff] }
 0x322   : > { %7626 = vrot.lane.b32.xlu1 %v7625_v30, %s7827_s26  ;;  %7621 = vrot.lane.b32.xlu0 %v7620_v26, %s7826_s25  ;;  %v10904_v27 = vpop.permute.xlu2 %7466  ;;  %v12152_v30 = vld [vmem:[#allocation82_spill] sm:$0xff]  ;;  %v12153_v26 = vld [vmem:[#allocation47_spill] sm:$0xff] }
 0x323   : > { %v7417_v31 = vpop.permute.xlu1 %7416  ;;  %v7412_v56 = vpop.permute.xlu0 %7411  ;;  %v12154_v58 = vpack.c.bf16 %v12152_v30, %v12153_v26  ;;  %v7650_v30 = vpack.i.bf16 %v6011_v62, %v6010_v11  ;;  %v5980_v11 = vld [vmem:[%s7889_s24 + $0x191] sm:$0xff] }
 0x324   : > { %v7413_v23 = vunpack.i.l.bf16 %v7412_v56  ;;  %v7419_v36 = vunpack.i.h.bf16 %v7417_v31  ;;  %v7418_v1 = vunpack.i.l.bf16 %v7417_v31  ;;  %v7660_v31 = vpack.i.bf16 %v6075_v54, %v6074_v8 }
 0x326   : > { %v10912_v24 = vsel %vm971_vm4, %v10488_v18, %v7413_v23  ;;  %v6043_v18 = vld [vmem:[%s7889_s24 + $0x183] sm:$0xff]  ;;  %v4830_v15 = vsel %vm872_vm1, %v5925_v10, %v7419_v36  ;;  %v4829_v20 = vsel %vm872_vm1, %v5924_v59, %v7418_v1  ;;  %v7414_v10 = vunpack.i.h.bf16 %v7412_v56  ;;  %v5926_v56 = vld [vmem:[%s7889_s24 + $0xb0] sm:$0xff] }
 0x327   : > { %v7655_v36 = vpack.i.bf16 %v6043_v18, %v6042_v34  ;;  %v4861_v1 = vsel %vm905_vm2, %v4829_v20, %v7423_v60  ;;  %v4862_v59 = vsel %vm905_vm2, %v4830_v15, %v7424_v17  ;;  %v5927_v34 = vld [vmem:[%s7889_s24 + $0xb8] sm:$0xff]  ;;  %v7438_v60 = vunpack.i.l.bf16 %v10829_v63 }
 0x328   : > { %7646 = vrot.lane.b32.xlu2 %v7645_v43, %s7826_s25  ;;  %v6013_v18 = vld [vmem:[%s7889_s24 + $0x19a] sm:$0xff]  ;;  %v12155_v15 = vpack.c.bf16 %v10647_v21, %v10643_v40  ;;  %v4832_v62 = vsel %vm872_vm1, %v5927_v34, %v7439_v5  ;;  %v7453_v5 = vunpack.i.l.bf16 %v10870_v55 }
 0x329   : > { %v5981_v63 = vld [vmem:[%s7889_s24 + $0x199] sm:$0xff] }
 0x32a   : > { %7641 = vrot.lane.b32.xlu1 %v7610_v7, %s7829_s28  ;;  %7636 = vrot.lane.b32.xlu0 %v10908_v2, %s7829_s28  ;;  %v10932_v32 = vpop.permute.xlu2 %7481  ;;  %v7670_v21 = vpack.i.bf16 %v5981_v63, %v5980_v11 }
 0x32b   : > { %5734 = vmatmul.msk.bf16.gmra.mxu2 %vm1855_vm5, %v12154_v58  ;;  %v7432_v22 = vpop.permute.xlu1 %7431  ;;  %v7427_v7 = vpop.permute.xlu0 %7426 }
 0x32c   : > { %v7433_v23 = vunpack.i.l.bf16 %v7432_v22  ;;  %v7429_v43 = vunpack.i.h.bf16 %v7427_v7  ;;  %v7428_v19 = vunpack.i.l.bf16 %v7427_v7  ;;  %v7434_v11 = vunpack.i.h.bf16 %v7432_v22  ;;  %v6014_v22 = vld [vmem:[%s7889_s24 + $0x1a2] sm:$0xff] }
 0x32e   : > { %v4894_v26 = vsel %vm938_vm3, %v4862_v59, %v7429_v43  ;;  %v4893_v58 = vsel %vm938_vm3, %v4861_v1, %v7428_v19  ;;  %v6012_v19 = vld [vmem:[%s7889_s24 + $0x192] sm:$0xff]  ;;  %v4831_v43 = vsel %vm872_vm1, %v5926_v56, %v7438_v60  ;;  %v6077_v60 = vld [vmem:[%s7889_s24 + $0x19c] sm:$0xff] }
 0x32f   : > { %v4925_v8 = vsel %vm971_vm4, %v4893_v58, %v7414_v10  ;;  %v4926_v54 = vsel %vm971_vm4, %v4894_v26, %v7433_v23  ;;  %v7675_v40 = vpack.i.bf16 %v6013_v18, %v6012_v19  ;;  %v6076_v58 = vld [vmem:[%s7889_s24 + $0x194] sm:$0xff] }
 0x330   : > { %7661 = vrot.lane.b32.xlu2 %v7660_v31, %s7829_s28  ;;  %v4957_v17 = vpack.c.bf16 %v4926_v54, %v4925_v8  ;;  %v12156_v8 = vld [vmem:[#allocation42_spill] sm:$0xff]  ;;  %v12157_v54 = vld [vmem:[#allocation28_spill] sm:$0xff] }
 0x331   : > { %5908 = vmatmul.msk.bf16.gmra.mxu3 %vm1855_vm5, %v12155_v15  ;;  %v12158_v56 = vpack.c.bf16 %v12156_v8, %v12157_v54  ;;  %v6045_v19 = vld [vmem:[%s7889_s24 + $0x19b] sm:$0xff] }
 0x332   : > { %7656 = vrot.lane.b32.xlu1 %v7655_v36, %s7828_s27  ;;  %7651 = vrot.lane.b32.xlu0 %v7650_v30, %s7827_s26  ;;  %v10956_v20 = vpop.permute.xlu2 %7496 }
 0x333   : > { %6091 = vmatmul.msk.bf16.vlgmr.msrb.gmra.mxu0 %vm1855_vm5, %v4957_v17  ;;  %v7447_v7 = vpop.permute.xlu1 %7446  ;;  %v7442_v23 = vpop.permute.xlu0 %7441  ;;  %v6044_v17 = vld [vmem:[%s7889_s24 + $0x193] sm:$0xff] }
 0x334   : > { %v7444_v36 = vunpack.i.h.bf16 %v7442_v23  ;;  %v7443_v10 = vunpack.i.l.bf16 %v7442_v23  ;;  %v7449_v1 = vunpack.i.h.bf16 %v7447_v7  ;;  %v7448_v59 = vunpack.i.l.bf16 %v7447_v7 }
 0x335   : > { %v7680_v7 = vpack.i.bf16 %v6045_v19, %v6044_v17 }
 0x336   : > { %v4864_v30 = vsel %vm905_vm2, %v4832_v62, %v7444_v36  ;;  %v4863_v26 = vsel %vm905_vm2, %v4831_v43, %v7443_v10  ;;  %v7685_v62 = vpack.i.bf16 %v6077_v60, %v6076_v58 }
 0x337   : > { %v4895_v18 = vsel %vm938_vm3, %v4863_v26, %v7448_v59  ;;  %v4896_v15 = vsel %vm938_vm3, %v4864_v30, %v7449_v1  ;;  %v6015_v59 = vld [vmem:[%s7889_s24 + $0x1aa] sm:$0xff]  ;;  %v5982_v30 = vld [vmem:[%s7889_s24 + $0x1a1] sm:$0xff] }
 0x338   : > { %7676 = vrot.lane.b32.xlu2 %v7675_v40, %s7827_s26  ;;  %v4927_v23 = vsel %vm971_vm4, %v4895_v18, %v7434_v11  ;;  %v4928_v43 = vsel %vm971_vm4, %v4896_v15, %v7453_v5  ;;  %v5929_v40 = vld [vmem:[%s7889_s24 + $0xd0] sm:$0xff]  ;;  %v5928_v5 = vld [vmem:[%s7889_s24 + $0xc8] sm:$0xff]  ;;  %v7700_v60 = vpack.i.bf16 %v6015_v59, %v6014_v22  ;;  %v7468_v18 = vunpack.i.l.bf16 %v10904_v27 }
 0x339   : > { %v4958_v10 = vpack.c.bf16 %v4928_v43, %v4927_v23  ;;  %v6078_v43 = vld [vmem:[%s7889_s24 + $0x1a4] sm:$0xff] }
 0x33a   : > { %7671 = vrot.lane.b32.xlu1 %v7670_v21, %s7826_s25  ;;  %7666 = vrot.lane.b32.xlu0 %v10908_v2, %s7829_s28  ;;  %v10974_v34 = vpop.permute.xlu2 %7511 }
 0x33b   : > { %5735 = vmatmul.msk.bf16.gmra.mxu2 %vm1855_vm5, %v12158_v56  ;;  %v7462_v63 = vpop.permute.xlu1 %7461 }
 0x33c   : > { %v7457_v2 = vpop.permute.xlu0 %7456  ;;  %v7464_v26 = vunpack.i.h.bf16 %v7462_v63  ;;  %v7463_v56 = vunpack.i.l.bf16 %v7462_v63  ;;  %v12159_v63 = vld [vmem:[#allocation6_spill] sm:$0xff] }
 0x33d   : > { %v7459_v36 = vunpack.i.h.bf16 %v7457_v2  ;;  %v7458_v21 = vunpack.i.l.bf16 %v7457_v2  ;;  %v12160_v2 = vld [vmem:[#allocation78_spill] sm:$0xff] }
 0x33f   : > { %v4834_v54 = vsel %vm872_vm1, %v5929_v40, %v7459_v36  ;;  %v4833_v17 = vsel %vm872_vm1, %v5928_v5, %v7458_v21  ;;  %v6079_v36 = vld [vmem:[%s7889_s24 + $0x1ac] sm:$0xff]  ;;  %v7454_v21 = vunpack.i.h.bf16 %v10870_v55 }
 0x340   : > { %7691 = vrot.lane.b32.xlu2 %v7660_v31, %s7829_s28  ;;  %v5983_v31 = vld [vmem:[%s7889_s24 + $0x1a9] sm:$0xff]  ;;  %v4866_v19 = vsel %vm905_vm2, %v4834_v54, %v7464_v26  ;;  %v4865_v15 = vsel %vm905_vm2, %v4833_v17, %v7463_v56  ;;  %v7710_v59 = vpack.i.bf16 %v6079_v36, %v6078_v43  ;;  %v11024_v26 = vpop.f32.mrf.mxu3 }
 0x341   : > { %5909 = vmatmul.msk.bf16.gmra.mxu3 %vm1855_vm5, %v3956_v6  ;;  %v7695_v25 = vpack.i.bf16 %v5983_v31, %v5982_v30  ;;  %v7469_v6 = vunpack.i.h.bf16 %v10904_v27  ;;  %v4897_v22 = vsel %vm938_vm3, %v4865_v15, %v7468_v18  ;;  %v6017_v17 = vld [vmem:[%s7889_s24 + $0x1c2] sm:$0xff] }
 0x342   : > { %7686 = vrot.lane.b32.xlu1 %v7685_v62, %s7829_s28  ;;  %7681 = vrot.lane.b32.xlu0 %v7680_v7, %s7828_s27  ;;  %v10993_v1 = vpop.permute.xlu2 %7526  ;;  %v12161_v7 = vpack.c.bf16 %v12159_v63, %v12160_v2  ;;  %v4929_v31 = vsel %vm971_vm4, %v4897_v22, %v7454_v21 }
 0x343   : > { %6092 = vmatmul.msk.bf16.gmra.mxu0 %vm1855_vm5, %v4958_v10  ;;  %v7477_v58 = vpop.permute.xlu1 %7476  ;;  %v4898_v27 = vsel %vm938_vm3, %v4866_v19, %v7469_v6  ;;  %v6016_v6 = vld [vmem:[%s7889_s24 + $0x1ba] sm:$0xff]  ;;  %v7483_v19 = vunpack.i.l.bf16 %v10932_v32 }
 0x344   : > { %v7472_v8 = vpop.permute.xlu0 %7471  ;;  %v7479_v5 = vunpack.i.h.bf16 %v7477_v58  ;;  %v7478_v54 = vunpack.i.l.bf16 %v7477_v58  ;;  %v7484_v58 = vunpack.i.h.bf16 %v10932_v32  ;;  %v7725_v63 = vpack.i.bf16 %v6017_v17, %v6016_v6 }
 0x345   : > { %v7473_v11 = vunpack.i.l.bf16 %v7472_v8 }
 0x347   : > { %v4930_v30 = vsel %vm971_vm4, %v4898_v27, %v7473_v11 }
 0x348   : > { %v4959_v56 = vpack.c.bf16 %v4930_v30, %v4929_v31  ;;  %v11047_v32 = vpop.f32.mrf.mxu3 }
 0x34a   : > { %7701 = vrot.lane.b32.xlu1 %v7700_v60, %s7827_s26  ;;  %7696 = vrot.lane.b32.xlu0 %v7695_v25, %s7826_s25  ;;  %v11013_v23 = vpop.permute.xlu2 %7541  ;;  %v5930_v60 = vld [vmem:[%s7889_s24 + $0xd8] sm:$0xff]  ;;  %v5931_v25 = vld [vmem:[%s7889_s24 + $0xe0] sm:$0xff] }
 0x34b   : > { %5736 = vmatmul.msk.bf16.gmra.mxu2 %vm1855_vm5, %v12161_v7  ;;  %v11018_v10 = vpop.permute.xlu1 %7491  ;;  %v4835_v11 = vsel %vm872_vm1, %v5930_v60, %v7478_v54  ;;  %v7474_v7 = vunpack.i.h.bf16 %v7472_v8  ;;  %v7499_v8 = vunpack.i.h.bf16 %v10956_v20  ;;  %v5933_v60 = vld [vmem:[%s7889_s24 + $0xf8] sm:$0xff] }
 0x34c   : > { %v7487_v40 = vpop.permute.xlu0 %7486  ;;  %v7493_v43 = vunpack.i.l.bf16 %v11018_v10 }
 0x34d   : > { %v7489_v29 = vunpack.i.h.bf16 %v7487_v40  ;;  %v7488_v44 = vunpack.i.l.bf16 %v7487_v40 }
 0x351   : > { %5910 = vmatmul.msk.bf16.gmra.mxu3 %vm1855_vm5, %v3957_v4  ;;  %v4867_v4 = vsel %vm905_vm2, %v4835_v11, %v7483_v19  ;;  %v4838_v11 = vsel %vm872_vm1, %v5933_v60, %v7499_v8 }
 0x352   : > { %7716 = vrot.lane.b32.xlu1 %v7685_v62, %s7829_s28  ;;  %7711 = vrot.lane.b32.xlu0 %v7710_v59, %s7829_s28  ;;  %v11035_v55 = vpop.permute.xlu2 %7556  ;;  %v4836_v62 = vsel %vm872_vm1, %v5931_v25, %v7479_v5  ;;  %v4899_v27 = vsel %vm938_vm3, %v4867_v4, %v7488_v44  ;;  %v7498_v5 = vunpack.i.l.bf16 %v10956_v20  ;;  %v12162_v25 = vpack.c.bf16 %v10702_v16, %v10698_v14  ;;  %v11071_v20 = vpop.f32.mrf.mxu3 }
 0x353   : > { %6093 = vmatmul.msk.bf16.gmra.mxu0 %vm1855_vm5, %v4959_v56  ;;  %v4868_v2 = vsel %vm905_vm2, %v4836_v62, %v7484_v58  ;;  %v4931_v30 = vsel %vm971_vm4, %v4899_v27, %v7474_v7  ;;  %v5932_v56 = vld [vmem:[%s7889_s24 + $0xf0] sm:$0xff]  ;;  %v7494_v44 = vunpack.i.h.bf16 %v11018_v10 }
 0x354   : > { %v7507_v18 = vpop.permute.xlu1 %7506  ;;  %v7502_v15 = vpop.permute.xlu0 %7501  ;;  %v4900_v36 = vsel %vm938_vm3, %v4868_v2, %v7489_v29 }
 0x355   : > { %v4932_v31 = vsel %vm971_vm4, %v4900_v36, %v7493_v43  ;;  %v7504_v17 = vunpack.i.h.bf16 %v7502_v15  ;;  %v7503_v58 = vunpack.i.l.bf16 %v7502_v15  ;;  %v7508_v14 = vunpack.i.l.bf16 %v7507_v18 }
 0x356   : > { %v4960_v54 = vpack.c.bf16 %v4932_v31, %v4931_v30  ;;  %v7513_v15 = vunpack.i.l.bf16 %v10974_v34 }
 0x357   : > { %v4870_v16 = vsel %vm905_vm2, %v4838_v11, %v7504_v17 }
 0x35a   : > { %7726 = vrot.lane.b32.xlu0 %v7725_v63, %s7827_s26  ;;  %v11051_v22 = vpop.permute.xlu2 %7571  ;;  %v7509_v63 = vunpack.i.h.bf16 %v7507_v18  ;;  %v11089_v30 = vpop.f32.mrf.mxu3 }
 0x35c   : > { %v7522_v40 = vpop.permute.xlu1 %7521  ;;  %v7517_v21 = vpop.permute.xlu0 %7516  ;;  %v4902_v7 = vsel %vm938_vm3, %v4870_v16, %v7509_v63 }
 0x35d   : > { %v4934_v27 = vsel %vm971_vm4, %v4902_v7, %v7513_v15  ;;  %v7519_v31 = vunpack.i.h.bf16 %v7517_v21  ;;  %v7518_v10 = vunpack.i.l.bf16 %v7517_v21  ;;  %v7523_v17 = vunpack.i.l.bf16 %v7522_v40  ;;  %v6048_v21 = vld [vmem:[%s7889_s24 + $0x1bb] sm:$0xff] }
 0x35e   : > { %v7529_v15 = vunpack.i.h.bf16 %v10993_v1 }
 0x361   : > { %5911 = vmatmul.msk.bf16.gmra.mxu3 %vm1855_vm5, %v12162_v25  ;;  %v7524_v25 = vunpack.i.h.bf16 %v7522_v40 }
 0x362   : > { %7741 = vrot.lane.b32.xlu0 %v7710_v59, %s7829_s28  ;;  %v11065_v6 = vpop.permute.xlu2 %7586  ;;  %v4837_v59 = vsel %vm872_vm1, %v5932_v56, %v7498_v5  ;;  %v5934_v5 = vld [vmem:[%s7889_s24 + $0x100] sm:$0xff]  ;;  %v12163_v56 = vpack.c.bf16 %v10881_v39, %v10877_v52 }
 0x363   : > { %6094 = vmatmul.msk.bf16.gmra.mxu0 %vm1855_vm5, %v4960_v54  ;;  %v4869_v29 = vsel %vm905_vm2, %v4837_v59, %v7503_v58  ;;  %v5935_v54 = vld [vmem:[%s7889_s24 + $0x108] sm:$0xff] }
 0x364   : > { %v11067_v19 = vpop.permute.xlu1 %7536  ;;  %v11069_v62 = vpop.permute.xlu0 %7531  ;;  %v4901_v2 = vsel %vm938_vm3, %v4869_v29, %v7508_v14  ;;  %v6049_v14 = vld [vmem:[%s7889_s24 + $0x1c3] sm:$0xff]  ;;  %v4840_v16 = vsel %vm872_vm1, %v5935_v54, %v7519_v31  ;;  %v4839_v29 = vsel %vm872_vm1, %v5934_v5, %v7518_v10 }
 0x365   : > { %v4933_v18 = vsel %vm971_vm4, %v4901_v2, %v7494_v44  ;;  %v7730_v40 = vpack.i.bf16 %v6049_v14, %v6048_v21  ;;  %v7528_v44 = vunpack.i.l.bf16 %v10993_v1  ;;  %v4872_v7 = vsel %vm905_vm2, %v4840_v16, %v7524_v25  ;;  %v6046_v54 = vld [vmem:[%s7889_s24 + $0x1a3] sm:$0xff]  ;;  %v5987_v25 = vld [vmem:[%s7889_s24 + $0x1d1] sm:$0xff] }
 0x366   : > { %v4961_v8 = vpack.c.bf16 %v4934_v27, %v4933_v18  ;;  %v7514_v18 = vunpack.i.h.bf16 %v10974_v34  ;;  %v7533_v27 = vunpack.i.l.bf16 %v11069_v62  ;;  %v4904_v10 = vsel %vm938_vm3, %v4872_v7, %v7529_v15 }
 0x367   : > { %7731 = vrot.lane.b32.xlu1 %v7730_v40, %s7828_s27  ;;  %v7539_v21 = vunpack.i.h.bf16 %v11067_v19  ;;  %v7538_v14 = vunpack.i.l.bf16 %v11067_v19  ;;  %v5937_v40 = vld [vmem:[%s7889_s24 + $0x120] sm:$0xff]  ;;  %v7544_v19 = vunpack.i.h.bf16 %v11013_v23 }
 0x36a   : > { %v11079_v4 = vpop.permute.xlu2 %7601 }
 0x36c   : > { %v11083_v43 = vpop.permute.xlu1 %7551  ;;  %v11085_v36 = vpop.permute.xlu0 %7546 }
 0x371   : > { %5912 = vmatmul.msk.bf16.gmra.mxu3 %vm1855_vm5, %v12163_v56  ;;  %v6047_v56 = vld [vmem:[%s7889_s24 + $0x1ab] sm:$0xff] }
 0x372   : > { %v7617_v60 = vpop.permute.xlu2 %7616 }
 0x373   : > { %6095 = vmatmul.msk.bf16.gmra.mxu0 %vm1855_vm5, %v4961_v8  ;;  %v7619_v58 = vunpack.i.h.bf16 %v7617_v60  ;;  %v7618_v11 = vunpack.i.l.bf16 %v7617_v60  ;;  %v5986_v60 = vld [vmem:[%s7889_s24 + $0x1c9] sm:$0xff] }
 0x374   : > { %v11098_v59 = vpop.permute.xlu1 %7566  ;;  %v11100_v63 = vpop.permute.xlu0 %7561 }
 0x375   : > { %v11108_v52 = vsel %vm971_vm4, %v10718_v28, %v7618_v11  ;;  %v11112_v39 = vsel %vm971_vm4, %v10714_v35, %v7619_v58  ;;  %v4871_v28 = vsel %vm905_vm2, %v4839_v29, %v7523_v17  ;;  %v11121_v35 = vpop.f32.mrf.mxu3  ;;  %v4936_v17 = vsel %vm971_vm4, %v4904_v10, %v7533_v27  ;;  %v5936_v29 = vld [vmem:[%s7889_s24 + $0x118] sm:$0xff] }
 0x376   : > { %v3963_v2 = vpack.c.bf16 %v11112_v39, %v11108_v52  ;;  %v4903_v1 = vsel %vm938_vm3, %v4871_v28, %v7528_v44  ;;  %v7705_v58 = vpack.i.bf16 %v6047_v56, %v6046_v54  ;;  %v7745_v11 = vpack.i.bf16 %v5987_v25, %v5986_v60  ;;  %v6051_v10 = vld [vmem:[%s7889_s24 + $0x1d3] sm:$0xff]  ;;  %v5985_v60 = vld [vmem:[%s7889_s24 + $0x1c1] sm:$0xff] }
 0x377   : > { %v4935_v34 = vsel %vm971_vm4, %v4903_v1, %v7514_v18  ;;  %v12164_v44 = vpack.c.bf16 %v10891_v51, %v10885_v57  ;;  %v7543_v28 = vunpack.i.l.bf16 %v11013_v23  ;;  %v6050_v1 = vld [vmem:[%s7889_s24 + $0x1cb] sm:$0xff]  ;;  %v4842_v57 = vsel %vm872_vm1, %v5937_v40, %v7539_v21  ;;  %v5984_v56 = vld [vmem:[%s7889_s24 + $0x1b9] sm:$0xff] }
 0x378   : > { %7706 = vrot.lane.b32.xlu2 %v7705_v58, %s7828_s27  ;;  %7746 = vrot.lane.b32.xlu1 %v7745_v11, %s7826_s25  ;;  %v4962_v16 = vpack.c.bf16 %v4936_v17, %v4935_v34  ;;  %v4841_v51 = vsel %vm872_vm1, %v5936_v29, %v7538_v14  ;;  %v7755_v25 = vpack.i.bf16 %v6051_v10, %v6050_v1  ;;  %v6082_v17 = vld [vmem:[%s7889_s24 + $0x1cc] sm:$0xff]  ;;  %v6083_v58 = vld [vmem:[%s7889_s24 + $0x1d4] sm:$0xff]  ;;  %v7549_v23 = vunpack.i.h.bf16 %v11085_v36 }
 0x379   : > { %v7720_v34 = vpack.i.bf16 %v5985_v60, %v5984_v56  ;;  %v7548_v11 = vunpack.i.l.bf16 %v11085_v36  ;;  %v4873_v21 = vsel %vm905_vm2, %v4841_v51, %v7543_v28  ;;  %v4874_v14 = vsel %vm905_vm2, %v4842_v57, %v7544_v19  ;;  %v6080_v57 = vld [vmem:[%s7889_s24 + $0x1bc] sm:$0xff]  ;;  %v6081_v51 = vld [vmem:[%s7889_s24 + $0x1c4] sm:$0xff] }
 0x37a   : > { %v11125_v31 = vpop.permute.xlu2 %7631  ;;  %7756 = vrot.lane.b32.xlu0 %v7755_v25, %s7828_s27  ;;  %v7760_v40 = vpack.i.bf16 %v6083_v58, %v6082_v17  ;;  %v7534_v36 = vunpack.i.h.bf16 %v11069_v62  ;;  %v7735_v60 = vpack.i.bf16 %v6081_v51, %v6080_v57  ;;  %v7559_v25 = vunpack.i.h.bf16 %v11035_v55  ;;  %v5938_v58 = vld [vmem:[%s7889_s24 + $0x128] sm:$0xff] }
 0x37b   : > { %v4905_v1 = vsel %vm938_vm3, %v4873_v21, %v7548_v11  ;;  %v12165_v11 = vpack.c.bf16 %v10748_v42, %v10744_v61 }
 0x37c   : > { %v11129_v8 = vpop.permute.xlu1 %7581  ;;  %v11131_v5 = vpop.permute.xlu0 %7576  ;;  %v4937_v62 = vsel %vm971_vm4, %v4905_v1, %v7534_v36  ;;  %v7568_v1 = vunpack.i.l.bf16 %v11098_v59 }
 0x37d   : > { %v11145_v15 = vpop.f32.mrf.mxu3 }
 0x380   : > { %7721 = vrot.lane.b32.xlu2 %v7720_v34, %s7826_s25  ;;  %7761 = vrot.lane.b32.xlu1 %v7760_v40, %s7829_s28  ;;  %v7558_v34 = vunpack.i.l.bf16 %v11035_v55  ;;  %v7563_v40 = vunpack.i.l.bf16 %v11100_v63  ;;  %s5341_s25 = sshll.u32 %s7808_s12, 3 }
 0x381   : > { %5913 = vmatmul.msk.bf16.gmra.mxu3 %vm1855_vm5, %v12164_v44  ;;  %v7553_v44 = vunpack.i.l.bf16 %v11083_v43  ;;  %p188_p6 = scmp.lt.s32.totalorder %s5341_s25, 31 }
 0x382   : > { %v11152_v7 = vpop.permute.xlu2 %7646  ;;  %v4843_v61 = vsel %vm872_vm1, %v5938_v58, %v7558_v34  ;;  %v6018_v34 = vld [vmem:[%s7889_s24 + $0x1ca] sm:$0xff] }
 0x383   : > { %6096 = vmatmul.msk.bf16.gmra.mxu0 %vm1855_vm5, %v4962_v16  ;;  %v4875_v51 = vsel %vm905_vm2, %v4843_v61, %v7563_v40  ;;  %s12201_s25 = smov (!%p188_p6, %s5341_s25), 31 }
 0x384   : > { %v11156_v18 = vpop.permute.xlu1 %7596  ;;  %v11158_v27 = vpop.permute.xlu0 %7591  ;;  %s5342_s12 = sshll.u32 %s12201_s25, 2 }
 0x385   : > { %v7594_v54 = vunpack.i.h.bf16 %v11158_v27 }
 0x387   : > { %v11173_v16 = vsel %vm971_vm4, %v10492_v46, %v7594_v54  ;;  %v4906_v46 = vsel %vm938_vm3, %v4874_v14, %v7549_v23  ;;  %v11194_v54 = vpop.f32.mrf.mxu3  ;;  %v5939_v23 = vld [vmem:[%s7889_s24 + $0x130] sm:$0xff]  ;;  %v7564_v14 = vunpack.i.h.bf16 %v11100_v63  ;;  %v7573_v63 = vunpack.i.l.bf16 %v11051_v22 }
 0x388   : > { %v3962_v29 = vpack.c.bf16 %v11173_v16, %v10912_v24  ;;  %v4938_v56 = vsel %vm971_vm4, %v4906_v46, %v7553_v44  ;;  %7736 = vrot.lane.b32.xlu2 %v7735_v60, %s7829_s28  ;;  %v4844_v44 = vsel %vm872_vm1, %v5939_v23, %v7559_v25  ;;  %v7569_v46 = vunpack.i.h.bf16 %v11098_v59 }
 0x389   : > { %v4963_v17 = vpack.c.bf16 %v4938_v56, %v4937_v62  ;;  %v4876_v57 = vsel %vm905_vm2, %v4844_v44, %v7564_v14  ;;  %v7554_v62 = vunpack.i.h.bf16 %v11083_v43  ;;  %v4907_v60 = vsel %vm938_vm3, %v4875_v51, %v7568_v1 }
 0x38a   : > { %v11185_v28 = vpop.permute.xlu2 %7661  ;;  %v4908_v25 = vsel %vm938_vm3, %v4876_v57, %v7569_v46  ;;  %v7589_v24 = vunpack.i.h.bf16 %v11065_v6  ;;  %v7588_v16 = vunpack.i.l.bf16 %v11065_v6 }
 0x38b   : > { %v4939_v1 = vsel %vm971_vm4, %v4907_v60, %v7554_v62  ;;  %v4940_v57 = vsel %vm971_vm4, %v4908_v25, %v7573_v63  ;;  %v7579_v62 = vunpack.i.h.bf16 %v11131_v5  ;;  %v7578_v63 = vunpack.i.l.bf16 %v11131_v5  ;;  %v5940_v25 = vld [vmem:[%s7889_s24 + $0x140] sm:$0xff] }
 0x38c   : > { %v11188_v19 = vpop.permute.xlu1 %7611  ;;  %v11190_v10 = vpop.permute.xlu0 %7606  ;;  %v4964_v60 = vpack.c.bf16 %v4940_v57, %v4939_v1 }
 0x38d   : > { %v7609_v39 = vunpack.i.h.bf16 %v11190_v10 }
 0x391   : > { %5914 = vmatmul.msk.bf16.gmra.mxu3 %vm1855_vm5, %v12165_v11 }
 0x392   : > { %v11208_v21 = vpop.permute.xlu2 %7676 }
 0x393   : > { %6097 = vmatmul.msk.bf16.gmra.mxu0 %vm1855_vm5, %v4963_v17  ;;  %v6019_v17 = vld [vmem:[%s7889_s24 + $0x1d2] sm:$0xff] }
 0x394   : > { %v11212_v55 = vpop.permute.xlu1 %7626  ;;  %v11214_v36 = vpop.permute.xlu0 %7621  ;;  %v7750_v14 = vpack.i.bf16 %v6019_v17, %v6018_v34  ;;  %v5941_v34 = vld [vmem:[%s7889_s24 + $0x148] sm:$0xff] }
 0x395   : > { %v11218_v42 = vpop.f32.mrf.mxu3  ;;  %v4846_v5 = vsel %vm872_vm1, %v5941_v34, %v7579_v62 }
 0x396   : > { %7751 = vrot.lane.b32.xlu2 %v7750_v14, %s7827_s26  ;;  %s5343_s26 = sshll.u32 %s12199_s13, 7 }
 0x397   : > { %s192_s27 = sadd.s32 %s5343_s26, %s5342_s12 }
 0x398   : > { %s5344_s13 = sshll.u32 %s192_s27, 3 }
 0x399   : > { %s11316_s10 = scalar_lea.vmem %s11722_s3, %s5344_s13 }
 0x39a   : > { %v7692_v56 = vpop.permute.xlu2 %7691 }
 0x39b   : > { %v7694_v58 = vunpack.i.h.bf16 %v7692_v56  ;;  %v7693_v23 = vunpack.i.l.bf16 %v7692_v56 }
 0x39c   : > { %v7642_v11 = vpop.permute.xlu1 %7641  ;;  %v11230_v59 = vpop.permute.xlu0 %7636 }
 0x39d   : > { %v7644_v44 = vunpack.i.h.bf16 %v7642_v11  ;;  %v7643_v40 = vunpack.i.l.bf16 %v7642_v11  ;;  %v11234_v43 = vsel %vm971_vm4, %v10768_v53, %v7693_v23  ;;  %v11238_v61 = vsel %vm971_vm4, %v10762_v33, %v7694_v58  ;;  %v11240_v46 = vpop.f32.mrf.mxu3 }
 0x39e   : > { %v3966_v51 = vpack.c.bf16 %v11238_v61, %v11234_v43  ;;  %v4845_v23 = vsel %vm872_vm1, %v5940_v25, %v7578_v63 }
 0x39f   : > { %v11250_v53 = vsel %vm971_vm4, %v10706_v48, %v7643_v40  ;;  %v11254_v33 = vsel %vm971_vm4, %v10710_v50, %v7644_v44  ;;  %v7584_v48 = vunpack.i.h.bf16 %v11129_v8  ;;  %v7583_v50 = vunpack.i.l.bf16 %v11129_v8 }
 0x3a0   : > { %v3964_v56 = vpack.c.bf16 %v11254_v33, %v11250_v53  ;;  %v7574_v8 = vunpack.i.h.bf16 %v11051_v22  ;;  %v7593_v44 = vunpack.i.l.bf16 %v11158_v27  ;;  %v12166_v22 = vld [vmem:[#allocation33_spill] sm:$0xff]  ;;  %v7634_v33 = vunpack.i.h.bf16 %v11125_v31 }
 0x3a1   : > { %5915 = vmatmul.msk.bf16.gmra.mxu3 %vm1855_vm5, %v3962_v29  ;;  %v4878_v29 = vsel %vm905_vm2, %v4846_v5, %v7584_v48  ;;  %v4877_v14 = vsel %vm905_vm2, %v4845_v23, %v7583_v50  ;;  %v4122_v27 = vadd.f32 %v11218_v42, %v12166_v22  ;;  %v12167_v48 = vld [vmem:[#allocation61_spill] sm:$0xff]  ;;  %v7599_v42 = vunpack.i.h.bf16 %v11156_v18 }
 0x3a2   : > { %v4909_v40 = vsel %vm938_vm3, %v4877_v14, %v7588_v16  ;;  %v4910_v1 = vsel %vm938_vm3, %v4878_v29, %v7589_v24  ;;  %v12168_v5 = vld [vmem:[#allocation37_spill] sm:$0xff]  ;;  %v11305_v24 = vld [vmem:[%s11721_s2] ss:$0 sm:$0xff]  ;;  %v7598_v14 = vunpack.i.l.bf16 %v11156_v18  ;;  %v7604_v18 = vunpack.i.h.bf16 %v11079_v4 }
 0x3a3   : > { %6098 = vmatmul.msk.bf16.gmra.mxu0 %vm1855_vm5, %v4964_v60  ;;  %v4941_v60 = vsel %vm971_vm4, %v4909_v40, %v7574_v8  ;;  %v4942_v25 = vsel %vm971_vm4, %v4910_v1, %v7593_v44  ;;  %v5942_v40 = vld [vmem:[%s7889_s24 + $0x150] sm:$0xff]  ;;  %v5943_v1 = vld [vmem:[%s7889_s24 + $0x158] sm:$0xff] }
 0x3a4   : > { %v11269_v17 = vpop.permute.xlu1 %7656  ;;  %v11271_v58 = vpop.permute.xlu0 %7651  ;;  %v4965_v8 = vpack.c.bf16 %v4942_v25, %v4941_v60  ;;  %v7603_v60 = vunpack.i.l.bf16 %v11079_v4 }
 0x3a5   : > { %v11275_v11 = vpop.f32.mrf.mxu3 }
 0x3ac   : > { %v11286_v57 = vpop.permute.xlu1 %7671  ;;  %v7667_v62 = vpop.permute.xlu0 %7666 }
 0x3ad   : > { %v7669_v63 = vunpack.i.h.bf16 %v7667_v62  ;;  %v7668_v6 = vunpack.i.l.bf16 %v7667_v62  ;;  %v11290_v34 = vpop.f32.mrf.mxu3  ;;  %v12169_v62 = vld [vmem:[#allocation34_spill] sm:$0xff] }
 0x3af   : > { %v11296_v50 = vsel %vm971_vm4, %v12167_v48, %v7668_v6  ;;  %v11300_v23 = vsel %vm971_vm4, %v12168_v5, %v7669_v63  ;;  %v12170_v63 = vld [vmem:[#allocation31_spill] sm:$0xff]  ;;  %v12171_v48 = vld [vmem:[#allocation49_spill] sm:$0xff] }
 0x3b0   : > { %v3965_v16 = vpack.c.bf16 %v11300_v23, %v11296_v50  ;;  %v5046_v29 = vpop.f32.mrf.mxu0  ;;  %v2069_v6 = vadd.f32 %v12170_v63, %v12169_v62  ;;  %v7658_v23 = vunpack.i.l.bf16 %v11269_v17 }
 0x3b1   : > { %v5126_v44 = vadd.f32 %v5046_v29, %v4122_v27  ;;  %5916 = vmatmul.msk.bf16.gmra.mxu3 %vm1855_vm5, %v3963_v2  ;;  %v4848_v29 = vsel %vm872_vm1, %v5943_v1, %v7599_v42  ;;  %v7608_v2 = vunpack.i.l.bf16 %v11190_v10  ;;  %v11348_v1 = vpop.f32.mrf.mxu2 }
 0x3b2   : > { %v3119_v5 = vadd.f32 %v12171_v48, %v2069_v6  ;;  %v4880_v62 = vsel %vm905_vm2, %v4848_v29, %v7604_v18  ;;  %v11344_v6 = vpop.f32.mrf.mxu1  ;;  %v4124_v29 = vadd.f32 %v11275_v11, %v10620_v12  ;;  %v7629_v12 = vunpack.i.h.bf16 %v11212_v55 }
 0x3b3   : > { %v5162_v22 = vadd.f32 %v11305_v24, %v5126_v44  ;;  %6099 = vmatmul.msk.bf16.gmra.mxu0 %vm1855_vm5, %v4965_v8  ;;  %v4847_v44 = vsel %vm872_vm1, %v5942_v40, %v7598_v14  ;;  %v7614_v14 = vunpack.i.h.bf16 %v11188_v19  ;;  %v7613_v40 = vunpack.i.l.bf16 %v11188_v19 }
 0x3b4   : > { %v11328_v25 = vpop.permute.xlu1 %7686  ;;  %v11330_v27 = vpop.permute.xlu0 %7681  ;;  %v4123_v4 = vadd.f32 %v11240_v46, %v3119_v5  ;;  %v4879_v8 = vsel %vm905_vm2, %v4847_v44, %v7603_v60  ;;  %v7628_v11 = vunpack.i.l.bf16 %v11212_v55  ;;  %v7633_v55 = vunpack.i.l.bf16 %v11125_v31 }
 0x3b5   : > { %5195 = vst.msk [vmem:[%s11316_s10] sm:$0xff] %vm5194_vm6, %v5162_v22  ;;  %v11337_v52 = vpop.f32.mrf.mxu3  ;;  %v4912_v22 = vsel %vm938_vm3, %v4880_v62, %v7609_v39  ;;  %v4911_v10 = vsel %vm938_vm3, %v4879_v8, %v7608_v2  ;;  %v7624_v39 = vunpack.i.h.bf16 %v11214_v36  ;;  %v7623_v2 = vunpack.i.l.bf16 %v11214_v36  ;;  %v5944_v62 = vld [vmem:[%s7889_s24 + $0x168] sm:$0xff] }
 0x3b6   : > { %v4943_v19 = vsel %vm971_vm4, %v4911_v10, %v7613_v40  ;;  %v4944_v5 = vsel %vm971_vm4, %v4912_v22, %v7614_v14  ;;  %v7684_v43 = vunpack.i.h.bf16 %v11330_v27  ;;  %v7683_v61 = vunpack.i.l.bf16 %v11330_v27 }
 0x3b7   : > { %v4966_v8 = vpack.c.bf16 %v4944_v5, %v4943_v19  ;;  %v4849_v22 = vsel %vm872_vm1, %v5944_v62, %v7623_v2  ;;  %v4125_v5 = vadd.f32 %v11290_v34, %v10665_v47  ;;  %v7639_v62 = vunpack.i.h.bf16 %v11230_v59 }
 0x3b8   : > { %v5048_v63 = vpop.f32.mrf.mxu0  ;;  %v4881_v2 = vsel %vm905_vm2, %v4849_v22, %v7628_v11  ;;  %v7638_v47 = vunpack.i.l.bf16 %v11230_v59  ;;  %v4126_v59 = vadd.f32 %v11337_v52, %v10722_v45  ;;  %v7654_v45 = vunpack.i.h.bf16 %v11271_v58 }
 0x3b9   : > { %v5127_v42 = vadd.f32 %v5048_v63, %v4123_v4  ;;  %v5945_v63 = vld [vmem:[%s7889_s24 + $0x170] sm:$0xff]  ;;  %v11385_v53 = vpop.f32.mrf.mxu2  ;;  %v7653_v52 = vunpack.i.l.bf16 %v11271_v58 }
 0x3ba   : > { %v4850_v40 = vsel %vm872_vm1, %v5945_v63, %v7624_v39 }
 0x3bb   : > { %v5163_v46 = vadd.f32 %v11305_v24, %v5127_v42  ;;  %v11369_v42 = vpop.f32.mrf.mxu1  ;;  %v4882_v39 = vsel %vm905_vm2, %v4850_v40, %v7629_v12 }
 0x3bc   : > { %v11353_v60 = vpop.permute.xlu1 %7701  ;;  %v11355_v18 = vpop.permute.xlu0 %7696  ;;  %v4914_v34 = vsel %vm938_vm3, %v4882_v39, %v7634_v33  ;;  %v5947_v39 = vld [vmem:[%s7889_s24 + $0x180] sm:$0xff] }
 0x3bd   : > { %5196 = vst.msk [vmem:[%s11316_s10 + $0x8] sm:$0xff] %vm5194_vm6, %v5163_v46  ;;  %v11359_v48 = vpop.f32.mrf.mxu3  ;;  %v4946_v11 = vsel %vm971_vm4, %v4914_v34, %v7639_v62 }
 0x3c0   : > { %v5051_v44 = vpop.f32.mrf.mxu0 }
 0x3c1   : > { %v5128_v4 = vadd.f32 %v5051_v44, %v4124_v29  ;;  %5917 = vmatmul.msk.bf16.gmra.mxu3 %vm1855_vm5, %v3964_v56  ;;  %v11422_v40 = vpop.f32.mrf.mxu2 }
 0x3c3   : > { %v5164_v46 = vadd.f32 %v11305_v24, %v5128_v4  ;;  %6100 = vmatmul.msk.bf16.gmra.mxu0 %vm1855_vm5, %v4966_v8 }
 0x3c4   : > { %v7717_v36 = vpop.permute.xlu1 %7716  ;;  %v11379_v14 = vpop.permute.xlu0 %7711 }
 0x3c5   : > { %5197 = vst.msk [vmem:[%s11316_s10 + $0x10] sm:$0xff] %vm5194_vm6, %v5164_v46  ;;  %v7719_v10 = vunpack.i.h.bf16 %v7717_v36  ;;  %v7718_v19 = vunpack.i.l.bf16 %v7717_v36  ;;  %v11388_v56 = vpop.f32.mrf.mxu3  ;;  %v11414_v46 = vpop.f32.mrf.mxu1 }
 0x3c7   : > { %v11395_v29 = vsel %vm971_vm4, %v10754_v9, %v7718_v19  ;;  %v11399_v44 = vsel %vm971_vm4, %v10758_v13, %v7719_v10  ;;  %v4913_v9 = vsel %vm938_vm3, %v4881_v2, %v7633_v55  ;;  %v7649_v10 = vunpack.i.h.bf16 %v11152_v7 }
 0x3c8   : > { %v3967_v4 = vpack.c.bf16 %v11399_v44, %v11395_v29  ;;  %v5053_v8 = vpop.f32.mrf.mxu0  ;;  %v4945_v12 = vsel %vm971_vm4, %v4913_v9, %v7638_v47  ;;  %v7648_v19 = vunpack.i.l.bf16 %v11152_v7  ;;  %v7659_v9 = vunpack.i.h.bf16 %v11269_v17 }
 0x3c9   : > { %v5129_v31 = vadd.f32 %v5053_v8, %v4125_v5  ;;  %v4967_v33 = vpack.c.bf16 %v4946_v11, %v4945_v12  ;;  %v5946_v5 = vld [vmem:[%s7889_s24 + $0x178] sm:$0xff]  ;;  %v4852_v7 = vsel %vm872_vm1, %v5947_v39, %v7649_v10  ;;  %v4128_v39 = vadd.f32 %v11388_v56, %v10804_v38 }
 0x3ca   : > { %v4884_v12 = vsel %vm905_vm2, %v4852_v7, %v7654_v45  ;;  %v7673_v45 = vunpack.i.l.bf16 %v11286_v57  ;;  %v7679_v56 = vunpack.i.h.bf16 %v11208_v21 }
 0x3cb   : > { %v5165_v13 = vadd.f32 %v11305_v24, %v5129_v31  ;;  %v4851_v31 = vsel %vm872_vm1, %v5946_v5, %v7648_v19 }
 0x3cc   : > { %v11410_v63 = vpop.permute.xlu0 %7726  ;;  %v4883_v11 = vsel %vm905_vm2, %v4851_v31, %v7653_v52  ;;  %v5948_v31 = vld [vmem:[%s7889_s24 + $0x190] sm:$0xff] }
 0x3cd   : > { %5198 = vst.msk [vmem:[%s11316_s10 + $0x18] sm:$0xff] %vm5194_vm6, %v5165_v13  ;;  %v11418_v36 = vpop.f32.mrf.mxu3  ;;  %v11452_v13 = vpop.f32.mrf.mxu1  ;;  %v4915_v10 = vsel %vm938_vm3, %v4883_v11, %v7658_v23  ;;  %v4853_v23 = vsel %vm872_vm1, %v5948_v31, %v7673_v45  ;;  %v7698_v45 = vunpack.i.l.bf16 %v11355_v18  ;;  %v5951_v31 = vld [vmem:[%s7889_s24 + $0x1a8] sm:$0xff] }
 0x3d0   : > { %v5056_v22 = vpop.f32.mrf.mxu0 }
 0x3d1   : > { %v5130_v55 = vadd.f32 %v5056_v22, %v4126_v59  ;;  %5918 = vmatmul.msk.bf16.gmra.mxu3 %vm1855_vm5, %v3965_v16  ;;  %v4127_v16 = vadd.f32 %v11359_v48, %v10770_v41  ;;  %v11458_v41 = vpop.f32.mrf.mxu2  ;;  %v7663_v48 = vunpack.i.l.bf16 %v11185_v28 }
 0x3d3   : > { %v5166_v2 = vadd.f32 %v11305_v24, %v5130_v55  ;;  %6101 = vmatmul.msk.bf16.gmra.mxu0 %vm1855_vm5, %v4967_v33  ;;  %v4947_v55 = vsel %vm971_vm4, %v4915_v10, %v7663_v48  ;;  %v12172_v48 = vld [vmem:[#allocation10_spill] sm:$0xff] }
 0x3d4   : > { %v7742_v8 = vpop.permute.xlu0 %7741 }
 0x3d5   : > { %5199 = vst.msk [vmem:[%s11316_s10 + $0x20] sm:$0xff] %vm5194_vm6, %v5166_v2  ;;  %v7744_v62 = vunpack.i.h.bf16 %v7742_v8  ;;  %v7743_v47 = vunpack.i.l.bf16 %v7742_v8  ;;  %v4062_v50 = vpop.f32.mrf.mxu3  ;;  %v11475_v7 = vpop.f32.mrf.mxu1 }
 0x3d7   : > { %v11446_v58 = vsel %vm971_vm4, %v10594_v0, %v7743_v47  ;;  %v11450_v34 = vsel %vm971_vm4, %v10598_v3, %v7744_v62  ;;  %v7664_v0 = vunpack.i.h.bf16 %v11185_v28  ;;  %v4916_v3 = vsel %vm938_vm3, %v4884_v12, %v7659_v9  ;;  %v5949_v62 = vld [vmem:[%s7889_s24 + $0x198] sm:$0xff] }
 0x3d8   : > { %v3968_v17 = vpack.c.bf16 %v11450_v34, %v11446_v58  ;;  %v5058_v59 = vpop.f32.mrf.mxu0  ;;  %v7674_v28 = vunpack.i.h.bf16 %v11286_v57  ;;  %v7678_v57 = vunpack.i.l.bf16 %v11208_v21 }
 0x3d9   : > { %v5131_v22 = vadd.f32 %v5058_v59, %v4127_v16  ;;  %v4948_v5 = vsel %vm971_vm4, %v4916_v3, %v7664_v0  ;;  %v11485_v38 = vpop.f32.mrf.mxu2  ;;  %v7688_v0 = vunpack.i.l.bf16 %v11328_v25  ;;  %v2087_v3 = vadd.f32 %v11344_v6, %v12172_v48 }
 0x3da   : > { %v4968_v8 = vpack.c.bf16 %v4948_v5, %v4947_v55  ;;  %v4854_v9 = vsel %vm872_vm1, %v5949_v62, %v7674_v28  ;;  %v4885_v12 = vsel %vm905_vm2, %v4853_v23, %v7678_v57  ;;  %v7699_v28 = vunpack.i.h.bf16 %v11355_v18  ;;  %v12173_v62 = vld [vmem:[#allocation40_spill] sm:$0xff] }
 0x3db   : > { %v5167_v19 = vadd.f32 %v11305_v24, %v5131_v22  ;;  %v4886_v21 = vsel %vm905_vm2, %v4854_v9, %v7679_v56  ;;  %v7689_v22 = vunpack.i.h.bf16 %v11328_v25  ;;  %v4917_v27 = vsel %vm938_vm3, %v4885_v12, %v7683_v61 }
 0x3dc   : > { %v4918_v10 = vsel %vm938_vm3, %v4886_v21, %v7684_v43  ;;  %v4949_v6 = vsel %vm971_vm4, %v4917_v27, %v7688_v0  ;;  %v7704_v57 = vunpack.i.h.bf16 %v11353_v60  ;;  %v7703_v18 = vunpack.i.l.bf16 %v11353_v60 }
 0x3dd   : > { %5200 = vst.msk [vmem:[%s11316_s10 + $0x28] sm:$0xff] %vm5194_vm6, %v5167_v19  ;;  %v11467_v33 = vpop.f32.mrf.mxu3  ;;  %v3126_v19 = vadd.f32 %v11348_v1, %v2087_v3  ;;  %v4950_v5 = vsel %vm971_vm4, %v4918_v10, %v7689_v22  ;;  %v5950_v1 = vld [vmem:[%s7889_s24 + $0x1a0] sm:$0xff]  ;;  %v4856_v23 = vsel %vm872_vm1, %v5951_v31, %v7699_v28  ;;  %v12174_v22 = vld [vmem:[#allocation68_spill] sm:$0xff] }
 0x3de   : > { %v2092_v0 = vadd.f32 %v11414_v46, %v12174_v22 }
 0x3e0   : > { %v5061_v2 = vpop.f32.mrf.mxu0  ;;  %v3128_v10 = vadd.f32 %v11422_v40, %v2092_v0 }
 0x3e1   : > { %v5132_v52 = vadd.f32 %v5061_v2, %v4128_v39  ;;  %5919 = vmatmul.msk.bf16.gmra.mxu3 %vm1855_vm5, %v3966_v51  ;;  %v4129_v51 = vadd.f32 %v11418_v36, %v10841_v37  ;;  %v11508_v36 = vpop.f32.mrf.mxu1  ;;  %v11513_v55 = vpop.f32.mrf.mxu2  ;;  %v4130_v39 = vadd.f32 %v4062_v50, %v3126_v19 }
 0x3e2   : > { %v7707_v50 = vpop.permute.xlu2 %7706 }
 0x3e3   : > { %v5168_v47 = vadd.f32 %v11305_v24, %v5132_v52  ;;  %6102 = vmatmul.msk.bf16.gmra.mxu0 %vm1855_vm5, %v4968_v8  ;;  %v4969_v8 = vpack.c.bf16 %v4950_v5, %v4949_v6  ;;  %v7708_v61 = vunpack.i.l.bf16 %v7707_v50 }
 0x3e5   : > { %5201 = vst.msk [vmem:[%s11316_s10 + $0x30] sm:$0xff] %vm5194_vm6, %v5168_v47  ;;  %v11493_v16 = vpop.f32.mrf.mxu3  ;;  %v2089_v47 = vadd.f32 %v11369_v42, %v12173_v62  ;;  %v4855_v42 = vsel %vm872_vm1, %v5950_v1, %v7698_v45  ;;  %v12175_v1 = vld [vmem:[#allocation25_spill] sm:$0xff] }
 0x3e6   : > { %v4887_v60 = vsel %vm905_vm2, %v4855_v42, %v7703_v18  ;;  %v4132_v46 = vadd.f32 %v11493_v16, %v3128_v10  ;;  %v2094_v31 = vadd.f32 %v11452_v13, %v12175_v1  ;;  %v7732_v16 = vpop.permute.xlu1 %7731 }
 0x3e7   : > { %v3127_v9 = vadd.f32 %v11385_v53, %v2089_v47  ;;  %v4888_v53 = vsel %vm905_vm2, %v4856_v23, %v7704_v57  ;;  %v4919_v48 = vsel %vm938_vm3, %v4887_v60, %v7708_v61  ;;  %v7729_v47 = vunpack.i.h.bf16 %v11410_v63  ;;  %v12176_v60 = vld [vmem:[#allocation2_spill] sm:$0xff] }
 0x3e8   : > { %v5063_v11 = vpop.f32.mrf.mxu0  ;;  %v7734_v34 = vunpack.i.h.bf16 %v7732_v16 }
 0x3e9   : > { %v5133_v59 = vadd.f32 %v5063_v11, %v4129_v51  ;;  %v11538_v43 = vpop.f32.mrf.mxu1  ;;  %v4131_v44 = vadd.f32 %v11467_v33, %v3127_v9  ;;  %v11543_v51 = vpop.f32.mrf.mxu2  ;;  %v7714_v11 = vunpack.i.h.bf16 %v11379_v14 }
 0x3ea   : > { %v7722_v27 = vpop.permute.xlu2 %7721 }
 0x3eb   : > { %v5169_v37 = vadd.f32 %v11305_v24, %v5133_v59  ;;  %v7713_v59 = vunpack.i.l.bf16 %v11379_v14 }
 0x3ed   : > { %5202 = vst.msk [vmem:[%s11316_s10 + $0x38] sm:$0xff] %vm5194_vm6, %v5169_v37  ;;  %v11515_v25 = vpop.f32.mrf.mxu3  ;;  %v4951_v14 = vsel %vm971_vm4, %v4919_v48, %v7713_v59 }
 0x3ee   : > { %v7747_v22 = vpop.permute.xlu1 %7746 }
 0x3f0   : > { %v5066_v2 = vpop.f32.mrf.mxu0 }
 0x3f1   : > { %v5134_v52 = vadd.f32 %v5066_v2, %v4130_v39  ;;  %5920 = vmatmul.msk.bf16.gmra.mxu3 %vm1855_vm5, %v3967_v4  ;;  %v7709_v4 = vunpack.i.h.bf16 %v7707_v50  ;;  %v11562_v6 = vpop.f32.mrf.mxu1  ;;  %v7724_v39 = vunpack.i.h.bf16 %v7722_v27  ;;  %v7723_v2 = vunpack.i.l.bf16 %v7722_v27  ;;  %v11564_v40 = vpop.f32.mrf.mxu2 }
 0x3f2   : > { %v3129_v50 = vadd.f32 %v11458_v41, %v2094_v31  ;;  %v7737_v9 = vpop.permute.xlu2 %7736  ;;  %v7749_v27 = vunpack.i.h.bf16 %v7747_v22 }
 0x3f3   : > { %v5170_v56 = vadd.f32 %v11305_v24, %v5134_v52  ;;  %6103 = vmatmul.msk.bf16.gmra.mxu0 %vm1855_vm5, %v4969_v8  ;;  %v4920_v33 = vsel %vm938_vm3, %v4888_v53, %v7709_v4  ;;  %v5952_v52 = vld [vmem:[%s7889_s24 + $0x1b8] sm:$0xff]  ;;  %v5953_v8 = vld [vmem:[%s7889_s24 + $0x1c0] sm:$0xff]  ;;  %v7739_v4 = vunpack.i.h.bf16 %v7737_v9  ;;  %v7738_v61 = vunpack.i.l.bf16 %v7737_v9 }
 0x3f4   : > { %v4952_v19 = vsel %vm971_vm4, %v4920_v33, %v7714_v11  ;;  %v4858_v57 = vsel %vm872_vm1, %v5953_v8, %v7724_v39  ;;  %v4857_v13 = vsel %vm872_vm1, %v5952_v52, %v7723_v2  ;;  %v4133_v58 = vadd.f32 %v11515_v25, %v3129_v50  ;;  %v5955_v39 = vld [vmem:[%s7889_s24 + $0x1d0] sm:$0xff] }
 0x3f5   : > { %5203 = vst.msk [vmem:[%s11316_s10 + $0x40] sm:$0xff] %vm5194_vm6, %v5170_v56  ;;  %v11540_v29 = vpop.f32.mrf.mxu3  ;;  %v4970_v45 = vpack.c.bf16 %v4952_v19, %v4951_v14  ;;  %v7728_v56 = vunpack.i.l.bf16 %v11410_v63  ;;  %v4890_v63 = vsel %vm905_vm2, %v4858_v57, %v7729_v47  ;;  %v2097_v53 = vadd.f32 %v11475_v7, %v12176_v60 }
 0x3f6   : > { %v4922_v25 = vsel %vm938_vm3, %v4890_v63, %v7734_v34  ;;  %v7748_v14 = vunpack.i.l.bf16 %v7747_v22  ;;  %v4860_v31 = vsel %vm872_vm1, %v5955_v39, %v7749_v27  ;;  %v7762_v57 = vpop.permute.xlu1 %7761 }
 0x3f7   : > { %v4889_v23 = vsel %vm905_vm2, %v4857_v13, %v7728_v56  ;;  %v3130_v59 = vadd.f32 %v11485_v38, %v2097_v53  ;;  %v4954_v48 = vsel %vm971_vm4, %v4922_v25, %v7739_v4  ;;  %v12177_v38 = vld [vmem:[#allocation3_spill] sm:$0xff]  ;;  %v7763_v9 = vunpack.i.l.bf16 %v7762_v57 }
 0x3f8   : > { %v5068_v12 = vpop.f32.mrf.mxu0  ;;  %v2099_v2 = vadd.f32 %v11508_v36, %v12177_v38 }
 0x3f9   : > { %v5135_v21 = vadd.f32 %v5068_v12, %v4131_v44  ;;  %v11588_v44 = vpop.f32.mrf.mxu1  ;;  %v11595_v11 = vpop.f32.mrf.mxu2  ;;  %v4134_v33 = vadd.f32 %v11540_v29, %v3130_v59 }
 0x3fa   : > { %v7757_v29 = vpop.permute.xlu0 %7756  ;;  %v3131_v1 = vadd.f32 %v11513_v55, %v2099_v2 }
 0x3fb   : > { %v5171_v3 = vadd.f32 %v11305_v24, %v5135_v21  ;;  %v7759_v56 = vunpack.i.h.bf16 %v7757_v29  ;;  %v7758_v50 = vunpack.i.l.bf16 %v7757_v29 }
 0x3fd   : > { %5204 = vst.msk [vmem:[%s11316_s10 + $0x48] sm:$0xff] %vm5194_vm6, %v5171_v3  ;;  %v11557_v37 = vpop.f32.mrf.mxu3 }
 0x3fe   : > { %v4135_v36 = vadd.f32 %v11557_v37, %v3131_v1 }
 0x400   : > { %v5071_v5 = vpop.f32.mrf.mxu0 }
 0x401   : > { %v5136_v28 = vadd.f32 %v5071_v5, %v4132_v46  ;;  %5921 = vmatmul.msk.bf16.gmra.mxu3 %vm1855_vm5, %v3968_v17  ;;  %v7733_v17 = vunpack.i.l.bf16 %v7732_v16  ;;  %v7752_v46 = vpop.permute.xlu2 %7751  ;;  %v5954_v5 = vld [vmem:[%s7889_s24 + $0x1c8] sm:$0xff]  ;;  %v3080_v16 = vpop.f32.mrf.mxu2 }
 0x402   : > { %v7754_v52 = vunpack.i.h.bf16 %v7752_v46  ;;  %v7753_v8 = vunpack.i.l.bf16 %v7752_v46  ;;  %v12180_v46 = vld [vmem:[#allocation43_spill] sm:$0xff] }
 0x403   : > { %v5172_v62 = vadd.f32 %v11305_v24, %v5136_v28  ;;  %6104 = vmatmul.msk.bf16.gmra.mxu0 %vm1855_vm5, %v4970_v45  ;;  %v4921_v12 = vsel %vm938_vm3, %v4889_v23, %v7733_v17  ;;  %v2108_v45 = vpop.f32.mrf.mxu1  ;;  %v7764_v17 = vunpack.i.h.bf16 %v7762_v57  ;;  %v12178_v23 = vld [vmem:[#allocation60_spill] sm:$0xff] }
 0x404   : > { %v4953_v0 = vsel %vm971_vm4, %v4921_v12, %v7738_v61  ;;  %v2102_v63 = vadd.f32 %v11538_v43, %v12178_v23 }
 0x405   : > { %5205 = vst.msk [vmem:[%s11316_s10 + $0x50] sm:$0xff] %vm5194_vm6, %v5172_v62  ;;  %v11583_v18 = vpop.f32.mrf.mxu3  ;;  %v4971_v10 = vpack.c.bf16 %v4954_v48, %v4953_v0  ;;  %v4859_v62 = vsel %vm872_vm1, %v5954_v5, %v7748_v14  ;;  %v12179_v0 = vld [vmem:[#allocation17_spill] sm:$0xff]  ;;  %v2107_v5 = vadd.f32 %v11588_v44, %v12180_v46 }
 0x406   : > { %v4891_v13 = vsel %vm905_vm2, %v4859_v62, %v7753_v8  ;;  %v3132_v4 = vadd.f32 %v11543_v51, %v2102_v63  ;;  %v2104_v48 = vadd.f32 %v11562_v6, %v12179_v0 }
 0x407   : > { %v3134_v39 = vadd.f32 %v11595_v11, %v2107_v5  ;;  %v12186_v5 = vld [vmem:[#allocation62_spill] sm:$0xff] }
 0x408   : > { %v5073_v42 = vpop.f32.mrf.mxu0  ;;  %v4136_v25 = vadd.f32 %v11583_v18, %v3132_v4 }
 0x409   : > { %v5137_v41 = vadd.f32 %v5073_v42, %v4133_v58  ;;  %v4892_v58 = vsel %vm905_vm2, %v4860_v31, %v7754_v52  ;;  %v3083_v43 = vpop.f32.mrf.mxu2  ;;  %v12181_v52 = vld [vmem:[#allocation13_spill] sm:$0xff] }
 0x40a   : > { %v4924_v42 = vsel %vm938_vm3, %v4892_v58, %v7759_v56  ;;  %v2109_v8 = vadd.f32 %v2108_v45, %v12181_v52  ;;  %v12182_v56 = vld [vmem:[#allocation4_spill] sm:$0xff] }
 0x40b   : > { %v5173_v21 = vadd.f32 %v11305_v24, %v5137_v41  ;;  %v4923_v41 = vsel %vm938_vm3, %v4891_v13, %v7758_v50  ;;  %v2111_v61 = vpop.f32.mrf.mxu1  ;;  %v4956_v53 = vsel %vm971_vm4, %v4924_v42, %v7764_v17  ;;  %v12183_v17 = vld [vmem:[#allocation59_spill] sm:$0xff] }
 0x40c   : > { %v4955_v60 = vsel %vm971_vm4, %v4923_v41, %v7763_v9  ;;  %v3135_v31 = vadd.f32 %v3080_v16, %v2109_v8  ;;  %v2112_v50 = vadd.f32 %v2111_v61, %v12182_v56  ;;  %v12187_v8 = vld [vmem:[#allocation23_spill] sm:$0xff] }
 0x40d   : > { %5206 = vst.msk [vmem:[%s11316_s10 + $0x58] sm:$0xff] %vm5194_vm6, %v5173_v21  ;;  %v4079_v7 = vpop.f32.mrf.mxu3  ;;  %v4972_v59 = vpack.c.bf16 %v4956_v53, %v4955_v60  ;;  %v12184_v53 = vld [vmem:[#allocation30_spill] sm:$0xff] }
 0x40e   : > { %v3136_v13 = vadd.f32 %v3083_v43, %v2112_v50 }
 0x410   : > { %v5076_v3 = vpop.f32.mrf.mxu0 }
 0x411   : > { %v5138_v19 = vadd.f32 %v5076_v3, %v4134_v33  ;;  %v3133_v33 = vadd.f32 %v11564_v40, %v2104_v48 }
 0x413   : > { %v5174_v28 = vadd.f32 %v11305_v24, %v5138_v19  ;;  %6105 = vmatmul.msk.bf16.gmra.mxu0 %vm1855_vm5, %v4971_v10  ;;  %v4137_v10 = vadd.f32 %v4079_v7, %v3133_v33  ;;  %v2113_v27 = vpop.f32.mrf.mxu1  ;;  %v3085_v19 = vpop.f32.mrf.mxu2 }
 0x414   : > { %v2114_v9 = vadd.f32 %v2113_v27, %v12183_v17 }
 0x415   : > { %5207 = vst.msk [vmem:[%s11316_s10 + $0x60] sm:$0xff] %vm5194_vm6, %v5174_v28  ;;  %v4082_v47 = vpop.f32.mrf.mxu3 }
 0x416   : > { %v4138_v40 = vadd.f32 %v4082_v47, %v3134_v39  ;;  %v3137_v63 = vadd.f32 %v3085_v19, %v2114_v9 }
 0x418   : > { %v5078_v34 = vpop.f32.mrf.mxu0 }
 0x419   : > { %v5139_v55 = vadd.f32 %v5078_v34, %v4135_v36 }
 0x41b   : > { %v5175_v37 = vadd.f32 %v11305_v24, %v5139_v55  ;;  %v2116_v7 = vpop.f32.mrf.mxu1  ;;  %v3088_v1 = vpop.f32.mrf.mxu2 }
 0x41d   : > { %5208 = vst.msk [vmem:[%s11316_s10 + $0x68] sm:$0xff] %vm5194_vm6, %v5175_v37  ;;  %v4084_v12 = vpop.f32.mrf.mxu3 }
 0x41e   : > { %v4139_v62 = vadd.f32 %v4084_v12, %v3135_v31  ;;  %v2117_v12 = vadd.f32 %v2116_v7, %v12184_v53 }
 0x420   : > { %v5081_v21 = vpop.f32.mrf.mxu0  ;;  %v3138_v43 = vadd.f32 %v3088_v1, %v2117_v12 }
 0x421   : > { %v5140_v22 = vadd.f32 %v5081_v21, %v4136_v25 }
 0x423   : > { %v5176_v51 = vadd.f32 %v11305_v24, %v5140_v22  ;;  %6106 = vmatmul.msk.bf16.gmra.mxu0 %vm1855_vm5, %v4972_v59  ;;  %v2118_v57 = vpop.f32.mrf.mxu1  ;;  %v3090_v45 = vpop.f32.mrf.mxu2 }
 0x425   : > { %5209 = vst.msk [vmem:[%s11316_s10 + $0x70] sm:$0xff] %vm5194_vm6, %v5176_v51  ;;  %v4087_v3 = vpop.f32.mrf.mxu3  ;;  %v12185_v51 = vld [vmem:[#allocation45_spill] sm:$0xff] }
 0x426   : > { %v4140_v58 = vadd.f32 %v4087_v3, %v3136_v13  ;;  %v2119_v33 = vadd.f32 %v2118_v57, %v12185_v51 }
 0x428   : > { %v5083_v18 = vpop.f32.mrf.mxu0  ;;  %v3139_v27 = vadd.f32 %v3090_v45, %v2119_v33 }
 0x429   : > { %v5141_v14 = vadd.f32 %v5083_v18, %v4137_v10 }
 0x42b   : > { %v5177_v6 = vadd.f32 %v11305_v24, %v5141_v14  ;;  %v2121_v42 = vpop.f32.mrf.mxu1  ;;  %v3093_v37 = vpop.f32.mrf.mxu2 }
 0x42d   : > { %5210 = vst.msk [vmem:[%s11316_s10 + $0x78] sm:$0xff] %vm5194_vm6, %v5177_v6  ;;  %v4089_v38 = vpop.f32.mrf.mxu3  ;;  %v2122_v6 = vadd.f32 %v2121_v42, %v12186_v5 }
 0x42e   : > { %v4141_v41 = vadd.f32 %v4089_v38, %v3137_v63 }
 0x430   : > { %v5086_v2 = vpop.f32.mrf.mxu0 }
 0x431   : > { %v5142_v28 = vadd.f32 %v5086_v2, %v4138_v40  ;;  %v3140_v40 = vadd.f32 %v3093_v37, %v2122_v6 }
 0x433   : > { %v5178_v29 = vadd.f32 %v11305_v24, %v5142_v28  ;;  %v2123_v59 = vpop.f32.mrf.mxu1  ;;  %v3095_v48 = vpop.f32.mrf.mxu2 }
 0x435   : > { %5211 = vst.msk [vmem:[%s11316_s10 + $0x80] sm:$0xff] %vm5194_vm6, %v5178_v29  ;;  %v4092_v44 = vpop.f32.mrf.mxu3  ;;  %v2124_v29 = vadd.f32 %v2123_v59, %v12187_v8 }
 0x436   : > { %v4142_v21 = vadd.f32 %v4092_v44, %v3138_v43 }
 0x437   : > { %v3141_v44 = vadd.f32 %v3095_v48, %v2124_v29 }
 0x438   : > { %v5088_v11 = vpop.f32.mrf.mxu0 }
 0x439   : > { %v5143_v36 = vadd.f32 %v5088_v11, %v4139_v62 }
 0x43b   : > { %v5179_v47 = vadd.f32 %v11305_v24, %v5143_v36  ;;  %v2126_v46 = vpop.f32.mrf.mxu1  ;;  %v3098_v38 = vpop.f32.mrf.mxu2 }
 0x43d   : > { %5212 = vst.msk [vmem:[%s11316_s10 + $0x88] sm:$0xff] %vm5194_vm6, %v5179_v47  ;;  %v4094_v34 = vpop.f32.mrf.mxu3  ;;  %v2127_v47 = vadd.f32 %v2126_v46, %v11000_v49 }
 0x43e   : > { %v4143_v18 = vadd.f32 %v4094_v34, %v3139_v27 }
 0x43f   : > { %v3142_v13 = vadd.f32 %v3098_v38, %v2127_v47 }
 0x440   : > { %v5091_v16 = vpop.f32.mrf.mxu0 }
 0x441   : > { %v5144_v55 = vadd.f32 %v5091_v16, %v4140_v58 }
 0x443   : > { %v5180_v23 = vadd.f32 %v11305_v24, %v5144_v55  ;;  %v2128_v31 = vpop.f32.mrf.mxu1  ;;  %v3100_v62 = vpop.f32.mrf.mxu2 }
 0x444   : > { %v2129_v9 = vadd.f32 %v2128_v31, %v11024_v26 }
 0x445   : > { %5213 = vst.msk [vmem:[%s11316_s10 + $0x90] sm:$0xff] %vm5194_vm6, %v5180_v23  ;;  %v4097_v60 = vpop.f32.mrf.mxu3 }
 0x446   : > { %v4144_v28 = vadd.f32 %v4097_v60, %v3140_v40  ;;  %v3143_v63 = vadd.f32 %v3100_v62, %v2129_v9 }
 0x448   : > { %v5093_v4 = vpop.f32.mrf.mxu0 }
 0x449   : > { %v5145_v61 = vadd.f32 %v5093_v4, %v4141_v41 }
 0x44b   : > { %v5181_v25 = vadd.f32 %v11305_v24, %v5145_v61  ;;  %v2131_v45 = vpop.f32.mrf.mxu1  ;;  %v3103_v34 = vpop.f32.mrf.mxu2 }
 0x44c   : > { %v2132_v61 = vadd.f32 %v2131_v45, %v11047_v32 }
 0x44d   : > { %5214 = vst.msk [vmem:[%s11316_s10 + $0x98] sm:$0xff] %vm5194_vm6, %v5181_v25  ;;  %v4099_v10 = vpop.f32.mrf.mxu3 }
 0x44e   : > { %v4145_v11 = vadd.f32 %v4099_v10, %v3141_v44  ;;  %v3144_v12 = vadd.f32 %v3103_v34, %v2132_v61 }
 0x450   : > { %v5096_v22 = vpop.f32.mrf.mxu0 }
 0x451   : > { %v5146_v0 = vadd.f32 %v5096_v22, %v4142_v21 }
 0x453   : > { %v5182_v3 = vadd.f32 %v11305_v24, %v5146_v0  ;;  %v2133_v42 = vpop.f32.mrf.mxu1  ;;  %v3105_v4 = vpop.f32.mrf.mxu2 }
 0x454   : > { %v2134_v59 = vadd.f32 %v2133_v42, %v11071_v20 }
 0x455   : > { %5215 = vst.msk [vmem:[%s11316_s10 + $0xa0] sm:$0xff] %vm5194_vm6, %v5182_v3  ;;  %v4102_v2 = vpop.f32.mrf.mxu3 }
 0x456   : > { %v4146_v58 = vadd.f32 %v4102_v2, %v3142_v13  ;;  %v3145_v48 = vadd.f32 %v3105_v4, %v2134_v59 }
 0x458   : > { %v5098_v14 = vpop.f32.mrf.mxu0 }
 0x459   : > { %v5147_v19 = vadd.f32 %v5098_v14, %v4143_v18 }
 0x45b   : > { %v5183_v39 = vadd.f32 %v11305_v24, %v5147_v19  ;;  %v2136_v21 = vpop.f32.mrf.mxu1  ;;  %v3108_v0 = vpop.f32.mrf.mxu2 }
 0x45c   : > { %v2137_v10 = vadd.f32 %v2136_v21, %v11089_v30 }
 0x45d   : > { %5216 = vst.msk [vmem:[%s11316_s10 + $0xa8] sm:$0xff] %vm5194_vm6, %v5183_v39  ;;  %v4104_v36 = vpop.f32.mrf.mxu3 }
 0x45e   : > { %v4147_v49 = vadd.f32 %v4104_v36, %v3143_v63  ;;  %v3146_v14 = vadd.f32 %v3108_v0, %v2137_v10 }
 0x460   : > { %v5101_v7 = vpop.f32.mrf.mxu0 }
 0x461   : > { %v5148_v52 = vadd.f32 %v5101_v7, %v4144_v28 }
 0x463   : > { %v5184_v1 = vadd.f32 %v11305_v24, %v5148_v52  ;;  %v2138_v18 = vpop.f32.mrf.mxu1  ;;  %v3110_v20 = vpop.f32.mrf.mxu2 }
 0x464   : > { %v2139_v39 = vadd.f32 %v2138_v18, %v11121_v35 }
 0x465   : > { %5217 = vst.msk [vmem:[%s11316_s10 + $0xb0] sm:$0xff] %vm5194_vm6, %v5184_v1  ;;  %v4107_v17 = vpop.f32.mrf.mxu3 }
 0x466   : > { %v4148_v26 = vadd.f32 %v4107_v17, %v3144_v12  ;;  %v3147_v40 = vadd.f32 %v3110_v20, %v2139_v39 }
 0x468   : > { %v5103_v56 = vpop.f32.mrf.mxu0 }
 0x469   : > { %v5149_v50 = vadd.f32 %v5103_v56, %v4145_v11 }
 0x46b   : > { %v5185_v57 = vadd.f32 %v11305_v24, %v5149_v50  ;;  %v2141_v30 = vpop.f32.mrf.mxu1  ;;  %v3113_v28 = vpop.f32.mrf.mxu2 }
 0x46c   : > { %v2142_v29 = vadd.f32 %v2141_v30, %v11145_v15 }
 0x46d   : > { %5218 = vst.msk [vmem:[%s11316_s10 + $0xb8] sm:$0xff] %vm5194_vm6, %v5185_v57  ;;  %v4109_v53 = vpop.f32.mrf.mxu3 }
 0x46e   : > { %v4149_v51 = vadd.f32 %v4109_v53, %v3145_v48  ;;  %v3148_v31 = vadd.f32 %v3113_v28, %v2142_v29 }
 0x470   : > { %v5106_v16 = vpop.f32.mrf.mxu0 }
 0x471   : > { %v5150_v55 = vadd.f32 %v5106_v16, %v4146_v58 }
 0x473   : > { %v5186_v23 = vadd.f32 %v11305_v24, %v5150_v55  ;;  %v2143_v44 = vpop.f32.mrf.mxu1  ;;  %v3115_v36 = vpop.f32.mrf.mxu2 }
 0x474   : > { %v2144_v56 = vadd.f32 %v2143_v44, %v11194_v54 }
 0x475   : > { %5219 = vst.msk [vmem:[%s11316_s10 + $0xc0] sm:$0xff] %vm5194_vm6, %v5186_v23  ;;  %v4112_v32 = vpop.f32.mrf.mxu3 }
 0x476   : > { %v4150_v19 = vadd.f32 %v4112_v32, %v3146_v14  ;;  %v3149_v57 = vadd.f32 %v3115_v36, %v2144_v56 }
 0x478   : > { %v5108_v41 = vpop.f32.mrf.mxu0 }
 0x479   : > { %v5151_v37 = vadd.f32 %v5108_v41, %v4147_v49 }
 0x47b   : > { %v5187_v60 = vadd.f32 %v11305_v24, %v5151_v37 }
 0x47d   : > { %5220 = vst.msk [vmem:[%s11316_s10 + $0xc8] sm:$0xff] %vm5194_vm6, %v5187_v60  ;;  %v4114_v46 = vpop.f32.mrf.mxu3 }
 0x47e   : > { %v4151_v2 = vadd.f32 %v4114_v46, %v3147_v40 }
 0x480   : > { %v5111_v25 = vpop.f32.mrf.mxu0 }
 0x481   : > { %v5152_v43 = vadd.f32 %v5111_v25, %v4148_v26 }
 0x483   : > { %v5188_v22 = vadd.f32 %v11305_v24, %v5152_v43 }
 0x485   : > { %5221 = vst.msk [vmem:[%s11316_s10 + $0xd0] sm:$0xff] %vm5194_vm6, %v5188_v22  ;;  %v4117_v8 = vpop.f32.mrf.mxu3 }
 0x486   : > { %v4152_v35 = vadd.f32 %v4117_v8, %v3148_v31 }
 0x488   : > { %v5113_v33 = vpop.f32.mrf.mxu0 }
 0x489   : > { %v5153_v3 = vadd.f32 %v5113_v33, %v4149_v51 }
 0x48b   : > { %v5189_v27 = vadd.f32 %v11305_v24, %v5153_v3 }
 0x48d   : > { %5222 = vst.msk [vmem:[%s11316_s10 + $0xd8] sm:$0xff] %vm5194_vm6, %v5189_v27  ;;  %v4119_v47 = vpop.f32.mrf.mxu3 }
 0x48e   : > { %v4153_v15 = vadd.f32 %v4119_v47, %v3149_v57 }
 0x490   : > { %v5116_v5 = vpop.f32.mrf.mxu0 }
 0x491   : > { %v5154_v6 = vadd.f32 %v5116_v5, %v4150_v19 }
 0x493   : > { %v5190_v38 = vadd.f32 %v11305_v24, %v5154_v6 }
 0x495   : > { %5223 = vst.msk [vmem:[%s11316_s10 + $0xe0] sm:$0xff] %vm5194_vm6, %v5190_v38 }
 0x498   : > { %v5118_v7 = vpop.f32.mrf.mxu0 }
 0x499   : > { %v5155_v52 = vadd.f32 %v5118_v7, %v4151_v2 }
 0x49b   : > { %v5191_v1 = vadd.f32 %v11305_v24, %v5155_v52 }
 0x49d   : > { %5224 = vst.msk [vmem:[%s11316_s10 + $0xe8] sm:$0xff] %vm5194_vm6, %v5191_v1 }
 0x4a0   : > { %v5121_v62 = vpop.f32.mrf.mxu0 }
 0x4a1   : > { %v5156_v11 = vadd.f32 %v5121_v62, %v4152_v35 }
 0x4a3   : > { %v5192_v50 = vadd.f32 %v11305_v24, %v5156_v11 }
 0x4a5   : > { %5225 = vst.msk [vmem:[%s11316_s10 + $0xf0] sm:$0xff] %vm5194_vm6, %v5192_v50 }
 0x4a8   : > { %v5123_v13 = vpop.f32.mrf.mxu0 }
 0x4a9   : > { %v5157_v45 = vadd.f32 %v5123_v13, %v4153_v15 }
 0x4ab   : > { %v5193_v58 = vadd.f32 %v11305_v24, %v5157_v45 }
 0x4ad   : > { %5226 = vst.msk [vmem:[%s11316_s10 + $0xf8] sm:$0xff] %vm5194_vm6, %v5193_v58 }
 0x4ae PF: > { %s13_s16 = sadd.s32 1, %s7824_s16   ;;  %s12188_s12 = smov %s7816_s14 }
 0x4af   : > { %p10_p7 = scmp.ge.s32.totalorder %s13_s16, 10   ;;  %s12189_s13 = smov %s7820_s15 }
 0x4b0   : > { %s12190_s14 = smov %s12193_s17  ;;  %s12191_s15 = smov %s12197_s18 }
 0x4b1   :  { %12 = sbr.rel (!%p10_p7) target bundleno = 3 (0x3), region = 71 }

</bundles_post_ra>
